<compile_context>
chip_gen: v7x
topology: tpu7x:2x2x1
jax: 0.10.0
libtpu: 0.0.40
codegen_flags: <defaults>
</compile_context>

<pallas_src>
import jax
import jax.numpy as jnp
from jax import lax
from jax.experimental import pallas as pl
from jax.experimental.pallas import tpu as pltpu


# ----------------------------------------------------------------------------
# Fused GNN kernel factory.
# refs layout: node, edge, inc, adj_in, ec_w, ec_b,
#              [w, w_al, w_ar, b, head_sel] * L, mean_mat, out
# ----------------------------------------------------------------------------
def _make_gnn_kernel(layer_cfgs, approx_recip=True):
    def recip(x):
        # approx=True -> EUP vrcp (free slot); set approx_recip=False for exact division.
        return pl.reciprocal(x, approx=True) if approx_recip else 1.0 / x

    def elu(x):
        # Clamp the unselected branch so exp() never produces inf.
        return jnp.where(x > 0, x, jnp.exp(jnp.minimum(x, 0.0)) - 1.0)

    def kernel(*refs):
        node_ref, edge_ref, inc_ref, adj_ref, ec_w_ref, ec_b_ref = refs[:6]
        mean_ref = refs[-2]
        o_ref = refs[-1]
        layer_refs = refs[6:-2]

        # 0/1 structure matrices are stored bf16 (exact); upcast once so MXU
        # contractions and masking stay f32-exact.
        adj_f = adj_ref[...].astype(jnp.float32)      # (N, N) adj_f[v, u] = 1 iff u->v
        adj_b = adj_f > 0.0
        inc_f = inc_ref[...].astype(jnp.float32)      # (N, M) inc_f[v, e] = 1 iff dst(e)=v

        # ---- InputInitializer: concat(node, sum of incoming edge feats) ----
        node_edge = jnp.dot(inc_f, edge_ref[...], preferred_element_type=jnp.float32)
        feats = jnp.concatenate([node_ref[...], node_edge], axis=1)       # (N, Dc)

        # ---- EdgeGraphConv: linear(sum over in-neighbors) ----
        agg = jnp.dot(adj_f, feats, preferred_element_type=jnp.float32)   # (N, Dc)
        feats = (jnp.dot(agg, ec_w_ref[...], preferred_element_type=jnp.float32)
                 + ec_b_ref[...])

        # ---- GAT stack ----
        for li, (H, F, agg_mode, apply_elu) in enumerate(layer_cfgs):
            w_ref, wal_ref, war_ref, b_ref, hs_ref = layer_refs[5 * li:5 * li + 5]

            z = jnp.dot(feats, w_ref[...], preferred_element_type=jnp.float32)    # (N, H*F)
            # Folded attention projections: el/er straight from feats (no z dependency).
            er = jnp.dot(feats, war_ref[...], preferred_element_type=jnp.float32)  # (N, H) dst term
            el_t = lax.dot_general(wal_ref[...], feats, (((0,), (1,)), ((), ())),
                                   preferred_element_type=jnp.float32)             # (H, N) src term

            alphas, zparts = [], []
            for h in range(H):
                # score[v, u] = LeakyReLU(el[u,h] + er[v,h]); softmax over in-edges of v.
                s = er[:, h:h + 1] + el_t[h:h + 1, :]                 # (N_dst, N_src)
                s = jnp.where(s > 0, s, 0.2 * s)                      # LeakyReLU(0.2)
                s = jnp.where(adj_b, s, jnp.float32(-1e30))           # mask BEFORE max (finite)
                m = jnp.max(s, axis=1, keepdims=True)                 # per-dst masked max
                p = jnp.exp(s - m) * adj_f                            # zero non-edges exactly
                # 1e-9 floor: dst nodes with no in-edges get alpha == 0 (zero aggregation),
                # a deliberate, documented difference from DGL's edge_softmax (which NaNs).
                denom = jnp.sum(p, axis=1, keepdims=True) + jnp.float32(1e-9)
                alphas.append(p * recip(denom))                       # (N_dst, N_src)
                zparts.append(z * hs_ref[h:h + 1, :])                 # keep only head h's cols

            # Merged aggregation: one MXU contraction with K = H*N instead of H thin matmuls.
            alpha_slab = jnp.concatenate(alphas, axis=1)              # (N_dst, H*N_src)
            zbig = jnp.concatenate(zparts, axis=0)                    # (H*N_src, H*F) block-diag
            out = jnp.dot(alpha_slab, zbig, preferred_element_type=jnp.float32)  # (N_dst, H*F)

            if agg_mode == "flatten":
                out = out + b_ref[...]
            else:  # mean over heads via a tiny (H*F, F) projection (bias pre-averaged on host)
                out = (jnp.dot(out, mean_ref[...], preferred_element_type=jnp.float32)
                       + b_ref[...])
            if apply_elu:
                out = elu(out)
            feats = out

        o_ref[...] = feats   # single store; TODO(synk): pad/keep H*F for lane density at scale

    return kernel


# ----------------------------------------------------------------------------
# GNN forward (InputInitializer -> EdgeGraphConv -> GAT), one pallas_call.
#   node_feats (N, D0) f32, edge_feats (M, D1) f32
#   inc (N, M): inc[v, e] = 1 iff dst(e) == v     (passed as bf16 to the kernel)
#   adj_in (N, N): adj_in[v, u] = 1 iff edge u->v (passed as bf16 to the kernel)
# ----------------------------------------------------------------------------
def gnn_forward(node_feats, edge_feats, inc, adj_in, params,
                gat_hidden_feats, num_heads, approx_recip=True):
    N, D0 = node_feats.shape
    M, D1 = edge_feats.shape
    Dc = D0 + D1
    n_layers = len(gat_hidden_feats)

    flat_inputs = [node_feats, edge_feats,
                   inc.astype(jnp.bfloat16), adj_in.astype(jnp.bfloat16),
                   params["ec_w"], params["ec_b"].reshape(1, Dc)]
    layer_cfgs = []
    in_dim = Dc
    for li, (F, H) in enumerate(zip(gat_hidden_feats, num_heads)):
        last = li == n_layers - 1
        agg_mode = "mean" if last else "flatten"
        W = params[f"gat{li}_w"]                                   # (in_dim, H*F)
        al = params[f"gat{li}_al"]                                 # (H, F)
        ar = params[f"gat{li}_ar"]                                 # (H, F)
        b = params[f"gat{li}_b"]                                   # (H*F,)
        W3 = W.reshape(in_dim, H, F)
        # Fold the per-head attention vectors into the weight (el = feats @ w_al, etc.)
        w_al = jnp.einsum("dhf,hf->dh", W3, al)                    # (in_dim, H)
        w_ar = jnp.einsum("dhf,hf->dh", W3, ar)                    # (in_dim, H)
        head_sel = jnp.repeat(jnp.eye(H, dtype=jnp.float32), F, axis=1)  # (H, H*F)
        if agg_mode == "mean":
            b_in = b.reshape(H, F).mean(axis=0).reshape(1, F)      # mean(out+b)=mean(out)+mean(b)
        else:
            b_in = b.reshape(1, H * F)
        flat_inputs += [W, w_al, w_ar, b_in, head_sel]
        layer_cfgs.append((H, F, agg_mode, not last))
        in_dim = H * F if not last else F

    F_last, H_last = gat_hidden_feats[-1], num_heads[-1]
    mean_mat = jnp.tile(jnp.eye(F_last, dtype=jnp.float32) / H_last, (H_last, 1))  # (H*F, F)
    flat_inputs.append(mean_mat)

    kernel = _make_gnn_kernel(tuple(layer_cfgs), approx_recip)
    in_specs = [pl.BlockSpec(x.shape, lambda i: (0, 0)) for x in flat_inputs]

    return pl.pallas_call(
        kernel,
        out_shape=jax.ShapeDtypeStruct((N, F_last), jnp.float32),
        grid=(1,),
        in_specs=in_specs,
        out_specs=pl.BlockSpec((N, F_last), lambda i: (0, 0)),
        compiler_params=pltpu.CompilerParams(
            dimension_semantics=("arbitrary",)),
    )(*flat_inputs)


if __name__ == "__main__":
    key = jax.random.PRNGKey(0)

    # Batch of 8 ring graphs (16 nodes each, edges both directions) -> block-diagonal
    # structure matrices with N=128 nodes / M=256 edges so MXU/vreg slabs are dense.
    n_per, B = 16, 8
    N = n_per * B                                   # 128
    D0, D1 = 16, 8
    gat_hidden_feats = [32, 16]
    num_heads = [4, 4]

    base = jnp.arange(n_per)
    src_l = jnp.concatenate([base, (base + 1) % n_per])
    dst_l = jnp.concatenate([(base + 1) % n_per, base])
    offs = (jnp.arange(B) * n_per)[:, None]
    src = (src_l[None, :] + offs).reshape(-1)
    dst = (dst_l[None, :] + offs).reshape(-1)
    M = int(src.shape[0])                           # 256 edges

    adj_in = jnp.zeros((N, N), jnp.float32).at[dst, src].set(1.0)        # adj_in[v, u]
    inc = jnp.zeros((N, M), jnp.float32).at[dst, jnp.arange(M)].set(1.0)  # inc[v, e]

    k = iter(jax.random.split(key, 16))
    node_feats = jax.random.normal(next(k), (N, D0), jnp.float32)
    edge_feats = jax.random.normal(next(k), (M, D1), jnp.float32)

    Dc = D0 + D1
    params = {
        "ec_w": 0.1 * jax.random.normal(next(k), (Dc, Dc), jnp.float32),
        "ec_b": 0.05 * jax.random.normal(next(k), (Dc,), jnp.float32),
    }
    in_dim = Dc
    for li, (hf, nh) in enumerate(zip(gat_hidden_feats, num_heads)):
        params[f"gat{li}_w"] = 0.1 * jax.random.normal(next(k), (in_dim, nh * hf), jnp.float32)
        params[f"gat{li}_al"] = 0.1 * jax.random.normal(next(k), (nh, hf), jnp.float32)
        params[f"gat{li}_ar"] = 0.1 * jax.random.normal(next(k), (nh, hf), jnp.float32)
        params[f"gat{li}_b"] = jnp.zeros((nh * hf,), jnp.float32)
        in_dim = nh * hf if li < len(gat_hidden_feats) - 1 else hf

    out = gnn_forward(node_feats, edge_feats, inc, adj_in, params,
                      gat_hidden_feats, num_heads)
    jax.block_until_ready(out)
    assert out.shape == (N, gat_hidden_feats[-1]) and out.dtype == jnp.float32
    assert bool(jnp.all(jnp.isfinite(out)))
    print("KERNEL_OK")
</pallas_src>

<mosaic_0001>
module attributes {stable_mosaic.version = 11 : i64} {
  func.func @kernel(%arg0: i32, %arg1: memref<128x16xf32, #tpu.memory_space<vmem>>, %arg2: memref<256x8xf32, #tpu.memory_space<vmem>>, %arg3: memref<128x256xbf16, #tpu.memory_space<vmem>>, %arg4: memref<128x128xbf16, #tpu.memory_space<vmem>>, %arg5: memref<24x24xf32, #tpu.memory_space<vmem>>, %arg6: memref<1x24xf32, #tpu.memory_space<vmem>>, %arg7: memref<24x128xf32, #tpu.memory_space<vmem>>, %arg8: memref<24x4xf32, #tpu.memory_space<vmem>>, %arg9: memref<24x4xf32, #tpu.memory_space<vmem>>, %arg10: memref<1x128xf32, #tpu.memory_space<vmem>>, %arg11: memref<4x128xf32, #tpu.memory_space<vmem>>, %arg12: memref<128x64xf32, #tpu.memory_space<vmem>>, %arg13: memref<128x4xf32, #tpu.memory_space<vmem>>, %arg14: memref<128x4xf32, #tpu.memory_space<vmem>>, %arg15: memref<1x16xf32, #tpu.memory_space<vmem>>, %arg16: memref<4x64xf32, #tpu.memory_space<vmem>>, %arg17: memref<64x16xf32, #tpu.memory_space<vmem>>, %arg18: memref<128x16xf32, #tpu.memory_space<vmem>>) attributes {dimension_semantics = [#tpu.dimension_semantics<arbitrary>], iteration_bounds = array<i64: 1>, scalar_prefetch = 0 : i64, scratch_operands = 0 : i64, tpu.core_type = #tpu.core_type<tc>, window_params = [{pipeline_mode = #tpu.pipeline_mode<synchronous>, transform_indices = @transform_0, window_bounds = array<i64: 128, 16>}, {pipeline_mode = #tpu.pipeline_mode<synchronous>, transform_indices = @transform_1, window_bounds = array<i64: 256, 8>}, {pipeline_mode = #tpu.pipeline_mode<synchronous>, transform_indices = @transform_2, window_bounds = array<i64: 128, 256>}, {pipeline_mode = #tpu.pipeline_mode<synchronous>, transform_indices = @transform_3, window_bounds = array<i64: 128, 128>}, {pipeline_mode = #tpu.pipeline_mode<synchronous>, transform_indices = @transform_4, window_bounds = array<i64: 24, 24>}, {pipeline_mode = #tpu.pipeline_mode<synchronous>, transform_indices = @transform_5, window_bounds = array<i64: 1, 24>}, {pipeline_mode = #tpu.pipeline_mode<synchronous>, transform_indices = @transform_6, window_bounds = array<i64: 24, 128>}, {pipeline_mode = #tpu.pipeline_mode<synchronous>, transform_indices = @transform_7, window_bounds = array<i64: 24, 4>}, {pipeline_mode = #tpu.pipeline_mode<synchronous>, transform_indices = @transform_8, window_bounds = array<i64: 24, 4>}, {pipeline_mode = #tpu.pipeline_mode<synchronous>, transform_indices = @transform_9, window_bounds = array<i64: 1, 128>}, {pipeline_mode = #tpu.pipeline_mode<synchronous>, transform_indices = @transform_10, window_bounds = array<i64: 4, 128>}, {pipeline_mode = #tpu.pipeline_mode<synchronous>, transform_indices = @transform_11, window_bounds = array<i64: 128, 64>}, {pipeline_mode = #tpu.pipeline_mode<synchronous>, transform_indices = @transform_12, window_bounds = array<i64: 128, 4>}, {pipeline_mode = #tpu.pipeline_mode<synchronous>, transform_indices = @transform_13, window_bounds = array<i64: 128, 4>}, {pipeline_mode = #tpu.pipeline_mode<synchronous>, transform_indices = @transform_14, window_bounds = array<i64: 1, 16>}, {pipeline_mode = #tpu.pipeline_mode<synchronous>, transform_indices = @transform_15, window_bounds = array<i64: 4, 64>}, {pipeline_mode = #tpu.pipeline_mode<synchronous>, transform_indices = @transform_16, window_bounds = array<i64: 64, 16>}, {pipeline_mode = #tpu.pipeline_mode<synchronous>, transform_indices = @transform_17, window_bounds = array<i64: 128, 16>}]} {
    %c0 = arith.constant 0 : index
    %c0_0 = arith.constant 0 : index
    %0 = vector.load %arg4[%c0, %c0_0] : memref<128x128xbf16, #tpu.memory_space<vmem>>, vector<128x128xbf16>
    %1 = arith.extf %0 : vector<128x128xbf16> to vector<128x128xf32>
    %cst = arith.constant 0.000000e+00 : f32
    %2 = vector.broadcast %cst : f32 to vector<128x128xf32>
    %3 = arith.cmpf ogt, %1, %2 : vector<128x128xf32>
    %c0_1 = arith.constant 0 : index
    %c0_2 = arith.constant 0 : index
    %4 = vector.load %arg3[%c0_1, %c0_2] : memref<128x256xbf16, #tpu.memory_space<vmem>>, vector<128x256xbf16>
    %5 = arith.extf %4 : vector<128x256xbf16> to vector<128x256xf32>
    %c0_3 = arith.constant 0 : index
    %c0_4 = arith.constant 0 : index
    %6 = vector.load %arg2[%c0_3, %c0_4] : memref<256x8xf32, #tpu.memory_space<vmem>>, vector<256x8xf32>
    %cst_5 = arith.constant dense<0.000000e+00> : vector<128x8xf32>
    %7 = tpu.matmul %5, %6, %cst_5 {dimension_numbers = #tpu.dot_dimension_numbers<[1], [0], [0], [1], [0, 0, 1, 1], [], []>} : vector<128x256xf32>, vector<256x8xf32>, vector<128x8xf32> -> vector<128x8xf32>
    %c0_6 = arith.constant 0 : index
    %c0_7 = arith.constant 0 : index
    %8 = vector.load %arg1[%c0_6, %c0_7] : memref<128x16xf32, #tpu.memory_space<vmem>>, vector<128x16xf32>
    %9 = tpu.concatenate %8, %7 in 1 : vector<128x16xf32>, vector<128x8xf32> -> vector<128x24xf32>
    %cst_8 = arith.constant dense<0.000000e+00> : vector<128x24xf32>
    %10 = tpu.matmul %1, %9, %cst_8 {dimension_numbers = #tpu.dot_dimension_numbers<[1], [0], [0], [1], [0, 0, 1, 1], [], []>} : vector<128x128xf32>, vector<128x24xf32>, vector<128x24xf32> -> vector<128x24xf32>
    %c0_9 = arith.constant 0 : index
    %c0_10 = arith.constant 0 : index
    %11 = vector.load %arg5[%c0_9, %c0_10] : memref<24x24xf32, #tpu.memory_space<vmem>>, vector<24x24xf32>
    %cst_11 = arith.constant dense<0.000000e+00> : vector<128x24xf32>
    %12 = tpu.matmul %10, %11, %cst_11 {dimension_numbers = #tpu.dot_dimension_numbers<[1], [0], [0], [1], [0, 0, 1, 1], [], []>} : vector<128x24xf32>, vector<24x24xf32>, vector<128x24xf32> -> vector<128x24xf32>
    %c0_12 = arith.constant 0 : index
    %c0_13 = arith.constant 0 : index
    %13 = vector.load %arg6[%c0_12, %c0_13] : memref<1x24xf32, #tpu.memory_space<vmem>>, vector<1x24xf32>
    %14 = vector.broadcast %13 : vector<1x24xf32> to vector<128x24xf32>
    %15 = arith.addf %12, %14 : vector<128x24xf32>
    %c0_14 = arith.constant 0 : index
    %c0_15 = arith.constant 0 : index
    %16 = vector.load %arg7[%c0_14, %c0_15] : memref<24x128xf32, #tpu.memory_space<vmem>>, vector<24x128xf32>
    %cst_16 = arith.constant dense<0.000000e+00> : vector<128x128xf32>
    %17 = tpu.matmul %15, %16, %cst_16 {dimension_numbers = #tpu.dot_dimension_numbers<[1], [0], [0], [1], [0, 0, 1, 1], [], []>} : vector<128x24xf32>, vector<24x128xf32>, vector<128x128xf32> -> vector<128x128xf32>
    %c0_17 = arith.constant 0 : index
    %c0_18 = arith.constant 0 : index
    %18 = vector.load %arg9[%c0_17, %c0_18] : memref<24x4xf32, #tpu.memory_space<vmem>>, vector<24x4xf32>
    %cst_19 = arith.constant dense<0.000000e+00> : vector<128x4xf32>
    %19 = tpu.matmul %15, %18, %cst_19 {dimension_numbers = #tpu.dot_dimension_numbers<[1], [0], [0], [1], [0, 0, 1, 1], [], []>} : vector<128x24xf32>, vector<24x4xf32>, vector<128x4xf32> -> vector<128x4xf32>
    %c0_20 = arith.constant 0 : index
    %c0_21 = arith.constant 0 : index
    %20 = vector.load %arg8[%c0_20, %c0_21] : memref<24x4xf32, #tpu.memory_space<vmem>>, vector<24x4xf32>
    %cst_22 = arith.constant dense<0.000000e+00> : vector<4x128xf32>
    %21 = tpu.matmul %20, %15, %cst_22 {dimension_numbers = #tpu.dot_dimension_numbers<[0], [1], [1], [0], [0, 1, 1, 0], [], []>} : vector<24x4xf32>, vector<128x24xf32>, vector<4x128xf32> -> vector<4x128xf32>
    %22 = vector.extract_strided_slice %19 {offsets = [0, 0], sizes = [128, 1], strides = [1, 1]} : vector<128x4xf32> to vector<128x1xf32>
    %23 = vector.extract_strided_slice %21 {offsets = [0, 0], sizes = [1, 128], strides = [1, 1]} : vector<4x128xf32> to vector<1x128xf32>
    %24 = vector.broadcast %22 : vector<128x1xf32> to vector<128x128xf32>
    %25 = vector.broadcast %23 : vector<1x128xf32> to vector<128x128xf32>
    %26 = arith.addf %24, %25 : vector<128x128xf32>
    %cst_23 = arith.constant 0.000000e+00 : f32
    %27 = vector.broadcast %cst_23 : f32 to vector<128x128xf32>
    %28 = arith.cmpf ogt, %26, %27 : vector<128x128xf32>
    %cst_24 = arith.constant 2.000000e-01 : f32
    %29 = vector.broadcast %cst_24 : f32 to vector<128x128xf32>
    %30 = arith.mulf %29, %26 : vector<128x128xf32>
    %31 = arith.select %28, %26, %30 : vector<128x128xi1>, vector<128x128xf32>
    %cst_25 = arith.constant -1.000000e+30 : f32
    %32 = vector.broadcast %cst_25 : f32 to vector<128x128xf32>
    %33 = arith.select %3, %31, %32 : vector<128x128xi1>, vector<128x128xf32>
    %cst_26 = arith.constant dense<0xFF800000> : vector<128xf32>
    %34 = vector.multi_reduction <maximumf>, %33, %cst_26 [1] : vector<128x128xf32> to vector<128xf32>
    %35 = vector.shape_cast %34 : vector<128xf32> to vector<128x1xf32>
    %36 = vector.broadcast %35 : vector<128x1xf32> to vector<128x128xf32>
    %37 = arith.subf %33, %36 : vector<128x128xf32>
    %38 = math.exp %37 : vector<128x128xf32>
    %39 = arith.mulf %38, %1 : vector<128x128xf32>
    %cst_27 = arith.constant dense<0.000000e+00> : vector<128xf32>
    %40 = vector.multi_reduction <add>, %39, %cst_27 [1] : vector<128x128xf32> to vector<128xf32>
    %41 = vector.shape_cast %40 : vector<128xf32> to vector<128x1xf32>
    %cst_28 = arith.constant 9.99999971E-10 : f32
    %42 = vector.broadcast %cst_28 : f32 to vector<128x1xf32>
    %43 = arith.addf %41, %42 : vector<128x1xf32>
    %44 = tpu.reciprocal %43 {approx = true} : vector<128x1xf32> -> vector<128x1xf32>
    %45 = vector.broadcast %44 : vector<128x1xf32> to vector<128x128xf32>
    %46 = arith.mulf %39, %45 : vector<128x128xf32>
    %c0_29 = arith.constant 0 : index
    %c0_30 = arith.constant 0 : index
    %47 = vector.load %arg11[%c0_29, %c0_30] : memref<4x128xf32, #tpu.memory_space<vmem>>, vector<1x128xf32>
    %48 = vector.broadcast %47 : vector<1x128xf32> to vector<128x128xf32>
    %49 = arith.mulf %17, %48 : vector<128x128xf32>
    %50 = vector.extract_strided_slice %19 {offsets = [0, 1], sizes = [128, 1], strides = [1, 1]} : vector<128x4xf32> to vector<128x1xf32>
    %51 = vector.extract_strided_slice %21 {offsets = [1, 0], sizes = [1, 128], strides = [1, 1]} : vector<4x128xf32> to vector<1x128xf32>
    %52 = vector.broadcast %50 : vector<128x1xf32> to vector<128x128xf32>
    %53 = vector.broadcast %51 : vector<1x128xf32> to vector<128x128xf32>
    %54 = arith.addf %52, %53 : vector<128x128xf32>
    %cst_31 = arith.constant 0.000000e+00 : f32
    %55 = vector.broadcast %cst_31 : f32 to vector<128x128xf32>
    %56 = arith.cmpf ogt, %54, %55 : vector<128x128xf32>
    %cst_32 = arith.constant 2.000000e-01 : f32
    %57 = vector.broadcast %cst_32 : f32 to vector<128x128xf32>
    %58 = arith.mulf %57, %54 : vector<128x128xf32>
    %59 = arith.select %56, %54, %58 : vector<128x128xi1>, vector<128x128xf32>
    %cst_33 = arith.constant -1.000000e+30 : f32
    %60 = vector.broadcast %cst_33 : f32 to vector<128x128xf32>
    %61 = arith.select %3, %59, %60 : vector<128x128xi1>, vector<128x128xf32>
    %cst_34 = arith.constant dense<0xFF800000> : vector<128xf32>
    %62 = vector.multi_reduction <maximumf>, %61, %cst_34 [1] : vector<128x128xf32> to vector<128xf32>
    %63 = vector.shape_cast %62 : vector<128xf32> to vector<128x1xf32>
    %64 = vector.broadcast %63 : vector<128x1xf32> to vector<128x128xf32>
    %65 = arith.subf %61, %64 : vector<128x128xf32>
    %66 = math.exp %65 : vector<128x128xf32>
    %67 = arith.mulf %66, %1 : vector<128x128xf32>
    %cst_35 = arith.constant dense<0.000000e+00> : vector<128xf32>
    %68 = vector.multi_reduction <add>, %67, %cst_35 [1] : vector<128x128xf32> to vector<128xf32>
    %69 = vector.shape_cast %68 : vector<128xf32> to vector<128x1xf32>
    %cst_36 = arith.constant 9.99999971E-10 : f32
    %70 = vector.broadcast %cst_36 : f32 to vector<128x1xf32>
    %71 = arith.addf %69, %70 : vector<128x1xf32>
    %72 = tpu.reciprocal %71 {approx = true} : vector<128x1xf32> -> vector<128x1xf32>
    %73 = vector.broadcast %72 : vector<128x1xf32> to vector<128x128xf32>
    %74 = arith.mulf %67, %73 : vector<128x128xf32>
    %c1 = arith.constant 1 : index
    %c0_37 = arith.constant 0 : index
    %75 = vector.load %arg11[%c1, %c0_37] : memref<4x128xf32, #tpu.memory_space<vmem>>, vector<1x128xf32>
    %76 = vector.broadcast %75 : vector<1x128xf32> to vector<128x128xf32>
    %77 = arith.mulf %17, %76 : vector<128x128xf32>
    %78 = vector.extract_strided_slice %19 {offsets = [0, 2], sizes = [128, 1], strides = [1, 1]} : vector<128x4xf32> to vector<128x1xf32>
    %79 = vector.extract_strided_slice %21 {offsets = [2, 0], sizes = [1, 128], strides = [1, 1]} : vector<4x128xf32> to vector<1x128xf32>
    %80 = vector.broadcast %78 : vector<128x1xf32> to vector<128x128xf32>
    %81 = vector.broadcast %79 : vector<1x128xf32> to vector<128x128xf32>
    %82 = arith.addf %80, %81 : vector<128x128xf32>
    %cst_38 = arith.constant 0.000000e+00 : f32
    %83 = vector.broadcast %cst_38 : f32 to vector<128x128xf32>
    %84 = arith.cmpf ogt, %82, %83 : vector<128x128xf32>
    %cst_39 = arith.constant 2.000000e-01 : f32
    %85 = vector.broadcast %cst_39 : f32 to vector<128x128xf32>
    %86 = arith.mulf %85, %82 : vector<128x128xf32>
    %87 = arith.select %84, %82, %86 : vector<128x128xi1>, vector<128x128xf32>
    %cst_40 = arith.constant -1.000000e+30 : f32
    %88 = vector.broadcast %cst_40 : f32 to vector<128x128xf32>
    %89 = arith.select %3, %87, %88 : vector<128x128xi1>, vector<128x128xf32>
    %cst_41 = arith.constant dense<0xFF800000> : vector<128xf32>
    %90 = vector.multi_reduction <maximumf>, %89, %cst_41 [1] : vector<128x128xf32> to vector<128xf32>
    %91 = vector.shape_cast %90 : vector<128xf32> to vector<128x1xf32>
    %92 = vector.broadcast %91 : vector<128x1xf32> to vector<128x128xf32>
    %93 = arith.subf %89, %92 : vector<128x128xf32>
    %94 = math.exp %93 : vector<128x128xf32>
    %95 = arith.mulf %94, %1 : vector<128x128xf32>
    %cst_42 = arith.constant dense<0.000000e+00> : vector<128xf32>
    %96 = vector.multi_reduction <add>, %95, %cst_42 [1] : vector<128x128xf32> to vector<128xf32>
    %97 = vector.shape_cast %96 : vector<128xf32> to vector<128x1xf32>
    %cst_43 = arith.constant 9.99999971E-10 : f32
    %98 = vector.broadcast %cst_43 : f32 to vector<128x1xf32>
    %99 = arith.addf %97, %98 : vector<128x1xf32>
    %100 = tpu.reciprocal %99 {approx = true} : vector<128x1xf32> -> vector<128x1xf32>
    %101 = vector.broadcast %100 : vector<128x1xf32> to vector<128x128xf32>
    %102 = arith.mulf %95, %101 : vector<128x128xf32>
    %c2 = arith.constant 2 : index
    %c0_44 = arith.constant 0 : index
    %103 = vector.load %arg11[%c2, %c0_44] : memref<4x128xf32, #tpu.memory_space<vmem>>, vector<1x128xf32>
    %104 = vector.broadcast %103 : vector<1x128xf32> to vector<128x128xf32>
    %105 = arith.mulf %17, %104 : vector<128x128xf32>
    %106 = vector.extract_strided_slice %19 {offsets = [0, 3], sizes = [128, 1], strides = [1, 1]} : vector<128x4xf32> to vector<128x1xf32>
    %107 = vector.extract_strided_slice %21 {offsets = [3, 0], sizes = [1, 128], strides = [1, 1]} : vector<4x128xf32> to vector<1x128xf32>
    %108 = vector.broadcast %106 : vector<128x1xf32> to vector<128x128xf32>
    %109 = vector.broadcast %107 : vector<1x128xf32> to vector<128x128xf32>
    %110 = arith.addf %108, %109 : vector<128x128xf32>
    %cst_45 = arith.constant 0.000000e+00 : f32
    %111 = vector.broadcast %cst_45 : f32 to vector<128x128xf32>
    %112 = arith.cmpf ogt, %110, %111 : vector<128x128xf32>
    %cst_46 = arith.constant 2.000000e-01 : f32
    %113 = vector.broadcast %cst_46 : f32 to vector<128x128xf32>
    %114 = arith.mulf %113, %110 : vector<128x128xf32>
    %115 = arith.select %112, %110, %114 : vector<128x128xi1>, vector<128x128xf32>
    %cst_47 = arith.constant -1.000000e+30 : f32
    %116 = vector.broadcast %cst_47 : f32 to vector<128x128xf32>
    %117 = arith.select %3, %115, %116 : vector<128x128xi1>, vector<128x128xf32>
    %cst_48 = arith.constant dense<0xFF800000> : vector<128xf32>
    %118 = vector.multi_reduction <maximumf>, %117, %cst_48 [1] : vector<128x128xf32> to vector<128xf32>
    %119 = vector.shape_cast %118 : vector<128xf32> to vector<128x1xf32>
    %120 = vector.broadcast %119 : vector<128x1xf32> to vector<128x128xf32>
    %121 = arith.subf %117, %120 : vector<128x128xf32>
    %122 = math.exp %121 : vector<128x128xf32>
    %123 = arith.mulf %122, %1 : vector<128x128xf32>
    %cst_49 = arith.constant dense<0.000000e+00> : vector<128xf32>
    %124 = vector.multi_reduction <add>, %123, %cst_49 [1] : vector<128x128xf32> to vector<128xf32>
    %125 = vector.shape_cast %124 : vector<128xf32> to vector<128x1xf32>
    %cst_50 = arith.constant 9.99999971E-10 : f32
    %126 = vector.broadcast %cst_50 : f32 to vector<128x1xf32>
    %127 = arith.addf %125, %126 : vector<128x1xf32>
    %128 = tpu.reciprocal %127 {approx = true} : vector<128x1xf32> -> vector<128x1xf32>
    %129 = vector.broadcast %128 : vector<128x1xf32> to vector<128x128xf32>
    %130 = arith.mulf %123, %129 : vector<128x128xf32>
    %c3 = arith.constant 3 : index
    %c0_51 = arith.constant 0 : index
    %131 = vector.load %arg11[%c3, %c0_51] : memref<4x128xf32, #tpu.memory_space<vmem>>, vector<1x128xf32>
    %132 = vector.broadcast %131 : vector<1x128xf32> to vector<128x128xf32>
    %133 = arith.mulf %17, %132 : vector<128x128xf32>
    %134 = tpu.concatenate %46, %74, %102, %130 in 1 : vector<128x128xf32>, vector<128x128xf32>, vector<128x128xf32>, vector<128x128xf32> -> vector<128x512xf32>
    %135 = tpu.concatenate %49, %77, %105, %133 in 0 : vector<128x128xf32>, vector<128x128xf32>, vector<128x128xf32>, vector<128x128xf32> -> vector<512x128xf32>
    %cst_52 = arith.constant dense<0.000000e+00> : vector<128x128xf32>
    %136 = tpu.matmul %134, %135, %cst_52 {dimension_numbers = #tpu.dot_dimension_numbers<[1], [0], [0], [1], [0, 0, 1, 1], [], []>} : vector<128x512xf32>, vector<512x128xf32>, vector<128x128xf32> -> vector<128x128xf32>
    %c0_53 = arith.constant 0 : index
    %c0_54 = arith.constant 0 : index
    %137 = vector.load %arg10[%c0_53, %c0_54] : memref<1x128xf32, #tpu.memory_space<vmem>>, vector<1x128xf32>
    %138 = vector.broadcast %137 : vector<1x128xf32> to vector<128x128xf32>
    %139 = arith.addf %136, %138 : vector<128x128xf32>
    %cst_55 = arith.constant 0.000000e+00 : f32
    %140 = vector.broadcast %cst_55 : f32 to vector<128x128xf32>
    %141 = arith.cmpf ogt, %139, %140 : vector<128x128xf32>
    %cst_56 = arith.constant 0.000000e+00 : f32
    %142 = vector.broadcast %cst_56 : f32 to vector<128x128xf32>
    %143 = arith.minimumf %139, %142 : vector<128x128xf32>
    %144 = math.exp %143 : vector<128x128xf32>
    %cst_57 = arith.constant 1.000000e+00 : f32
    %145 = vector.broadcast %cst_57 : f32 to vector<128x128xf32>
    %146 = arith.subf %144, %145 : vector<128x128xf32>
    %147 = arith.select %141, %139, %146 : vector<128x128xi1>, vector<128x128xf32>
    %c0_58 = arith.constant 0 : index
    %c0_59 = arith.constant 0 : index
    %148 = vector.load %arg12[%c0_58, %c0_59] : memref<128x64xf32, #tpu.memory_space<vmem>>, vector<128x64xf32>
    %cst_60 = arith.constant dense<0.000000e+00> : vector<128x64xf32>
    %149 = tpu.matmul %147, %148, %cst_60 {dimension_numbers = #tpu.dot_dimension_numbers<[1], [0], [0], [1], [0, 0, 1, 1], [], []>} : vector<128x128xf32>, vector<128x64xf32>, vector<128x64xf32> -> vector<128x64xf32>
    %c0_61 = arith.constant 0 : index
    %c0_62 = arith.constant 0 : index
    %150 = vector.load %arg14[%c0_61, %c0_62] : memref<128x4xf32, #tpu.memory_space<vmem>>, vector<128x4xf32>
    %cst_63 = arith.constant dense<0.000000e+00> : vector<128x4xf32>
    %151 = tpu.matmul %147, %150, %cst_63 {dimension_numbers = #tpu.dot_dimension_numbers<[1], [0], [0], [1], [0, 0, 1, 1], [], []>} : vector<128x128xf32>, vector<128x4xf32>, vector<128x4xf32> -> vector<128x4xf32>
    %c0_64 = arith.constant 0 : index
    %c0_65 = arith.constant 0 : index
    %152 = vector.load %arg13[%c0_64, %c0_65] : memref<128x4xf32, #tpu.memory_space<vmem>>, vector<128x4xf32>
    %cst_66 = arith.constant dense<0.000000e+00> : vector<4x128xf32>
    %153 = tpu.matmul %152, %147, %cst_66 {dimension_numbers = #tpu.dot_dimension_numbers<[0], [1], [1], [0], [0, 1, 1, 0], [], []>} : vector<128x4xf32>, vector<128x128xf32>, vector<4x128xf32> -> vector<4x128xf32>
    %154 = vector.extract_strided_slice %151 {offsets = [0, 0], sizes = [128, 1], strides = [1, 1]} : vector<128x4xf32> to vector<128x1xf32>
    %155 = vector.extract_strided_slice %153 {offsets = [0, 0], sizes = [1, 128], strides = [1, 1]} : vector<4x128xf32> to vector<1x128xf32>
    %156 = vector.broadcast %154 : vector<128x1xf32> to vector<128x128xf32>
    %157 = vector.broadcast %155 : vector<1x128xf32> to vector<128x128xf32>
    %158 = arith.addf %156, %157 : vector<128x128xf32>
    %cst_67 = arith.constant 0.000000e+00 : f32
    %159 = vector.broadcast %cst_67 : f32 to vector<128x128xf32>
    %160 = arith.cmpf ogt, %158, %159 : vector<128x128xf32>
    %cst_68 = arith.constant 2.000000e-01 : f32
    %161 = vector.broadcast %cst_68 : f32 to vector<128x128xf32>
    %162 = arith.mulf %161, %158 : vector<128x128xf32>
    %163 = arith.select %160, %158, %162 : vector<128x128xi1>, vector<128x128xf32>
    %cst_69 = arith.constant -1.000000e+30 : f32
    %164 = vector.broadcast %cst_69 : f32 to vector<128x128xf32>
    %165 = arith.select %3, %163, %164 : vector<128x128xi1>, vector<128x128xf32>
    %cst_70 = arith.constant dense<0xFF800000> : vector<128xf32>
    %166 = vector.multi_reduction <maximumf>, %165, %cst_70 [1] : vector<128x128xf32> to vector<128xf32>
    %167 = vector.shape_cast %166 : vector<128xf32> to vector<128x1xf32>
    %168 = vector.broadcast %167 : vector<128x1xf32> to vector<128x128xf32>
    %169 = arith.subf %165, %168 : vector<128x128xf32>
    %170 = math.exp %169 : vector<128x128xf32>
    %171 = arith.mulf %170, %1 : vector<128x128xf32>
    %cst_71 = arith.constant dense<0.000000e+00> : vector<128xf32>
    %172 = vector.multi_reduction <add>, %171, %cst_71 [1] : vector<128x128xf32> to vector<128xf32>
    %173 = vector.shape_cast %172 : vector<128xf32> to vector<128x1xf32>
    %cst_72 = arith.constant 9.99999971E-10 : f32
    %174 = vector.broadcast %cst_72 : f32 to vector<128x1xf32>
    %175 = arith.addf %173, %174 : vector<128x1xf32>
    %176 = tpu.reciprocal %175 {approx = true} : vector<128x1xf32> -> vector<128x1xf32>
    %177 = vector.broadcast %176 : vector<128x1xf32> to vector<128x128xf32>
    %178 = arith.mulf %171, %177 : vector<128x128xf32>
    %c0_73 = arith.constant 0 : index
    %c0_74 = arith.constant 0 : index
    %179 = vector.load %arg16[%c0_73, %c0_74] : memref<4x64xf32, #tpu.memory_space<vmem>>, vector<1x64xf32>
    %180 = vector.broadcast %179 : vector<1x64xf32> to vector<128x64xf32>
    %181 = arith.mulf %149, %180 : vector<128x64xf32>
    %182 = vector.extract_strided_slice %151 {offsets = [0, 1], sizes = [128, 1], strides = [1, 1]} : vector<128x4xf32> to vector<128x1xf32>
    %183 = vector.extract_strided_slice %153 {offsets = [1, 0], sizes = [1, 128], strides = [1, 1]} : vector<4x128xf32> to vector<1x128xf32>
    %184 = vector.broadcast %182 : vector<128x1xf32> to vector<128x128xf32>
    %185 = vector.broadcast %183 : vector<1x128xf32> to vector<128x128xf32>
    %186 = arith.addf %184, %185 : vector<128x128xf32>
    %cst_75 = arith.constant 0.000000e+00 : f32
    %187 = vector.broadcast %cst_75 : f32 to vector<128x128xf32>
    %188 = arith.cmpf ogt, %186, %187 : vector<128x128xf32>
    %cst_76 = arith.constant 2.000000e-01 : f32
    %189 = vector.broadcast %cst_76 : f32 to vector<128x128xf32>
    %190 = arith.mulf %189, %186 : vector<128x128xf32>
    %191 = arith.select %188, %186, %190 : vector<128x128xi1>, vector<128x128xf32>
    %cst_77 = arith.constant -1.000000e+30 : f32
    %192 = vector.broadcast %cst_77 : f32 to vector<128x128xf32>
    %193 = arith.select %3, %191, %192 : vector<128x128xi1>, vector<128x128xf32>
    %cst_78 = arith.constant dense<0xFF800000> : vector<128xf32>
    %194 = vector.multi_reduction <maximumf>, %193, %cst_78 [1] : vector<128x128xf32> to vector<128xf32>
    %195 = vector.shape_cast %194 : vector<128xf32> to vector<128x1xf32>
    %196 = vector.broadcast %195 : vector<128x1xf32> to vector<128x128xf32>
    %197 = arith.subf %193, %196 : vector<128x128xf32>
    %198 = math.exp %197 : vector<128x128xf32>
    %199 = arith.mulf %198, %1 : vector<128x128xf32>
    %cst_79 = arith.constant dense<0.000000e+00> : vector<128xf32>
    %200 = vector.multi_reduction <add>, %199, %cst_79 [1] : vector<128x128xf32> to vector<128xf32>
    %201 = vector.shape_cast %200 : vector<128xf32> to vector<128x1xf32>
    %cst_80 = arith.constant 9.99999971E-10 : f32
    %202 = vector.broadcast %cst_80 : f32 to vector<128x1xf32>
    %203 = arith.addf %201, %202 : vector<128x1xf32>
    %204 = tpu.reciprocal %203 {approx = true} : vector<128x1xf32> -> vector<128x1xf32>
    %205 = vector.broadcast %204 : vector<128x1xf32> to vector<128x128xf32>
    %206 = arith.mulf %199, %205 : vector<128x128xf32>
    %c1_81 = arith.constant 1 : index
    %c0_82 = arith.constant 0 : index
    %207 = vector.load %arg16[%c1_81, %c0_82] : memref<4x64xf32, #tpu.memory_space<vmem>>, vector<1x64xf32>
    %208 = vector.broadcast %207 : vector<1x64xf32> to vector<128x64xf32>
    %209 = arith.mulf %149, %208 : vector<128x64xf32>
    %210 = vector.extract_strided_slice %151 {offsets = [0, 2], sizes = [128, 1], strides = [1, 1]} : vector<128x4xf32> to vector<128x1xf32>
    %211 = vector.extract_strided_slice %153 {offsets = [2, 0], sizes = [1, 128], strides = [1, 1]} : vector<4x128xf32> to vector<1x128xf32>
    %212 = vector.broadcast %210 : vector<128x1xf32> to vector<128x128xf32>
    %213 = vector.broadcast %211 : vector<1x128xf32> to vector<128x128xf32>
    %214 = arith.addf %212, %213 : vector<128x128xf32>
    %cst_83 = arith.constant 0.000000e+00 : f32
    %215 = vector.broadcast %cst_83 : f32 to vector<128x128xf32>
    %216 = arith.cmpf ogt, %214, %215 : vector<128x128xf32>
    %cst_84 = arith.constant 2.000000e-01 : f32
    %217 = vector.broadcast %cst_84 : f32 to vector<128x128xf32>
    %218 = arith.mulf %217, %214 : vector<128x128xf32>
    %219 = arith.select %216, %214, %218 : vector<128x128xi1>, vector<128x128xf32>
    %cst_85 = arith.constant -1.000000e+30 : f32
    %220 = vector.broadcast %cst_85 : f32 to vector<128x128xf32>
    %221 = arith.select %3, %219, %220 : vector<128x128xi1>, vector<128x128xf32>
    %cst_86 = arith.constant dense<0xFF800000> : vector<128xf32>
    %222 = vector.multi_reduction <maximumf>, %221, %cst_86 [1] : vector<128x128xf32> to vector<128xf32>
    %223 = vector.shape_cast %222 : vector<128xf32> to vector<128x1xf32>
    %224 = vector.broadcast %223 : vector<128x1xf32> to vector<128x128xf32>
    %225 = arith.subf %221, %224 : vector<128x128xf32>
    %226 = math.exp %225 : vector<128x128xf32>
    %227 = arith.mulf %226, %1 : vector<128x128xf32>
    %cst_87 = arith.constant dense<0.000000e+00> : vector<128xf32>
    %228 = vector.multi_reduction <add>, %227, %cst_87 [1] : vector<128x128xf32> to vector<128xf32>
    %229 = vector.shape_cast %228 : vector<128xf32> to vector<128x1xf32>
    %cst_88 = arith.constant 9.99999971E-10 : f32
    %230 = vector.broadcast %cst_88 : f32 to vector<128x1xf32>
    %231 = arith.addf %229, %230 : vector<128x1xf32>
    %232 = tpu.reciprocal %231 {approx = true} : vector<128x1xf32> -> vector<128x1xf32>
    %233 = vector.broadcast %232 : vector<128x1xf32> to vector<128x128xf32>
    %234 = arith.mulf %227, %233 : vector<128x128xf32>
    %c2_89 = arith.constant 2 : index
    %c0_90 = arith.constant 0 : index
    %235 = vector.load %arg16[%c2_89, %c0_90] : memref<4x64xf32, #tpu.memory_space<vmem>>, vector<1x64xf32>
    %236 = vector.broadcast %235 : vector<1x64xf32> to vector<128x64xf32>
    %237 = arith.mulf %149, %236 : vector<128x64xf32>
    %238 = vector.extract_strided_slice %151 {offsets = [0, 3], sizes = [128, 1], strides = [1, 1]} : vector<128x4xf32> to vector<128x1xf32>
    %239 = vector.extract_strided_slice %153 {offsets = [3, 0], sizes = [1, 128], strides = [1, 1]} : vector<4x128xf32> to vector<1x128xf32>
    %240 = vector.broadcast %238 : vector<128x1xf32> to vector<128x128xf32>
    %241 = vector.broadcast %239 : vector<1x128xf32> to vector<128x128xf32>
    %242 = arith.addf %240, %241 : vector<128x128xf32>
    %cst_91 = arith.constant 0.000000e+00 : f32
    %243 = vector.broadcast %cst_91 : f32 to vector<128x128xf32>
    %244 = arith.cmpf ogt, %242, %243 : vector<128x128xf32>
    %cst_92 = arith.constant 2.000000e-01 : f32
    %245 = vector.broadcast %cst_92 : f32 to vector<128x128xf32>
    %246 = arith.mulf %245, %242 : vector<128x128xf32>
    %247 = arith.select %244, %242, %246 : vector<128x128xi1>, vector<128x128xf32>
    %cst_93 = arith.constant -1.000000e+30 : f32
    %248 = vector.broadcast %cst_93 : f32 to vector<128x128xf32>
    %249 = arith.select %3, %247, %248 : vector<128x128xi1>, vector<128x128xf32>
    %cst_94 = arith.constant dense<0xFF800000> : vector<128xf32>
    %250 = vector.multi_reduction <maximumf>, %249, %cst_94 [1] : vector<128x128xf32> to vector<128xf32>
    %251 = vector.shape_cast %250 : vector<128xf32> to vector<128x1xf32>
    %252 = vector.broadcast %251 : vector<128x1xf32> to vector<128x128xf32>
    %253 = arith.subf %249, %252 : vector<128x128xf32>
    %254 = math.exp %253 : vector<128x128xf32>
    %255 = arith.mulf %254, %1 : vector<128x128xf32>
    %cst_95 = arith.constant dense<0.000000e+00> : vector<128xf32>
    %256 = vector.multi_reduction <add>, %255, %cst_95 [1] : vector<128x128xf32> to vector<128xf32>
    %257 = vector.shape_cast %256 : vector<128xf32> to vector<128x1xf32>
    %cst_96 = arith.constant 9.99999971E-10 : f32
    %258 = vector.broadcast %cst_96 : f32 to vector<128x1xf32>
    %259 = arith.addf %257, %258 : vector<128x1xf32>
    %260 = tpu.reciprocal %259 {approx = true} : vector<128x1xf32> -> vector<128x1xf32>
    %261 = vector.broadcast %260 : vector<128x1xf32> to vector<128x128xf32>
    %262 = arith.mulf %255, %261 : vector<128x128xf32>
    %c3_97 = arith.constant 3 : index
    %c0_98 = arith.constant 0 : index
    %263 = vector.load %arg16[%c3_97, %c0_98] : memref<4x64xf32, #tpu.memory_space<vmem>>, vector<1x64xf32>
    %264 = vector.broadcast %263 : vector<1x64xf32> to vector<128x64xf32>
    %265 = arith.mulf %149, %264 : vector<128x64xf32>
    %266 = tpu.concatenate %178, %206, %234, %262 in 1 : vector<128x128xf32>, vector<128x128xf32>, vector<128x128xf32>, vector<128x128xf32> -> vector<128x512xf32>
    %267 = tpu.concatenate %181, %209, %237, %265 in 0 : vector<128x64xf32>, vector<128x64xf32>, vector<128x64xf32>, vector<128x64xf32> -> vector<512x64xf32>
    %cst_99 = arith.constant dense<0.000000e+00> : vector<128x64xf32>
    %268 = tpu.matmul %266, %267, %cst_99 {dimension_numbers = #tpu.dot_dimension_numbers<[1], [0], [0], [1], [0, 0, 1, 1], [], []>} : vector<128x512xf32>, vector<512x64xf32>, vector<128x64xf32> -> vector<128x64xf32>
    %c0_100 = arith.constant 0 : index
    %c0_101 = arith.constant 0 : index
    %269 = vector.load %arg17[%c0_100, %c0_101] : memref<64x16xf32, #tpu.memory_space<vmem>>, vector<64x16xf32>
    %cst_102 = arith.constant dense<0.000000e+00> : vector<128x16xf32>
    %270 = tpu.matmul %268, %269, %cst_102 {dimension_numbers = #tpu.dot_dimension_numbers<[1], [0], [0], [1], [0, 0, 1, 1], [], []>} : vector<128x64xf32>, vector<64x16xf32>, vector<128x16xf32> -> vector<128x16xf32>
    %c0_103 = arith.constant 0 : index
    %c0_104 = arith.constant 0 : index
    %271 = vector.load %arg15[%c0_103, %c0_104] : memref<1x16xf32, #tpu.memory_space<vmem>>, vector<1x16xf32>
    %272 = vector.broadcast %271 : vector<1x16xf32> to vector<128x16xf32>
    %273 = arith.addf %270, %272 : vector<128x16xf32>
    %c0_105 = arith.constant 0 : index
    %c0_106 = arith.constant 0 : index
    %274 = vector.load %arg18[%c0_105, %c0_106] : memref<128x16xf32, #tpu.memory_space<vmem>>, vector<128x16xf32>
    tpu.vector_store %arg18[%c0_105, %c0_106], %273 {strides = array<i32>} : memref<128x16xf32, #tpu.memory_space<vmem>>, vector<128x16xf32>,
    return
  }
  func.func @transform_0(%arg0: i32) -> (i32, i32) {
    %c0_i32 = arith.constant 0 : i32
    %c0_i32_0 = arith.constant 0 : i32
    %c0_i32_1 = arith.constant 0 : i32
    return %c0_i32, %c0_i32_0 : i32, i32
  }
  func.func @transform_1(%arg0: i32) -> (i32, i32) {
    %c0_i32 = arith.constant 0 : i32
    %c0_i32_0 = arith.constant 0 : i32
    %c0_i32_1 = arith.constant 0 : i32
    return %c0_i32, %c0_i32_0 : i32, i32
  }
  func.func @transform_2(%arg0: i32) -> (i32, i32) {
    %c0_i32 = arith.constant 0 : i32
    %c0_i32_0 = arith.constant 0 : i32
    %c0_i32_1 = arith.constant 0 : i32
    return %c0_i32, %c0_i32_0 : i32, i32
  }
  func.func @transform_3(%arg0: i32) -> (i32, i32) {
    %c0_i32 = arith.constant 0 : i32
    %c0_i32_0 = arith.constant 0 : i32
    %c0_i32_1 = arith.constant 0 : i32
    return %c0_i32, %c0_i32_0 : i32, i32
  }
  func.func @transform_4(%arg0: i32) -> (i32, i32) {
    %c0_i32 = arith.constant 0 : i32
    %c0_i32_0 = arith.constant 0 : i32
    %c0_i32_1 = arith.constant 0 : i32
    return %c0_i32, %c0_i32_0 : i32, i32
  }
  func.func @transform_5(%arg0: i32) -> (i32, i32) {
    %c0_i32 = arith.constant 0 : i32
    %c0_i32_0 = arith.constant 0 : i32
    %c0_i32_1 = arith.constant 0 : i32
    return %c0_i32, %c0_i32_0 : i32, i32
  }
  func.func @transform_6(%arg0: i32) -> (i32, i32) {
    %c0_i32 = arith.constant 0 : i32
    %c0_i32_0 = arith.constant 0 : i32
    %c0_i32_1 = arith.constant 0 : i32
    return %c0_i32, %c0_i32_0 : i32, i32
  }
  func.func @transform_7(%arg0: i32) -> (i32, i32) {
    %c0_i32 = arith.constant 0 : i32
    %c0_i32_0 = arith.constant 0 : i32
    %c0_i32_1 = arith.constant 0 : i32
    return %c0_i32, %c0_i32_0 : i32, i32
  }
  func.func @transform_8(%arg0: i32) -> (i32, i32) {
    %c0_i32 = arith.constant 0 : i32
    %c0_i32_0 = arith.constant 0 : i32
    %c0_i32_1 = arith.constant 0 : i32
    return %c0_i32, %c0_i32_0 : i32, i32
  }
  func.func @transform_9(%arg0: i32) -> (i32, i32) {
    %c0_i32 = arith.constant 0 : i32
    %c0_i32_0 = arith.constant 0 : i32
    %c0_i32_1 = arith.constant 0 : i32
    return %c0_i32, %c0_i32_0 : i32, i32
  }
  func.func @transform_10(%arg0: i32) -> (i32, i32) {
    %c0_i32 = arith.constant 0 : i32
    %c0_i32_0 = arith.constant 0 : i32
    %c0_i32_1 = arith.constant 0 : i32
    return %c0_i32, %c0_i32_0 : i32, i32
  }
  func.func @transform_11(%arg0: i32) -> (i32, i32) {
    %c0_i32 = arith.constant 0 : i32
    %c0_i32_0 = arith.constant 0 : i32
    %c0_i32_1 = arith.constant 0 : i32
    return %c0_i32, %c0_i32_0 : i32, i32
  }
  func.func @transform_12(%arg0: i32) -> (i32, i32) {
    %c0_i32 = arith.constant 0 : i32
    %c0_i32_0 = arith.constant 0 : i32
    %c0_i32_1 = arith.constant 0 : i32
    return %c0_i32, %c0_i32_0 : i32, i32
  }
  func.func @transform_13(%arg0: i32) -> (i32, i32) {
    %c0_i32 = arith.constant 0 : i32
    %c0_i32_0 = arith.constant 0 : i32
    %c0_i32_1 = arith.constant 0 : i32
    return %c0_i32, %c0_i32_0 : i32, i32
  }
  func.func @transform_14(%arg0: i32) -> (i32, i32) {
    %c0_i32 = arith.constant 0 : i32
    %c0_i32_0 = arith.constant 0 : i32
    %c0_i32_1 = arith.constant 0 : i32
    return %c0_i32, %c0_i32_0 : i32, i32
  }
  func.func @transform_15(%arg0: i32) -> (i32, i32) {
    %c0_i32 = arith.constant 0 : i32
    %c0_i32_0 = arith.constant 0 : i32
    %c0_i32_1 = arith.constant 0 : i32
    return %c0_i32, %c0_i32_0 : i32, i32
  }
  func.func @transform_16(%arg0: i32) -> (i32, i32) {
    %c0_i32 = arith.constant 0 : i32
    %c0_i32_0 = arith.constant 0 : i32
    %c0_i32_1 = arith.constant 0 : i32
    return %c0_i32, %c0_i32_0 : i32, i32
  }
  func.func @transform_17(%arg0: i32) -> (i32, i32) {
    %c0_i32 = arith.constant 0 : i32
    %c0_i32_0 = arith.constant 0 : i32
    %c0_i32_1 = arith.constant 0 : i32
    return %c0_i32, %c0_i32_0 : i32, i32
  }
}

</mosaic_0001>

<bundles_post_ra>
// kernel: tpu_custom_call.1
= control target key start
LH: loop header
LB: loop body
LE: loop exit
PB: predicated region body
PF: predicated region fallthrough
CT: control target
= control target key end

     0   :  { %s7551_s25 = smov 16   ;;  %vm10904_vm0 = vcmask 130048   ;;  %vm581_vm1 = vcmask 195584   ;;  %vm7554_vm3 = vmmov 0   ;;  %s10859_s1 = inlined_call_operand.vmem [shape: f32[256,8], index: 1, kind: input, shape index: {}]   ;;  %s10860_s2 = inlined_call_operand.vmem [shape: bf16[128,256], index: 2, kind: input, shape index: {}]   ;;  %s10861_s3 = inlined_call_operand.vmem [shape: bf16[128,128], index: 3, kind: input, shape index: {}]   ;;  %s10862_s0 = inlined_call_operand.vmem [shape: f32[128,16], index: 0, kind: input, shape index: {}]   ;;  %s10863_s4 = inlined_call_operand.vmem [shape: f32[24,24], index: 4, kind: input, shape index: {}]   ;;  %s10864_s8 = inlined_call_operand.vmem [shape: f32[24,4], index: 8, kind: input, shape index: {}]   ;;  %s10865_s6 = inlined_call_operand.vmem [shape: f32[24,128], index: 6, kind: input, shape index: {}]   ;;  %s10866_s7 = inlined_call_operand.vmem [shape: f32[24,4], index: 7, kind: input, shape index: {}]   ;;  %s10867_s5 = inlined_call_operand.vmem [shape: f32[1,24], index: 5, kind: input, shape index: {}]   ;;  %s10868_s10 = inlined_call_operand.vmem [shape: f32[4,128], index: 10, kind: input, shape index: {}]   ;;  %s10869_s11 = inlined_call_operand.vmem [shape: f32[128,64], index: 11, kind: input, shape index: {}]   ;;  %s10870_s13 = inlined_call_operand.vmem [shape: f32[128,4], index: 13, kind: input, shape index: {}]   ;;  %s10871_s12 = inlined_call_operand.vmem [shape: f32[128,4], index: 12, kind: input, shape index: {}]   ;;  %s10872_s9 = inlined_call_operand.vmem [shape: f32[1,128], index: 9, kind: input, shape index: {}]   ;;  %s10873_s15 = inlined_call_operand.vmem [shape: f32[4,64], index: 15, kind: input, shape index: {}]   ;;  %s10874_s16 = inlined_call_operand.vmem [shape: f32[64,16], index: 16, kind: input, shape index: {}]   ;;  %s10875_s14 = inlined_call_operand.vmem [shape: f32[1,16], index: 14, kind: input, shape index: {}]   ;;  %s10876_s17 = inlined_call_operand.vmem [shape: f32[128,16], index: 17, kind: output, shape index: {}]  }
   0x1   :  { %11051 = sst [smem:[#allocation50_spill]] %s10859_s1  ;;  %vm8004_vm2 = vmpackc.low %vm581_vm1, %vm581_vm1 }
   0x2   :  { %11052 = sst [smem:[#allocation51_spill]] %s10860_s2  ;;  %s11053_s26 = sld [smem:[#allocation50_spill]] }
   0x3   :  { %s11054_s20 = sld [smem:[#allocation51_spill]] }
   0x8   :  { %v168_v0 = vld [vmem:[%s11053_s26 + $0x80] sm:$0xff]  ;;  %v169_v1 = vld [vmem:[%s11053_s26 + $0x88] sm:$0xff]  ;;  %v170_v5 = vld [vmem:[%s11053_s26 + $0x90] sm:$0xff] }
   0x9   :  { %v152_v2 = vld [vmem:[%s11053_s26] sm:$0xff]  ;;  %v6497_v3 = vpack.c.bf16 %v169_v1, %v168_v0  ;;  %v153_v4 = vld [vmem:[%s11053_s26 + $0x8] sm:$0xff]  ;;  %v171_v6 = vld [vmem:[%s11053_s26 + $0x98] sm:$0xff] }
   0xa   :  { %v6499_v7 = vpack.c.bf16 %v153_v4, %v152_v2  ;;  %v6501_v8 = vpack.c.bf16 %v171_v6, %v170_v5  ;;  %v154_v9 = vld [vmem:[%s11053_s26 + $0x10] sm:$0xff]  ;;  %v155_v10 = vld [vmem:[%s11053_s26 + $0x18] sm:$0xff]  ;;  %v172_v11 = vld [vmem:[%s11053_s26 + $0xa0] sm:$0xff] }
   0xb   :  { %6498 = vmatprep.subr.bf16.mxu0 %v6497_v3  ;;  %v173_v12 = vld [vmem:[%s11053_s26 + $0xa8] sm:$0xff]  ;;  %v6503_v13 = vpack.c.bf16 %v155_v10, %v154_v9  ;;  %v156_v15 = vld [vmem:[%s11053_s26 + $0x20] sm:$0xff]  ;;  %v174_v17 = vld [vmem:[%s11053_s26 + $0xb0] sm:$0xff] }
   0xc   :  { %6500 = vmatpush3.bf16.msra.mxu0 %v6499_v7  ;;  %v6505_v14 = vpack.c.bf16 %v173_v12, %v172_v11  ;;  %v157_v16 = vld [vmem:[%s11053_s26 + $0x28] sm:$0xff]  ;;  %v175_v18 = vld [vmem:[%s11053_s26 + $0xb8] sm:$0xff]  ;;  %v158_v21 = vld [vmem:[%s11053_s26 + $0x30] sm:$0xff] }
   0xd   :  { %6502 = vmatprep.subr.bf16.mxu0 %v6501_v8  ;;  %v6507_v19 = vpack.c.bf16 %v157_v16, %v156_v15  ;;  %v6509_v20 = vpack.c.bf16 %v175_v18, %v174_v17  ;;  %v159_v22 = vld [vmem:[%s11053_s26 + $0x38] sm:$0xff]  ;;  %v176_v23 = vld [vmem:[%s11053_s26 + $0xc0] sm:$0xff]  ;;  %v177_v24 = vld [vmem:[%s11053_s26 + $0xc8] sm:$0xff] }
   0xe   :  { %v104_v25 = vld [vmem:[%s11054_s20] sm:$0xff]  ;;  %v6511_v27 = vpack.c.bf16 %v159_v22, %v158_v21  ;;  %v6513_v28 = vpack.c.bf16 %v177_v24, %v176_v23  ;;  %v161_v30 = vld [vmem:[%s11053_s26 + $0x48] sm:$0xff]  ;;  %v178_v31 = vld [vmem:[%s11053_s26 + $0xd0] sm:$0xff] }
   0xf   :  { %v121_v26 = vunpack.c.h.bf16 %v104_v25  ;;  %v160_v29 = vld [vmem:[%s11053_s26 + $0x40] sm:$0xff]  ;;  %v179_v32 = vld [vmem:[%s11053_s26 + $0xd8] sm:$0xff]  ;;  %v162_v35 = vld [vmem:[%s11053_s26 + $0x50] sm:$0xff]  ;;  %v120_v51 = vunpack.c.l.bf16 %v104_v25 }
  0x10   :  { %6504 = vmatpush3.bf16.msra.mxu0 %v6503_v13  ;;  %v6515_v33 = vpack.c.bf16 %v161_v30, %v160_v29  ;;  %v6517_v34 = vpack.c.bf16 %v179_v32, %v178_v31  ;;  %v163_v36 = vld [vmem:[%s11053_s26 + $0x58] sm:$0xff]  ;;  %v180_v37 = vld [vmem:[%s11053_s26 + $0xe0] sm:$0xff]  ;;  %v181_v38 = vld [vmem:[%s11053_s26 + $0xe8] sm:$0xff] }
  0x11   :  { %6506 = vmatprep.subr.bf16.mxu0 %v6505_v14  ;;  %248 = vmatprep.mubr.f32.mxu0 %v121_v26  ;;  %v6519_v39 = vpack.c.bf16 %v163_v36, %v162_v35  ;;  %v6521_v40 = vpack.c.bf16 %v181_v38, %v180_v37  ;;  %v164_v41 = vld [vmem:[%s11053_s26 + $0x60] sm:$0xff]  ;;  %v165_v42 = vld [vmem:[%s11053_s26 + $0x68] sm:$0xff]  ;;  %v182_v43 = vld [vmem:[%s11053_s26 + $0xf0] sm:$0xff] }
  0x12   :  { %v183_v44 = vld [vmem:[%s11053_s26 + $0xf8] sm:$0xff]  ;;  %v6523_v45 = vpack.c.bf16 %v165_v42, %v164_v41  ;;  %v166_v47 = vld [vmem:[%s11053_s26 + $0x70] sm:$0xff]  ;;  %v105_v50 = vld [vmem:[%s11054_s20 + $0x8] sm:$0xff] }
  0x13   :  { %v6525_v46 = vpack.c.bf16 %v183_v44, %v182_v43  ;;  %v167_v48 = vld [vmem:[%s11053_s26 + $0x78] sm:$0xff]  ;;  %v123_v52 = vunpack.c.h.bf16 %v105_v50  ;;  %v106_v53 = vld [vmem:[%s11054_s20 + $0x10] sm:$0xff]  ;;  %v122_v54 = vunpack.c.l.bf16 %v105_v50  ;;  %v108_v59 = vld [vmem:[%s11054_s20 + $0x20] sm:$0xff] }
  0x14   :  { %6508 = vmatpush3.bf16.msra.mxu0 %v6507_v19  ;;  %v6527_v49 = vpack.c.bf16 %v167_v48, %v166_v47  ;;  %v125_v55 = vunpack.c.h.bf16 %v106_v53  ;;  %v107_v56 = vld [vmem:[%s11054_s20 + $0x18] sm:$0xff]  ;;  %v124_v57 = vunpack.c.l.bf16 %v106_v53  ;;  %v129_v61 = vunpack.c.h.bf16 %v108_v59  ;;  %v109_v62 = vld [vmem:[%s11054_s20 + $0x28] sm:$0xff]  ;;  %v110_v1 = vld [vmem:[%s11054_s20 + $0x30] sm:$0xff] }
  0x15   :  { %6510 = vmatprep.subr.bf16.mxu0 %v6509_v20  ;;  %v127_v58 = vunpack.c.h.bf16 %v107_v56  ;;  %v126_v60 = vunpack.c.l.bf16 %v107_v56  ;;  %v128_v63 = vunpack.c.l.bf16 %v108_v59  ;;  %v131_v0 = vunpack.c.h.bf16 %v109_v62  ;;  %v111_v4 = vld [vmem:[%s11054_s20 + $0x38] sm:$0xff]  ;;  %v112_v7 = vld [vmem:[%s11054_s20 + $0x40] sm:$0xff]  ;;  %v113_v10 = vld [vmem:[%s11054_s20 + $0x48] sm:$0xff] }
  0x16   :  { %v130_v2 = vunpack.c.l.bf16 %v109_v62  ;;  %v133_v3 = vunpack.c.h.bf16 %v110_v1  ;;  %v132_v5 = vunpack.c.l.bf16 %v110_v1  ;;  %v135_v6 = vunpack.c.h.bf16 %v111_v4  ;;  %v114_v13 = vld [vmem:[%s11054_s20 + $0x50] sm:$0xff]  ;;  %v115_v16 = vld [vmem:[%s11054_s20 + $0x58] sm:$0xff]  ;;  %v116_v19 = vld [vmem:[%s11054_s20 + $0x60] sm:$0xff] }
  0x17   :  { %v134_v8 = vunpack.c.l.bf16 %v111_v4  ;;  %v137_v9 = vunpack.c.h.bf16 %v112_v7  ;;  %v136_v11 = vunpack.c.l.bf16 %v112_v7  ;;  %v139_v12 = vunpack.c.h.bf16 %v113_v10  ;;  %v117_v22 = vld [vmem:[%s11054_s20 + $0x68] sm:$0xff]  ;;  %v118_v25 = vld [vmem:[%s11054_s20 + $0x70] sm:$0xff] }
  0x18   :  { %6512 = vmatpush3.bf16.msra.mxu0 %v6511_v27  ;;  %v138_v14 = vunpack.c.l.bf16 %v113_v10  ;;  %v141_v15 = vunpack.c.h.bf16 %v114_v13  ;;  %v140_v17 = vunpack.c.l.bf16 %v114_v13  ;;  %v143_v18 = vunpack.c.h.bf16 %v115_v16 }
  0x19   :  { %6514 = vmatprep.subr.bf16.mxu0 %v6513_v28  ;;  %v142_v20 = vunpack.c.l.bf16 %v115_v16  ;;  %v145_v21 = vunpack.c.h.bf16 %v116_v19  ;;  %v144_v23 = vunpack.c.l.bf16 %v116_v19  ;;  %v147_v24 = vunpack.c.h.bf16 %v117_v22  ;;  %v119_v28 = vld [vmem:[%s11054_s20 + $0x78] sm:$0xff] }
  0x1a   :  { %v146_v26 = vunpack.c.l.bf16 %v117_v22  ;;  %v149_v27 = vunpack.c.h.bf16 %v118_v25  ;;  %v148_v29 = vunpack.c.l.bf16 %v118_v25  ;;  %v151_v30 = vunpack.c.h.bf16 %v119_v28 }
  0x1b   :  { %v150_v31 = vunpack.c.l.bf16 %v119_v28  ;;  %v330_v28 = vld [vmem:[%s10862_s0 + $0x8] sm:$0xff] }
  0x1c   :  { %6516 = vmatpush3.bf16.msra.mxu0 %v6515_v33 }
  0x1d   :  { %6518 = vmatprep.subr.bf16.mxu0 %v6517_v34 }
  0x20   :  { %6520 = vmatpush3.bf16.msra.mxu0 %v6519_v39 }
  0x21   :  { %6522 = vmatprep.subr.bf16.mxu0 %v6521_v40 }
  0x24   :  { %6524 = vmatpush3.bf16.msra.mxu0 %v6523_v45 }
  0x25   :  { %6526 = vmatprep.subr.bf16.mxu0 %v6525_v46 }
  0x28   :  { %6528 = vmatpush3.bf16.msra.mxu0 %v6527_v49 }
  0x2b   :  { %249 = vmatmul.mubr.f32.vlgmr.msra.gmra.mrb[0].mxu0 %v120_v51 }
  0x2c   :  { %253 = vmatprep.mubr.f32.mxu0 %v123_v52 }
  0x2f   :  { %254 = vmatmul.mubr.f32.gmra.mrb[2].mxu0 %v122_v54 }
  0x30   :  { %258 = vmatprep.mubr.f32.mxu0 %v125_v55 }
  0x33   :  { %259 = vmatmul.mubr.f32.gmra.mrb[4].mxu0 %v124_v57 }
  0x34   :  { %263 = vmatprep.mubr.f32.mxu0 %v127_v58 }
  0x37   :  { %264 = vmatmul.mubr.f32.gmra.mrb[6].mxu0 %v126_v60 }
  0x38   :  { %268 = vmatprep.mubr.f32.mxu0 %v129_v61 }
  0x3b   :  { %269 = vmatmul.mubr.f32.gmra.mrb[8].mxu0 %v128_v63 }
  0x3c   :  { %273 = vmatprep.mubr.f32.mxu0 %v131_v0 }
  0x3f   :  { %274 = vmatmul.mubr.f32.gmra.mrb[10].mxu0 %v130_v2 }
  0x40   :  { %278 = vmatprep.mubr.f32.mxu0 %v133_v3 }
  0x43   :  { %279 = vmatmul.mubr.f32.gmra.mrb[12].mxu0 %v132_v5 }
  0x44   :  { %283 = vmatprep.mubr.f32.mxu0 %v135_v6 }
  0x47   :  { %284 = vmatmul.mubr.f32.gmra.mrb[14].mxu0 %v134_v8 }
  0x48   :  { %288 = vmatprep.mubr.f32.mxu0 %v137_v9 }
  0x4b   :  { %289 = vmatmul.mubr.f32.gmra.mrb[16].mxu0 %v136_v11 }
  0x4c   :  { %293 = vmatprep.mubr.f32.mxu0 %v139_v12 }
  0x4f   :  { %294 = vmatmul.mubr.f32.gmra.mrb[18].mxu0 %v138_v14 }
  0x50   :  { %298 = vmatprep.mubr.f32.mxu0 %v141_v15 }
  0x53   :  { %299 = vmatmul.mubr.f32.gmra.mrb[20].mxu0 %v140_v17 }
  0x54   :  { %303 = vmatprep.mubr.f32.mxu0 %v143_v18 }
  0x57   :  { %304 = vmatmul.mubr.f32.gmra.mrb[22].mxu0 %v142_v20  ;;  %v7803_v20 = vld [vmem:[%s10861_s3] sm:$0xff]  }
  0x58   :  { %308 = vmatprep.mubr.f32.mxu0 %v145_v21  ;;  %v7806_v21 = vunpack.c.l.bf16 %v7803_v20 }
  0x5a   :  { %11055 = vst [vmem:[#allocation2_spill] sm:$0xff] %v7806_v21  ;;  %6161 = vmatprep.mubr.f32.mxu1 %v7806_v21  ;;  %vm88_vm8 = vcmp.gt.f32.partialorder %v7806_v21, 0.0 }
  0x5b   :  { %309 = vmatmul.mubr.f32.gmra.mrb[24].mxu0 %v144_v23 }
  0x5c   :  { %313 = vmatprep.mubr.f32.mxu0 %v147_v24 }
  0x5f   :  { %314 = vmatmul.mubr.f32.gmra.mrb[26].mxu0 %v146_v26 }
  0x60   :  { %318 = vmatprep.mubr.f32.mxu0 %v149_v27  ;;  %v329_v27 = vld [vmem:[%s10862_s0] sm:$0xff] }
  0x63   :  { %319 = vmatmul.mubr.f32.gmra.mrb[28].mxu0 %v148_v29 }
  0x64   :  { %323 = vmatprep.mubr.f32.mxu0 %v151_v30 }
  0x67   :  { %324 = vmatmul.mubr.f32.gmra.mrb[30].mxu0 %v150_v31 }
  0xfe   :  { %v5550_v32 = vpop.f32.mrb[0].mxu0 }
  0xff   :  { %v5551_v33 = vpop.f32.mrb[1].mxu0 }
 0x100   :  { %v5552_v34 = vadd.f32 %v5551_v33, %v5550_v32 }
 0x102   :  { %v5553_v35 = vpop.f32.mrb[2].mxu0 }
 0x103   :  { %v5554_v36 = vpop.f32.mrb[3].mxu0 }
 0x104   :  { %v5555_v37 = vadd.f32 %v5554_v36, %v5553_v35  ;;  %v331_v35 = vld [vmem:[%s10862_s0 + $0x10] sm:$0xff]  ;;  %v332_v36 = vld [vmem:[%s10862_s0 + $0x18] sm:$0xff] }
 0x106   :  { %v5556_v38 = vpop.f32.mrb[4].mxu0  ;;  %v6845_v39 = vpack.i.bf16 %v5555_v37, %v5552_v34 }
 0x107   :  { %v5557_v40 = vpop.f32.mrb[5].mxu0 }
 0x108   :  { %v5558_v41 = vadd.f32 %v5557_v40, %v5556_v38  ;;  %6846 = vrot.lane.b32.xlu0 %v6845_v39, %s7551_s25 }
 0x10a   :  { %v5559_v42 = vpop.f32.mrb[6].mxu0 }
 0x10b   :  { %v5560_v43 = vpop.f32.mrb[7].mxu0 }
 0x10c   :  { %v5561_v44 = vadd.f32 %v5560_v43, %v5559_v42  ;;  %v333_v43 = vld [vmem:[%s10862_s0 + $0x20] sm:$0xff] }
 0x10e   :  { %v6850_v45 = vpack.i.bf16 %v5561_v44, %v5558_v41  ;;  %v5562_v46 = vpop.f32.mrb[8].mxu0  ;;  %v334_v44 = vld [vmem:[%s10862_s0 + $0x28] sm:$0xff] }
 0x10f   :  { %v5563_v47 = vpop.f32.mrb[9].mxu0 }
 0x110   :  { %v5564_v48 = vadd.f32 %v5563_v47, %v5562_v46  ;;  %6851 = vrot.lane.b32.xlu0 %v6850_v45, %s7551_s25 }
 0x112   :  { %v5565_v49 = vpop.f32.mrb[10].mxu0 }
 0x113   :  { %v5566_v50 = vpop.f32.mrb[11].mxu0 }
 0x114   :  { %v5567_v51 = vadd.f32 %v5566_v50, %v5565_v49 }
 0x116   :  { %v5568_v52 = vpop.f32.mrb[12].mxu0  ;;  %v6855_v53 = vpack.i.bf16 %v5567_v51, %v5564_v48  ;;  %v335_v51 = vld [vmem:[%s10862_s0 + $0x30] sm:$0xff] }
 0x117   :  { %v5569_v54 = vpop.f32.mrb[13].mxu0 }
 0x118   :  { %v5570_v55 = vadd.f32 %v5569_v54, %v5568_v52  ;;  %6856 = vrot.lane.b32.xlu1 %v6855_v53, %s7551_s25  ;;  %v336_v52 = vld [vmem:[%s10862_s0 + $0x38] sm:$0xff] }
 0x11a   :  { %v5571_v56 = vpop.f32.mrb[14].mxu0 }
 0x11b   :  { %v5572_v57 = vpop.f32.mrb[15].mxu0 }
 0x11c   :  { %v5573_v58 = vadd.f32 %v5572_v57, %v5571_v56 }
 0x11e   :  { %v6860_v59 = vpack.i.bf16 %v5573_v58, %v5570_v55  ;;  %v5574_v60 = vpop.f32.mrb[16].mxu0 }
 0x11f   :  { %v5575_v61 = vpop.f32.mrb[17].mxu0 }
 0x120   :  { %v5576_v62 = vadd.f32 %v5575_v61, %v5574_v60  ;;  %6861 = vrot.lane.b32.xlu1 %v6860_v59, %s7551_s25  ;;  %v337_v59 = vld [vmem:[%s10862_s0 + $0x40] sm:$0xff]  ;;  %v338_v60 = vld [vmem:[%s10862_s0 + $0x48] sm:$0xff] }
 0x122   :  { %v5577_v63 = vpop.f32.mrb[18].mxu0 }
 0x123   :  { %v5578_v0 = vpop.f32.mrb[19].mxu0 }
 0x124   :  { %v5579_v1 = vadd.f32 %v5578_v0, %v5577_v63 }
 0x126   :  { %v6865_v2 = vpack.i.bf16 %v5579_v1, %v5576_v62  ;;  %v5580_v3 = vpop.f32.mrb[20].mxu0 }
 0x127   :  { %v5581_v4 = vpop.f32.mrb[21].mxu0 }
 0x128   :  { %v5582_v5 = vadd.f32 %v5581_v4, %v5580_v3  ;;  %6866 = vrot.lane.b32.xlu0 %v6865_v2, %s7551_s25  ;;  %v339_v3 = vld [vmem:[%s10862_s0 + $0x50] sm:$0xff]  ;;  %v340_v4 = vld [vmem:[%s10862_s0 + $0x58] sm:$0xff] }
 0x12a   :  { %v5583_v6 = vpop.f32.mrb[22].mxu0 }
 0x12b   :  { %v5584_v7 = vpop.f32.mrb[23].mxu0 }
 0x12c   :  { %v5585_v8 = vadd.f32 %v5584_v7, %v5583_v6 }
 0x12e   :  { %v6870_v9 = vpack.i.bf16 %v5585_v8, %v5582_v5  ;;  %v5586_v10 = vpop.f32.mrb[24].mxu0 }
 0x12f   :  { %v5587_v11 = vpop.f32.mrb[25].mxu0 }
 0x130   :  { %v5588_v12 = vadd.f32 %v5587_v11, %v5586_v10  ;;  %6871 = vrot.lane.b32.xlu1 %v6870_v9, %s7551_s25  ;;  %v341_v11 = vld [vmem:[%s10862_s0 + $0x60] sm:$0xff] }
 0x132   :  { %v5589_v13 = vpop.f32.mrb[26].mxu0 }
 0x133   :  { %v5590_v14 = vpop.f32.mrb[27].mxu0 }
 0x134   :  { %v5591_v15 = vadd.f32 %v5590_v14, %v5589_v13 }
 0x136   :  { %v6875_v16 = vpack.i.bf16 %v5591_v15, %v5588_v12  ;;  %v5592_v17 = vpop.f32.mrb[28].mxu0  ;;  %v342_v12 = vld [vmem:[%s10862_s0 + $0x68] sm:$0xff] }
 0x137   :  { %v5593_v18 = vpop.f32.mrb[29].mxu0 }
 0x138   :  { %v5594_v19 = vadd.f32 %v5593_v18, %v5592_v17  ;;  %6876 = vrot.lane.b32.xlu0 %v6875_v16, %s7551_s25 }
 0x13a   :  { %v5595_v22 = vpop.f32.mrb[30].mxu0 }
 0x13b   :  { %v5596_v23 = vpop.f32.mrb[31].mxu0 }
 0x13c   :  { %v5597_v24 = vadd.f32 %v5596_v23, %v5595_v22  ;;  %v344_v22 = vld [vmem:[%s10862_s0 + $0x78] sm:$0xff] }
 0x13e   :  { %v6880_v25 = vpack.i.bf16 %v5597_v24, %v5594_v19  ;;  %v343_v19 = vld [vmem:[%s10862_s0 + $0x70] sm:$0xff] }
 0x140   :  { %6881 = vrot.lane.b32.xlu1 %v6880_v25, %s7551_s25  ;;  %v571_v25 = vld [vmem:[%s10863_s4] sm:$0xff] }
 0x17a   :  { %v6847_v26 = vpop.permute.xlu0 %6846 }
 0x17b   :  { %v6849_v29 = vunpack.i.h.bf16 %v6847_v26  ;;  %v6848_v30 = vunpack.i.l.bf16 %v6847_v26  ;;  %v572_v26 = vld [vmem:[%s10863_s4 + $0x8] sm:$0xff] }
 0x17d   :  { %v410_v31 = vsel %vm10904_vm0, %v329_v27, %v6848_v30  ;;  %v411_v32 = vsel %vm10904_vm0, %v330_v28, %v6849_v29  ;;  %v5511_v30 = vld [vmem:[%s10861_s3 + $0x8] sm:$0xff]  }
 0x17e   :  { %v6529_v33 = vpack.c.bf16 %v411_v32, %v410_v31  ;;  %v6561_v31 = vpack.c.bf16 %v572_v26, %v571_v25  ;;  %v7884_v32 = vunpack.c.h.bf16 %v7803_v20 }
 0x180   :  { %6530 = vmatprep.subr.bf16.mxu1 %v6529_v33  ;;  %11056 = vst [vmem:[#allocation3_spill] sm:$0xff] %v7884_v32  ;;  %vm89_vm5 = vcmp.gt.f32.partialorder %v7884_v32, 0.0 }
 0x181   :  { %6532 = vmatpush3.bf16.msra.mxu1 %v6529_v33  ;;  %v7886_v33 = vunpack.c.l.bf16 %v5511_v30 }
 0x182   :  { %v6852_v34 = vpop.permute.xlu0 %6851 }
 0x183   :  { %v6854_v37 = vunpack.i.h.bf16 %v6852_v34  ;;  %v6853_v38 = vunpack.i.l.bf16 %v6852_v34  ;;  %11057 = vst [vmem:[#allocation4_spill] sm:$0xff] %v7886_v33  ;;  %v5512_v34 = vld [vmem:[%s10861_s3 + $0x10] sm:$0xff]   ;;  %vm90_vm14 = vcmp.gt.f32.partialorder %v7886_v33, 0.0 }
 0x184   :  { %v7898_v20 = vunpack.c.l.bf16 %v5512_v34 }
 0x185   :  { %v412_v39 = vsel %vm10904_vm0, %v331_v35, %v6853_v38  ;;  %v413_v40 = vsel %vm10904_vm0, %v332_v36, %v6854_v37  ;;  %v573_v35 = vld [vmem:[%s10863_s4 + $0x10] sm:$0xff]  ;;  %v7895_v36 = vunpack.c.h.bf16 %v5511_v30  ;;  %v5513_v37 = vld [vmem:[%s10861_s3 + $0x18] sm:$0xff]   ;;  %v7904_v38 = vunpack.c.h.bf16 %v5512_v34 }
 0x186   :  { %v6533_v41 = vpack.c.bf16 %v413_v40, %v412_v39  ;;  %11059 = vst [vmem:[#allocation6_spill] sm:$0xff] %v7898_v20  ;;  %v7907_v39 = vunpack.c.l.bf16 %v5513_v37  ;;  %v5514_v40 = vld [vmem:[%s10861_s3 + $0x20] sm:$0xff]  }
 0x187   :  { %11058 = vst [vmem:[#allocation5_spill] sm:$0xff] %v7895_v36  ;;  %11060 = vst [vmem:[#allocation7_spill] sm:$0xff] %v7904_v38  ;;  %vm91_vm11 = vcmp.gt.f32.partialorder %v7895_v36, 0.0 }
 0x188   :  { %6534 = vmatprep.subr.bf16.mxu1 %v6533_v41  ;;  %11061 = vst [vmem:[#allocation8_spill] sm:$0xff] %v7907_v39 }
 0x189   :  { %6536 = vmatpush3.bf16.msra.mxu1 %v6533_v41  ;;  %v7913_v41 = vunpack.c.h.bf16 %v5513_v37 }
 0x18a   :  { %v6857_v42 = vpop.permute.xlu1 %6856 }
 0x18b   :  { %v6859_v45 = vunpack.i.h.bf16 %v6857_v42  ;;  %v6858_v46 = vunpack.i.l.bf16 %v6857_v42  ;;  %11062 = vst [vmem:[#allocation9_spill] sm:$0xff] %v7913_v41  ;;  %v7916_v42 = vunpack.c.l.bf16 %v5514_v40 }
 0x18d   :  { %v414_v47 = vsel %vm10904_vm0, %v333_v43, %v6858_v46  ;;  %v415_v48 = vsel %vm10904_vm0, %v334_v44, %v6859_v45  ;;  %11063 = vst [vmem:[#allocation10_spill] sm:$0xff] %v7916_v42  ;;  %v5515_v43 = vld [vmem:[%s10861_s3 + $0x28] sm:$0xff]   ;;  %v7922_v44 = vunpack.c.h.bf16 %v5514_v40  ;;  %v5516_v46 = vld [vmem:[%s10861_s3 + $0x30] sm:$0xff]  }
 0x18e   :  { %v6537_v49 = vpack.c.bf16 %v415_v48, %v414_v47  ;;  %v7925_v45 = vunpack.c.l.bf16 %v5515_v43  ;;  %v7931_v47 = vunpack.c.h.bf16 %v5515_v43  ;;  %v7934_v48 = vunpack.c.l.bf16 %v5516_v46 }
 0x18f   :  { %11064 = vst [vmem:[#allocation11_spill] sm:$0xff] %v7922_v44 }
 0x190   :  { %6538 = vmatprep.subr.bf16.mxu1 %v6537_v49  ;;  %11065 = vst [vmem:[#allocation12_spill] sm:$0xff] %v7925_v45  ;;  %11066 = vst [vmem:[#allocation13_spill] sm:$0xff] %v7931_v47 }
 0x191   :  { %6540 = vmatpush3.bf16.msra.mxu1 %v6537_v49  ;;  %11067 = vst [vmem:[#allocation14_spill] sm:$0xff] %v7934_v48  ;;  %v5517_v49 = vld [vmem:[%s10861_s3 + $0x38] sm:$0xff]  }
 0x192   :  { %v6862_v50 = vpop.permute.xlu1 %6861 }
 0x193   :  { %v6864_v53 = vunpack.i.h.bf16 %v6862_v50  ;;  %v6863_v54 = vunpack.i.l.bf16 %v6862_v50  ;;  %v7940_v50 = vunpack.c.h.bf16 %v5516_v46 }
 0x195   :  { %v416_v55 = vsel %vm10904_vm0, %v335_v51, %v6863_v54  ;;  %v417_v56 = vsel %vm10904_vm0, %v336_v52, %v6864_v53  ;;  %11068 = vst [vmem:[#allocation15_spill] sm:$0xff] %v7940_v50  ;;  %v7943_v51 = vunpack.c.l.bf16 %v5517_v49  ;;  %v7946_v52 = vunpack.c.h.bf16 %v5517_v49  ;;  %v971_v53 = vld [vmem:[%s10864_s8] sm:$0xff]  ;;  %v972_v54 = vld [vmem:[%s10864_s8 + $0x8] sm:$0xff] }
 0x196   :  { %v6541_v57 = vpack.c.bf16 %v417_v56, %v416_v55  ;;  %v6569_v55 = vpack.c.bf16 %v972_v54, %v971_v53  ;;  %v775_v56 = vld [vmem:[%s10865_s6] sm:$0xff] }
 0x197   :  { %11069 = vst [vmem:[#allocation16_spill] sm:$0xff] %v7943_v51  ;;  %11070 = vst [vmem:[#allocation17_spill] sm:$0xff] %v7946_v52 }
 0x198   :  { %6542 = vmatprep.subr.bf16.mxu1 %v6541_v57 }
 0x199   :  { %6544 = vmatpush3.bf16.msra.mxu1 %v6541_v57  ;;  %v776_v57 = vld [vmem:[%s10865_s6 + $0x8] sm:$0xff] }
 0x19a   :  { %v6867_v58 = vpop.permute.xlu0 %6866 }
 0x19b   :  { %v6869_v61 = vunpack.i.h.bf16 %v6867_v58  ;;  %v6868_v62 = vunpack.i.l.bf16 %v6867_v58  ;;  %v6565_v58 = vpack.c.bf16 %v776_v57, %v775_v56 }
 0x19d   :  { %v418_v63 = vsel %vm10904_vm0, %v337_v59, %v6868_v62  ;;  %v419_v0 = vsel %vm10904_vm0, %v338_v60, %v6869_v61  ;;  %v777_v59 = vld [vmem:[%s10865_s6 + $0x10] sm:$0xff]  ;;  %6566 = vmatprep.subr.bf16.mxu0 %v6565_v58 }
 0x19e   :  { %v6545_v1 = vpack.c.bf16 %v419_v0, %v418_v63  ;;  %6568 = vmatpush3.bf16.msra.mxu0 %v6565_v58  ;;  %v973_v62 = vld [vmem:[%s10864_s8 + $0x10] sm:$0xff] }
 0x19f   :  { %6219 = vmatprep.subr.mxu0 %v777_v59 }
 0x1a0   :  { %6546 = vmatprep.subr.bf16.mxu1 %v6545_v1 }
 0x1a1   :  { %6548 = vmatpush3.bf16.msra.mxu1 %v6545_v1 }
 0x1a2   :  { %v6872_v2 = vpop.permute.xlu1 %6871  ;;  %6220 = vmatpush3.msra.mxu0 %v777_v59 }
 0x1a3   :  { %v6874_v5 = vunpack.i.h.bf16 %v6872_v2  ;;  %v6873_v6 = vunpack.i.l.bf16 %v6872_v2 }
 0x1a5   :  { %v420_v7 = vsel %vm10904_vm0, %v339_v3, %v6873_v6  ;;  %v421_v8 = vsel %vm10904_vm0, %v340_v4, %v6874_v5 }
 0x1a6   :  { %v6549_v9 = vpack.c.bf16 %v421_v8, %v420_v7 }
 0x1a8   :  { %6550 = vmatprep.subr.bf16.mxu1 %v6549_v9 }
 0x1a9   :  { %6552 = vmatpush3.bf16.msra.mxu1 %v6549_v9 }
 0x1aa   :  { %v6877_v10 = vpop.permute.xlu0 %6876 }
 0x1ab   :  { %v6879_v13 = vunpack.i.h.bf16 %v6877_v10  ;;  %v6878_v14 = vunpack.i.l.bf16 %v6877_v10 }
 0x1ad   :  { %v422_v15 = vsel %vm10904_vm0, %v341_v11, %v6878_v14  ;;  %v423_v16 = vsel %vm10904_vm0, %v342_v12, %v6879_v13  ;;  %v1119_v13 = vld [vmem:[%s10866_s7] sm:$0xff]  ;;  %v10891_v14 = vmov 0.0|0.0  }
 0x1ae   :  { %v6553_v17 = vpack.c.bf16 %v423_v16, %v422_v15  ;;  %1122 = vxpose.xlu0.b32.start [1/3] (short) (narrow) %v1119_v13, 8  ;;  %6573 = vmatprep.subr.bf16.mxu0 %v10891_v14  ;;  %v1120_v15 = vld [vmem:[%s10866_s7 + $0x8] sm:$0xff]  ;;  %v1121_v16 = vld [vmem:[%s10866_s7 + $0x10] sm:$0xff] }
 0x1b0   :  { %6554 = vmatprep.subr.bf16.mxu1 %v6553_v17 }
 0x1b1   :  { %6556 = vmatpush3.bf16.msra.mxu1 %v6553_v17  ;;  %v10884_v17 = vmov 1  }
 0x1b2   :  { %v6882_v18 = vpop.permute.xlu1 %6881  ;;  %1123 = vxpose.xlu0.b32.cont [2/3] (short) (narrow) %v1120_v15, 8  ;;  %6885 = vset.pattern.permute.xlu1 %v10884_v17  ;;  %v10887_v15 = vmov 3  }
 0x1b3   :  { %v6884_v23 = vunpack.i.h.bf16 %v6882_v18  ;;  %v6883_v24 = vunpack.i.l.bf16 %v6882_v18  ;;  %v7998_v18 = vld [vmem:[%s10867_s5] ss:$0 sm:$0xff] }
 0x1b5   :  { %v424_v27 = vsel %vm10904_vm0, %v343_v19, %v6883_v24  ;;  %v425_v28 = vsel %vm10904_vm0, %v344_v22, %v6884_v23  ;;  %vm99_vm0 = vcmp.gt.f32.partialorder %v7931_v47, 0.0 }
 0x1b6   :  { %v6557_v29 = vpack.c.bf16 %v425_v28, %v424_v27  ;;  %1124 = vxpose.xlu0.b32.end [3/3] (short) (narrow) %v1121_v16, 8  ;;  %v8084_v16 = vld [vmem:[%s10868_s10] ss:$0 sm:$0xff] }
 0x1b8   :  { %6558 = vmatprep.subr.bf16.mxu1 %v6557_v29 }
 0x1b9   :  { %6560 = vmatpush3.bf16.msra.mxu1 %v6557_v29 }
 0x1ba   :  { %6562 = vmatprep.subr.bf16.mxu1 %v6561_v31 }
 0x1bc   :  { %6162 = vmatmul.mubr.f32.vlgmr.msra.gmra.mrb[0].mxu1 %v7884_v32 }
 0x1bd   :  { %6164 = vmatprep.mubr.f32.mxu1 %v7886_v33  ;;  %6564 = vmatpush3.bf16.msra.mxu1 %v6561_v31 }
 0x1be   :  { %6189 = vmatprep.subr.mxu1 %v573_v35 }
 0x1c0   :  { %6165 = vmatmul.mubr.f32.gmra.mrb[2].mxu1 %v7895_v36 }
 0x1c1   :  { %6167 = vmatprep.mubr.f32.mxu1 %v7898_v20  ;;  %6190 = vmatpush3.msra.mxu1 %v573_v35 }
 0x1c2   :  { %6570 = vmatprep.subr.bf16.mxu1 %v6569_v55 }
 0x1c4   :  { %6168 = vmatmul.mubr.f32.gmra.mrb[4].mxu1 %v7904_v38 }
 0x1c5   :  { %6170 = vmatprep.mubr.f32.mxu1 %v7907_v39 }
 0x1c8   :  { %6171 = vmatmul.mubr.f32.gmra.mrb[6].mxu1 %v7913_v41 }
 0x1c9   :  { %6173 = vmatprep.mubr.f32.mxu1 %v7916_v42 }
 0x1cc   :  { %6174 = vmatmul.mubr.f32.gmra.mrb[8].mxu1 %v7922_v44 }
 0x1cd   :  { %6176 = vmatprep.mubr.f32.mxu1 %v7925_v45 }
 0x1d0   :  { %6177 = vmatmul.mubr.f32.gmra.mrb[10].mxu1 %v7931_v47 }
 0x1d1   :  { %6179 = vmatprep.mubr.f32.mxu1 %v7934_v48 }
 0x1d4   :  { %6180 = vmatmul.mubr.f32.gmra.mrb[12].mxu1 %v7940_v50 }
 0x1d5   :  { %6182 = vmatprep.mubr.f32.mxu1 %v7943_v51 }
 0x1d8   :  { %6183 = vmatmul.mubr.f32.gmra.mrb[14].mxu1 %v7946_v52 }
 0x1df   :  { %6899 = vset.pattern.permute.xlu0 %v10887_v15 }
 0x22e   :  { %v1138_v13 = vpop.trf.xlu0 }
 0x28f   :  { %v6163_v60 = vpop.f32.mrb[0].mxu1 }
 0x290   :  { %v492_v61 = vpop.f32.mrb[1].mxu1 }
 0x291   :  { %6191 = vmatprep.mubr.msk.f32.mxu1 %vm581_vm1, %v492_v61 }
 0x292   :  { %6192 = vmatmul.mubr.msk.f32.vlgmr.msra.gmra.mrb[16].mxu1 %vm581_vm1, %v6163_v60 }
 0x293   :  { %v6166_v63 = vpop.f32.mrb[2].mxu1  ;;  %6572 = vmatpush3.bf16.msra.mxu1 %v6569_v55 }
 0x294   :  { %v502_v0 = vpop.f32.mrb[3].mxu1  ;;  %6249 = vmatprep.subr.mxu1 %v973_v62 }
 0x295   :  { %6194 = vmatprep.mubr.msk.f32.mxu1 %vm581_vm1, %v502_v0 }
 0x296   :  { %6195 = vmatmul.mubr.msk.f32.gmra.mrb[18].mxu1 %vm581_vm1, %v6166_v63 }
 0x297   :  { %v6169_v1 = vpop.f32.mrb[4].mxu1  ;;  %6250 = vmatpush3.msra.mxu1 %v973_v62 }
 0x298   :  { %v512_v2 = vpop.f32.mrb[5].mxu1 }
 0x299   :  { %6197 = vmatprep.mubr.msk.f32.mxu1 %vm581_vm1, %v512_v2 }
 0x29a   :  { %6198 = vmatmul.mubr.msk.f32.gmra.mrb[20].mxu1 %vm581_vm1, %v6169_v1 }
 0x29b   :  { %v6172_v3 = vpop.f32.mrb[6].mxu1 }
 0x29c   :  { %v522_v4 = vpop.f32.mrb[7].mxu1 }
 0x29d   :  { %6200 = vmatprep.mubr.msk.f32.mxu1 %vm581_vm1, %v522_v4 }
 0x29e   :  { %6201 = vmatmul.mubr.msk.f32.gmra.mrb[22].mxu1 %vm581_vm1, %v6172_v3 }
 0x29f   :  { %v6175_v5 = vpop.f32.mrb[8].mxu1 }
 0x2a0   :  { %v532_v6 = vpop.f32.mrb[9].mxu1 }
 0x2a1   :  { %6203 = vmatprep.mubr.msk.f32.mxu1 %vm581_vm1, %v532_v6 }
 0x2a2   :  { %6204 = vmatmul.mubr.msk.f32.gmra.mrb[24].mxu1 %vm581_vm1, %v6175_v5 }
 0x2a3   :  { %v6178_v7 = vpop.f32.mrb[10].mxu1 }
 0x2a4   :  { %v542_v8 = vpop.f32.mrb[11].mxu1 }
 0x2a5   :  { %6206 = vmatprep.mubr.msk.f32.mxu1 %vm581_vm1, %v542_v8 }
 0x2a6   :  { %6207 = vmatmul.mubr.msk.f32.gmra.mrb[26].mxu1 %vm581_vm1, %v6178_v7 }
 0x2a7   :  { %v6181_v9 = vpop.f32.mrb[12].mxu1 }
 0x2a8   :  { %v552_v10 = vpop.f32.mrb[13].mxu1 }
 0x2a9   :  { %6209 = vmatprep.mubr.msk.f32.mxu1 %vm581_vm1, %v552_v10 }
 0x2aa   :  { %6210 = vmatmul.mubr.msk.f32.gmra.mrb[28].mxu1 %vm581_vm1, %v6181_v9 }
 0x2ab   :  { %v6184_v11 = vpop.f32.mrb[14].mxu1 }
 0x2ac   :  { %v562_v12 = vpop.f32.mrb[15].mxu1 }
 0x2ad   :  { %6212 = vmatprep.mubr.msk.f32.mxu1 %vm581_vm1, %v562_v12  ;;  %v10879_v12 = vmov 0.0  }
 0x2ae   :  { %6213 = vmatmul.mubr.msk.f32.gmra.mrb[30].mxu1 %vm581_vm1, %v6184_v11 }
 0x365   :  { %v6193_v19 = vpop.f32.mrb[16].mxu1 }
 0x366   :  { %v702_v22 = vadd.f32 %v6193_v19, %v7998_v18  ;;  %v696_v23 = vpop.f32.mrb[17].mxu1  ;;  %v8094_v19 = vld [vmem:[%s10868_s10 + $0x2] ss:$0 sm:$0xff] }
 0x367   :  { %v697_v24 = vadd.f32 %v7998_v18, %v696_v23 }
 0x369   :  { %v6574_v26 = vpack.c.bf16 %v702_v22, %v697_v24  ;;  %6221 = vmatprep.mubr.msk.f32.mxu0 %vm581_vm1, %v697_v24  ;;  %6251 = vmatprep.mubr.msk.f32.mxu1 %vm581_vm1, %v697_v24  ;;  %v6196_v27 = vpop.f32.mrb[18].mxu1 }
 0x36a   :  { %6222 = vmatmul.mubr.msk.f32.vlgmr.msra.gmra.mrb[32].mxu0 %vm581_vm1, %v702_v22  ;;  %6252 = vmatmul.mubr.msk.f32.vlgmr.msra.gmra.mrb[32].mxu1 %vm581_vm1, %v702_v22  ;;  %v712_v28 = vadd.f32 %v6196_v27, %v7998_v18  ;;  %v706_v29 = vpop.f32.mrb[19].mxu1  ;;  %v8099_v22 = vld [vmem:[%s10868_s10 + $0x3] ss:$0 sm:$0xff] }
 0x36b   :  { %6576 = vmatpush3.bf16.xpose.msk.msra.mxu0 %vm8004_vm2, %v6574_v26  ;;  %v707_v30 = vadd.f32 %v7998_v18, %v706_v29 }
 0x36c   :  { %6577 = vmatprep.subr.bf16.mxu0 %v10891_v14 }
 0x36d   :  { %v6578_v31 = vpack.c.bf16 %v712_v28, %v707_v30  ;;  %6254 = vmatprep.mubr.msk.f32.mxu1 %vm581_vm1, %v707_v30  ;;  %6224 = vmatprep.mubr.msk.f32.mxu0 %vm581_vm1, %v707_v30  ;;  %v6199_v34 = vpop.f32.mrb[20].mxu1 }
 0x36e   :  { %6255 = vmatmul.mubr.msk.f32.gmra.mrb[34].mxu1 %vm581_vm1, %v712_v28  ;;  %6225 = vmatmul.mubr.msk.f32.gmra.mrb[34].mxu0 %vm581_vm1, %v712_v28  ;;  %v722_v35 = vadd.f32 %v6199_v34, %v7998_v18  ;;  %v716_v37 = vpop.f32.mrb[21].mxu1 }
 0x36f   :  { %v717_v40 = vadd.f32 %v7998_v18, %v716_v37 }
 0x371   :  { %v6582_v43 = vpack.c.bf16 %v722_v35, %v717_v40  ;;  %6257 = vmatprep.mubr.msk.f32.mxu1 %vm581_vm1, %v717_v40  ;;  %v6202_v46 = vpop.f32.mrb[22].mxu1  ;;  %6227 = vmatprep.mubr.msk.f32.mxu0 %vm581_vm1, %v717_v40 }
 0x372   :  { %v732_v49 = vadd.f32 %v6202_v46, %v7998_v18  ;;  %6258 = vmatmul.mubr.msk.f32.gmra.mrb[36].mxu1 %vm581_vm1, %v722_v35  ;;  %v726_v53 = vpop.f32.mrb[23].mxu1  ;;  %6228 = vmatmul.mubr.msk.f32.gmra.mrb[36].mxu0 %vm581_vm1, %v722_v35 }
 0x373   :  { %6580 = vmatpush3.bf16.xpose.msk.msra.mxu0 %vm8004_vm2, %v6578_v31  ;;  %v727_v54 = vadd.f32 %v7998_v18, %v726_v53 }
 0x374   :  { %6581 = vmatprep.subr.bf16.mxu0 %v10891_v14 }
 0x375   :  { %v6586_v55 = vpack.c.bf16 %v732_v49, %v727_v54  ;;  %6260 = vmatprep.mubr.msk.f32.mxu1 %vm581_vm1, %v727_v54  ;;  %v6205_v56 = vpop.f32.mrb[24].mxu1  ;;  %6230 = vmatprep.mubr.msk.f32.mxu0 %vm581_vm1, %v727_v54 }
 0x376   :  { %6261 = vmatmul.mubr.msk.f32.gmra.mrb[38].mxu1 %vm581_vm1, %v732_v49  ;;  %v742_v57 = vadd.f32 %v6205_v56, %v7998_v18  ;;  %v736_v58 = vpop.f32.mrb[25].mxu1  ;;  %6231 = vmatmul.mubr.msk.f32.gmra.mrb[38].mxu0 %vm581_vm1, %v732_v49 }
 0x377   :  { %v737_v59 = vadd.f32 %v7998_v18, %v736_v58 }
 0x379   :  { %v6590_v60 = vpack.c.bf16 %v742_v57, %v737_v59  ;;  %6263 = vmatprep.mubr.msk.f32.mxu1 %vm581_vm1, %v737_v59  ;;  %v6208_v61 = vpop.f32.mrb[26].mxu1  ;;  %6233 = vmatprep.mubr.msk.f32.mxu0 %vm581_vm1, %v737_v59 }
 0x37a   :  { %6264 = vmatmul.mubr.msk.f32.gmra.mrb[40].mxu1 %vm581_vm1, %v742_v57  ;;  %v752_v62 = vadd.f32 %v6208_v61, %v7998_v18  ;;  %v746_v63 = vpop.f32.mrb[27].mxu1  ;;  %6234 = vmatmul.mubr.msk.f32.gmra.mrb[40].mxu0 %vm581_vm1, %v742_v57 }
 0x37b   :  { %v747_v0 = vadd.f32 %v7998_v18, %v746_v63  ;;  %6584 = vmatpush3.bf16.xpose.msk.msra.mxu0 %vm8004_vm2, %v6582_v43 }
 0x37c   :  { %6585 = vmatprep.subr.bf16.mxu0 %v10891_v14 }
 0x37d   :  { %v6594_v1 = vpack.c.bf16 %v752_v62, %v747_v0  ;;  %6266 = vmatprep.mubr.msk.f32.mxu1 %vm581_vm1, %v747_v0  ;;  %v6211_v2 = vpop.f32.mrb[28].mxu1  ;;  %6236 = vmatprep.mubr.msk.f32.mxu0 %vm581_vm1, %v747_v0 }
 0x37e   :  { %6267 = vmatmul.mubr.msk.f32.gmra.mrb[42].mxu1 %vm581_vm1, %v752_v62  ;;  %v762_v3 = vadd.f32 %v6211_v2, %v7998_v18  ;;  %v756_v4 = vpop.f32.mrb[29].mxu1  ;;  %6237 = vmatmul.mubr.msk.f32.gmra.mrb[42].mxu0 %vm581_vm1, %v752_v62 }
 0x37f   :  { %v757_v5 = vadd.f32 %v7998_v18, %v756_v4 }
 0x381   :  { %v6598_v6 = vpack.c.bf16 %v762_v3, %v757_v5  ;;  %6269 = vmatprep.mubr.msk.f32.mxu1 %vm581_vm1, %v757_v5  ;;  %v6214_v7 = vpop.f32.mrb[30].mxu1  ;;  %6239 = vmatprep.mubr.msk.f32.mxu0 %vm581_vm1, %v757_v5 }
 0x382   :  { %6270 = vmatmul.mubr.msk.f32.gmra.mrb[44].mxu1 %vm581_vm1, %v762_v3  ;;  %v772_v8 = vadd.f32 %v6214_v7, %v7998_v18  ;;  %v766_v9 = vpop.f32.mrb[31].mxu1  ;;  %6240 = vmatmul.mubr.msk.f32.gmra.mrb[44].mxu0 %vm581_vm1, %v762_v3 }
 0x383   :  { %6588 = vmatpush3.bf16.xpose.msk.msra.mxu0 %vm8004_vm2, %v6586_v55  ;;  %v767_v10 = vadd.f32 %v7998_v18, %v766_v9  ;;  %v8089_v18 = vld [vmem:[%s10868_s10 + $0x1] ss:$0 sm:$0xff]  ;;  %v10889_v55 = vmov 0  }
 0x384   :  { %6589 = vmatprep.subr.bf16.mxu0 %v10891_v14 }
 0x385   :  { %v6602_v11 = vpack.c.bf16 %v772_v8, %v767_v10  ;;  %6272 = vmatprep.mubr.msk.f32.mxu1 %vm581_vm1, %v767_v10  ;;  %6242 = vmatprep.mubr.msk.f32.mxu0 %vm581_vm1, %v767_v10 }
 0x386   :  { %6273 = vmatmul.mubr.msk.f32.gmra.mrb[46].mxu1 %vm581_vm1, %v772_v8  ;;  %6243 = vmatmul.mubr.msk.f32.gmra.mrb[46].mxu0 %vm581_vm1, %v772_v8 }
 0x387   :  { %6307 = vmatprep.mubr.msk.f32.mxu0 %vm7554_vm3, %v10879_v12 }
 0x38b   :  { %6592 = vmatpush3.bf16.xpose.msk.msra.mxu0 %vm8004_vm2, %v6590_v60 }
 0x38c   :  { %6593 = vmatprep.subr.bf16.mxu0 %v10891_v14 }
 0x393   :  { %6596 = vmatpush3.bf16.xpose.msk.msra.mxu0 %vm8004_vm2, %v6594_v1 }
 0x394   :  { %6597 = vmatprep.subr.bf16.mxu0 %v10891_v14 }
 0x39b   :  { %6600 = vmatpush3.bf16.xpose.msk.msra.mxu0 %vm8004_vm2, %v6598_v6 }
 0x39c   :  { %6601 = vmatprep.subr.bf16.mxu0 %v10891_v14 }
 0x3a3   :  { %6604 = vmatpush3.bf16.xpose.msk.msra.mxu0 %vm8004_vm2, %v6602_v11  ;;  %vm93_vm2 = vcmp.gt.f32.partialorder %v7904_v38, 0.0 }
 0x3aa   :  { %6308 = vmatmul.mubr.msk.f32.vlgmr.msra.gmra.mrb[48].mxu0 %vm581_vm1, %v1138_v13 }
 0x43d   :  { %v6223_v23 = vpop.f32.mrb[32].mxu0  ;;  %v8101_v24 = vpop.f32.mrb[32].mxu1 }
 0x43e   :  { %v1573_v25 = vmul.f32 %v6223_v23, %v8084_v16  ;;  %v1918_v26 = vmul.f32 %v6223_v23, %v8089_v18  ;;  %v2263_v27 = vmul.f32 %v6223_v23, %v8094_v19  ;;  %v2608_v28 = vmul.f32 %v6223_v23, %v8099_v22  ;;  %1593 = vperm.xlu1 %6885, %v8101_v24   ;;  %v892_v29 = vpop.f32.mrb[33].mxu0  ;;  %v8108_v30 = vpop.f32.mrb[33].mxu1 }
 0x43f   :  { %v1572_v31 = vmul.f32 %v8084_v16, %v892_v29  ;;  %v1917_v34 = vmul.f32 %v8089_v18, %v892_v29  ;;  %v2262_v35 = vmul.f32 %v8094_v19, %v892_v29  ;;  %v2607_v37 = vmul.f32 %v8099_v22, %v892_v29 }
 0x441   :  { %v6605_v40 = vpack.c.bf16 %v1918_v26, %v1917_v34  ;;  %v6637_v43 = vpack.c.bf16 %v2608_v28, %v2607_v37  ;;  %v6607_v46 = vpack.c.bf16 %v1573_v25, %v1572_v31  ;;  %v6639_v49 = vpack.c.bf16 %v2263_v27, %v2262_v35  ;;  %v8114_v53 = vpop.f32.mrb[34].mxu1  ;;  %v6226_v54 = vpop.f32.mrb[34].mxu0 }
 0x442   :  { %6886 = vset.pattern.permute.xlu1 %v10889_v55  ;;  %v1575_v56 = vmul.f32 %v6226_v54, %v8084_v16  ;;  %v1920_v57 = vmul.f32 %v6226_v54, %v8089_v18  ;;  %v2265_v58 = vmul.f32 %v6226_v54, %v8094_v19  ;;  %v2610_v59 = vmul.f32 %v6226_v54, %v8099_v22  ;;  %v8121_v60 = vpop.f32.mrb[35].mxu1  ;;  %v902_v61 = vpop.f32.mrb[35].mxu0 }
 0x443   :  { %1234 = vperm.xlu1 %6886, %v8101_v24   ;;  %6606 = vmatprep.subr.bf16.mxu1 %v6605_v40  ;;  %v1574_v62 = vmul.f32 %v8084_v16, %v902_v61  ;;  %v1919_v63 = vmul.f32 %v8089_v18, %v902_v61  ;;  %v2264_v0 = vmul.f32 %v8094_v19, %v902_v61 }
 0x444   :  { %6638 = vmatprep.subr.bf16.mxu0 %v6637_v43  ;;  %6608 = vmatpush3.bf16.msra.mxu1 %v6607_v46  ;;  %v2609_v1 = vmul.f32 %v8099_v22, %v902_v61 }
 0x445   :  { %6640 = vmatpush3.bf16.msra.mxu0 %v6639_v49  ;;  %2287 = vperm.xlu0 %6899, %v8121_v60   ;;  %v8129_v2 = vpop.f32.mrb[36].mxu1  ;;  %v6609_v3 = vpack.c.bf16 %v1920_v57, %v1919_v63  ;;  %v6611_v4 = vpack.c.bf16 %v1575_v56, %v1574_v62  ;;  %v6643_v5 = vpack.c.bf16 %v2265_v58, %v2264_v0  ;;  %v6229_v6 = vpop.f32.mrb[36].mxu0 }
 0x446   :  { %v6641_v7 = vpack.c.bf16 %v2610_v59, %v2609_v1  ;;  %v8131_v8 = vpop.f32.mrb[37].mxu1  ;;  %v1577_v9 = vmul.f32 %v6229_v6, %v8084_v16  ;;  %v1922_v10 = vmul.f32 %v6229_v6, %v8089_v18  ;;  %v2267_v11 = vmul.f32 %v6229_v6, %v8094_v19  ;;  %v912_v13 = vpop.f32.mrb[37].mxu0 }
 0x447   :  { %6887 = vset.pattern.permute.xlu1 %v10887_v15  ;;  %6610 = vmatprep.subr.bf16.mxu1 %v6609_v3  ;;  %v2612_v23 = vmul.f32 %v6229_v6, %v8099_v22  ;;  %v1576_v25 = vmul.f32 %v8084_v16, %v912_v13  ;;  %v1921_v26 = vmul.f32 %v8089_v18, %v912_v13  ;;  %v10882_v59 = vmov 2  }
 0x448   :  { %2283 = vperm.xlu1 %6887, %v8101_v24   ;;  %6642 = vmatprep.subr.bf16.mxu0 %v6641_v7  ;;  %v2266_v27 = vmul.f32 %v8094_v19, %v912_v13  ;;  %v2611_v28 = vmul.f32 %v8099_v22, %v912_v13 }
 0x449   :  { %6902 = vset.pattern.permute.xlu0 %v10889_v55  ;;  %6612 = vmatpush3.bf16.msra.mxu1 %v6611_v4  ;;  %v8144_v29 = vpop.f32.mrb[38].mxu1  ;;  %v6613_v31 = vpack.c.bf16 %v1922_v10, %v1921_v26  ;;  %v6615_v34 = vpack.c.bf16 %v1577_v9, %v1576_v25  ;;  %v6232_v35 = vpop.f32.mrb[38].mxu0 }
 0x44a   :  { %1254 = vperm.xlu0 %6902, %v8129_v2   ;;  %6644 = vmatpush3.bf16.msra.mxu0 %v6643_v5  ;;  %v8147_v37 = vpop.f32.mrb[39].mxu1  ;;  %v6645_v40 = vpack.c.bf16 %v2612_v23, %v2611_v28  ;;  %v6647_v43 = vpack.c.bf16 %v2267_v11, %v2266_v27  ;;  %v1579_v46 = vmul.f32 %v6232_v35, %v8084_v16  ;;  %v922_v49 = vpop.f32.mrb[39].mxu0 }
 0x44b   :  { %6614 = vmatprep.subr.bf16.mxu1 %v6613_v31  ;;  %v1924_v54 = vmul.f32 %v6232_v35, %v8089_v18  ;;  %v2269_v56 = vmul.f32 %v6232_v35, %v8094_v19  ;;  %v2614_v57 = vmul.f32 %v6232_v35, %v8099_v22  ;;  %v1578_v58 = vmul.f32 %v8084_v16, %v922_v49 }
 0x44c   :  { %6888 = vset.pattern.permute.xlu1 %v10882_v59  ;;  %6646 = vmatprep.subr.bf16.mxu0 %v6645_v40  ;;  %v1923_v61 = vmul.f32 %v8089_v18, %v922_v49  ;;  %v2268_v62 = vmul.f32 %v8094_v19, %v922_v49  ;;  %v2613_v63 = vmul.f32 %v8099_v22, %v922_v49 }
 0x44d   :  { %1938 = vperm.xlu1 %6888, %v8101_v24   ;;  %v8159_v0 = vpop.f32.mrb[40].mxu1  ;;  %6616 = vmatpush3.bf16.msra.mxu1 %v6615_v34  ;;  %v6619_v1 = vpack.c.bf16 %v1579_v46, %v1578_v58  ;;  %v6235_v3 = vpop.f32.mrb[40].mxu0 }
 0x44e   :  { %6911 = vset.pattern.permute.xlu0 %v10887_v15  ;;  %v8162_v4 = vpop.f32.mrb[41].mxu1  ;;  %6648 = vmatpush3.bf16.msra.mxu0 %v6647_v43  ;;  %v6617_v5 = vpack.c.bf16 %v1924_v54, %v1923_v61  ;;  %v6649_v6 = vpack.c.bf16 %v2614_v57, %v2613_v63  ;;  %v6651_v7 = vpack.c.bf16 %v2269_v56, %v2268_v62  ;;  %v932_v9 = vpop.f32.mrb[41].mxu0 }
 0x44f   :  { %2307 = vperm.xlu0 %6911, %v8144_v29   ;;  %v1581_v10 = vmul.f32 %v6235_v3, %v8084_v16  ;;  %v1926_v24 = vmul.f32 %v6235_v3, %v8089_v18  ;;  %v2616_v11 = vmul.f32 %v6235_v3, %v8099_v22  ;;  %v1580_v13 = vmul.f32 %v8084_v16, %v932_v9 }
 0x450   :  { %6618 = vmatprep.subr.bf16.mxu1 %v6617_v5  ;;  %6650 = vmatprep.subr.bf16.mxu0 %v6649_v6  ;;  %v1925_v23 = vmul.f32 %v8089_v18, %v932_v9  ;;  %v2271_v26 = vmul.f32 %v6235_v3, %v8094_v19  ;;  %v2270_v27 = vmul.f32 %v8094_v19, %v932_v9 }
 0x451   :  { %6889 = vset.pattern.permute.xlu1 %v10884_v17  ;;  %v8171_v25 = vpop.f32.mrb[42].mxu1  ;;  %6620 = vmatpush3.bf16.msra.mxu1 %v6619_v1  ;;  %v2615_v28 = vmul.f32 %v8099_v22, %v932_v9  ;;  %v6238_v31 = vpop.f32.mrb[42].mxu0  ;;  %v6623_v46 = vpack.c.bf16 %v1581_v10, %v1580_v13 }
 0x452   :  { %1589 = vperm.xlu1 %6889, %v8108_v30   ;;  %v8177_v34 = vpop.f32.mrb[43].mxu1  ;;  %6652 = vmatpush3.bf16.msra.mxu0 %v6651_v7  ;;  %v942_v35 = vpop.f32.mrb[43].mxu0  ;;  %v6621_v40 = vpack.c.bf16 %v1926_v24, %v1925_v23  ;;  %v6655_v56 = vpack.c.bf16 %v2271_v26, %v2270_v27  ;;  %v1583_v61 = vmul.f32 %v6238_v31, %v8084_v16 }
 0x453   :  { %6913 = vset.pattern.permute.xlu0 %v10884_v17  ;;  %v6653_v43 = vpack.c.bf16 %v2616_v11, %v2615_v28  ;;  %v1928_v62 = vmul.f32 %v6238_v31, %v8089_v18  ;;  %v2618_v63 = vmul.f32 %v6238_v31, %v8099_v22  ;;  %v1927_v1 = vmul.f32 %v8089_v18, %v942_v35 }
 0x454   :  { %1613 = vperm.xlu0 %6913, %v8147_v37   ;;  %v2617_v3 = vmul.f32 %v8099_v22, %v942_v35  ;;  %6622 = vmatprep.subr.bf16.mxu1 %v6621_v40  ;;  %v2273_v6 = vmul.f32 %v6238_v31, %v8094_v19  ;;  %v1582_v7 = vmul.f32 %v8084_v16, %v942_v35 }
 0x455   :  { %v8181_v49 = vpop.f32.mrb[44].mxu1  ;;  %v8183_v54 = vpop.f32.mrb[44].mxu0  ;;  %v2272_v9 = vmul.f32 %v8094_v19, %v942_v35  ;;  %6654 = vmatprep.subr.bf16.mxu0 %v6653_v43  ;;  %6624 = vmatpush3.bf16.msra.mxu1 %v6623_v46  ;;  %v6625_v43 = vpack.c.bf16 %v1928_v62, %v1927_v1 }
 0x456   :  { %6890 = vset.pattern.permute.xlu1 %v10889_v55  ;;  %v8186_v57 = vpop.f32.mrb[45].mxu1  ;;  %v8188_v58 = vpop.f32.mrb[45].mxu0  ;;  %6656 = vmatpush3.bf16.msra.mxu0 %v6655_v56  ;;  %v6627_v46 = vpack.c.bf16 %v1583_v61, %v1582_v7  ;;  %v1585_v62 = vmul.f32 %v8183_v54, %v8084_v16 }
 0x457   :  { %1229 = vperm.xlu1 %6890, %v8108_v30   ;;  %v6659_v12 = vpack.c.bf16 %v2273_v6, %v2272_v9  ;;  %6626 = vmatprep.subr.bf16.mxu1 %v6625_v43  ;;  %v1929_v56 = vmul.f32 %v8089_v18, %v8188_v58  ;;  %v2619_v61 = vmul.f32 %v8099_v22, %v8188_v58 }
 0x458   :  { %6916 = vset.pattern.permute.xlu0 %v10882_v59  ;;  %v2274_v1 = vmul.f32 %v8094_v19, %v8188_v58 }
 0x459   :  { %1958 = vperm.xlu0 %6916, %v8147_v37   ;;  %v8198_v5 = vpop.f32.mrb[46].mxu1  ;;  %v6244_v10 = vpop.f32.mrb[46].mxu0  ;;  %6628 = vmatpush3.bf16.msra.mxu1 %v6627_v46 }
 0x45a   :  { %v8203_v24 = vpop.f32.mrb[47].mxu1  ;;  %v8206_v11 = vmul.f32 %v6244_v10, %v8084_v16  ;;  %v8209_v13 = vmul.f32 %v6244_v10, %v8089_v18  ;;  %v8212_v23 = vmul.f32 %v6244_v10, %v8094_v19  ;;  %v8215_v26 = vmul.f32 %v6244_v10, %v8099_v22  ;;  %v962_v27 = vpop.f32.mrb[47].mxu0 }
 0x45b   :  { %6891 = vset.pattern.permute.xlu1 %v10887_v15  ;;  %v8219_v28 = vmul.f32 %v8084_v16, %v962_v27  ;;  %v8222_v31 = vmul.f32 %v8089_v18, %v962_v27  ;;  %v8225_v35 = vmul.f32 %v8094_v19, %v962_v27  ;;  %v8228_v40 = vmul.f32 %v8099_v22, %v962_v27 }
 0x45c   :  { %2279 = vperm.xlu1 %6891, %v8108_v30   ;;  %v6657_v10 = vpack.c.bf16 %v2618_v63, %v2617_v3  ;;  %v1584_v63 = vmul.f32 %v8084_v16, %v8188_v58 }
 0x45d   :  { %6917 = vset.pattern.permute.xlu0 %v10884_v17  ;;  %v6635_v58 = vpack.c.bf16 %v8206_v11, %v8219_v28  ;;  %v6667_v7 = vpack.c.bf16 %v8212_v23, %v8225_v35 }
 0x45e   :  { %1625 = vperm.xlu0 %6917, %v8159_v0   ;;  %6658 = vmatprep.subr.bf16.mxu0 %v6657_v10  ;;  %v6631_v3 = vpack.c.bf16 %v1585_v62, %v1584_v63 }
 0x45f   :  { %6660 = vmatpush3.bf16.msra.mxu0 %v6659_v12  ;;  %v1930_v12 = vmul.f32 %v8183_v54, %v8089_v18 }
 0x460   :  { %6892 = vset.pattern.permute.xlu1 %v10882_v59 }
 0x461   :  { %1934 = vperm.xlu1 %6892, %v8108_v30   ;;  %v2620_v30 = vmul.f32 %v8183_v54, %v8099_v22  ;;  %v6629_v18 = vpack.c.bf16 %v1930_v12, %v1929_v56 }
 0x462   :  { %6920 = vset.pattern.permute.xlu0 %v10882_v59 }
 0x463   :  { %1970 = vperm.xlu0 %6920, %v8159_v0   ;;  %v6661_v22 = vpack.c.bf16 %v2620_v30, %v2619_v61  ;;  %6630 = vmatprep.subr.bf16.mxu1 %v6629_v18 }
 0x464   :  { %6632 = vmatpush3.bf16.msra.mxu1 %v6631_v3 }
 0x465   :  { %6893 = vset.pattern.permute.xlu1 %v10884_v17  ;;  %6662 = vmatprep.subr.bf16.mxu0 %v6661_v22 }
 0x466   :  { %1601 = vperm.xlu1 %6893, %v8114_v53  }
 0x467   :  { %6922 = vset.pattern.permute.xlu0 %v10889_v55 }
 0x468   :  { %1269 = vperm.xlu0 %6922, %v8162_v4  }
 0x46a   :  { %6894 = vset.pattern.permute.xlu1 %v10889_v55 }
 0x46b   :  { %1244 = vperm.xlu1 %6894, %v8114_v53  }
 0x46c   :  { %1284 = vperm.xlu0 %6922, %v8171_v25  }
 0x46f   :  { %6895 = vset.pattern.permute.xlu1 %v10887_v15 }
 0x470   :  { %2291 = vperm.xlu1 %6895, %v8114_v53   ;;  %6930 = vset.pattern.permute.xlu0 %v10887_v15 }
 0x471   :  { %2319 = vperm.xlu0 %6930, %v8177_v34  }
 0x474   :  { %6896 = vset.pattern.permute.xlu1 %v10882_v59 }
 0x475   :  { %1946 = vperm.xlu1 %6896, %v8114_v53   ;;  %2331 = vperm.xlu0 %6930, %v8181_v49   ;;  %v2275_v53 = vmul.f32 %v8183_v54, %v8094_v19  ;;  %v6633_v19 = vpack.c.bf16 %v8209_v13, %v8222_v31 }
 0x477   :  { %v6663_v6 = vpack.c.bf16 %v2275_v53, %v2274_v1  ;;  %6634 = vmatprep.subr.bf16.mxu1 %v6633_v19 }
 0x478   :  { %6636 = vmatpush3.bf16.msra.mxu1 %v6635_v58 }
 0x479   :  { %6897 = vset.pattern.permute.xlu1 %v10884_v17  ;;  %6935 = vset.pattern.permute.xlu0 %v10884_v17 }
 0x47a   :  { %1597 = vperm.xlu1 %6897, %v8121_v60   ;;  %1637 = vperm.xlu0 %6935, %v8186_v57  }
 0x47b   :  { %6664 = vmatpush3.bf16.msra.mxu0 %v6663_v6 }
 0x47d   :  { %v8271_v54 = vpop.f32.mrb[48].mxu0 }
 0x47e   :  { %6898 = vset.pattern.permute.xlu1 %v10889_v55  ;;  %6938 = vset.pattern.permute.xlu0 %v10882_v59  ;;  %v6309_v16 = vpop.f32.mrb[49].mxu0 }
 0x47f   :  { %1239 = vperm.xlu1 %6898, %v8121_v60   ;;  %1982 = vperm.xlu0 %6938, %v8186_v57  }
 0x483   :  { %6900 = vset.pattern.permute.xlu1 %v10882_v59  ;;  %6939 = vset.pattern.permute.xlu0 %v10884_v17 }
 0x484   :  { %1942 = vperm.xlu1 %6900, %v8121_v60   ;;  %1649 = vperm.xlu0 %6939, %v8198_v5   ;;  %v6665_v60 = vpack.c.bf16 %v8215_v26, %v8228_v40 }
 0x486   :  { %6666 = vmatprep.subr.bf16.mxu0 %v6665_v60 }
 0x487   :  { %6668 = vmatpush3.bf16.msra.mxu0 %v6667_v7 }
 0x488   :  { %6901 = vset.pattern.permute.xlu1 %v10884_v17  ;;  %6942 = vset.pattern.permute.xlu0 %v10882_v59 }
 0x489   :  { %1609 = vperm.xlu1 %6901, %v8129_v2   ;;  %1994 = vperm.xlu0 %6942, %v8198_v5  }
 0x48a   :  { %6733 = vmatprep.subr.bf16.mxu0 %v10891_v14 }
 0x48d   :  { %6903 = vset.pattern.permute.xlu1 %v10887_v15  ;;  %6944 = vset.pattern.permute.xlu0 %v10889_v55 }
 0x48e   :  { %2299 = vperm.xlu1 %6903, %v8129_v2   ;;  %1299 = vperm.xlu0 %6944, %v8203_v24  }
 0x492   :  { %6904 = vset.pattern.permute.xlu1 %v10882_v59  ;;  %6947 = vset.pattern.permute.xlu0 %v10884_v17 }
 0x493   :  { %1954 = vperm.xlu1 %6904, %v8129_v2   ;;  %v1307_v2 = vlaneseq }
 0x495   :  { %v8315_v9 = vshrl.u32 %v1307_v2, 7 }
 0x497   :  { %6905 = vset.pattern.permute.xlu1 %v10884_v17  ;;  %11073 = vst [vmem:[#allocation18_spill] sm:$0xff] %v8315_v9  ;;  %v10880_v26 = vsub.s32 2, %v8315_v9 }
 0x498   :  { %1605 = vperm.xlu1 %6905, %v8131_v8  }
 0x49c   :  { %6906 = vset.pattern.permute.xlu1 %v10889_v55 }
 0x49d   :  { %1249 = vperm.xlu1 %6906, %v8131_v8  }
 0x4a1   :  { %6907 = vset.pattern.permute.xlu1 %v10887_v15 }
 0x4a2   :  { %2295 = vperm.xlu1 %6907, %v8131_v8  }
 0x4a6   :  { %6908 = vset.pattern.permute.xlu1 %v10882_v59 }
 0x4a7   :  { %1950 = vperm.xlu1 %6908, %v8131_v8   ;;  %v10881_v8 = vsub.s32 0, %v8315_v9 }
 0x4a9   :  { %v8325_v13 = vrot.slane %v8271_v54, %v10881_v8 }
 0x4ab   :  { %6909 = vset.pattern.permute.xlu1 %v10884_v17 }
 0x4ac   :  { %1617 = vperm.xlu1 %6909, %v8144_v29  }
 0x4b0   :  { %6910 = vset.pattern.permute.xlu1 %v10889_v55 }
 0x4b1   :  { %1264 = vperm.xlu1 %6910, %v8144_v29  }
 0x4b5   :  { %6912 = vset.pattern.permute.xlu1 %v10882_v59 }
 0x4b6   :  { %1962 = vperm.xlu1 %6912, %v8144_v29  }
 0x4ba   :  { %6914 = vset.pattern.permute.xlu1 %v10889_v55 }
 0x4bb   :  { %1259 = vperm.xlu1 %6914, %v8147_v37  }
 0x4bd   :  { %v8320_v11 = vpop.permute.xlu1 %1593 }
 0x4bf   :  { %6915 = vset.pattern.permute.xlu1 %v10887_v15 }
 0x4c0   :  { %2303 = vperm.xlu1 %6915, %v8147_v37   ;;  %v8343_v37 = vrot.slane %v8271_v54, %v10880_v26 }
 0x4c2   :  { %v1235_v29 = vpop.permute.xlu1 %1234 }
 0x4c3   :  { %v1312_v23 = vadd.f32 %v8325_v13, %v1235_v29 }
 0x4c4   :  { %6918 = vset.pattern.permute.xlu1 %v10889_v55 }
 0x4c5   :  { %1274 = vperm.xlu1 %6918, %v8159_v0   ;;  %vm1328_vm4 = vcmp.gt.f32.partialorder %v1312_v23, 0.0  ;;  %v1344_v27 = vmul.f32 0.2, %v1312_v23 }
 0x4c7   :  { %v8333_v28 = vpop.permute.xlu1 %2283  ;;  %v1360_v31 = vsel %vm1328_vm4, %v1312_v23, %v1344_v27 }
 0x4c8   :  { %v8338_v35 = vsel %vm89_vm5, %v1360_v31, -1e+30 }
 0x4c9   :  { %6919 = vset.pattern.permute.xlu1 %v10887_v15  ;;  %1393 = vmax.xlane.f32.xlu0 %v8338_v35 }
 0x4ca   :  { %2315 = vperm.xlu1 %6919, %v8159_v0  }
 0x4cc   :  { %v1939_v40 = vpop.permute.xlu1 %1938 }
 0x4cd   :  { %v2002_v43 = vadd.f32 %v8343_v37, %v1939_v40 }
 0x4ce   :  { %6921 = vset.pattern.permute.xlu1 %v10884_v17 }
 0x4cf   :  { %1621 = vperm.xlu1 %6921, %v8162_v4   ;;  %vm2018_vm6 = vcmp.gt.f32.partialorder %v2002_v43, 0.0  ;;  %v2034_v10 = vmul.f32 0.2, %v2002_v43 }
 0x4d1   :  { %v8351_v46 = vpop.permute.xlu1 %1589  ;;  %v2050_v12 = vsel %vm2018_vm6, %v2002_v43, %v2034_v10  ;;  %v8407_v43 = vpop.permute.xlu0 %2287 }
 0x4d2   :  { %v8355_v30 = vsel %vm89_vm5, %v2050_v12, -1e+30 }
 0x4d3   :  { %6923 = vset.pattern.permute.xlu1 %v10887_v15  ;;  %2083 = vmax.xlane.f32.xlu0 %v8355_v30 }
 0x4d4   :  { %2311 = vperm.xlu1 %6923, %v8162_v4  }
 0x4d5   :  { %v1255_v12 = vpop.permute.xlu0 %1254 }
 0x4d6   :  { %v1230_v0 = vpop.permute.xlu1 %1229 }
 0x4d7   :  { %v1311_v56 = vadd.f32 %v8325_v13, %v1230_v0 }
 0x4d8   :  { %6924 = vset.pattern.permute.xlu1 %v10882_v59 }
 0x4d9   :  { %1966 = vperm.xlu1 %6924, %v8162_v4   ;;  %vm1327_vm7 = vcmp.gt.f32.partialorder %v1311_v56, 0.0  ;;  %v1343_v61 = vmul.f32 0.2, %v1311_v56 }
 0x4db   :  { %v8363_v62 = vpop.permute.xlu1 %2279  ;;  %v1359_v53 = vsel %vm1327_vm7, %v1311_v56, %v1343_v61  ;;  %v1316_v56 = vadd.f32 %v8325_v13, %v1255_v12  ;;  %vm10915_vm7 = vcmp.gt.f32.partialorder %v7898_v20, 0.0 }
 0x4dc   :  { %v8368_v63 = vsel %vm88_vm8, %v1359_v53, -1e+30 }
 0x4dd   :  { %6925 = vset.pattern.permute.xlu1 %v10884_v17  ;;  %1391 = vmax.xlane.f32.xlu0 %v8368_v63  ;;  %vm1332_vm1 = vcmp.gt.f32.partialorder %v1316_v56, 0.0 }
 0x4de   :  { %1633 = vperm.xlu1 %6925, %v8171_v25  }
 0x4e0   :  { %v1935_v1 = vpop.permute.xlu1 %1934 }
 0x4e1   :  { %v2001_v4 = vadd.f32 %v8343_v37, %v1935_v1 }
 0x4e2   :  { %6926 = vset.pattern.permute.xlu1 %v10887_v15 }
 0x4e3   :  { %2323 = vperm.xlu1 %6926, %v8171_v25   ;;  %vm2017_vm9 = vcmp.gt.f32.partialorder %v2001_v4, 0.0  ;;  %v2033_v18 = vmul.f32 0.2, %v2001_v4 }
 0x4e5   :  { %v8376_v22 = vpop.permute.xlu1 %1601  ;;  %v2049_v3 = vsel %vm2017_vm9, %v2001_v4, %v2033_v18 }
 0x4e6   :  { %v8380_v6 = vsel %vm88_vm8, %v2049_v3, -1e+30  ;;  %v1348_v3 = vmul.f32 0.2, %v1316_v56 }
 0x4e7   :  { %6927 = vset.pattern.permute.xlu1 %v10882_v59  ;;  %2081 = vmax.xlane.f32.xlu0 %v8380_v6 }
 0x4e8   :  { %1978 = vperm.xlu1 %6927, %v8171_v25  }
 0x4ea   :  { %v1245_v16 = vpop.permute.xlu1 %1244 }
 0x4eb   :  { %v1314_v19 = vadd.f32 %v8325_v13, %v1245_v16 }
 0x4ec   :  { %6928 = vset.pattern.permute.xlu1 %v10884_v17 }
 0x4ed   :  { %1629 = vperm.xlu1 %6928, %v8177_v34   ;;  %vm1330_vm10 = vcmp.gt.f32.partialorder %v1314_v19, 0.0  ;;  %v1346_v60 = vmul.f32 0.2, %v1314_v19 }
 0x4ef   :  { %v8388_v58 = vpop.permute.xlu1 %2291  ;;  %v1362_v7 = vsel %vm1330_vm10, %v1314_v19, %v1346_v60 }
 0x4f0   :  { %v8393_v2 = vsel %vm91_vm11, %v1362_v7, -1e+30  ;;  %v1364_v7 = vsel %vm1332_vm1, %v1316_v56, %v1348_v3  ;;  %v8470_v3 = vpop.permute.xlu0 %2307 }
 0x4f1   :  { %6929 = vset.pattern.permute.xlu1 %v10889_v55  ;;  %1397 = vmax.xlane.f32.xlu0 %v8393_v2 }
 0x4f2   :  { %1279 = vperm.xlu1 %6929, %v8177_v34  }
 0x4f4   :  { %v1947_v25 = vpop.permute.xlu1 %1946 }
 0x4f5   :  { %v2004_v29 = vadd.f32 %v8343_v37, %v1947_v25  ;;  %v8439_v25 = vsel %vm93_vm2, %v1364_v7, -1e+30 }
 0x4f6   :  { %6931 = vset.pattern.permute.xlu1 %v10882_v59 }
 0x4f7   :  { %1974 = vperm.xlu1 %6931, %v8177_v34   ;;  %vm2020_vm12 = vcmp.gt.f32.partialorder %v2004_v29, 0.0  ;;  %v2036_v23 = vmul.f32 0.2, %v2004_v29 }
 0x4f9   :  { %v8401_v27 = vpop.permute.xlu1 %1597  ;;  %v2052_v31 = vsel %vm2020_vm12, %v2004_v29, %v2036_v23  ;;  %vm10924_vm12 = vcmp.gt.f32.partialorder %v7913_v41, 0.0 }
 0x4fa   :  { %v8405_v40 = vsel %vm91_vm11, %v2052_v31, -1e+30 }
 0x4fb   :  { %6932 = vset.pattern.permute.xlu1 %v10884_v17  ;;  %2087 = vmax.xlane.f32.xlu0 %v8405_v40 }
 0x4fc   :  { %1641 = vperm.xlu1 %6932, %v8181_v49  }
 0x4fe   :  { %v1240_v10 = vpop.permute.xlu1 %1239 }
 0x4ff   :  { %v1313_v34 = vadd.f32 %v8325_v13, %v1240_v10 }
 0x500   :  { %6933 = vset.pattern.permute.xlu1 %v10889_v55 }
 0x501   :  { %1294 = vperm.xlu1 %6933, %v8181_v49   ;;  %vm1329_vm13 = vcmp.gt.f32.partialorder %v1313_v34, 0.0  ;;  %v1345_v0 = vmul.f32 0.2, %v1313_v34 }
 0x503   :  { %v1943_v61 = vpop.permute.xlu1 %1942  ;;  %v1361_v53 = vsel %vm1329_vm13, %v1313_v34, %v1345_v0 }
 0x504   :  { %v2003_v1 = vadd.f32 %v8343_v37, %v1943_v61  ;;  %v8420_v4 = vsel %vm90_vm14, %v1361_v53, -1e+30 }
 0x505   :  { %6934 = vset.pattern.permute.xlu1 %v10882_v59  ;;  %1395 = vmax.xlane.f32.xlu0 %v8420_v4 }
 0x506   :  { %1986 = vperm.xlu1 %6934, %v8181_v49   ;;  %vm2019_vm15 = vcmp.gt.f32.partialorder %v2003_v1, 0.0  ;;  %v2035_v18 = vmul.f32 0.2, %v2003_v1 }
 0x508   :  { %v8425_v16 = vpop.permute.xlu1 %1609  ;;  %v2051_v19 = vsel %vm2019_vm15, %v2003_v1, %v2035_v18 }
 0x509   :  { %v8429_v60 = vsel %vm90_vm14, %v2051_v19, -1e+30 }
 0x50a   :  { %6936 = vset.pattern.permute.xlu1 %v10889_v55  ;;  %2085 = vmax.xlane.f32.xlu0 %v8429_v60 }
 0x50b   :  { %1289 = vperm.xlu1 %6936, %v8186_v57  }
 0x50d   :  { %v8435_v49 = vpop.permute.xlu1 %2299 }
 0x50e   :  { %1401 = vmax.xlane.f32.xlu0 %v8439_v25 }
 0x50f   :  { %6937 = vset.pattern.permute.xlu1 %v10887_v15 }
 0x510   :  { %2327 = vperm.xlu1 %6937, %v8186_v57  }
 0x512   :  { %v1955_v29 = vpop.permute.xlu1 %1954 }
 0x513   :  { %v2006_v23 = vadd.f32 %v8343_v37, %v1955_v29 }
 0x514   :  { %6940 = vset.pattern.permute.xlu1 %v10889_v55 }
 0x515   :  { %1304 = vperm.xlu1 %6940, %v8198_v5   ;;  %vm2022_vm4 = vcmp.gt.f32.partialorder %v2006_v23, 0.0  ;;  %v2038_v31 = vmul.f32 0.2, %v2006_v23 }
 0x517   :  { %v8447_v10 = vpop.permute.xlu1 %1605  ;;  %v2054_v34 = vsel %vm2022_vm4, %v2006_v23, %v2038_v31  ;;  %v8481_v31 = vpop.permute.xlu0 %1613  ;;  %vm10923_vm4 = vcmp.gt.f32.partialorder %v7907_v39, 0.0 }
 0x518   :  { %v8451_v12 = vsel %vm93_vm2, %v2054_v34, -1e+30 }
 0x519   :  { %6941 = vset.pattern.permute.xlu1 %v10887_v15  ;;  %2091 = vmax.xlane.f32.xlu0 %v8451_v12 }
 0x51a   :  { %2339 = vperm.xlu1 %6941, %v8198_v5  }
 0x51c   :  { %v1250_v57 = vpop.permute.xlu1 %1249 }
 0x51d   :  { %v1315_v0 = vadd.f32 %v8325_v13, %v1250_v57 }
 0x51e   :  { %6943 = vset.pattern.permute.xlu1 %v10884_v17 }
 0x51f   :  { %1645 = vperm.xlu1 %6943, %v8203_v24   ;;  %vm1331_vm6 = vcmp.gt.f32.partialorder %v1315_v0, 0.0  ;;  %v1347_v56 = vmul.f32 0.2, %v1315_v0 }
 0x521   :  { %v8459_v61 = vpop.permute.xlu1 %2295  ;;  %v1363_v53 = vsel %vm1331_vm6, %v1315_v0, %v1347_v56  ;;  %v1959_v56 = vpop.permute.xlu0 %1958 }
 0x522   :  { %v8464_v1 = vsel %vm10915_vm7, %v1363_v53, -1e+30 }
 0x523   :  { %6945 = vset.pattern.permute.xlu1 %v10887_v15  ;;  %1399 = vmax.xlane.f32.xlu0 %v8464_v1 }
 0x524   :  { %2335 = vperm.xlu1 %6945, %v8203_v24  }
 0x525   :  { %v8493_v26 = vpop.permute.xlu0 %1625 }
 0x526   :  { %v1951_v5 = vpop.permute.xlu1 %1950 }
 0x527   :  { %v2005_v18 = vadd.f32 %v8343_v37, %v1951_v5 }
 0x528   :  { %6946 = vset.pattern.permute.xlu1 %v10882_v59 }
 0x529   :  { %1990 = vperm.xlu1 %6946, %v8203_v24   ;;  %vm2021_vm9 = vcmp.gt.f32.partialorder %v2005_v18, 0.0  ;;  %v2037_v19 = vmul.f32 0.2, %v2005_v18 }
 0x52b   :  { %v8474_v7 = vpop.permute.xlu1 %1617  ;;  %v2053_v29 = vsel %vm2021_vm9, %v2005_v18, %v2037_v19  ;;  %v10886_v19 = vsub.s32 1, %v8315_v9 }
 0x52c   :  { %v8478_v23 = vsel %vm10915_vm7, %v2053_v29, -1e+30 }
 0x52d   :  { %2089 = vmax.xlane.f32.xlu0 %v8478_v23 }
 0x530   :  { %v1265_v34 = vpop.permute.xlu1 %1264 }
 0x531   :  { %v1318_v57 = vadd.f32 %v8325_v13, %v1265_v34  ;;  %v2007_v34 = vadd.f32 %v8343_v37, %v1959_v56 }
 0x533   :  { %vm1334_vm10 = vcmp.gt.f32.partialorder %v1318_v57, 0.0  ;;  %v1350_v0 = vmul.f32 0.2, %v1318_v57  ;;  %v2039_v17 = vmul.f32 0.2, %v2007_v34  ;;  %vm2023_vm1 = vcmp.gt.f32.partialorder %v2007_v34, 0.0 }
 0x535   :  { %v1963_v24 = vpop.permute.xlu1 %1962  ;;  %v1366_v53 = vsel %vm1334_vm10, %v1318_v57, %v1350_v0  ;;  %v2055_v55 = vsel %vm2023_vm1, %v2007_v34, %v2039_v17 }
 0x536   :  { %v2008_v5 = vadd.f32 %v8343_v37, %v1963_v24  ;;  %v8488_v18 = vsel %vm10924_vm12, %v1366_v53, -1e+30  ;;  %v8503_v24 = vrot.slane %v8271_v54, %v10886_v19  ;;  %v10894_v53 = vsub.s32 3, %v8315_v9 }
 0x537   :  { %1405 = vmax.xlane.f32.xlu0 %v8488_v18 }
 0x538   :  { %vm2024_vm13 = vcmp.gt.f32.partialorder %v2008_v5, 0.0  ;;  %v2040_v29 = vmul.f32 0.2, %v2008_v5  ;;  %v8519_v15 = vrot.slane %v8271_v54, %v10894_v53 }
 0x53a   :  { %v1260_v8 = vpop.permute.xlu1 %1259  ;;  %v2056_v59 = vsel %vm2024_vm13, %v2008_v5, %v2040_v29  ;;  %v1971_v29 = vpop.permute.xlu0 %1970  ;;  %vm10928_vm13 = vcmp.gt.f32.partialorder %v7922_v44, 0.0 }
 0x53b   :  { %v1317_v57 = vadd.f32 %v8325_v13, %v1260_v8  ;;  %v8498_v0 = vsel %vm10924_vm12, %v2056_v59, -1e+30  ;;  %v1657_v59 = vadd.f32 %v8503_v24, %v8320_v11  ;;  %v2010_v14 = vadd.f32 %v8343_v37, %v1971_v29 }
 0x53c   :  { %11074 = vst [vmem:[#allocation19_spill] sm:$0xff] %v8498_v0  ;;  %2095 = vmax.xlane.f32.xlu0 %v8498_v0  ;;  %v8525_v11 = vsel %vm10923_vm4, %v2055_v55, -1e+30  ;;  %v1656_v55 = vadd.f32 %v8503_v24, %v8351_v46 }
 0x53d   :  { %vm1333_vm15 = vcmp.gt.f32.partialorder %v1317_v57, 0.0  ;;  %v1349_v56 = vmul.f32 0.2, %v1317_v57  ;;  %v1689_v0 = vmul.f32 0.2, %v1657_v59  ;;  %11076 = vst [vmem:[#allocation21_spill] sm:$0xff] %v8525_v11 }
 0x53e   :  { %vm1673_vm6 = vcmp.gt.f32.partialorder %v1657_v59, 0.0  ;;  %v1270_v54 = vpop.permute.xlu0 %1269  ;;  %v2042_v34 = vmul.f32 0.2, %v2010_v14  ;;  %vm2026_vm10 = vcmp.gt.f32.partialorder %v2010_v14, 0.0  ;;  %v1688_v46 = vmul.f32 0.2, %v1656_v55 }
 0x53f   :  { %v8507_v5 = vpop.permute.xlu1 %2303  ;;  %v1365_v8 = vsel %vm1333_vm15, %v1317_v57, %v1349_v56  ;;  %v2347_v56 = vadd.f32 %v8519_v15, %v8333_v28  ;;  %v1319_v53 = vadd.f32 %v8325_v13, %v1270_v54  ;;  %v1705_v29 = vsel %vm1673_vm6, %v1657_v59, %v1689_v0 }
 0x540   :  { %v8514_v19 = vsel %vm10923_vm4, %v1365_v8, -1e+30  ;;  %v2058_v54 = vsel %vm2026_vm10, %v2010_v14, %v2042_v34  ;;  %v8544_v0 = vsel %vm89_vm5, %v1705_v29, -1e+30  ;;  %v2346_v59 = vadd.f32 %v8519_v15, %v8363_v62 }
 0x541   :  { %11075 = vst [vmem:[#allocation20_spill] sm:$0xff] %v8514_v19  ;;  %1403 = vmax.xlane.f32.xlu0 %v8514_v19  ;;  %v2379_v9 = vmul.f32 0.2, %v2347_v56  ;;  %vm2363_vm15 = vcmp.gt.f32.partialorder %v2347_v56, 0.0  ;;  %vm1335_vm1 = vcmp.gt.f32.partialorder %v1319_v53, 0.0  ;;  %vm1672_vm6 = vcmp.gt.f32.partialorder %v1656_v55, 0.0 }
 0x542   :  { %v2378_v62 = vmul.f32 0.2, %v2346_v59  ;;  %vm2362_vm10 = vcmp.gt.f32.partialorder %v2346_v59, 0.0 }
 0x544   :  { %v1275_v57 = vpop.permute.xlu1 %1274 }
 0x545   :  { %v1320_v8 = vadd.f32 %v8325_v13, %v1275_v57  ;;  %2093 = vmax.xlane.f32.xlu0 %v8525_v11  ;;  %v1351_v11 = vmul.f32 0.2, %v1319_v53 }
 0x547   :  { %vm1336_vm9 = vcmp.gt.f32.partialorder %v1320_v8, 0.0  ;;  %v1352_v17 = vmul.f32 0.2, %v1320_v8  ;;  %v1367_v14 = vsel %vm1335_vm1, %v1319_v53, %v1351_v11 }
 0x549   :  { %v8534_v19 = vpop.permute.xlu1 %2315  ;;  %v1368_v28 = vsel %vm1336_vm9, %v1320_v8, %v1352_v17  ;;  %v2395_v8 = vsel %vm2363_vm15, %v2347_v56, %v2379_v9  ;;  %vm10932_vm9 = vcmp.gt.f32.partialorder %v7916_v42, 0.0  ;;  %v1659_v9 = vadd.f32 %v8503_v24, %v8376_v22 }
 0x54a   :  { %v8539_v57 = vsel %vm10928_vm13, %v1368_v28, -1e+30  ;;  %v8553_v28 = vsel %vm10928_vm13, %v2058_v54, -1e+30  ;;  %v8559_v34 = vsel %vm89_vm5, %v2395_v8, -1e+30  ;;  %v1704_v56 = vsel %vm1672_vm6, %v1656_v55, %v1688_v46  ;;  %v1285_v46 = vpop.permute.xlu0 %1284 }
 0x54b   :  { %11077 = vst [vmem:[#allocation22_spill] sm:$0xff] %v8539_v57  ;;  %1409 = vmax.xlane.f32.xlu0 %v8539_v57  ;;  %11078 = vst [vmem:[#allocation23_spill] sm:$0xff] %v8553_v28  ;;  %v8566_v29 = vsel %vm10932_vm9, %v1367_v14, -1e+30  ;;  %v8573_v53 = vsel %vm88_vm8, %v1704_v56, -1e+30  ;;  %v2349_v22 = vadd.f32 %v8519_v15, %v8388_v58  ;;  %v2394_v55 = vsel %vm2362_vm10, %v2346_v59, %v2378_v62 }
 0x54c   :  { %11079 = vst [vmem:[#allocation24_spill] sm:$0xff] %v8559_v34  ;;  %11080 = vst [vmem:[#allocation25_spill] sm:$0xff] %v8566_v29  ;;  %v1691_v11 = vmul.f32 0.2, %v1659_v9  ;;  %vm1675_vm15 = vcmp.gt.f32.partialorder %v1659_v9, 0.0  ;;  %v1322_v8 = vadd.f32 %v8325_v13, %v1285_v46  ;;  %v1658_v56 = vadd.f32 %v8503_v24, %v8401_v27 }
 0x54d   :  { %1738 = vmax.xlane.f32.xlu1 %v8544_v0  ;;  %11081 = vst [vmem:[#allocation26_spill] sm:$0xff] %v8573_v53  ;;  %vm2365_vm1 = vcmp.gt.f32.partialorder %v2349_v22, 0.0 }
 0x54e   :  { %v8549_v17 = vpop.permute.xlu1 %1621  ;;  %v1707_v58 = vsel %vm1675_vm15, %v1659_v9, %v1691_v11  ;;  %v1354_v62 = vmul.f32 0.2, %v1322_v8  ;;  %vm1338_vm10 = vcmp.gt.f32.partialorder %v1322_v8, 0.0  ;;  %vm1674_vm15 = vcmp.gt.f32.partialorder %v1658_v56, 0.0 }
 0x54f   :  { %2099 = vmax.xlane.f32.xlu0 %v8553_v28  ;;  %v8581_v28 = vsel %vm88_vm8, %v2394_v55, -1e+30  ;;  %v8589_v46 = vsel %vm91_vm11, %v1707_v58, -1e+30  ;;  %v2348_v55 = vadd.f32 %v8519_v15, %v8407_v43 }
 0x550   :  { %11082 = vst [vmem:[#allocation27_spill] sm:$0xff] %v8589_v46  ;;  %v1370_v11 = vsel %vm1338_vm10, %v1322_v8, %v1354_v62  ;;  %v8623_v62 = vpop.permute.xlu0 %2319 }
 0x551   :  { %2428 = vmax.xlane.f32.xlu1 %v8559_v34  ;;  %v2380_v58 = vmul.f32 0.2, %v2348_v55 }
 0x553   :  { %v8568_v54 = vpop.permute.xlu1 %2311  ;;  %1407 = vmax.xlane.f32.xlu0 %v8566_v29  ;;  %v2381_v29 = vmul.f32 0.2, %v2349_v22 }
 0x555   :  { %1736 = vmax.xlane.f32.xlu1 %v8573_v53  ;;  %v1690_v53 = vmul.f32 0.2, %v1658_v56 }
 0x558   :  { %v1967_v14 = vpop.permute.xlu1 %1966 }
 0x559   :  { %v2009_v34 = vadd.f32 %v8343_v37, %v1967_v14  ;;  %2426 = vmax.xlane.f32.xlu1 %v8581_v28  ;;  %v2397_v14 = vsel %vm2365_vm1, %v2349_v22, %v2381_v29  ;;  %v8613_v22 = vsel %vm99_vm0, %v1370_v11, -1e+30  ;;  %vm2364_vm1 = vcmp.gt.f32.partialorder %v2348_v55, 0.0 }
 0x55a   :  { %v8604_v43 = vsel %vm91_vm11, %v2397_v14, -1e+30  ;;  %11084 = vst [vmem:[#allocation29_spill] sm:$0xff] %v8613_v22 }
 0x55b   :  { %vm2025_vm6 = vcmp.gt.f32.partialorder %v2009_v34, 0.0  ;;  %v2041_v59 = vmul.f32 0.2, %v2009_v34  ;;  %11083 = vst [vmem:[#allocation28_spill] sm:$0xff] %v8604_v43 }
 0x55d   :  { %v8593_v57 = vpop.permute.xlu1 %1633  ;;  %1742 = vmax.xlane.f32.xlu1 %v8589_v46  ;;  %v2057_v27 = vsel %vm2025_vm6, %v2009_v34, %v2041_v59  ;;  %v1661_v46 = vadd.f32 %v8503_v24, %v8425_v16  ;;  %v1706_v34 = vsel %vm1674_vm15, %v1658_v56, %v1690_v53  ;;  %v2351_v16 = vadd.f32 %v8519_v15, %v8435_v49 }
 0x55e   :  { %v8598_v9 = vsel %vm10932_vm9, %v2057_v27, -1e+30  ;;  %v8618_v8 = vsel %vm90_vm14, %v1706_v34, -1e+30  ;;  %v2396_v53 = vsel %vm2364_vm1, %v2348_v55, %v2380_v58  ;;  %v1660_v34 = vadd.f32 %v8503_v24, %v8447_v10 }
 0x55f   :  { %2097 = vmax.xlane.f32.xlu0 %v8598_v9  ;;  %11085 = vst [vmem:[#allocation30_spill] sm:$0xff] %v8618_v8  ;;  %v1693_v59 = vmul.f32 0.2, %v1661_v46  ;;  %vm1677_vm6 = vcmp.gt.f32.partialorder %v1661_v46, 0.0  ;;  %v8628_v14 = vsel %vm90_vm14, %v2396_v53, -1e+30  ;;  %v2350_v53 = vadd.f32 %v8519_v15, %v8459_v61 }
 0x560   :  { %11086 = vst [vmem:[#allocation31_spill] sm:$0xff] %v8628_v14  ;;  %v2383_v11 = vmul.f32 0.2, %v2351_v16  ;;  %vm2367_vm15 = vcmp.gt.f32.partialorder %v2351_v16, 0.0  ;;  %vm1676_vm1 = vcmp.gt.f32.partialorder %v1660_v34, 0.0  ;;  %v1663_v61 = vadd.f32 %v8503_v24, %v8474_v7 }
 0x561   :  { %2432 = vmax.xlane.f32.xlu1 %v8604_v43  ;;  %v1709_v49 = vsel %vm1677_vm6, %v1661_v46, %v1693_v59  ;;  %v8646_v59 = vpop.permute.xlu0 %2331  ;;  %vm2366_vm6 = vcmp.gt.f32.partialorder %v2350_v53, 0.0 }
 0x562   :  { %v8609_v29 = vpop.permute.xlu1 %2323  ;;  %v8637_v58 = vsel %vm93_vm2, %v1709_v49, -1e+30  ;;  %v2399_v46 = vsel %vm2367_vm15, %v2351_v16, %v2383_v11  ;;  %v2353_v16 = vadd.f32 %v8519_v15, %v8470_v3  ;;  %vm98_vm15 = vcmp.gt.f32.partialorder %v7925_v45, 0.0 }
 0x563   :  { %1413 = vmax.xlane.f32.xlu0 %v8613_v22  ;;  %11087 = vst [vmem:[#allocation32_spill] sm:$0xff] %v8637_v58  ;;  %v1692_v22 = vmul.f32 0.2, %v1660_v34  ;;  %v8651_v49 = vsel %vm93_vm2, %v2399_v46, -1e+30 }
 0x564   :  { %11089 = vst [vmem:[#allocation34_spill] sm:$0xff] %v8651_v49 }
 0x565   :  { %1740 = vmax.xlane.f32.xlu1 %v8618_v8  ;;  %v8659_v11 = vpop.permute.xlu0 %1637 }
 0x567   :  { %v1979_v56 = vpop.permute.xlu1 %1978 }
 0x568   :  { %v2012_v27 = vadd.f32 %v8343_v37, %v1979_v56 }
 0x569   :  { %2430 = vmax.xlane.f32.xlu1 %v8628_v14  ;;  %v1695_v14 = vmul.f32 0.2, %v1663_v61 }
 0x56a   :  { %vm2028_vm10 = vcmp.gt.f32.partialorder %v2012_v27, 0.0  ;;  %v2044_v8 = vmul.f32 0.2, %v2012_v27 }
 0x56c   :  { %v8633_v55 = vpop.permute.xlu1 %1629  ;;  %v2060_v56 = vsel %vm2028_vm10, %v2012_v27, %v2044_v8  ;;  %v2382_v8 = vmul.f32 0.2, %v2350_v53 }
 0x56d   :  { %1746 = vmax.xlane.f32.xlu1 %v8637_v58  ;;  %v8644_v10 = vsel %vm99_vm0, %v2060_v56, -1e+30  ;;  %v1708_v58 = vsel %vm1676_vm1, %v1660_v34, %v1692_v22  ;;  %vm1679_vm1 = vcmp.gt.f32.partialorder %v1663_v61, 0.0 }
 0x56e   :  { %11088 = vst [vmem:[#allocation33_spill] sm:$0xff] %v8644_v10  ;;  %2103 = vmax.xlane.f32.xlu0 %v8644_v10  ;;  %v8663_v46 = vsel %vm10915_vm7, %v1708_v58, -1e+30  ;;  %v2398_v7 = vsel %vm2366_vm6, %v2350_v53, %v2382_v8  ;;  %v1662_v53 = vadd.f32 %v8503_v24, %v8481_v31 }
 0x56f   :  { %11090 = vst [vmem:[#allocation35_spill] sm:$0xff] %v8663_v46  ;;  %v8675_v58 = vsel %vm10915_vm7, %v2398_v7, -1e+30 }
 0x570   :  { %11092 = vst [vmem:[#allocation37_spill] sm:$0xff] %v8675_v58 }
 0x571   :  { %v1280_v27 = vpop.permute.xlu1 %1279  ;;  %2436 = vmax.xlane.f32.xlu1 %v8651_v49 }
 0x572   :  { %v1321_v56 = vadd.f32 %v8325_v13, %v1280_v27  ;;  %v2385_v27 = vmul.f32 0.2, %v2353_v16 }
 0x574   :  { %vm1337_vm10 = vcmp.gt.f32.partialorder %v1321_v56, 0.0  ;;  %v1353_v10 = vmul.f32 0.2, %v1321_v56 }
 0x575   :  { %1744 = vmax.xlane.f32.xlu1 %v8663_v46 }
 0x576   :  { %v1975_v49 = vpop.permute.xlu1 %1974  ;;  %v1369_v22 = vsel %vm1337_vm10, %v1321_v56, %v1353_v10  ;;  %v1711_v10 = vsel %vm1679_vm1, %v1663_v61, %v1695_v14  ;;  %vm2369_vm10 = vcmp.gt.f32.partialorder %v2353_v16, 0.0  ;;  %vm1678_vm1 = vcmp.gt.f32.partialorder %v1662_v53, 0.0 }
 0x577   :  { %v2011_v34 = vadd.f32 %v8343_v37, %v1975_v49  ;;  %v8670_v3 = vsel %vm98_vm15, %v1369_v22, -1e+30  ;;  %v1983_v49 = vpop.permute.xlu0 %1982  ;;  %v8686_v7 = vsel %vm10924_vm12, %v1711_v10, -1e+30  ;;  %v2401_v14 = vsel %vm2369_vm10, %v2353_v16, %v2385_v27 }
 0x578   :  { %11091 = vst [vmem:[#allocation36_spill] sm:$0xff] %v8670_v3  ;;  %1411 = vmax.xlane.f32.xlu0 %v8670_v3  ;;  %v2352_v3 = vadd.f32 %v8519_v15, %v8507_v5  ;;  %11093 = vst [vmem:[#allocation38_spill] sm:$0xff] %v8686_v7  ;;  %v8698_v5 = vsel %vm10924_vm12, %v2401_v14, -1e+30  ;;  %v1665_v10 = vadd.f32 %v8503_v24, %v8493_v26  ;;  %vm101_vm10 = vcmp.gt.f32.partialorder %v7940_v50, 0.0 }
 0x579   :  { %2434 = vmax.xlane.f32.xlu1 %v8675_v58  ;;  %vm2027_vm6 = vcmp.gt.f32.partialorder %v2011_v34, 0.0  ;;  %v2043_v8 = vmul.f32 0.2, %v2011_v34  ;;  %v1694_v58 = vmul.f32 0.2, %v1662_v53  ;;  %11095 = vst [vmem:[#allocation40_spill] sm:$0xff] %v8698_v5  ;;  %v2355_v27 = vadd.f32 %v8519_v15, %v8534_v19 }
 0x57a   :  { %v1697_v46 = vmul.f32 0.2, %v1665_v10  ;;  %vm100_vm12 = vcmp.gt.f32.partialorder %v7934_v48, 0.0 }
 0x57b   :  { %v8680_v56 = vpop.permute.xlu1 %1641  ;;  %v2059_v22 = vsel %vm2027_vm6, %v2011_v34, %v2043_v8  ;;  %v8694_v61 = vpop.permute.xlu0 %1649  ;;  %v2384_v34 = vmul.f32 0.2, %v2352_v3  ;;  %vm2368_vm6 = vcmp.gt.f32.partialorder %v2352_v3, 0.0 }
 0x57c   :  { %v8690_v31 = vsel %vm98_vm15, %v2059_v22, -1e+30 }
 0x57d   :  { %11094 = vst [vmem:[#allocation39_spill] sm:$0xff] %v8690_v31  ;;  %1750 = vmax.xlane.f32.xlu1 %v8686_v7  ;;  %2101 = vmax.xlane.f32.xlu0 %v8690_v31  ;;  %v1710_v7 = vsel %vm1678_vm1, %v1662_v53, %v1694_v58  ;;  %v2400_v14 = vsel %vm2368_vm6, %v2352_v3, %v2384_v34  ;;  %vm1681_vm1 = vcmp.gt.f32.partialorder %v1665_v10, 0.0 }
 0x57e   :  { %v8708_v31 = vsel %vm10923_vm4, %v1710_v7, -1e+30  ;;  %v8720_v19 = vsel %vm10923_vm4, %v2400_v14, -1e+30  ;;  %v2013_v3 = vadd.f32 %v8343_v37, %v1983_v49  ;;  %v2387_v7 = vmul.f32 0.2, %v2355_v27 }
 0x57f   :  { %11096 = vst [vmem:[#allocation41_spill] sm:$0xff] %v8708_v31  ;;  %11098 = vst [vmem:[#allocation43_spill] sm:$0xff] %v8720_v19 }
 0x580   :  { %v1295_v8 = vpop.permute.xlu1 %1294  ;;  %vm2029_vm4 = vcmp.gt.f32.partialorder %v2013_v3, 0.0 }
 0x581   :  { %v1324_v22 = vadd.f32 %v8325_v13, %v1295_v8  ;;  %2440 = vmax.xlane.f32.xlu1 %v8698_v5  ;;  %v1995_v8 = vpop.permute.xlu0 %1994  ;;  %v2045_v5 = vmul.f32 0.2, %v2013_v3 }
 0x583   :  { %vm1340_vm7 = vcmp.gt.f32.partialorder %v1324_v22, 0.0  ;;  %v1356_v16 = vmul.f32 0.2, %v1324_v22 }
 0x585   :  { %v1987_v43 = vpop.permute.xlu1 %1986  ;;  %1748 = vmax.xlane.f32.xlu1 %v8708_v31  ;;  %v1372_v26 = vsel %vm1340_vm7, %v1324_v22, %v1356_v16  ;;  %v1664_v22 = vadd.f32 %v8503_v24, %v8549_v17  ;;  %vm2371_vm7 = vcmp.gt.f32.partialorder %v2355_v27, 0.0  ;;  %v1300_v31 = vpop.permute.xlu0 %1299 }
 0x586   :  { %v2014_v58 = vadd.f32 %v8343_v37, %v1987_v43  ;;  %v8715_v53 = vsel %vm101_vm10, %v1372_v26, -1e+30  ;;  %v1713_v43 = vsel %vm1681_vm1, %v1665_v10, %v1697_v46  ;;  %v2403_v17 = vsel %vm2371_vm7, %v2355_v27, %v2387_v7 }
 0x587   :  { %11097 = vst [vmem:[#allocation42_spill] sm:$0xff] %v8715_v53  ;;  %1417 = vmax.xlane.f32.xlu0 %v8715_v53  ;;  %v8734_v49 = vsel %vm10928_vm13, %v1713_v43, -1e+30  ;;  %v2354_v46 = vadd.f32 %v8519_v15, %v8568_v54  ;;  %v8744_v27 = vsel %vm10928_vm13, %v2403_v17, -1e+30  ;;  %v1667_v43 = vadd.f32 %v8503_v24, %v8593_v57 }
 0x588   :  { %vm2030_vm6 = vcmp.gt.f32.partialorder %v2014_v58, 0.0  ;;  %v2046_v34 = vmul.f32 0.2, %v2014_v58  ;;  %11100 = vst [vmem:[#allocation45_spill] sm:$0xff] %v8734_v49  ;;  %11101 = vst [vmem:[#allocation46_spill] sm:$0xff] %v8744_v27 }
 0x589   :  { %2438 = vmax.xlane.f32.xlu1 %v8720_v19  ;;  %v1696_v19 = vmul.f32 0.2, %v1664_v22  ;;  %v2386_v54 = vmul.f32 0.2, %v2354_v46  ;;  %vm2370_vm7 = vcmp.gt.f32.partialorder %v2354_v46, 0.0 }
 0x58a   :  { %v1290_v16 = vpop.permute.xlu1 %1289  ;;  %v2062_v26 = vsel %vm2030_vm6, %v2014_v58, %v2046_v34  ;;  %vm1680_vm6 = vcmp.gt.f32.partialorder %v1664_v22, 0.0  ;;  %v1699_v57 = vmul.f32 0.2, %v1667_v43 }
 0x58b   :  { %v1323_v53 = vadd.f32 %v8325_v13, %v1290_v16  ;;  %v8729_v14 = vsel %vm101_vm10, %v2062_v26, -1e+30  ;;  %v1394_v16 = vpop.xlane.xlu0 %1393  ;;  %v1712_v26 = vsel %vm1680_vm6, %v1664_v22, %v1696_v19  ;;  %vm103_vm6 = vcmp.gt.f32.partialorder %v7946_v52, 0.0 }
 0x58c   :  { %11099 = vst [vmem:[#allocation44_spill] sm:$0xff] %v8729_v14  ;;  %2107 = vmax.xlane.f32.xlu0 %v8729_v14  ;;  %v8757_v14 = vsel %vm10932_vm9, %v1712_v26, -1e+30 }
 0x58d   :  { %1754 = vmax.xlane.f32.xlu1 %v8734_v49  ;;  %vm1339_vm1 = vcmp.gt.f32.partialorder %v1323_v53, 0.0  ;;  %v1355_v10 = vmul.f32 0.2, %v1323_v53  ;;  %v2061_v49 = vsel %vm2029_vm4, %v2013_v3, %v2045_v5  ;;  %11103 = vst [vmem:[#allocation48_spill] sm:$0xff] %v8757_v14  ;;  %v2402_v5 = vsel %vm2370_vm7, %v2354_v46, %v2386_v54 }
 0x58e   :  { %vm1683_vm4 = vcmp.gt.f32.partialorder %v1667_v43, 0.0  ;;  %v1325_v3 = vadd.f32 %v8325_v13, %v1300_v31 }
 0x58f   :  { %v8739_v58 = vpop.permute.xlu1 %2327  ;;  %v1371_v34 = vsel %vm1339_vm1, %v1323_v53, %v1355_v10  ;;  %v2016_v53 = vadd.f32 %v8343_v37, %v1995_v8  ;;  %v2084_v10 = vpop.xlane.xlu0 %2083 }
 0x590   :  { %v8748_v7 = vsel %vm100_vm12, %v1371_v34, -1e+30  ;;  %v8761_v34 = vsel %vm100_vm12, %v2061_v49, -1e+30  ;;  %v8771_v49 = vsel %vm10932_vm9, %v2402_v5, -1e+30 }
 0x591   :  { %11102 = vst [vmem:[#allocation47_spill] sm:$0xff] %v8748_v7  ;;  %2444 = vmax.xlane.f32.xlu1 %v8744_v27  ;;  %1415 = vmax.xlane.f32.xlu0 %v8748_v7  ;;  %11104 = vst [vmem:[#allocation49_spill] sm:$0xff] %v8761_v34  ;;  %v2357_v27 = vadd.f32 %v8519_v15, %v8609_v29  ;;  %v2048_v8 = vmul.f32 0.2, %v2016_v53  ;;  %vm2032_vm13 = vcmp.gt.f32.partialorder %v2016_v53, 0.0  ;;  %vm1341_vm9 = vcmp.gt.f32.partialorder %v1325_v3, 0.0 }
 0x592   :  { %v1357_v54 = vmul.f32 0.2, %v1325_v3 }
 0x593   :  { %v1392_v26 = vpop.xlane.xlu0 %1391  ;;  %v2389_v29 = vmul.f32 0.2, %v2357_v27  ;;  %vm2373_vm7 = vcmp.gt.f32.partialorder %v2357_v27, 0.0  ;;  %v2064_v5 = vsel %vm2032_vm13, %v2016_v53, %v2048_v8  ;;  %v2114_v8 = vsub.f32 %v8355_v30, %v2084_v10 }
 0x594   :  { %v1305_v17 = vpop.permute.xlu1 %1304  ;;  %v8796_v53 = vsel %vm103_vm6, %v2064_v5, -1e+30  ;;  %v1423_v10 = vsub.f32 %v8368_v63, %v1392_v26 }
 0x595   :  { %v1326_v19 = vadd.f32 %v8325_v13, %v1305_v17  ;;  %1752 = vmax.xlane.f32.xlu1 %v8757_v14  ;;  %2105 = vmax.xlane.f32.xlu0 %v8761_v34  ;;  %v1666_v17 = vadd.f32 %v8503_v24, %v8633_v55  ;;  %v1715_v13 = vsel %vm1683_vm4, %v1667_v43, %v1699_v57  ;;  %vm102_vm4 = vcmp.gt.f32.partialorder %v7943_v51, 0.0 }
 0x596   :  { %v1424_v14 = vsub.f32 %v8338_v35, %v1394_v16  ;;  %v8787_v55 = vsel %vm99_vm0, %v1715_v13, -1e+30  ;;  %v2356_v43 = vadd.f32 %v8519_v15, %v8623_v62  ;;  %v1373_v35 = vsel %vm1341_vm9, %v1325_v3, %v1357_v54 }
 0x597   :  { %v1358_v22 = vmul.f32 0.2, %v1326_v19  ;;  %vm1342_vm1 = vcmp.gt.f32.partialorder %v1326_v19, 0.0  ;;  %v2082_v7 = vpop.xlane.xlu0 %2081  ;;  %v1698_v57 = vmul.f32 0.2, %v1666_v17  ;;  %vm1682_vm13 = vcmp.gt.f32.partialorder %v1666_v17, 0.0 }
 0x598   :  { %v1441_v16 = vmul.f32 1.442695, %v1424_v14  ;;  %v8810_v5 = vsel %vm102_vm4, %v1373_v35, -1e+30  ;;  %vm2372_vm9 = vcmp.gt.f32.partialorder %v2356_v43, 0.0  ;;  %v2113_v35 = vsub.f32 %v8380_v6, %v2082_v7 }
 0x599   :  { %v8776_v34 = vpop.permute.xlu1 %2339  ;;  %2442 = vmax.xlane.f32.xlu1 %v8771_v49  ;;  %v1374_v46 = vsel %vm1342_vm1, %v1326_v19, %v1358_v22  ;;  %v2405_v19 = vsel %vm2373_vm7, %v2357_v27, %v2389_v29  ;;  %v2388_v27 = vmul.f32 0.2, %v2356_v43  ;;  %v1669_v29 = vadd.f32 %v8503_v24, %v8680_v56 }
 0x59a   :  { %v8781_v31 = vsel %vm103_vm6, %v1374_v46, -1e+30  ;;  %v8803_v46 = vsel %vm99_vm0, %v2405_v19, -1e+30  ;;  %v1714_v13 = vsel %vm1682_vm13, %v1666_v17, %v1698_v57  ;;  %7007 = vpow2.f32 %v1441_v16 }
 0x59b   :  { %1421 = vmax.xlane.f32.xlu0 %v8781_v31  ;;  %v1398_v62 = vpop.xlane.xlu0 %1397  ;;  %v2131_v30 = vmul.f32 1.442695, %v2114_v8  ;;  %v8818_v56 = vsel %vm98_vm15, %v1714_v13, -1e+30  ;;  %v2359_v17 = vadd.f32 %v8519_v15, %v8646_v59  ;;  %v1701_v54 = vmul.f32 0.2, %v1669_v29 }
 0x59c   :  { %v2404_v57 = vsel %vm2372_vm9, %v2356_v43, %v2388_v27  ;;  %vm1685_vm1 = vcmp.gt.f32.partialorder %v1669_v29, 0.0  ;;  %v1439_v19 = vmul.f32 1.442695, %v1423_v10  ;;  %v1668_v13 = vadd.f32 %v8503_v24, %v8659_v11 }
 0x59d   :  { %1758 = vmax.xlane.f32.xlu1 %v8787_v55  ;;  %7009 = vpow2.f32 %v2131_v30  ;;  %v8826_v63 = vsel %vm98_vm15, %v2404_v57, -1e+30  ;;  %v2391_v26 = vmul.f32 0.2, %v2359_v17  ;;  %v1717_v43 = vsel %vm1685_vm1, %v1669_v29, %v1701_v54 }
 0x59e   :  { %v8792_v22 = vpop.permute.xlu1 %1645  ;;  %vm2375_vm7 = vcmp.gt.f32.partialorder %v2359_v17, 0.0  ;;  %7011 = vpow2.f32 %v1439_v19  ;;  %v2129_v6 = vmul.f32 1.442695, %v2113_v35  ;;  %v1426_v7 = vsub.f32 %v8393_v2, %v1398_v62 }
 0x59f   :  { %2111 = vmax.xlane.f32.xlu0 %v8796_v53  ;;  %v2088_v3 = vpop.xlane.xlu0 %2087  ;;  %v8835_v30 = vsel %vm101_vm10, %v1717_v43, -1e+30  ;;  %v1700_v10 = vmul.f32 0.2, %v1668_v13  ;;  %v2358_v11 = vadd.f32 %v8519_v15, %v8739_v58  ;;  %v2407_v57 = vsel %vm2375_vm7, %v2359_v17, %v2391_v26 }
 0x5a0   :  { %vm1684_vm9 = vcmp.gt.f32.partialorder %v1668_v13, 0.0  ;;  %7013 = vpow2.f32 %v2129_v6  ;;  %v1445_v2 = vmul.f32 1.442695, %v1426_v7  ;;  %v2116_v62 = vsub.f32 %v8405_v40, %v2088_v3 }
 0x5a1   :  { %2448 = vmax.xlane.f32.xlu1 %v8803_v46  ;;  %v8848_v58 = vsel %vm101_vm10, %v2407_v57, -1e+30  ;;  %v1671_v17 = vadd.f32 %v8503_v24, %v8694_v61  ;;  %v2390_v35 = vmul.f32 0.2, %v2358_v11  ;;  %v1716_v26 = vsel %vm1684_vm9, %v1668_v13, %v1700_v10 }
 0x5a2   :  { %vm2374_vm1 = vcmp.gt.f32.partialorder %v2358_v11, 0.0  ;;  %7015 = vpow2.f32 %v1445_v2  ;;  %v2135_v40 = vmul.f32 1.442695, %v2116_v62  ;;  %v2361_v6 = vadd.f32 %v8519_v15, %v8776_v34 }
 0x5a3   :  { %v8812_v14 = vpop.permute.xlu1 %2335  ;;  %1419 = vmax.xlane.f32.xlu0 %v8810_v5  ;;  %v1396_v16 = vpop.xlane.xlu0 %1395  ;;  %v1703_v61 = vmul.f32 0.2, %v1671_v17  ;;  %v2406_v7 = vsel %vm2374_vm1, %v2358_v11, %v2390_v35  ;;  %vm1687_vm7 = vcmp.gt.f32.partialorder %v1671_v17, 0.0 }
 0x5a4   :  { %v7008_v29 = vpop.eup %7007  ;;  %v1425_v3 = vsub.f32 %v8420_v4, %v1396_v16  ;;  %7017 = vpow2.f32 %v2135_v40  ;;  %v8872_v57 = vsel %vm100_vm12, %v2406_v7, -1e+30  ;;  %v2393_v34 = vmul.f32 0.2, %v2361_v6 }
 0x5a5   :  { %1756 = vmax.xlane.f32.xlu1 %v8818_v56  ;;  %v1719_v2 = vsel %vm1687_vm7, %v1671_v17, %v1703_v61 }
 0x5a6   :  { %v1443_v4 = vmul.f32 1.442695, %v1425_v3 }
 0x5a7   :  { %v2086_v54 = vpop.xlane.xlu0 %2085 }
 0x5a8   :  { %v1991_v8 = vpop.permute.xlu1 %1990  ;;  %v2115_v16 = vsub.f32 %v8429_v60, %v2086_v54  ;;  %7019 = vpow2.f32 %v1443_v4 }
 0x5a9   :  { %v2015_v59 = vadd.f32 %v8343_v37, %v1991_v8  ;;  %2446 = vmax.xlane.f32.xlu1 %v8826_v63  ;;  %v8854_v8 = vmul.f32 %v7008_v29, %v7884_v32  ;;  %v1670_v29 = vadd.f32 %v8503_v24, %v8792_v22  ;;  %v2360_v22 = vadd.f32 %v8519_v15, %v8812_v14 }
 0x5aa   :  { %v2133_v60 = vmul.f32 1.442695, %v2115_v16 }
 0x5ab   :  { %v2047_v27 = vmul.f32 0.2, %v2015_v59  ;;  %vm2031_vm13 = vcmp.gt.f32.partialorder %v2015_v59, 0.0  ;;  %v1402_v43 = vpop.xlane.xlu0 %1401  ;;  %v1702_v24 = vmul.f32 0.2, %v1670_v29  ;;  %vm1686_vm9 = vcmp.gt.f32.partialorder %v1670_v29, 0.0 }
 0x5ac   :  { %v1428_v54 = vsub.f32 %v8439_v25, %v1402_v43  ;;  %7021 = vpow2.f32 %v2133_v60  ;;  %v2392_v15 = vmul.f32 0.2, %v2360_v22  ;;  %vm2376_vm1 = vcmp.gt.f32.partialorder %v2360_v22, 0.0 }
 0x5ad   :  { %1762 = vmax.xlane.f32.xlu1 %v8835_v30  ;;  %v2063_v37 = vsel %vm2031_vm13, %v2015_v59, %v2047_v27  ;;  %v7010_v59 = vpop.eup %7009  ;;  %v8860_v27 = vsel %vm100_vm12, %v1716_v26, -1e+30  ;;  %vm2377_vm13 = vcmp.gt.f32.partialorder %v2361_v6, 0.0  ;;  %v8884_v26 = vsel %vm103_vm6, %v1719_v2, -1e+30 }
 0x5ae   :  { %v8842_v19 = vsel %vm102_vm4, %v2063_v37, -1e+30  ;;  %v8866_v13 = vmul.f32 %v7010_v59, %v7884_v32  ;;  %v7012_v10 = vpop.eup %7011  ;;  %v2409_v59 = vsel %vm2377_vm13, %v2361_v6, %v2393_v34  ;;  %v1449_v25 = vmul.f32 1.442695, %v1428_v54 }
 0x5af   :  { %2109 = vmax.xlane.f32.xlu0 %v8842_v19  ;;  %v2092_v37 = vpop.xlane.xlu0 %2091  ;;  %v8878_v11 = vmul.f32 %v7012_v10, %v7806_v21  ;;  %v7014_v62 = vpop.eup %7013  ;;  %v8896_v61 = vsel %vm103_vm6, %v2409_v59, -1e+30  ;;  %v1718_v6 = vsel %vm1686_vm9, %v1670_v29, %v1702_v24  ;;  %v2408_v34 = vsel %vm2376_vm1, %v2360_v22, %v2392_v15 }
 0x5b0   :  { %v8890_v17 = vmul.f32 %v7014_v62, %v7806_v21  ;;  %v7016_v40 = vpop.eup %7015  ;;  %v2118_v3 = vsub.f32 %v8451_v12, %v2092_v37  ;;  %7023 = vpow2.f32 %v1449_v25  ;;  %v8906_v16 = vsel %vm102_vm4, %v1718_v6, -1e+30 }
 0x5b1   :  { %2452 = vmax.xlane.f32.xlu1 %v8848_v58  ;;  %v8900_v14 = vmul.f32 %v7016_v40, %v7895_v36  ;;  %v7018_v7 = vpop.eup %7017 }
 0x5b2   :  { %v2139_v10 = vmul.f32 1.442695, %v2118_v3  ;;  %v8910_v37 = vmul.f32 %v7018_v7, %v7895_v36  ;;  %v7020_v29 = vpop.eup %7019  ;;  %v11105_v3 = vld [vmem:[#allocation19_spill] sm:$0xff] }
 0x5b3   :  { %1489 = vadd.xlane.f32.xlu0 %v8854_v8  ;;  %v1400_v35 = vpop.xlane.xlu0 %1399  ;;  %v8920_v54 = vmul.f32 %v7020_v29, %v7886_v33 }
 0x5b4   :  { %v1427_v12 = vsub.f32 %v8464_v1, %v1400_v35  ;;  %7025 = vpow2.f32 %v2139_v10  ;;  %v8916_v1 = vsel %vm102_vm4, %v2408_v34, -1e+30 }
 0x5b5   :  { %1760 = vmax.xlane.f32.xlu1 %v8860_v27 }
 0x5b6   :  { %v1447_v2 = vmul.f32 1.442695, %v1427_v12  ;;  %v7022_v35 = vpop.eup %7021 }
 0x5b7   :  { %2179 = vadd.xlane.f32.xlu0 %v8866_v13  ;;  %v8925_v59 = vmul.f32 %v7022_v35, %v7886_v33 }
 0x5b8   :  { %7027 = vpow2.f32 %v1447_v2  ;;  %v11109_v2 = vld [vmem:[#allocation21_spill] sm:$0xff] }
 0x5b9   :  { %2450 = vmax.xlane.f32.xlu1 %v8872_v57 }
 0x5ba   :  { %v2090_v43 = vpop.xlane.xlu0 %2089 }
 0x5bb   :  { %1487 = vadd.xlane.f32.xlu0 %v8878_v11  ;;  %v2117_v62 = vsub.f32 %v8478_v23, %v2090_v43  ;;  %v7024_v23 = vpop.eup %7023 }
 0x5bc   :  { %v8930_v15 = vmul.f32 %v7024_v23, %v7904_v38 }
 0x5bd   :  { %1766 = vmax.xlane.f32.xlu1 %v8884_v26  ;;  %v2137_v24 = vmul.f32 1.442695, %v2117_v62 }
 0x5be   :  { %11106 = vst [vmem:[#allocation19_spill] sm:$0xff] %v8930_v15  ;;  %v7026_v6 = vpop.eup %7025 }
 0x5bf   :  { %2177 = vadd.xlane.f32.xlu0 %v8890_v17  ;;  %7029 = vpow2.f32 %v2137_v24 }
 0x5c1   :  { %2456 = vmax.xlane.f32.xlu1 %v8896_v61 }
 0x5c2   :  { %v7028_v34 = vpop.eup %7027 }
 0x5c3   :  { %1493 = vadd.xlane.f32.xlu0 %v8900_v14  ;;  %v8940_v35 = vmul.f32 %v7028_v34, %v7898_v20 }
 0x5c4   :  { %v1406_v4 = vpop.xlane.xlu0 %1405 }
 0x5c5   :  { %1764 = vmax.xlane.f32.xlu1 %v8906_v16  ;;  %v1430_v22 = vsub.f32 %v8488_v18, %v1406_v4  ;;  %v11107_v18 = vld [vmem:[#allocation20_spill] sm:$0xff]  ;;  %v8935_v4 = vmul.f32 %v7026_v6, %v7904_v38 }
 0x5c7   :  { %2183 = vadd.xlane.f32.xlu0 %v8910_v37  ;;  %v1453_v25 = vmul.f32 1.442695, %v1430_v22  ;;  %11108 = vst [vmem:[#allocation20_spill] sm:$0xff] %v8935_v4 }
 0x5c9   :  { %2454 = vmax.xlane.f32.xlu1 %v8916_v1  ;;  %v2096_v60 = vpop.xlane.xlu0 %2095  ;;  %7031 = vpow2.f32 %v1453_v25  ;;  %v7030_v24 = vpop.eup %7029  ;;  %v11110_v25 = vld [vmem:[#allocation22_spill] sm:$0xff] }
 0x5ca   :  { %v2120_v43 = vsub.f32 %v11105_v3, %v2096_v60 }
 0x5cb   :  { %1491 = vadd.xlane.f32.xlu0 %v8920_v54 }
 0x5cc   :  { %v2143_v7 = vmul.f32 1.442695, %v2120_v43 }
 0x5ce   :  { %v1404_v40 = vpop.xlane.xlu0 %1403  ;;  %7033 = vpow2.f32 %v2143_v7  ;;  %v8946_v7 = vmul.f32 %v7030_v24, %v7898_v20  ;;  %v11115_v24 = vld [vmem:[#allocation26_spill] sm:$0xff] }
 0x5cf   :  { %2181 = vadd.xlane.f32.xlu0 %v8925_v59  ;;  %v1429_v10 = vsub.f32 %v11107_v18, %v1404_v40 }
 0x5d0   :  { %11111 = vst [vmem:[#allocation21_spill] sm:$0xff] %v8946_v7 }
 0x5d1   :  { %v1451_v29 = vmul.f32 1.442695, %v1429_v10 }
 0x5d2   :  { %v2094_v12 = vpop.xlane.xlu0 %2093 }
 0x5d3   :  { %1497 = vadd.xlane.f32.xlu0 %v8930_v15  ;;  %v2119_v62 = vsub.f32 %v11109_v2, %v2094_v12  ;;  %7035 = vpow2.f32 %v1451_v29  ;;  %v7032_v18 = vpop.eup %7031  ;;  %v11112_v12 = vld [vmem:[#allocation24_spill] sm:$0xff]  ;;  %v11113_v2 = vld [vmem:[#allocation23_spill] sm:$0xff] }
 0x5d5   :  { %v2141_v40 = vmul.f32 1.442695, %v2119_v62 }
 0x5d7   :  { %2187 = vadd.xlane.f32.xlu0 %v8935_v4 }
 0x5d8   :  { %v1410_v60 = vpop.xlane.xlu0 %1409 }
 0x5d9   :  { %v1432_v3 = vsub.f32 %v11110_v25, %v1410_v60  ;;  %v8952_v60 = vmul.f32 %v7032_v18, %v7913_v41 }
 0x5da   :  { %v1739_v22 = vpop.xlane.xlu1 %1738 }
 0x5db   :  { %v1769_v23 = vsub.f32 %v8544_v0, %v1739_v22  ;;  %1495 = vadd.xlane.f32.xlu0 %v8940_v35  ;;  %v1457_v0 = vmul.f32 1.442695, %v1432_v3  ;;  %11114 = vst [vmem:[#allocation22_spill] sm:$0xff] %v8952_v60 }
 0x5dc   :  { %v2100_v43 = vpop.xlane.xlu0 %2099 }
 0x5dd   :  { %v1786_v6 = vmul.f32 1.442695, %v1769_v23  ;;  %v2122_v22 = vsub.f32 %v11113_v2, %v2100_v43  ;;  %v7034_v23 = vpop.eup %7033 }
 0x5de   :  { %v2429_v10 = vpop.xlane.xlu1 %2428  ;;  %v8958_v3 = vmul.f32 %v7034_v23, %v7913_v41  ;;  %v7036_v43 = vpop.eup %7035  ;;  %v11119_v23 = vld [vmem:[#allocation27_spill] sm:$0xff] }
 0x5df   :  { %7037 = vpow2.f32 %v1786_v6  ;;  %v2459_v34 = vsub.f32 %v11112_v12, %v2429_v10  ;;  %2185 = vadd.xlane.f32.xlu0 %v8946_v7  ;;  %v2147_v6 = vmul.f32 1.442695, %v2122_v22  ;;  %v11116_v10 = vld [vmem:[#allocation25_spill] sm:$0xff] }
 0x5e0   :  { %7039 = vpow2.f32 %v2141_v40  ;;  %v1408_v62 = vpop.xlane.xlu0 %1407  ;;  %11117 = vst [vmem:[#allocation24_spill] sm:$0xff] %v8958_v3 }
 0x5e1   :  { %v2476_v29 = vmul.f32 1.442695, %v2459_v34  ;;  %v1431_v12 = vsub.f32 %v11116_v10, %v1408_v62 }
 0x5e2   :  { %v1737_v25 = vpop.xlane.xlu1 %1736 }
 0x5e3   :  { %7041 = vpow2.f32 %v2476_v29  ;;  %v1768_v4 = vsub.f32 %v11115_v24, %v1737_v25  ;;  %1501 = vadd.xlane.f32.xlu0 %v8952_v60  ;;  %v1455_v2 = vmul.f32 1.442695, %v1431_v12 }
 0x5e4   :  { %7043 = vpow2.f32 %v1457_v0  ;;  %v8963_v0 = vmul.f32 %v7036_v43, %v7907_v39 }
 0x5e5   :  { %v1784_v40 = vmul.f32 1.442695, %v1768_v4 }
 0x5e6   :  { %v2427_v34 = vpop.xlane.xlu1 %2426  ;;  %11118 = vst [vmem:[#allocation23_spill] sm:$0xff] %v8963_v0 }
 0x5e7   :  { %7045 = vpow2.f32 %v1784_v40  ;;  %v2458_v18 = vsub.f32 %v8581_v28, %v2427_v34  ;;  %2191 = vadd.xlane.f32.xlu0 %v8958_v3 }
 0x5e8   :  { %7047 = vpow2.f32 %v2147_v6 }
 0x5e9   :  { %v7038_v29 = vpop.eup %7037  ;;  %v2474_v25 = vmul.f32 1.442695, %v2458_v18 }
 0x5ea   :  { %v7040_v22 = vpop.eup %7039  ;;  %v1743_v62 = vpop.xlane.xlu1 %1742  ;;  %v8966_v4 = vmul.f32 %v7038_v29, %v7884_v32 }
 0x5eb   :  { %7049 = vpow2.f32 %v2474_v25  ;;  %v1771_v24 = vsub.f32 %v11119_v23, %v1743_v62  ;;  %1499 = vadd.xlane.f32.xlu0 %v8963_v0  ;;  %v8973_v40 = vmul.f32 %v7040_v22, %v7907_v39  ;;  %v11121_v25 = vld [vmem:[#allocation28_spill] sm:$0xff] }
 0x5ec   :  { %7051 = vpow2.f32 %v1455_v2  ;;  %1834 = vadd.xlane.f32.xlu1 %v8966_v4  ;;  %v2098_v28 = vpop.xlane.xlu0 %2097 }
 0x5ed   :  { %v7042_v6 = vpop.eup %7041  ;;  %v1790_v10 = vmul.f32 1.442695, %v1771_v24  ;;  %v2121_v12 = vsub.f32 %v8598_v9, %v2098_v28  ;;  %11120 = vst [vmem:[#allocation26_spill] sm:$0xff] %v8973_v40  ;;  %v11122_v24 = vld [vmem:[#allocation29_spill] sm:$0xff] }
 0x5ee   :  { %v7044_v43 = vpop.eup %7043  ;;  %v2433_v34 = vpop.xlane.xlu1 %2432  ;;  %v8976_v18 = vmul.f32 %v7042_v6, %v7884_v32 }
 0x5ef   :  { %7053 = vpow2.f32 %v1790_v10  ;;  %v2145_v29 = vmul.f32 1.442695, %v2121_v12  ;;  %v2461_v62 = vsub.f32 %v11121_v25, %v2433_v34  ;;  %2189 = vadd.xlane.f32.xlu0 %v8973_v40  ;;  %v8983_v28 = vmul.f32 %v7044_v43, %v7922_v44  ;;  %v11124_v34 = vld [vmem:[#allocation30_spill] sm:$0xff] }
 0x5f0   :  { %2524 = vadd.xlane.f32.xlu1 %v8976_v18  ;;  %v1414_v2 = vpop.xlane.xlu0 %1413 }
 0x5f1   :  { %v7046_v23 = vpop.eup %7045  ;;  %7055 = vpow2.f32 %v2145_v29  ;;  %v2480_v9 = vmul.f32 1.442695, %v2461_v62  ;;  %v1434_v22 = vsub.f32 %v11122_v24, %v1414_v2  ;;  %11123 = vst [vmem:[#allocation25_spill] sm:$0xff] %v8983_v28 }
 0x5f2   :  { %v7048_v3 = vpop.eup %7047  ;;  %v1741_v6 = vpop.xlane.xlu1 %1740  ;;  %v8986_v10 = vmul.f32 %v7046_v23, %v7806_v21  ;;  %v11126_v23 = vld [vmem:[#allocation31_spill] sm:$0xff] }
 0x5f3   :  { %7057 = vpow2.f32 %v2480_v9  ;;  %v1461_v12 = vmul.f32 1.442695, %v1434_v22  ;;  %v1770_v25 = vsub.f32 %v11124_v34, %v1741_v6  ;;  %1505 = vadd.xlane.f32.xlu0 %v8983_v28  ;;  %v8992_v2 = vmul.f32 %v7048_v3, %v7922_v44 }
 0x5f4   :  { %1832 = vadd.xlane.f32.xlu1 %v8986_v10 }
 0x5f5   :  { %v7050_v29 = vpop.eup %7049  ;;  %7059 = vpow2.f32 %v1461_v12  ;;  %v1788_v62 = vmul.f32 1.442695, %v1770_v25  ;;  %11125 = vst [vmem:[#allocation27_spill] sm:$0xff] %v8992_v2 }
 0x5f6   :  { %v7052_v43 = vpop.eup %7051  ;;  %v2431_v24 = vpop.xlane.xlu1 %2430  ;;  %v8995_v32 = vmul.f32 %v7050_v29, %v7806_v21  ;;  %v11128_v29 = vld [vmem:[#allocation32_spill] sm:$0xff] }
 0x5f7   :  { %7061 = vpow2.f32 %v1788_v62  ;;  %v2460_v9 = vsub.f32 %v11126_v23, %v2431_v24  ;;  %2195 = vadd.xlane.f32.xlu0 %v8992_v2  ;;  %v9001_v12 = vmul.f32 %v7052_v43, %v7916_v42  ;;  %v11129_v24 = vld [vmem:[#allocation33_spill] sm:$0xff] }
 0x5f8   :  { %2522 = vadd.xlane.f32.xlu1 %v8995_v32 }
 0x5f9   :  { %v7054_v22 = vpop.eup %7053  ;;  %v2478_v6 = vmul.f32 1.442695, %v2460_v9  ;;  %11127 = vst [vmem:[#allocation28_spill] sm:$0xff] %v9001_v12 }
 0x5fa   :  { %v1747_v34 = vpop.xlane.xlu1 %1746  ;;  %v9004_v3 = vmul.f32 %v7054_v22, %v7895_v36 }
 0x5fb   :  { %v7056_v25 = vpop.eup %7055  ;;  %7063 = vpow2.f32 %v2478_v6  ;;  %v1773_v21 = vsub.f32 %v11128_v29, %v1747_v34  ;;  %1503 = vadd.xlane.f32.xlu0 %v9001_v12  ;;  %v2104_v62 = vpop.xlane.xlu0 %2103  ;;  %v11131_v34 = vld [vmem:[#allocation34_spill] sm:$0xff] }
 0x5fc   :  { %v2124_v23 = vsub.f32 %v11129_v24, %v2104_v62  ;;  %1838 = vadd.xlane.f32.xlu1 %v9004_v3  ;;  %v9011_v9 = vmul.f32 %v7056_v25, %v7916_v42 }
 0x5fd   :  { %v7058_v43 = vpop.eup %7057  ;;  %v1794_v2 = vmul.f32 1.442695, %v1773_v21 }
 0x5fe   :  { %11130 = vst [vmem:[#allocation29_spill] sm:$0xff] %v9011_v9  ;;  %v2151_v28 = vmul.f32 1.442695, %v2124_v23  ;;  %v2437_v40 = vpop.xlane.xlu1 %2436  ;;  %v9014_v22 = vmul.f32 %v7058_v43, %v7895_v36  ;;  %v11133_v43 = vld [vmem:[#allocation35_spill] sm:$0xff] }
 0x5ff   :  { %v7060_v6 = vpop.eup %7059  ;;  %7065 = vpow2.f32 %v1794_v2  ;;  %v2463_v29 = vsub.f32 %v11131_v34, %v2437_v40  ;;  %2193 = vadd.xlane.f32.xlu0 %v9011_v9  ;;  %v11134_v34 = vld [vmem:[#allocation36_spill] sm:$0xff] }
 0x600   :  { %7067 = vpow2.f32 %v2151_v28  ;;  %2528 = vadd.xlane.f32.xlu1 %v9014_v22  ;;  %v9020_v62 = vmul.f32 %v7060_v6, %v7931_v47 }
 0x601   :  { %v7062_v25 = vpop.eup %7061  ;;  %v2484_v24 = vmul.f32 1.442695, %v2463_v29  ;;  %v11135_v29 = vld [vmem:[#allocation37_spill] sm:$0xff] }
 0x602   :  { %11132 = vst [vmem:[#allocation30_spill] sm:$0xff] %v9020_v62  ;;  %v1745_v21 = vpop.xlane.xlu1 %1744  ;;  %v9023_v23 = vmul.f32 %v7062_v25, %v7886_v33 }
 0x603   :  { %7069 = vpow2.f32 %v2484_v24  ;;  %v1772_v36 = vsub.f32 %v11133_v43, %v1745_v21  ;;  %1509 = vadd.xlane.f32.xlu0 %v9020_v62 }
 0x604   :  { %1836 = vadd.xlane.f32.xlu1 %v9023_v23 }
 0x605   :  { %v7064_v40 = vpop.eup %7063  ;;  %v1792_v28 = vmul.f32 1.442695, %v1772_v36  ;;  %v1412_v2 = vpop.xlane.xlu0 %1411 }
 0x606   :  { %v1433_v9 = vsub.f32 %v11134_v34, %v1412_v2  ;;  %v2435_v6 = vpop.xlane.xlu1 %2434  ;;  %v9030_v12 = vmul.f32 %v7064_v40, %v7886_v33  ;;  %v11136_v2 = vld [vmem:[#allocation38_spill] sm:$0xff]  ;;  %v11137_v40 = vld [vmem:[#allocation39_spill] sm:$0xff] }
 0x607   :  { %7071 = vpow2.f32 %v1792_v28  ;;  %v2462_v25 = vsub.f32 %v11135_v29, %v2435_v6 }
 0x608   :  { %v1459_v60 = vmul.f32 1.442695, %v1433_v9  ;;  %2526 = vadd.xlane.f32.xlu1 %v9030_v12 }
 0x609   :  { %v7066_v24 = vpop.eup %7065  ;;  %v2482_v21 = vmul.f32 1.442695, %v2462_v25 }
 0x60a   :  { %v7068_v43 = vpop.eup %7067  ;;  %7073 = vpow2.f32 %v1459_v60  ;;  %v1751_v62 = vpop.xlane.xlu1 %1750  ;;  %v9035_v36 = vmul.f32 %v7066_v24, %v7904_v38  ;;  %v11140_v24 = vld [vmem:[#allocation40_spill] sm:$0xff] }
 0x60b   :  { %v2102_v0 = vpop.xlane.xlu0 %2101  ;;  %7075 = vpow2.f32 %v2482_v21  ;;  %v1775_v34 = vsub.f32 %v11136_v2, %v1751_v62  ;;  %v9040_v28 = vmul.f32 %v7068_v43, %v7931_v47 }
 0x60c   :  { %v2123_v33 = vsub.f32 %v11137_v40, %v2102_v0  ;;  %1842 = vadd.xlane.f32.xlu1 %v9035_v36 }
 0x60d   :  { %11138 = vst [vmem:[#allocation31_spill] sm:$0xff] %v9040_v28  ;;  %v7070_v9 = vpop.eup %7069  ;;  %v1798_v6 = vmul.f32 1.442695, %v1775_v34  ;;  %2199 = vadd.xlane.f32.xlu0 %v9040_v28  ;;  %v11142_v28 = vld [vmem:[#allocation42_spill] sm:$0xff] }
 0x60e   :  { %v2149_v29 = vmul.f32 1.442695, %v2123_v33  ;;  %v2441_v60 = vpop.xlane.xlu1 %2440  ;;  %v9045_v25 = vmul.f32 %v7070_v9, %v7904_v38  ;;  %v11141_v33 = vld [vmem:[#allocation41_spill] sm:$0xff] }
 0x60f   :  { %7077 = vpow2.f32 %v1798_v6  ;;  %v2465_v21 = vsub.f32 %v11140_v24, %v2441_v60 }
 0x610   :  { %11139 = vst [vmem:[#allocation32_spill] sm:$0xff] %v9045_v25  ;;  %7079 = vpow2.f32 %v2149_v29  ;;  %2532 = vadd.xlane.f32.xlu1 %v9045_v25 }
 0x611   :  { %v7072_v0 = vpop.eup %7071  ;;  %v2488_v62 = vmul.f32 1.442695, %v2465_v21 }
 0x612   :  { %v1749_v43 = vpop.xlane.xlu1 %1748  ;;  %v9050_v2 = vmul.f32 %v7072_v0, %v7898_v20 }
 0x613   :  { %7081 = vpow2.f32 %v2488_v62  ;;  %v1774_v34 = vsub.f32 %v11141_v33, %v1749_v43  ;;  %v11144_v62 = vld [vmem:[#allocation43_spill] sm:$0xff] }
 0x614   :  { %v7074_v40 = vpop.eup %7073  ;;  %1840 = vadd.xlane.f32.xlu1 %v9050_v2  ;;  %v1418_v9 = vpop.xlane.xlu0 %1417 }
 0x615   :  { %v7076_v38 = vpop.eup %7075  ;;  %v1796_v6 = vmul.f32 1.442695, %v1774_v34  ;;  %v1436_v60 = vsub.f32 %v11142_v28, %v1418_v9  ;;  %v9056_v29 = vmul.f32 %v7074_v40, %v7925_v45  ;;  %v11145_v9 = vld [vmem:[#allocation44_spill] sm:$0xff] }
 0x616   :  { %v2439_v24 = vpop.xlane.xlu1 %2438  ;;  %v9059_v21 = vmul.f32 %v7076_v38, %v7898_v20  ;;  %v11147_v38 = vld [vmem:[#allocation45_spill] sm:$0xff] }
 0x617   :  { %11143 = vst [vmem:[#allocation33_spill] sm:$0xff] %v9056_v29  ;;  %7083 = vpow2.f32 %v1796_v6  ;;  %v1465_v0 = vmul.f32 1.442695, %v1436_v60  ;;  %v2464_v25 = vsub.f32 %v11144_v62, %v2439_v24  ;;  %1507 = vadd.xlane.f32.xlu0 %v9056_v29 }
 0x618   :  { %2530 = vadd.xlane.f32.xlu1 %v9059_v21 }
 0x619   :  { %v7078_v43 = vpop.eup %7077  ;;  %7085 = vpow2.f32 %v1465_v0  ;;  %v2486_v33 = vmul.f32 1.442695, %v2464_v25  ;;  %v2108_v34 = vpop.xlane.xlu0 %2107 }
 0x61a   :  { %v7080_v28 = vpop.eup %7079  ;;  %v2126_v40 = vsub.f32 %v11145_v9, %v2108_v34  ;;  %v1755_v7 = vpop.xlane.xlu1 %1754  ;;  %v9066_v15 = vmul.f32 %v7078_v43, %v7913_v41  ;;  %v11149_v43 = vld [vmem:[#allocation46_spill] sm:$0xff] }
 0x61b   :  { %7087 = vpow2.f32 %v2486_v33  ;;  %v1777_v6 = vsub.f32 %v11147_v38, %v1755_v7  ;;  %v9070_v60 = vmul.f32 %v7080_v28, %v7925_v45  ;;  %v11150_v7 = vld [vmem:[#allocation47_spill] sm:$0xff] }
 0x61c   :  { %11146 = vst [vmem:[#allocation34_spill] sm:$0xff] %v9066_v15  ;;  %v2155_v24 = vmul.f32 1.442695, %v2126_v40  ;;  %1846 = vadd.xlane.f32.xlu1 %v9066_v15  ;;  %v11151_v15 = vld [vmem:[#allocation48_spill] sm:$0xff] }
 0x61d   :  { %11148 = vst [vmem:[#allocation35_spill] sm:$0xff] %v9070_v60  ;;  %v7082_v62 = vpop.eup %7081  ;;  %v1802_v0 = vmul.f32 1.442695, %v1777_v6  ;;  %2197 = vadd.xlane.f32.xlu0 %v9070_v60 }
 0x61e   :  { %7089 = vpow2.f32 %v2155_v24  ;;  %v2445_v25 = vpop.xlane.xlu1 %2444  ;;  %v1416_v34 = vpop.xlane.xlu0 %1415  ;;  %v9075_v9 = vmul.f32 %v7082_v62, %v7913_v41  ;;  %v11152_v41 = vld [vmem:[#allocation49_spill] sm:$0xff] }
 0x61f   :  { %7091 = vpow2.f32 %v1802_v0  ;;  %v2467_v33 = vsub.f32 %v11149_v43, %v2445_v25  ;;  %v1435_v38 = vsub.f32 %v11150_v7, %v1416_v34 }
 0x620   :  { %2536 = vadd.xlane.f32.xlu1 %v9075_v9 }
 0x621   :  { %v7084_v28 = vpop.eup %7083  ;;  %v2492_v40 = vmul.f32 1.442695, %v2467_v33  ;;  %v1463_v20 = vmul.f32 1.442695, %v1435_v38 }
 0x622   :  { %v1753_v29 = vpop.xlane.xlu1 %1752  ;;  %v2106_v6 = vpop.xlane.xlu0 %2105  ;;  %v9081_v60 = vmul.f32 %v7084_v28, %v7907_v39 }
 0x623   :  { %v7086_v24 = vpop.eup %7085  ;;  %7093 = vpow2.f32 %v2492_v40  ;;  %v1776_v62 = vsub.f32 %v11151_v15, %v1753_v29  ;;  %v2125_v0 = vsub.f32 %v11152_v41, %v2106_v6 }
 0x624   :  { %7095 = vpow2.f32 %v1463_v20  ;;  %1844 = vadd.xlane.f32.xlu1 %v9081_v60  ;;  %v9087_v25 = vmul.f32 %v7086_v24, %v7940_v50 }
 0x625   :  { %v7088_v34 = vpop.eup %7087  ;;  %v1800_v43 = vmul.f32 1.442695, %v1776_v62  ;;  %v2153_v33 = vmul.f32 1.442695, %v2125_v0 }
 0x626   :  { %v2443_v7 = vpop.xlane.xlu1 %2442  ;;  %1513 = vadd.xlane.f32.xlu0 %v9087_v25  ;;  %v9091_v38 = vmul.f32 %v7088_v34, %v7907_v39 }
 0x627   :  { %7097 = vpow2.f32 %v1800_v43  ;;  %v2466_v15 = vsub.f32 %v8771_v49, %v2443_v7 }
 0x628   :  { %v7090_v29 = vpop.eup %7089  ;;  %7099 = vpow2.f32 %v2153_v33  ;;  %2534 = vadd.xlane.f32.xlu1 %v9091_v38  ;;  %v1422_v20 = vpop.xlane.xlu0 %1421 }
 0x629   :  { %v7092_v41 = vpop.eup %7091  ;;  %v2490_v28 = vmul.f32 1.442695, %v2466_v15  ;;  %v1438_v40 = vsub.f32 %v8781_v31, %v1422_v20  ;;  %v9097_v6 = vmul.f32 %v7090_v29, %v7940_v50 }
 0x62a   :  { %v1759_v24 = vpop.xlane.xlu1 %1758  ;;  %v9100_v62 = vmul.f32 %v7092_v41, %v7922_v44 }
 0x62b   :  { %11153 = vst [vmem:[#allocation36_spill] sm:$0xff] %v9097_v6  ;;  %7101 = vpow2.f32 %v2490_v28  ;;  %v1469_v0 = vmul.f32 1.442695, %v1438_v40  ;;  %v1779_v49 = vsub.f32 %v8787_v55, %v1759_v24  ;;  %2203 = vadd.xlane.f32.xlu0 %v9097_v6 }
 0x62c   :  { %1850 = vadd.xlane.f32.xlu1 %v9100_v62  ;;  %v2112_v34 = vpop.xlane.xlu0 %2111 }
 0x62d   :  { %v7094_v43 = vpop.eup %7093  ;;  %7103 = vpow2.f32 %v1469_v0  ;;  %v1806_v33 = vmul.f32 1.442695, %v1779_v49 }
 0x62e   :  { %v7096_v31 = vpop.eup %7095  ;;  %v2449_v7 = vpop.xlane.xlu1 %2448  ;;  %v9106_v15 = vmul.f32 %v7094_v43, %v7922_v44 }
 0x62f   :  { %7105 = vpow2.f32 %v1806_v33  ;;  %v2469_v29 = vsub.f32 %v8803_v46, %v2449_v7  ;;  %v9110_v20 = vmul.f32 %v7096_v31, %v7934_v48 }
 0x630   :  { %2540 = vadd.xlane.f32.xlu1 %v9106_v15  ;;  %v1420_v55 = vpop.xlane.xlu0 %1419 }
 0x631   :  { %v7098_v41 = vpop.eup %7097  ;;  %v2496_v28 = vmul.f32 1.442695, %v2469_v29  ;;  %1511 = vadd.xlane.f32.xlu0 %v9110_v20  ;;  %v1437_v40 = vsub.f32 %v8810_v5, %v1420_v55 }
 0x632   :  { %v7100_v24 = vpop.eup %7099  ;;  %v1757_v0 = vpop.xlane.xlu1 %1756  ;;  %v9116_v49 = vmul.f32 %v7098_v41, %v7916_v42 }
 0x633   :  { %7107 = vpow2.f32 %v2496_v28  ;;  %v1467_v43 = vmul.f32 1.442695, %v1437_v40  ;;  %v1778_v46 = vsub.f32 %v8818_v56, %v1757_v0  ;;  %v9120_v33 = vmul.f32 %v7100_v24, %v7934_v48 }
 0x634   :  { %1848 = vadd.xlane.f32.xlu1 %v9116_v49  ;;  %v2128_v24 = vsub.f32 %v8796_v53, %v2112_v34 }
 0x635   :  { %11154 = vst [vmem:[#allocation37_spill] sm:$0xff] %v9120_v33  ;;  %v7102_v31 = vpop.eup %7101  ;;  %7109 = vpow2.f32 %v1467_v43  ;;  %v1804_v7 = vmul.f32 1.442695, %v1778_v46  ;;  %2201 = vadd.xlane.f32.xlu0 %v9120_v33 }
 0x636   :  { %v2447_v5 = vpop.xlane.xlu1 %2446  ;;  %v9125_v29 = vmul.f32 %v7102_v31, %v7916_v42 }
 0x637   :  { %v7104_v55 = vpop.eup %7103  ;;  %7111 = vpow2.f32 %v1804_v7  ;;  %v2468_v41 = vsub.f32 %v8826_v63, %v2447_v5 }
 0x638   :  { %2538 = vadd.xlane.f32.xlu1 %v9125_v29  ;;  %v9130_v56 = vmul.f32 %v7104_v55, %v7946_v52  ;;  %v2159_v55 = vmul.f32 1.442695, %v2128_v24 }
 0x639   :  { %v7106_v28 = vpop.eup %7105  ;;  %v2494_v40 = vmul.f32 1.442695, %v2468_v41 }
 0x63a   :  { %11155 = vst [vmem:[#allocation38_spill] sm:$0xff] %v9130_v56  ;;  %v1763_v0 = vpop.xlane.xlu1 %1762  ;;  %1517 = vadd.xlane.f32.xlu0 %v9130_v56  ;;  %v9135_v43 = vmul.f32 %v7106_v28, %v7931_v47 }
 0x63b   :  { %7113 = vpow2.f32 %v2494_v40  ;;  %v1781_v46 = vsub.f32 %v8835_v30, %v1763_v0 }
 0x63c   :  { %1854 = vadd.xlane.f32.xlu1 %v9135_v43  ;;  %v2110_v63 = vpop.xlane.xlu0 %2109 }
 0x63d   :  { %v7108_v31 = vpop.eup %7107  ;;  %v1810_v7 = vmul.f32 1.442695, %v1781_v46  ;;  %v2127_v5 = vsub.f32 %v8842_v19, %v2110_v63 }
 0x63e   :  { %v2453_v41 = vpop.xlane.xlu1 %2452  ;;  %v9141_v53 = vmul.f32 %v7108_v31, %v7931_v47 }
 0x63f   :  { %v7110_v34 = vpop.eup %7109  ;;  %7115 = vpow2.f32 %v1810_v7  ;;  %v2157_v42 = vmul.f32 1.442695, %v2127_v5  ;;  %v2471_v28 = vsub.f32 %v8848_v58, %v2453_v41 }
 0x640   :  { %2544 = vadd.xlane.f32.xlu1 %v9141_v53  ;;  %v9146_v30 = vmul.f32 %v7110_v34, %v7943_v51  ;;  %v9152_v46 = vpop.xlane.xlu0 %1489 }
 0x641   :  { %v7112_v40 = vpop.eup %7111  ;;  %7117 = vpow2.f32 %v2157_v42  ;;  %v2500_v0 = vmul.f32 1.442695, %v2471_v28 }
 0x642   :  { %11156 = vst [vmem:[#allocation39_spill] sm:$0xff] %v9146_v30  ;;  %7119 = vpow2.f32 %v2159_v55  ;;  %v1761_v19 = vpop.xlane.xlu1 %1760  ;;  %1515 = vadd.xlane.f32.xlu0 %v9146_v30  ;;  %v9150_v24 = vmul.f32 %v7112_v40, %v7925_v45 }
 0x643   :  { %7121 = vpow2.f32 %v2500_v0  ;;  %v1780_v58 = vsub.f32 %v8860_v27, %v1761_v19 }
 0x644   :  { %1852 = vadd.xlane.f32.xlu1 %v9150_v24  ;;  %v9161_v41 = vpop.xlane.xlu0 %2179 }
 0x645   :  { %v7114_v63 = vpop.eup %7113  ;;  %v1808_v31 = vmul.f32 1.442695, %v1780_v58 }
 0x646   :  { %v2451_v7 = vpop.xlane.xlu1 %2450  ;;  %v9157_v42 = vmul.f32 %v7114_v63, %v7925_v45 }
 0x647   :  { %7123 = vpow2.f32 %v1808_v31  ;;  %v2470_v5 = vsub.f32 %v8872_v57, %v2451_v7 }
 0x648   :  { %2542 = vadd.xlane.f32.xlu1 %v9157_v42 }
 0x649   :  { %v7116_v55 = vpop.eup %7115  ;;  %v2498_v34 = vmul.f32 1.442695, %v2470_v5  ;;  %v1488_v5 = vpop.xlane.xlu0 %1487 }
 0x64a   :  { %v1767_v28 = vpop.xlane.xlu1 %1766  ;;  %v9164_v27 = vmul.f32 %v7116_v55, %v7940_v50 }
 0x64b   :  { %v7118_v40 = vpop.eup %7117  ;;  %7125 = vpow2.f32 %v2498_v34  ;;  %v1783_v0 = vsub.f32 %v8884_v26, %v1767_v28 }
 0x64c   :  { %v7120_v19 = vpop.eup %7119  ;;  %1858 = vadd.xlane.f32.xlu1 %v9164_v27  ;;  %v9169_v58 = vmul.f32 %v7118_v40, %v7943_v51 }
 0x64d   :  { %v7122_v57 = vpop.eup %7121  ;;  %v1814_v63 = vmul.f32 1.442695, %v1783_v0  ;;  %v9177_v26 = vmul.f32 %v7120_v19, %v7946_v52 }
 0x64e   :  { %11157 = vst [vmem:[#allocation40_spill] sm:$0xff] %v9169_v58  ;;  %v2457_v31 = vpop.xlane.xlu1 %2456  ;;  %2205 = vadd.xlane.f32.xlu0 %v9169_v58  ;;  %v9173_v7 = vmul.f32 %v7122_v57, %v7940_v50  ;;  %v2178_v57 = vpop.xlane.xlu0 %2177 }
 0x64f   :  { %7127 = vpow2.f32 %v1814_v63  ;;  %11159 = vst [vmem:[#allocation42_spill] sm:$0xff] %v9177_v26  ;;  %v2473_v63 = vsub.f32 %v8896_v61, %v2457_v31  ;;  %v2209_v56 = vadd.f32 1e-09, %v2178_v57 }
 0x650   :  { %11158 = vst [vmem:[#allocation41_spill] sm:$0xff] %v9173_v7  ;;  %2548 = vadd.xlane.f32.xlu1 %v9173_v7 }
 0x651   :  { %v7124_v55 = vpop.eup %7123  ;;  %v2504_v44 = vmul.f32 1.442695, %v2473_v63 }
 0x652   :  { %v1765_v34 = vpop.xlane.xlu1 %1764  ;;  %2207 = vadd.xlane.f32.xlu0 %v9177_v26  ;;  %v9181_v28 = vmul.f32 %v7124_v55, %v7934_v48 }
 0x653   :  { %v1782_v40 = vsub.f32 %v8906_v16, %v1765_v34  ;;  %v1494_v34 = vpop.xlane.xlu0 %1493 }
 0x654   :  { %1856 = vadd.xlane.f32.xlu1 %v9181_v28 }
 0x655   :  { %v7126_v0 = vpop.eup %7125  ;;  %v1812_v50 = vmul.f32 1.442695, %v1782_v40 }
 0x656   :  { %v2455_v45 = vpop.xlane.xlu1 %2454  ;;  %v9187_v19 = vmul.f32 %v7126_v0, %v7934_v48  ;;  %v1519_v48 = vadd.f32 1e-09, %v1488_v5  ;;  %v2210_v5 = vadd.f32 1e-09, %v9161_v41  ;;  %v1522_v41 = vadd.f32 1e-09, %v1494_v34 }
 0x657   :  { %7129 = vpow2.f32 %v1812_v50  ;;  %v2472_v47 = vsub.f32 %v8916_v1, %v2455_v45  ;;  %v9195_v31 = vpop.xlane.xlu0 %2183 }
 0x658   :  { %2546 = vadd.xlane.f32.xlu1 %v9187_v19 }
 0x659   :  { %v7128_v55 = vpop.eup %7127  ;;  %v2502_v39 = vmul.f32 1.442695, %v2472_v47 }
 0x65a   :  { %v9192_v16 = vmul.f32 %v7128_v55, %v7946_v52 }
 0x65b   :  { %7131 = vpow2.f32 %v2502_v39  ;;  %v1492_v40 = vpop.xlane.xlu0 %1491 }
 0x65c   :  { %11160 = vst [vmem:[#allocation43_spill] sm:$0xff] %v9192_v16  ;;  %1862 = vadd.xlane.f32.xlu1 %v9192_v16  ;;  %7133 = vpow2.f32 %v2504_v44 }
 0x65d   :  { %7135 = vrcp.f32 %v1519_v48 }
 0x65f   :  { %v2182_v44 = vpop.xlane.xlu0 %2181 }
 0x660   :  { %v2211_v7 = vadd.f32 1e-09, %v2182_v44 }
 0x661   :  { %v7130_v61 = vpop.eup %7129 }
 0x662   :  { %v9198_v50 = vmul.f32 %v7130_v61, %v7943_v51 }
 0x663   :  { %v9209_v0 = vpop.xlane.xlu0 %1497 }
 0x664   :  { %11161 = vst [vmem:[#allocation44_spill] sm:$0xff] %v9198_v50  ;;  %1860 = vadd.xlane.f32.xlu1 %v9198_v50 }
 0x665   :  { %v7132_v45 = vpop.eup %7131 }
 0x666   :  { %v9202_v1 = vmul.f32 %v7132_v45, %v7943_v51  ;;  %v7134_v47 = vpop.eup %7133  ;;  %v1520_v51 = vadd.f32 1e-09, %v9152_v46 }
 0x667   :  { %v9206_v39 = vmul.f32 %v7134_v47, %v7946_v52  ;;  %v9211_v63 = vpop.xlane.xlu0 %2187  ;;  %v7136_v48 = vpop.eup %7135 }
 0x668   :  { %11162 = vst [vmem:[#allocation45_spill] sm:$0xff] %v9202_v1  ;;  %2550 = vadd.xlane.f32.xlu1 %v9202_v1 }
 0x669   :  { %11163 = vst [vmem:[#allocation46_spill] sm:$0xff] %v9206_v39 }
 0x66b   :  { %v9213_v26 = vpop.xlane.xlu0 %1495 }
 0x66c   :  { %2552 = vadd.xlane.f32.xlu1 %v9206_v39 }
 0x66f   :  { %v9216_v39 = vpop.xlane.xlu0 %2185 }
 0x673   :  { %v9219_v46 = vpop.xlane.xlu0 %1501 }
 0x679   :  { %v1835_v55 = vpop.xlane.xlu1 %1834 }
 0x67a   :  { %v1865_v45 = vadd.f32 1e-09, %v1835_v55 }
 0x67c   :  { %7137 = vrcp.f32 %v1865_v45 }
 0x67d   :  { %v2525_v61 = vpop.xlane.xlu1 %2524 }
 0x67e   :  { %v2555_v52 = vadd.f32 1e-09, %v2525_v61  ;;  %v1521_v61 = vadd.f32 1e-09, %v1492_v40 }
 0x681   :  { %v1833_v58 = vpop.xlane.xlu1 %1832 }
 0x682   :  { %v1864_v47 = vadd.f32 1e-09, %v1833_v58 }
 0x684   :  { %7139 = vrcp.f32 %v1864_v47 }
 0x685   :  { %7141 = vrcp.f32 %v1520_v51  ;;  %v2523_v1 = vpop.xlane.xlu1 %2522 }
 0x686   :  { %7143 = vrcp.f32 %v2209_v56  ;;  %v2554_v16 = vadd.f32 1e-09, %v2523_v1  ;;  %v7138_v57 = vpop.eup %7137  ;;  %v1551_v56 = vmul.f32 %v7136_v48, %v8878_v11  ;;  %v2212_v48 = vadd.f32 1e-09, %v9195_v31 }
 0x687   :  { %7145 = vrcp.f32 %v2555_v52  ;;  %v9223_v52 = vpop.xlane.xlu0 %2191 }
 0x688   :  { %7147 = vrcp.f32 %v2554_v16 }
 0x689   :  { %v1839_v55 = vpop.xlane.xlu1 %1838  ;;  %7149 = vrcp.f32 %v2210_v5  ;;  %v1897_v5 = vmul.f32 %v7138_v57, %v8966_v4 }
 0x68a   :  { %v1867_v51 = vadd.f32 1e-09, %v1839_v55  ;;  %7151 = vrcp.f32 %v1521_v61 }
 0x68b   :  { %v1500_v57 = vpop.xlane.xlu0 %1499 }
 0x68c   :  { %7153 = vrcp.f32 %v1867_v51 }
 0x68d   :  { %v2529_v58 = vpop.xlane.xlu1 %2528 }
 0x68e   :  { %v7140_v45 = vpop.eup %7139  ;;  %v2557_v40 = vadd.f32 1e-09, %v2529_v58 }
 0x68f   :  { %v7142_v47 = vpop.eup %7141  ;;  %v1896_v30 = vmul.f32 %v7140_v45, %v8986_v10 }
 0x690   :  { %v7144_v50 = vpop.eup %7143  ;;  %v1552_v11 = vmul.f32 %v7142_v47, %v8854_v8 }
 0x691   :  { %v7146_v1 = vpop.eup %7145  ;;  %2694 = vmatprep.mubr.f32.mxu1 %v1896_v30  ;;  %v1837_v16 = vpop.xlane.xlu1 %1836  ;;  %v2241_v34 = vmul.f32 %v7144_v50, %v8890_v17 }
 0x692   :  { %v7148_v6 = vpop.eup %7147  ;;  %v1866_v33 = vadd.f32 1e-09, %v1837_v16  ;;  %2695 = vmatmul.mubr.f32.vlgmr.msra.gmra.mrb[48].mxu1 %v1551_v56  ;;  %v2587_v4 = vmul.f32 %v7146_v1, %v8976_v18  ;;  %v2213_v16 = vadd.f32 1e-09, %v9216_v39 }
 0x693   :  { %2699 = vmatprep.mubr.f32.mxu1 %v1897_v5  ;;  %v2586_v10 = vmul.f32 %v7148_v6, %v8995_v32  ;;  %v7150_v55 = vpop.eup %7149 }
 0x694   :  { %7155 = vrcp.f32 %v1866_v33  ;;  %v2242_v32 = vmul.f32 %v7150_v55, %v8866_v13  ;;  %v7152_v17 = vpop.eup %7151  ;;  %v2190_v33 = vpop.xlane.xlu0 %2189  ;;  %v1524_v13 = vadd.f32 1e-09, %v9209_v0 }
 0x695   :  { %7157 = vrcp.f32 %v1522_v41  ;;  %2839 = vmatprep.mubr.f32.mxu0 %v2586_v10  ;;  %v2527_v30 = vpop.xlane.xlu1 %2526  ;;  %v1553_v47 = vmul.f32 %v7152_v17, %v8920_v54 }
 0x696   :  { %7159 = vrcp.f32 %v2211_v7  ;;  %v2556_v44 = vadd.f32 1e-09, %v2527_v30  ;;  %2700 = vmatmul.mubr.f32.gmra.mrb[50].mxu1 %v1552_v11  ;;  %2840 = vmatmul.mubr.f32.vlgmr.msra.gmra.mrb[50].mxu0 %v2241_v34  ;;  %v7154_v6 = vpop.eup %7153  ;;  %v1523_v7 = vadd.f32 1e-09, %v9213_v26  ;;  %v2214_v34 = vadd.f32 1e-09, %v9211_v63 }
 0x697   :  { %7161 = vrcp.f32 %v2557_v40  ;;  %2844 = vmatprep.mubr.f32.mxu0 %v2587_v4  ;;  %v1899_v1 = vmul.f32 %v7154_v6, %v9004_v3 }
 0x698   :  { %7163 = vrcp.f32 %v2556_v44  ;;  %v9238_v26 = vpop.xlane.xlu0 %1505  ;;  %v1525_v44 = vadd.f32 1e-09, %v1500_v57 }
 0x699   :  { %v1843_v8 = vpop.xlane.xlu1 %1842  ;;  %7165 = vrcp.f32 %v2212_v48 }
 0x69a   :  { %2845 = vmatmul.mubr.f32.gmra.mrb[52].mxu0 %v2242_v32  ;;  %v1869_v45 = vadd.f32 1e-09, %v1843_v8  ;;  %7167 = vrcp.f32 %v1523_v7 }
 0x69c   :  { %7169 = vrcp.f32 %v1869_v45  ;;  %v2215_v45 = vadd.f32 1e-09, %v2190_v33 }
 0x69d   :  { %v2533_v50 = vpop.xlane.xlu1 %2532 }
 0x69e   :  { %v7156_v18 = vpop.eup %7155 }
 0x69f   :  { %v7158_v58 = vpop.eup %7157  ;;  %v1898_v31 = vmul.f32 %v7156_v18, %v9023_v23  ;;  %v2559_v23 = vadd.f32 1e-09, %v2533_v50 }
 0x6a0   :  { %v7160_v61 = vpop.eup %7159  ;;  %v1554_v0 = vmul.f32 %v7158_v58, %v8900_v14  ;;  %v9246_v14 = vpop.xlane.xlu0 %2195 }
 0x6a1   :  { %v7162_v51 = vpop.eup %7161  ;;  %v1841_v56 = vpop.xlane.xlu1 %1840  ;;  %2704 = vmatprep.mubr.f32.mxu1 %v1898_v31  ;;  %v2243_v40 = vmul.f32 %v7160_v61, %v8925_v59  ;;  %v11164_v61 = vld [vmem:[#allocation19_spill] sm:$0xff] }
 0x6a2   :  { %v7164_v41 = vpop.eup %7163  ;;  %v1868_v5 = vadd.f32 1e-09, %v1841_v56  ;;  %2705 = vmatmul.mubr.f32.gmra.mrb[52].mxu1 %v1553_v47  ;;  %v2589_v39 = vmul.f32 %v7162_v51, %v9014_v22  ;;  %v11165_v47 = vld [vmem:[#allocation21_spill] sm:$0xff] }
 0x6a3   :  { %2709 = vmatprep.mubr.f32.mxu1 %v1899_v1  ;;  %v2588_v54 = vmul.f32 %v7164_v41, %v9030_v12  ;;  %v7166_v10 = vpop.eup %7165  ;;  %v2216_v41 = vadd.f32 1e-09, %v9223_v52 }
 0x6a4   :  { %7171 = vrcp.f32 %v1868_v5  ;;  %v2244_v12 = vmul.f32 %v7166_v10, %v8910_v37  ;;  %v7168_v55 = vpop.eup %7167  ;;  %v1504_v32 = vpop.xlane.xlu0 %1503  ;;  %v1526_v37 = vadd.f32 1e-09, %v9219_v46 }
 0x6a5   :  { %7173 = vrcp.f32 %v1524_v13  ;;  %v2531_v3 = vpop.xlane.xlu1 %2530  ;;  %2849 = vmatprep.mubr.f32.mxu0 %v2588_v54  ;;  %v1555_v6 = vmul.f32 %v7168_v55, %v8940_v35 }
 0x6a6   :  { %7175 = vrcp.f32 %v2213_v16  ;;  %v2558_v11 = vadd.f32 1e-09, %v2531_v3  ;;  %2710 = vmatmul.mubr.f32.gmra.mrb[54].mxu1 %v1554_v0  ;;  %2850 = vmatmul.mubr.f32.gmra.mrb[54].mxu0 %v2243_v40  ;;  %v7170_v30 = vpop.eup %7169  ;;  %v1527_v3 = vadd.f32 1e-09, %v1504_v32 }
 0x6a7   :  { %7177 = vrcp.f32 %v2559_v23  ;;  %2854 = vmatprep.mubr.f32.mxu0 %v2589_v39  ;;  %v1901_v7 = vmul.f32 %v7170_v30, %v9035_v36  ;;  %v11166_v36 = vld [vmem:[#allocation32_spill] sm:$0xff] }
 0x6a8   :  { %7179 = vrcp.f32 %v2558_v11  ;;  %v2194_v13 = vpop.xlane.xlu0 %2193 }
 0x6a9   :  { %v1847_v59 = vpop.xlane.xlu1 %1846  ;;  %7181 = vrcp.f32 %v2214_v34 }
 0x6aa   :  { %2855 = vmatmul.mubr.f32.gmra.mrb[56].mxu0 %v2244_v12  ;;  %v1871_v8 = vadd.f32 1e-09, %v1847_v59  ;;  %7183 = vrcp.f32 %v1525_v44  ;;  %v11168_v59 = vld [vmem:[#allocation23_spill] sm:$0xff]  ;;  %v11169_v44 = vld [vmem:[#allocation34_spill] sm:$0xff] }
 0x6ac   :  { %7185 = vrcp.f32 %v1871_v8  ;;  %v1510_v23 = vpop.xlane.xlu0 %1509 }
 0x6ad   :  { %v2537_v4 = vpop.xlane.xlu1 %2536 }
 0x6ae   :  { %v7172_v22 = vpop.eup %7171  ;;  %v2561_v57 = vadd.f32 1e-09, %v2537_v4  ;;  %v1528_v4 = vadd.f32 1e-09, %v9238_v26 }
 0x6af   :  { %v7174_v48 = vpop.eup %7173  ;;  %v1900_v63 = vmul.f32 %v7172_v22, %v9050_v2 }
 0x6b0   :  { %v7176_v17 = vpop.eup %7175  ;;  %v1556_v35 = vmul.f32 %v7174_v48, %v11164_v61  ;;  %v9258_v11 = vpop.xlane.xlu0 %2199 }
 0x6b1   :  { %v7178_v50 = vpop.eup %7177  ;;  %v1845_v18 = vpop.xlane.xlu1 %1844  ;;  %2714 = vmatprep.mubr.f32.mxu1 %v1900_v63  ;;  %v2245_v51 = vmul.f32 %v7176_v17, %v11165_v47  ;;  %v2217_v63 = vadd.f32 1e-09, %v2194_v13 }
 0x6b2   :  { %v7180_v58 = vpop.eup %7179  ;;  %v1870_v31 = vadd.f32 1e-09, %v1845_v18  ;;  %2715 = vmatmul.mubr.f32.gmra.mrb[56].mxu1 %v1555_v6  ;;  %v2591_v1 = vmul.f32 %v7178_v50, %v11166_v36  ;;  %v11170_v50 = vld [vmem:[#allocation22_spill] sm:$0xff] }
 0x6b3   :  { %2719 = vmatprep.mubr.f32.mxu1 %v1901_v7  ;;  %v2590_v2 = vmul.f32 %v7180_v58, %v9059_v21  ;;  %v7182_v46 = vpop.eup %7181  ;;  %v11167_v21 = vld [vmem:[#allocation20_spill] sm:$0xff]  ;;  %v11171_v18 = vld [vmem:[#allocation26_spill] sm:$0xff] }
 0x6b4   :  { %7187 = vrcp.f32 %v1870_v31  ;;  %v2246_v16 = vmul.f32 %v7182_v46, %v11167_v21  ;;  %v7184_v54 = vpop.eup %7183  ;;  %v1508_v17 = vpop.xlane.xlu0 %1507 }
 0x6b5   :  { %7189 = vrcp.f32 %v1526_v37  ;;  %v2535_v56 = vpop.xlane.xlu1 %2534  ;;  %2859 = vmatprep.mubr.f32.mxu0 %v2590_v2  ;;  %v1557_v55 = vmul.f32 %v7184_v54, %v11168_v59 }
 0x6b6   :  { %7191 = vrcp.f32 %v2215_v45  ;;  %v2560_v33 = vadd.f32 1e-09, %v2535_v56  ;;  %2720 = vmatmul.mubr.f32.gmra.mrb[58].mxu1 %v1556_v35  ;;  %2860 = vmatmul.mubr.f32.gmra.mrb[58].mxu0 %v2245_v51  ;;  %v7186_v0 = vpop.eup %7185  ;;  %v1529_v56 = vadd.f32 1e-09, %v1508_v17 }
 0x6b7   :  { %7193 = vrcp.f32 %v2561_v57  ;;  %2864 = vmatprep.mubr.f32.mxu0 %v2591_v1  ;;  %v1903_v48 = vmul.f32 %v7186_v0, %v11169_v44  ;;  %v2218_v57 = vadd.f32 1e-09, %v9246_v14 }
 0x6b8   :  { %7195 = vrcp.f32 %v2560_v33  ;;  %v2198_v61 = vpop.xlane.xlu0 %2197 }
 0x6b9   :  { %v1851_v5 = vpop.xlane.xlu1 %1850  ;;  %7197 = vrcp.f32 %v2216_v41  ;;  %v11173_v41 = vld [vmem:[#allocation28_spill] sm:$0xff] }
 0x6ba   :  { %2865 = vmatmul.mubr.f32.gmra.mrb[60].mxu0 %v2246_v16  ;;  %v1873_v34 = vadd.f32 1e-09, %v1851_v5  ;;  %7199 = vrcp.f32 %v1527_v3  ;;  %v1530_v5 = vadd.f32 1e-09, %v1510_v23  ;;  %v11175_v23 = vld [vmem:[#allocation29_spill] sm:$0xff] }
 0x6bc   :  { %7201 = vrcp.f32 %v1873_v34  ;;  %v1514_v46 = vpop.xlane.xlu0 %1513 }
 0x6bd   :  { %v2541_v40 = vpop.xlane.xlu1 %2540 }
 0x6be   :  { %v7188_v10 = vpop.eup %7187  ;;  %v2563_v6 = vadd.f32 1e-09, %v2541_v40 }
 0x6bf   :  { %v7190_v39 = vpop.eup %7189  ;;  %v1902_v52 = vmul.f32 %v7188_v10, %v9081_v60  ;;  %v2219_v10 = vadd.f32 1e-09, %v2198_v61 }
 0x6c0   :  { %v7192_v12 = vpop.eup %7191  ;;  %v1558_v37 = vmul.f32 %v7190_v39, %v11170_v50  ;;  %v9273_v39 = vpop.xlane.xlu0 %2203 }
 0x6c1   :  { %v7194_v30 = vpop.eup %7193  ;;  %v1849_v22 = vpop.xlane.xlu1 %1848  ;;  %2724 = vmatprep.mubr.f32.mxu1 %v1902_v52  ;;  %v2247_v26 = vmul.f32 %v7192_v12, %v11171_v18  ;;  %v11174_v52 = vld [vmem:[#allocation25_spill] sm:$0xff] }
 0x6c2   :  { %v7196_v8 = vpop.eup %7195  ;;  %v1872_v32 = vadd.f32 1e-09, %v1849_v22  ;;  %2725 = vmatmul.mubr.f32.gmra.mrb[60].mxu1 %v1557_v55  ;;  %v2593_v45 = vmul.f32 %v7194_v30, %v9075_v9  ;;  %v2220_v22 = vadd.f32 1e-09, %v9258_v11 }
 0x6c3   :  { %2729 = vmatprep.mubr.f32.mxu1 %v1903_v48  ;;  %v2592_v60 = vmul.f32 %v7196_v8, %v9091_v38  ;;  %v7198_v7 = vpop.eup %7197  ;;  %v11172_v38 = vld [vmem:[#allocation24_spill] sm:$0xff] }
 0x6c4   :  { %7203 = vrcp.f32 %v1872_v32  ;;  %v2248_v2 = vmul.f32 %v7198_v7, %v11172_v38  ;;  %v7200_v47 = vpop.eup %7199  ;;  %v1512_v48 = vpop.xlane.xlu0 %1511 }
 0x6c5   :  { %7205 = vrcp.f32 %v1528_v4  ;;  %v2539_v58 = vpop.xlane.xlu1 %2538  ;;  %2869 = vmatprep.mubr.f32.mxu0 %v2592_v60  ;;  %v1559_v21 = vmul.f32 %v7200_v47, %v11173_v41  ;;  %v2222_v41 = vadd.f32 1e-09, %v9273_v39 }
 0x6c6   :  { %7207 = vrcp.f32 %v2217_v63  ;;  %v2562_v31 = vadd.f32 1e-09, %v2539_v58  ;;  %2730 = vmatmul.mubr.f32.gmra.mrb[62].mxu1 %v1558_v37  ;;  %2870 = vmatmul.mubr.f32.gmra.mrb[62].mxu0 %v2247_v26  ;;  %v7202_v51 = vpop.eup %7201  ;;  %v11177_v26 = vld [vmem:[#allocation33_spill] sm:$0xff] }
 0x6c7   :  { %7209 = vrcp.f32 %v2563_v6  ;;  %2874 = vmatprep.mubr.f32.mxu0 %v2593_v45  ;;  %v1905_v0 = vmul.f32 %v7202_v51, %v9100_v62  ;;  %v1532_v45 = vadd.f32 1e-09, %v1514_v46  ;;  %v3017_v51 = vld [vmem:[%s10869_s11 + $0x8] sm:$0xff] }
 0x6c8   :  { %7211 = vrcp.f32 %v2562_v31  ;;  %v2202_v50 = vpop.xlane.xlu0 %2201 }
 0x6c9   :  { %v1855_v35 = vpop.xlane.xlu1 %1854  ;;  %7213 = vrcp.f32 %v2218_v57 }
 0x6ca   :  { %2875 = vmatmul.mubr.f32.gmra.mrb[64].mxu0 %v2248_v2  ;;  %v1875_v1 = vadd.f32 1e-09, %v1855_v35  ;;  %7215 = vrcp.f32 %v1529_v56  ;;  %v2221_v2 = vadd.f32 1e-09, %v2202_v50 }
 0x6cc   :  { %7217 = vrcp.f32 %v1875_v1 }
 0x6cd   :  { %v2545_v13 = vpop.xlane.xlu1 %2544 }
 0x6ce   :  { %v7204_v9 = vpop.eup %7203  ;;  %v2565_v34 = vadd.f32 1e-09, %v2545_v13  ;;  %v11179_v13 = vld [vmem:[#allocation35_spill] sm:$0xff] }
 0x6cf   :  { %v7206_v36 = vpop.eup %7205  ;;  %v1904_v33 = vmul.f32 %v7204_v9, %v9116_v49 }
 0x6d0   :  { %v7208_v14 = vpop.eup %7207  ;;  %v1560_v12 = vmul.f32 %v7206_v36, %v11174_v52 }
 0x6d1   :  { %v7210_v16 = vpop.eup %7209  ;;  %v1853_v54 = vpop.xlane.xlu1 %1852  ;;  %2734 = vmatprep.mubr.f32.mxu1 %v1904_v33  ;;  %v2249_v59 = vmul.f32 %v7208_v14, %v11175_v23 }
 0x6d2   :  { %v7212_v40 = vpop.eup %7211  ;;  %v1874_v3 = vadd.f32 1e-09, %v1853_v54  ;;  %2735 = vmatmul.mubr.f32.gmra.mrb[64].mxu1 %v1559_v21  ;;  %v2595_v30 = vmul.f32 %v7210_v16, %v9106_v15  ;;  %v1531_v15 = vadd.f32 1e-09, %v1512_v48  ;;  %v1518_v33 = vpop.xlane.xlu0 %1517  ;;  %v3018_v21 = vld [vmem:[%s10869_s11 + $0x10] sm:$0xff]  ;;  %v3019_v16 = vld [vmem:[%s10869_s11 + $0x18] sm:$0xff] }
 0x6d3   :  { %2739 = vmatprep.mubr.f32.mxu1 %v1905_v0  ;;  %v2594_v49 = vmul.f32 %v7212_v40, %v9125_v29  ;;  %v7214_v55 = vpop.eup %7213  ;;  %v11176_v29 = vld [vmem:[#allocation27_spill] sm:$0xff]  ;;  %v6673_v54 = vpack.c.bf16 %v3019_v16, %v3018_v21  ;;  %v3020_v40 = vld [vmem:[%s10869_s11 + $0x20] sm:$0xff] }
 0x6d4   :  { %7219 = vrcp.f32 %v1874_v3  ;;  %v2250_v44 = vmul.f32 %v7214_v55, %v11176_v29  ;;  %v7216_v63 = vpop.eup %7215 }
 0x6d5   :  { %7221 = vrcp.f32 %v1530_v5  ;;  %v2543_v62 = vpop.xlane.xlu1 %2542  ;;  %2879 = vmatprep.mubr.f32.mxu0 %v2594_v49  ;;  %v1561_v7 = vmul.f32 %v7216_v63, %v11177_v26 }
 0x6d6   :  { %7223 = vrcp.f32 %v2219_v10  ;;  %v2564_v4 = vadd.f32 1e-09, %v2543_v62  ;;  %2740 = vmatmul.mubr.f32.gmra.mrb[66].mxu1 %v1560_v12  ;;  %2880 = vmatmul.mubr.f32.gmra.mrb[66].mxu0 %v2249_v59  ;;  %v7218_v32 = vpop.eup %7217  ;;  %v1516_v0 = vpop.xlane.xlu0 %1515  ;;  %v3021_v10 = vld [vmem:[%s10869_s11 + $0x28] sm:$0xff] }
 0x6d7   :  { %7225 = vrcp.f32 %v2565_v34  ;;  %2884 = vmatprep.mubr.f32.mxu0 %v2595_v30  ;;  %v1907_v57 = vmul.f32 %v7218_v32, %v9135_v43  ;;  %v11178_v43 = vld [vmem:[#allocation30_spill] sm:$0xff]  ;;  %v6677_v34 = vpack.c.bf16 %v3021_v10, %v3020_v40  ;;  %v1533_v12 = vadd.f32 1e-09, %v1516_v0  ;;  %v3022_v30 = vld [vmem:[%s10869_s11 + $0x30] sm:$0xff]  ;;  %v11187_v0 = vld [vmem:[#allocation45_spill] sm:$0xff] }
 0x6d8   :  { %7227 = vrcp.f32 %v2564_v4  ;;  %v3023_v4 = vld [vmem:[%s10869_s11 + $0x38] sm:$0xff]  ;;  %v11188_v10 = vld [vmem:[#allocation38_spill] sm:$0xff] }
 0x6d9   :  { %v1859_v8 = vpop.xlane.xlu1 %1858  ;;  %7229 = vrcp.f32 %v2220_v22 }
 0x6da   :  { %2885 = vmatmul.mubr.f32.gmra.mrb[68].mxu0 %v2250_v44  ;;  %v1877_v37 = vadd.f32 1e-09, %v1859_v8  ;;  %7231 = vrcp.f32 %v1531_v15  ;;  %v6681_v44 = vpack.c.bf16 %v3023_v4, %v3022_v30  ;;  %v3177_v30 = vld [vmem:[%s10870_s13] sm:$0xff]  ;;  %v3178_v4 = vld [vmem:[%s10870_s13 + $0x8] sm:$0xff] }
 0x6db   :  { %v2206_v23 = vpop.xlane.xlu0 %2205 }
 0x6dc   :  { %7233 = vrcp.f32 %v1877_v37  ;;  %v11181_v37 = vld [vmem:[#allocation37_spill] sm:$0xff] }
 0x6dd   :  { %v2549_v17 = vpop.xlane.xlu1 %2548 }
 0x6de   :  { %v7220_v6 = vpop.eup %7219  ;;  %v2567_v35 = vadd.f32 1e-09, %v2549_v17 }
 0x6df   :  { %v7222_v60 = vpop.eup %7221  ;;  %v1906_v18 = vmul.f32 %v7220_v6, %v9150_v24  ;;  %v3016_v24 = vld [vmem:[%s10869_s11] sm:$0xff]  ;;  %v2223_v6 = vadd.f32 1e-09, %v2206_v23 }
 0x6e0   :  { %v7224_v11 = vpop.eup %7223  ;;  %v1562_v46 = vmul.f32 %v7222_v60, %v11178_v43  ;;  %v6669_v56 = vpack.c.bf16 %v3017_v51, %v3016_v24  ;;  %v3025_v60 = vld [vmem:[%s10869_s11 + $0x48] sm:$0xff]  ;;  %v3028_v24 = vld [vmem:[%s10869_s11 + $0x60] sm:$0xff] }
 0x6e1   :  { %v7226_v58 = vpop.eup %7225  ;;  %v1857_v31 = vpop.xlane.xlu1 %1856  ;;  %2744 = vmatprep.mubr.f32.mxu1 %v1906_v18  ;;  %v2251_v9 = vmul.f32 %v7224_v11, %v11179_v13  ;;  %v3029_v51 = vld [vmem:[%s10869_s11 + $0x68] sm:$0xff] }
 0x6e2   :  { %v7228_v38 = vpop.eup %7227  ;;  %v1876_v61 = vadd.f32 1e-09, %v1857_v31  ;;  %2745 = vmatmul.mubr.f32.gmra.mrb[68].mxu1 %v1561_v7  ;;  %6670 = vmatprep.subr.bf16.mxu1 %v6669_v56 }
 0x6e3   :  { %2749 = vmatprep.mubr.f32.mxu1 %v1907_v57  ;;  %v2596_v47 = vmul.f32 %v7228_v38, %v9157_v42  ;;  %v7230_v36 = vpop.eup %7229  ;;  %v2597_v42 = vmul.f32 %v7226_v58, %v9141_v53  ;;  %v11180_v53 = vld [vmem:[#allocation31_spill] sm:$0xff]  ;;  %6672 = vmatpush3.bf16.msra.mxu1 %v6669_v56  ;;  %v3027_v57 = vld [vmem:[%s10869_s11 + $0x58] sm:$0xff]  ;;  %v11183_v38 = vld [vmem:[#allocation36_spill] sm:$0xff] }
 0x6e4   :  { %7235 = vrcp.f32 %v1876_v61  ;;  %v2252_v5 = vmul.f32 %v7230_v36, %v11180_v53  ;;  %6674 = vmatprep.subr.bf16.mxu1 %v6673_v54  ;;  %v7232_v3 = vpop.eup %7231  ;;  %v11184_v56 = vld [vmem:[#allocation44_spill] sm:$0xff]  ;;  %v11186_v53 = vld [vmem:[#allocation43_spill] sm:$0xff] }
 0x6e5   :  { %7237 = vrcp.f32 %v1532_v45  ;;  %v2547_v1 = vpop.xlane.xlu1 %2546  ;;  %2889 = vmatprep.mubr.f32.mxu0 %v2596_v47  ;;  %v1563_v29 = vmul.f32 %v7232_v3, %v9110_v20  ;;  %v3024_v20 = vld [vmem:[%s10869_s11 + $0x40] sm:$0xff] }
 0x6e6   :  { %7239 = vrcp.f32 %v2221_v2  ;;  %v2566_v14 = vadd.f32 1e-09, %v2547_v1  ;;  %2750 = vmatmul.mubr.f32.gmra.mrb[70].mxu1 %v1562_v46  ;;  %2890 = vmatmul.mubr.f32.gmra.mrb[70].mxu0 %v2251_v9  ;;  %v7234_v49 = vpop.eup %7233  ;;  %v6685_v11 = vpack.c.bf16 %v3025_v60, %v3024_v20  ;;  %v6693_v46 = vpack.c.bf16 %v3029_v51, %v3028_v24  ;;  %v3030_v1 = vld [vmem:[%s10869_s11 + $0x70] sm:$0xff] }
 0x6e7   :  { %7241 = vrcp.f32 %v2567_v35  ;;  %2894 = vmatprep.mubr.f32.mxu0 %v2597_v42  ;;  %6676 = vmatpush3.bf16.msra.mxu1 %v6673_v54  ;;  %v1909_v63 = vmul.f32 %v7234_v49, %v9164_v27  ;;  %v2208_v27 = vpop.xlane.xlu0 %2207  ;;  %v3031_v42 = vld [vmem:[%s10869_s11 + $0x78] sm:$0xff] }
 0x6e8   :  { %7243 = vrcp.f32 %v2566_v14  ;;  %6678 = vmatprep.subr.bf16.mxu1 %v6677_v34  ;;  %v2224_v31 = vadd.f32 1e-09, %v2208_v27  ;;  %v11185_v14 = vld [vmem:[#allocation39_spill] sm:$0xff]  ;;  %v6697_v21 = vpack.c.bf16 %v3031_v42, %v3030_v1 }
 0x6e9   :  { %7245 = vrcp.f32 %v2222_v41  ;;  %v1863_v39 = vpop.xlane.xlu1 %1862 }
 0x6ea   :  { %2895 = vmatmul.mubr.f32.gmra.mrb[72].mxu0 %v2252_v5  ;;  %v1879_v55 = vadd.f32 1e-09, %v1863_v39  ;;  %7247 = vrcp.f32 %v1533_v12  ;;  %v11189_v39 = vld [vmem:[#allocation40_spill] sm:$0xff]  ;;  %v11190_v12 = vld [vmem:[#allocation46_spill] sm:$0xff] }
 0x6eb   :  { %6680 = vmatpush3.bf16.msra.mxu1 %v6677_v34 }
 0x6ec   :  { %6682 = vmatprep.subr.bf16.mxu1 %v6681_v44  ;;  %7249 = vrcp.f32 %v1879_v55 }
 0x6ee   :  { %v7236_v52 = vpop.eup %7235 }
 0x6ef   :  { %v7238_v59 = vpop.eup %7237  ;;  %v1908_v62 = vmul.f32 %v7236_v52, %v9181_v28  ;;  %v1534_v28 = vadd.f32 1e-09, %v1518_v33  ;;  %6684 = vmatpush3.bf16.msra.mxu1 %v6681_v44  ;;  %v3339_v44 = vld [vmem:[%s10871_s12 + $0x8] sm:$0xff] }
 0x6f0   :  { %v7240_v22 = vpop.eup %7239  ;;  %v1564_v50 = vmul.f32 %v7238_v59, %v9087_v25  ;;  %6686 = vmatprep.subr.bf16.mxu1 %v6685_v11  ;;  %v3026_v25 = vld [vmem:[%s10869_s11 + $0x50] sm:$0xff]  ;;  %v11191_v59 = vld [vmem:[#allocation42_spill] sm:$0xff] }
 0x6f1   :  { %v7242_v48 = vpop.eup %7241  ;;  %v1861_v8 = vpop.xlane.xlu1 %1860  ;;  %2754 = vmatprep.mubr.f32.mxu1 %v1908_v62  ;;  %v2253_v18 = vmul.f32 %v7240_v22, %v11181_v37  ;;  %v6689_v61 = vpack.c.bf16 %v3027_v57, %v3026_v25  ;;  %v11192_v62 = vmov 0.0   ;;  %v9362_v22 = vpack.c.bf16 %v3178_v4, %v3177_v30  ;;  %v3343_v57 = vld [vmem:[%s10871_s12 + $0x28] sm:$0xff] }
 0x6f2   :  { %v7244_v32 = vpop.eup %7243  ;;  %v1878_v17 = vadd.f32 1e-09, %v1861_v8  ;;  %2755 = vmatmul.mubr.f32.gmra.mrb[72].mxu1 %v1563_v29  ;;  %v3338_v29 = vld [vmem:[%s10871_s12] sm:$0xff] }
 0x6f3   :  { %2759 = vmatprep.mubr.f32.mxu1 %v1909_v63  ;;  %v2598_v15 = vmul.f32 %v7244_v32, %v9187_v19  ;;  %v7246_v26 = vpop.eup %7245  ;;  %v11182_v19 = vld [vmem:[#allocation41_spill] sm:$0xff]  ;;  %6688 = vmatpush3.bf16.msra.mxu1 %v6685_v11  ;;  %v3340_v63 = vld [vmem:[%s10871_s12 + $0x10] sm:$0xff] }
 0x6f4   :  { %7251 = vrcp.f32 %v1878_v17  ;;  %v2599_v58 = vmul.f32 %v7242_v48, %v11182_v19  ;;  %v2254_v2 = vmul.f32 %v7246_v26, %v11183_v38  ;;  %6690 = vmatprep.subr.bf16.mxu1 %v6689_v61  ;;  %v7248_v43 = vpop.eup %7247  ;;  %3354 = vxpose.xlu1.b32.start [1/16] (narrow) %v3338_v29, 8  ;;  %v3341_v17 = vld [vmem:[%s10871_s12 + $0x18] sm:$0xff] }
 0x6f5   :  { %v2551_v7 = vpop.xlane.xlu1 %2550  ;;  %2899 = vmatprep.mubr.f32.mxu0 %v2598_v15  ;;  %7253 = vrcp.f32 %v1534_v28  ;;  %v1565_v41 = vmul.f32 %v7248_v43, %v11185_v14  ;;  %v9377_v28 = vld [vmem:[%s10872_s9] ss:$0 sm:$0xff] }
 0x6f6   :  { %v2568_v45 = vadd.f32 1e-09, %v2551_v7  ;;  %2760 = vmatmul.mubr.f32.gmra.mrb[74].mxu1 %v1564_v50  ;;  %2900 = vmatmul.mubr.f32.gmra.mrb[74].mxu0 %v2253_v18  ;;  %7255 = vrcp.f32 %v2223_v6  ;;  %v7250_v13 = vpop.eup %7249  ;;  %v3342_v18 = vld [vmem:[%s10871_s12 + $0x20] sm:$0xff] }
 0x6f7   :  { %2904 = vmatprep.mubr.f32.mxu0 %v2599_v58  ;;  %6692 = vmatpush3.bf16.msra.mxu1 %v6689_v61  ;;  %v1911_v5 = vmul.f32 %v7250_v13, %v11186_v53 }
 0x6f8   :  { %7257 = vrcp.f32 %v2568_v45  ;;  %6694 = vmatprep.subr.bf16.mxu1 %v6693_v46  ;;  %3355 = vxpose.xlu1.b32.cont [2/16] (narrow) %v3339_v44, 8  ;;  %v3348_v44 = vld [vmem:[%s10871_s12 + $0x50] sm:$0xff] }
 0x6f9   :  { %v2553_v35 = vpop.xlane.xlu1 %2552  ;;  %7259 = vrcp.f32 %v2224_v31 }
 0x6fa   :  { %v2569_v47 = vadd.f32 1e-09, %v2553_v35  ;;  %2905 = vmatmul.mubr.f32.gmra.mrb[76].mxu0 %v2254_v2  ;;  %v3344_v35 = vld [vmem:[%s10871_s12 + $0x30] sm:$0xff] }
 0x6fb   :  { %6696 = vmatpush3.bf16.msra.mxu1 %v6693_v46  ;;  %v3345_v46 = vld [vmem:[%s10871_s12 + $0x38] sm:$0xff] }
 0x6fc   :  { %7261 = vrcp.f32 %v2569_v47  ;;  %6698 = vmatprep.subr.bf16.mxu1 %v6697_v21  ;;  %3356 = vxpose.xlu1.b32.cont [3/16] (narrow) %v3340_v63, 8 }
 0x6fe   :  { %v7252_v9 = vpop.eup %7251 }
 0x6ff   :  { %v1910_v36 = vmul.f32 %v7252_v9, %v11184_v56  ;;  %v7254_v33 = vpop.eup %7253  ;;  %6700 = vmatpush3.bf16.msra.mxu1 %v6697_v21 }
 0x700   :  { %v7256_v16 = vpop.eup %7255  ;;  %v1566_v3 = vmul.f32 %v7254_v33, %v11188_v10  ;;  %6702 = vmatprep.subr.bf16.mxu1 %v9362_v22  ;;  %3357 = vxpose.xlu1.b32.cont [4/16] (narrow) %v3341_v17, 8  ;;  %v3180_v10 = vld [vmem:[%s10870_s13 + $0x18] sm:$0xff]  ;;  %v3183_v17 = vld [vmem:[%s10870_s13 + $0x30] sm:$0xff] }
 0x701   :  { %2764 = vmatprep.mubr.f32.mxu1 %v1910_v36  ;;  %v2255_v34 = vmul.f32 %v7256_v16, %v11189_v39 }
 0x702   :  { %v7258_v54 = vpop.eup %7257  ;;  %2765 = vmatmul.mubr.f32.gmra.mrb[76].mxu1 %v1565_v41  ;;  %v3346_v41 = vld [vmem:[%s10871_s12 + $0x40] sm:$0xff] }
 0x703   :  { %2769 = vmatprep.mubr.f32.mxu1 %v1911_v5  ;;  %v2600_v40 = vmul.f32 %v7258_v54, %v11187_v0  ;;  %v7260_v49 = vpop.eup %7259 }
 0x704   :  { %v2256_v55 = vmul.f32 %v7260_v49, %v11191_v59  ;;  %3358 = vxpose.xlu1.b32.cont [5/16] (narrow) %v3342_v18, 8  ;;  %v3347_v49 = vld [vmem:[%s10871_s12 + $0x48] sm:$0xff] }
 0x705   :  { %2909 = vmatprep.mubr.f32.mxu0 %v2600_v40  ;;  %v3179_v40 = vld [vmem:[%s10870_s13 + $0x10] sm:$0xff] }
 0x706   :  { %v7262_v52 = vpop.eup %7261  ;;  %2770 = vmatmul.mubr.f32.gmra.mrb[78].mxu1 %v1566_v3  ;;  %2910 = vmatmul.mubr.f32.gmra.mrb[78].mxu0 %v2255_v34 }
 0x707   :  { %v2601_v23 = vmul.f32 %v7262_v52, %v11190_v12 }
 0x708   :  { %3359 = vxpose.xlu1.b32.cont [6/16] (narrow) %v3343_v57, 8 }
 0x709   :  { %2914 = vmatprep.mubr.f32.mxu0 %v2601_v23  ;;  %v6705_v23 = vpack.c.bf16 %v3180_v10, %v3179_v40  ;;  %v3191_v10 = vld [vmem:[%s10870_s13 + $0x70] sm:$0xff] }
 0x70a   :  { %2915 = vmatmul.mubr.f32.gmra.mrb[80].mxu0 %v2256_v55  ;;  %v3181_v55 = vld [vmem:[%s10870_s13 + $0x20] sm:$0xff] }
 0x70b   :  { %6454 = vmatprep.mubr.msk.f32.mxu0 %vm7554_vm3, %v11192_v62  ;;  %v3182_v62 = vld [vmem:[%s10870_s13 + $0x28] sm:$0xff] }
 0x70c   :  { %3360 = vxpose.xlu1.b32.cont [7/16] (narrow) %v3344_v35, 8  ;;  %v6709_v63 = vpack.c.bf16 %v3182_v62, %v3181_v55 }
 0x710   :  { %3361 = vxpose.xlu1.b32.cont [8/16] (narrow) %v3345_v46, 8 }
 0x714   :  { %3362 = vxpose.xlu1.b32.cont [9/16] (narrow) %v3346_v41, 8 }
 0x718   :  { %3363 = vxpose.xlu1.b32.cont [10/16] (narrow) %v3347_v49, 8  ;;  %v3353_v49 = vld [vmem:[%s10871_s12 + $0x78] sm:$0xff] }
 0x71c   :  { %3364 = vxpose.xlu1.b32.cont [11/16] (narrow) %v3348_v44, 8 }
 0x765   :  { %v5736_v48 = vpop.f32.mrb[48].mxu1 }
 0x766   :  { %v5737_v8 = vpop.f32.mrb[49].mxu1 }
 0x767   :  { %v5738_v32 = vadd.f32 %v5737_v8, %v5736_v48 }
 0x769   :  { %v5739_v6 = vpop.f32.mrb[50].mxu1  ;;  %v5816_v15 = vpop.f32.mrb[50].mxu0  ;;  %v2697_v27 = vadd.f32 %v5738_v32, %v9377_v28  ;;  %v11193_v32 = vmov 0.0|0.0  }
 0x76a   :  { %v5740_v20 = vpop.f32.mrb[51].mxu1  ;;  %v5817_v60 = vpop.f32.mrb[51].mxu0 }
 0x76b   :  { %v5741_v50 = vadd.f32 %v5740_v20, %v5739_v6  ;;  %v5818_v37 = vadd.f32 %v5817_v60, %v5816_v15  ;;  %v3184_v6 = vld [vmem:[%s10870_s13 + $0x38] sm:$0xff] }
 0x76d   :  { %v2842_v11 = vadd.f32 %v5818_v37, %v2697_v27  ;;  %v5819_v26 = vpop.f32.mrb[52].mxu0  ;;  %v2702_v19 = vadd.f32 %v5741_v50, %v9377_v28 }
 0x76e   :  { %v5820_v7 = vpop.f32.mrb[53].mxu0 }
 0x76f   :  { %v2936_v58 = vmin.f32 %v2842_v11, 0.0  ;;  %v5821_v45 = vadd.f32 %v5820_v7, %v5819_v26  ;;  %vm2920_vm3 = vcmp.gt.f32.partialorder %v2842_v11, 0.0  ;;  %v3185_v26 = vld [vmem:[%s10870_s13 + $0x40] sm:$0xff]  ;;  %v3186_v7 = vld [vmem:[%s10870_s13 + $0x48] sm:$0xff] }
 0x771   :  { %v2952_v31 = vmul.f32 1.442695, %v2936_v58  ;;  %v2847_v25 = vadd.f32 %v5821_v45, %v2702_v19 }
 0x773   :  { %7263 = vpow2.f32 %v2952_v31  ;;  %v2937_v38 = vmin.f32 %v2847_v25, 0.0  ;;  %vm2921_vm7 = vcmp.gt.f32.partialorder %v2847_v25, 0.0  ;;  %v3350_v31 = vld [vmem:[%s10871_s12 + $0x60] sm:$0xff] }
 0x775   :  { %v2954_v2 = vmul.f32 1.442695, %v2937_v38  ;;  %v5742_v61 = vpop.f32.mrb[52].mxu1  ;;  %v6717_v38 = vpack.c.bf16 %v3186_v7, %v3185_v26 }
 0x776   :  { %v5743_v47 = vpop.f32.mrb[53].mxu1 }
 0x777   :  { %7265 = vpow2.f32 %v2954_v2  ;;  %v5744_v24 = vadd.f32 %v5743_v47, %v5742_v61 }
 0x779   :  { %v5745_v51 = vpop.f32.mrb[54].mxu1  ;;  %v5822_v43 = vpop.f32.mrb[54].mxu0  ;;  %v2707_v56 = vadd.f32 %v5744_v24, %v9377_v28  ;;  %v3187_v24 = vld [vmem:[%s10870_s13 + $0x50] sm:$0xff] }
 0x77a   :  { %v5746_v13 = vpop.f32.mrb[55].mxu1  ;;  %v5823_v9 = vpop.f32.mrb[55].mxu0 }
 0x77b   :  { %v5747_v36 = vadd.f32 %v5746_v13, %v5745_v51  ;;  %v5824_v1 = vadd.f32 %v5823_v9, %v5822_v43  ;;  %v3188_v51 = vld [vmem:[%s10870_s13 + $0x58] sm:$0xff]  ;;  %v3351_v9 = vld [vmem:[%s10871_s12 + $0x68] sm:$0xff] }
 0x77d   :  { %v7264_v42 = vpop.eup %7263  ;;  %v9397_v33 = vadd.f32 %v5824_v1, %v2707_v56  ;;  %v5825_v14 = vpop.f32.mrb[56].mxu0  ;;  %v2712_v53 = vadd.f32 %v5747_v36, %v9377_v28  ;;  %v6721_v1 = vpack.c.bf16 %v3188_v51, %v3187_v24 }
 0x77e   :  { %v5826_v21 = vpop.f32.mrb[57].mxu0  ;;  %v5442_v16 = vadd.f32 -1.0, %v7264_v42 }
 0x77f   :  { %v2938_v5 = vmin.f32 %v9397_v33, 0.0  ;;  %v5827_v54 = vadd.f32 %v5826_v21, %v5825_v14  ;;  %vm2922_vm13 = vcmp.gt.f32.partialorder %v9397_v33, 0.0  ;;  %v3190_v14 = vld [vmem:[%s10870_s13 + $0x68] sm:$0xff] }
 0x780   :  { %v9404_v0 = vsel %vm2920_vm3, %v2842_v11, %v5442_v16  ;;  %v6713_v11 = vpack.c.bf16 %v3184_v6, %v3183_v17 }
 0x781   :  { %v7266_v3 = vpop.eup %7265  ;;  %v2956_v39 = vmul.f32 1.442695, %v2938_v5  ;;  %v9412_v34 = vadd.f32 %v5827_v54, %v2712_v53  ;;  %6342 = vmatprep.mubr.f32.mxu1 %v9404_v0  ;;  %v3352_v53 = vld [vmem:[%s10871_s12 + $0x70] sm:$0xff] }
 0x782   :  { %v5443_v52 = vadd.f32 -1.0, %v7266_v3  ;;  %v3192_v3 = vld [vmem:[%s10870_s13 + $0x78] sm:$0xff] }
 0x783   :  { %7267 = vpow2.f32 %v2956_v39  ;;  %v2939_v12 = vmin.f32 %v9412_v34, 0.0  ;;  %vm2923_vm9 = vcmp.gt.f32.partialorder %v9412_v34, 0.0 }
 0x784   :  { %v9419_v59 = vsel %vm2921_vm7, %v2847_v25, %v5443_v52 }
 0x785   :  { %v2958_v30 = vmul.f32 1.442695, %v2939_v12  ;;  %v6734_v4 = vpack.c.bf16 %v9419_v59, %v9404_v0  ;;  %v5748_v29 = vpop.f32.mrb[56].mxu1  ;;  %6343 = vmatmul.mubr.f32.vlgmr.msra.gmra.mrb[80].mxu1 %v9419_v59 }
 0x786   :  { %v5749_v48 = vpop.f32.mrb[57].mxu1  ;;  %6704 = vmatpush3.bf16.msra.mxu1 %v9362_v22  ;;  %v3349_v22 = vld [vmem:[%s10871_s12 + $0x58] sm:$0xff] }
 0x787   :  { %7269 = vpow2.f32 %v2958_v30  ;;  %v5750_v8 = vadd.f32 %v5749_v48, %v5748_v29  ;;  %6735 = vmatpush3.bf16.xpose.msra.mxu0 %v6734_v4  ;;  %6706 = vmatprep.subr.bf16.mxu1 %v6705_v23  ;;  %v6729_v30 = vpack.c.bf16 %v3192_v3, %v3191_v10 }
 0x788   :  { %6736 = vmatprep.subr.bf16.mxu0 %v11193_v32  ;;  %3365 = vxpose.xlu1.b32.cont [12/16] (narrow) %v3349_v22, 8 }
 0x789   :  { %v5751_v15 = vpop.f32.mrb[58].mxu1  ;;  %v5828_v20 = vpop.f32.mrb[58].mxu0  ;;  %v2717_v50 = vadd.f32 %v5750_v8, %v9377_v28 }
 0x78a   :  { %v5752_v60 = vpop.f32.mrb[59].mxu1  ;;  %v5829_v27 = vpop.f32.mrb[59].mxu0  ;;  %6708 = vmatpush3.bf16.msra.mxu1 %v6705_v23 }
 0x78b   :  { %v5753_v37 = vadd.f32 %v5752_v60, %v5751_v15  ;;  %v5830_v18 = vadd.f32 %v5829_v27, %v5828_v20  ;;  %6710 = vmatprep.subr.bf16.mxu1 %v6709_v63 }
 0x78c   :  { %3366 = vxpose.xlu1.b32.cont [13/16] (narrow) %v3350_v31, 8 }
 0x78d   :  { %v7268_v19 = vpop.eup %7267  ;;  %v9451_v58 = vadd.f32 %v5830_v18, %v2717_v50  ;;  %v5831_v45 = vpop.f32.mrb[60].mxu0  ;;  %v2722_v2 = vadd.f32 %v5753_v37, %v9377_v28 }
 0x78e   :  { %v5832_v25 = vpop.f32.mrb[61].mxu0  ;;  %v5444_v57 = vadd.f32 -1.0, %v7268_v19  ;;  %6712 = vmatpush3.bf16.msra.mxu1 %v6709_v63 }
 0x78f   :  { %v2940_v61 = vmin.f32 %v9451_v58, 0.0  ;;  %v5833_v35 = vadd.f32 %v5832_v25, %v5831_v45  ;;  %6714 = vmatprep.subr.bf16.mxu1 %v6713_v11  ;;  %vm2924_vm1 = vcmp.gt.f32.partialorder %v9451_v58, 0.0 }
 0x790   :  { %v9460_v47 = vsel %vm2922_vm13, %v9397_v33, %v5444_v57  ;;  %v3189_v33 = vld [vmem:[%s10870_s13 + $0x60] sm:$0xff]  ;;  %3367 = vxpose.xlu1.b32.cont [14/16] (narrow) %v3351_v9, 8 }
 0x791   :  { %v7270_v43 = vpop.eup %7269  ;;  %v2960_v46 = vmul.f32 1.442695, %v2940_v61  ;;  %v9468_v13 = vadd.f32 %v5833_v35, %v2722_v2  ;;  %6345 = vmatprep.mubr.f32.mxu1 %v9460_v47  ;;  %v6725_v40 = vpack.c.bf16 %v3190_v14, %v3189_v33 }
 0x792   :  { %v5445_v56 = vadd.f32 -1.0, %v7270_v43  ;;  %6716 = vmatpush3.bf16.msra.mxu1 %v6713_v11 }
 0x793   :  { %7271 = vpow2.f32 %v2960_v46  ;;  %v2941_v36 = vmin.f32 %v9468_v13, 0.0  ;;  %6718 = vmatprep.subr.bf16.mxu1 %v6717_v38  ;;  %vm2925_vm3 = vcmp.gt.f32.partialorder %v9468_v13, 0.0 }
 0x794   :  { %v9477_v42 = vsel %vm2923_vm9, %v9412_v34, %v5445_v56  ;;  %3368 = vxpose.xlu1.b32.cont [15/16] (narrow) %v3352_v53, 8 }
 0x795   :  { %v2962_v41 = vmul.f32 1.442695, %v2941_v36  ;;  %v5754_v21 = vpop.f32.mrb[60].mxu1  ;;  %6346 = vmatmul.mubr.f32.gmra.mrb[82].mxu1 %v9477_v42  ;;  %v6737_v16 = vpack.c.bf16 %v9477_v42, %v9460_v47 }
 0x796   :  { %v5755_v5 = vpop.f32.mrb[61].mxu1  ;;  %6720 = vmatpush3.bf16.msra.mxu1 %v6717_v38 }
 0x797   :  { %7273 = vpow2.f32 %v2962_v41  ;;  %v5756_v54 = vadd.f32 %v5755_v5, %v5754_v21  ;;  %6738 = vmatpush3.bf16.xpose.msra.mxu0 %v6737_v16  ;;  %6722 = vmatprep.subr.bf16.mxu1 %v6721_v1 }
 0x798   :  { %6739 = vmatprep.subr.bf16.mxu0 %v11193_v32  ;;  %3369 = vxpose.xlu1.b32.end [16/16] (narrow) %v3353_v49, 8  ;;  %v11194_v49 = vmov 0  }
 0x799   :  { %v5757_v39 = vpop.f32.mrb[62].mxu1  ;;  %v5834_v34 = vpop.f32.mrb[62].mxu0  ;;  %v2727_v23 = vadd.f32 %v5756_v54, %v9377_v28 }
 0x79a   :  { %v5758_v52 = vpop.f32.mrb[63].mxu1  ;;  %v5835_v12 = vpop.f32.mrb[63].mxu0  ;;  %6724 = vmatpush3.bf16.msra.mxu1 %v6721_v1 }
 0x79b   :  { %v5759_v55 = vadd.f32 %v5758_v52, %v5757_v39  ;;  %v5836_v62 = vadd.f32 %v5835_v12, %v5834_v34  ;;  %6726 = vmatprep.subr.bf16.mxu1 %v6725_v40 }
 0x79d   :  { %v7272_v4 = vpop.eup %7271  ;;  %v2872_v29 = vadd.f32 %v5836_v62, %v2727_v23  ;;  %v5837_v44 = vpop.f32.mrb[64].mxu0  ;;  %v2732_v63 = vadd.f32 %v5759_v55, %v9377_v28 }
 0x79e   :  { %v5838_v48 = vpop.f32.mrb[65].mxu0  ;;  %v5446_v8 = vadd.f32 -1.0, %v7272_v4  ;;  %6728 = vmatpush3.bf16.msra.mxu1 %v6725_v40 }
 0x79f   :  { %v2942_v17 = vmin.f32 %v2872_v29, 0.0  ;;  %v5839_v6 = vadd.f32 %v5838_v48, %v5837_v44  ;;  %6730 = vmatprep.subr.bf16.mxu1 %v6729_v30  ;;  %vm2926_vm7 = vcmp.gt.f32.partialorder %v2872_v29, 0.0 }
 0x7a0   :  { %v9505_v15 = vsel %vm2924_vm1, %v9451_v58, %v5446_v8 }
 0x7a1   :  { %v7274_v20 = vpop.eup %7273  ;;  %v2964_v22 = vmul.f32 1.442695, %v2942_v17  ;;  %v2877_v60 = vadd.f32 %v5839_v6, %v2732_v63  ;;  %6348 = vmatprep.mubr.f32.mxu1 %v9505_v15 }
 0x7a2   :  { %v5447_v27 = vadd.f32 -1.0, %v7274_v20  ;;  %6732 = vmatpush3.bf16.msra.mxu1 %v6729_v30 }
 0x7a3   :  { %7275 = vpow2.f32 %v2964_v22  ;;  %v2943_v50 = vmin.f32 %v2877_v60, 0.0  ;;  %vm2927_vm13 = vcmp.gt.f32.partialorder %v2877_v60, 0.0 }
 0x7a4   :  { %v9510_v37 = vsel %vm2925_vm3, %v9468_v13, %v5447_v27 }
 0x7a5   :  { %v2966_v18 = vmul.f32 1.442695, %v2943_v50  ;;  %v5760_v11 = vpop.f32.mrb[64].mxu1  ;;  %6349 = vmatmul.mubr.f32.gmra.mrb[84].mxu1 %v9510_v37  ;;  %v6740_v26 = vpack.c.bf16 %v9510_v37, %v9505_v15 }
 0x7a6   :  { %v5761_v7 = vpop.f32.mrb[65].mxu1 }
 0x7a7   :  { %7277 = vpow2.f32 %v2966_v18  ;;  %v5762_v19 = vadd.f32 %v5761_v7, %v5760_v11  ;;  %6741 = vmatpush3.bf16.xpose.msra.mxu0 %v6740_v26 }
 0x7a8   :  { %6742 = vmatprep.subr.bf16.mxu0 %v11193_v32 }
 0x7a9   :  { %v5763_v58 = vpop.f32.mrb[66].mxu1  ;;  %v5840_v45 = vpop.f32.mrb[66].mxu0  ;;  %v2737_v57 = vadd.f32 %v5762_v19, %v9377_v28 }
 0x7aa   :  { %v5764_v31 = vpop.f32.mrb[67].mxu1  ;;  %v5841_v25 = vpop.f32.mrb[67].mxu0 }
 0x7ab   :  { %v5765_v38 = vadd.f32 %v5764_v31, %v5763_v58  ;;  %v5842_v2 = vadd.f32 %v5841_v25, %v5840_v45 }
 0x7ad   :  { %v7276_v61 = vpop.eup %7275  ;;  %v2882_v35 = vadd.f32 %v5842_v2, %v2737_v57  ;;  %v5843_v24 = vpop.f32.mrb[68].mxu0  ;;  %v2742_v46 = vadd.f32 %v5765_v38, %v9377_v28 }
 0x7ae   :  { %v5844_v51 = vpop.f32.mrb[69].mxu0  ;;  %v5448_v43 = vadd.f32 -1.0, %v7276_v61 }
 0x7af   :  { %v2944_v13 = vmin.f32 %v2882_v35, 0.0  ;;  %v5845_v9 = vadd.f32 %v5844_v51, %v5843_v24  ;;  %vm2928_vm9 = vcmp.gt.f32.partialorder %v2882_v35, 0.0 }
 0x7b0   :  { %v9518_v56 = vsel %vm2926_vm7, %v2872_v29, %v5448_v43 }
 0x7b1   :  { %v7278_v36 = vpop.eup %7277  ;;  %v2968_v1 = vmul.f32 1.442695, %v2944_v13  ;;  %v2887_v33 = vadd.f32 %v5845_v9, %v2742_v46  ;;  %6351 = vmatprep.mubr.f32.mxu1 %v9518_v56 }
 0x7b2   :  { %v5449_v14 = vadd.f32 -1.0, %v7278_v36 }
 0x7b3   :  { %7279 = vpow2.f32 %v2968_v1  ;;  %v2945_v41 = vmin.f32 %v2887_v33, 0.0  ;;  %vm2929_vm1 = vcmp.gt.f32.partialorder %v2887_v33, 0.0 }
 0x7b4   :  { %v9521_v21 = vsel %vm2927_vm13, %v2877_v60, %v5449_v14 }
 0x7b5   :  { %v2970_v16 = vmul.f32 1.442695, %v2945_v41  ;;  %v5766_v53 = vpop.f32.mrb[68].mxu1  ;;  %6352 = vmatmul.mubr.f32.gmra.mrb[86].mxu1 %v9521_v21  ;;  %v6743_v5 = vpack.c.bf16 %v9521_v21, %v9518_v56 }
 0x7b6   :  { %v5767_v54 = vpop.f32.mrb[69].mxu1  ;;  %6957 = vset.pattern.permute.xlu1 %v11194_v49 }
 0x7b7   :  { %7281 = vpow2.f32 %v2970_v16  ;;  %v5768_v40 = vadd.f32 %v5767_v54, %v5766_v53  ;;  %6744 = vmatpush3.bf16.xpose.msra.mxu0 %v6743_v5 }
 0x7b8   :  { %6745 = vmatprep.subr.bf16.mxu0 %v11193_v32 }
 0x7b9   :  { %v5769_v10 = vpop.f32.mrb[70].mxu1  ;;  %v5846_v3 = vpop.f32.mrb[70].mxu0  ;;  %v2747_v52 = vadd.f32 %v5768_v40, %v9377_v28 }
 0x7ba   :  { %v5770_v39 = vpop.f32.mrb[71].mxu1  ;;  %v5847_v34 = vpop.f32.mrb[71].mxu0 }
 0x7bb   :  { %v5771_v12 = vadd.f32 %v5770_v39, %v5769_v10  ;;  %v5848_v23 = vadd.f32 %v5847_v34, %v5846_v3 }
 0x7bd   :  { %v7280_v55 = vpop.eup %7279  ;;  %v2892_v62 = vadd.f32 %v5848_v23, %v2747_v52  ;;  %v5849_v30 = vpop.f32.mrb[72].mxu0  ;;  %v2752_v44 = vadd.f32 %v5771_v12, %v9377_v28 }
 0x7be   :  { %v5850_v4 = vpop.f32.mrb[73].mxu0  ;;  %v5450_v29 = vadd.f32 -1.0, %v7280_v55 }
 0x7bf   :  { %v2946_v48 = vmin.f32 %v2892_v62, 0.0  ;;  %v5851_v8 = vadd.f32 %v5850_v4, %v5849_v30  ;;  %vm2930_vm3 = vcmp.gt.f32.partialorder %v2892_v62, 0.0 }
 0x7c0   :  { %v9530_v63 = vsel %vm2928_vm9, %v2882_v35, %v5450_v29 }
 0x7c1   :  { %v7282_v17 = vpop.eup %7281  ;;  %v2972_v6 = vmul.f32 1.442695, %v2946_v48  ;;  %v2897_v20 = vadd.f32 %v5851_v8, %v2752_v44  ;;  %6354 = vmatprep.mubr.f32.mxu1 %v9530_v63 }
 0x7c2   :  { %v5451_v22 = vadd.f32 -1.0, %v7282_v17 }
 0x7c3   :  { %7283 = vpow2.f32 %v2972_v6  ;;  %v2947_v60 = vmin.f32 %v2897_v20, 0.0  ;;  %vm2931_vm7 = vcmp.gt.f32.partialorder %v2897_v20, 0.0 }
 0x7c4   :  { %v9533_v27 = vsel %vm2929_vm1, %v2887_v33, %v5451_v22 }
 0x7c5   :  { %v2974_v50 = vmul.f32 1.442695, %v2947_v60  ;;  %v5772_v18 = vpop.f32.mrb[72].mxu1  ;;  %6355 = vmatmul.mubr.f32.gmra.mrb[88].mxu1 %v9533_v27  ;;  %v6746_v11 = vpack.c.bf16 %v9533_v27, %v9530_v63 }
 0x7c6   :  { %v5773_v26 = vpop.f32.mrb[73].mxu1 }
 0x7c7   :  { %7285 = vpow2.f32 %v2974_v50  ;;  %v5774_v7 = vadd.f32 %v5773_v26, %v5772_v18  ;;  %6747 = vmatpush3.bf16.xpose.msra.mxu0 %v6746_v11 }
 0x7c8   :  { %6748 = vmatprep.subr.bf16.mxu0 %v11193_v32 }
 0x7c9   :  { %v5775_v19 = vpop.f32.mrb[74].mxu1  ;;  %v5852_v58 = vpop.f32.mrb[74].mxu0  ;;  %v2757_v25 = vadd.f32 %v5774_v7, %v9377_v28 }
 0x7ca   :  { %v5776_v45 = vpop.f32.mrb[75].mxu1  ;;  %v5853_v31 = vpop.f32.mrb[75].mxu0 }
 0x7cb   :  { %v5777_v57 = vadd.f32 %v5776_v45, %v5775_v19  ;;  %v5854_v38 = vadd.f32 %v5853_v31, %v5852_v58 }
 0x7cd   :  { %v7284_v2 = vpop.eup %7283  ;;  %v2902_v61 = vadd.f32 %v5854_v38, %v2757_v25  ;;  %v5855_v35 = vpop.f32.mrb[76].mxu0  ;;  %v2762_v43 = vadd.f32 %v5777_v57, %v9377_v28 }
 0x7ce   :  { %v5856_v24 = vpop.f32.mrb[77].mxu0  ;;  %v5452_v51 = vadd.f32 -1.0, %v7284_v2 }
 0x7cf   :  { %v2948_v46 = vmin.f32 %v2902_v61, 0.0  ;;  %v5857_v13 = vadd.f32 %v5856_v24, %v5855_v35  ;;  %vm2932_vm13 = vcmp.gt.f32.partialorder %v2902_v61, 0.0 }
 0x7d0   :  { %v9541_v9 = vsel %vm2930_vm3, %v2892_v62, %v5452_v51 }
 0x7d1   :  { %v7286_v36 = vpop.eup %7285  ;;  %v2976_v1 = vmul.f32 1.442695, %v2948_v46  ;;  %v2907_v33 = vadd.f32 %v5857_v13, %v2762_v43  ;;  %6357 = vmatprep.mubr.f32.mxu1 %v9541_v9 }
 0x7d2   :  { %v5453_v14 = vadd.f32 -1.0, %v7286_v36 }
 0x7d3   :  { %7287 = vpow2.f32 %v2976_v1  ;;  %v2949_v41 = vmin.f32 %v2907_v33, 0.0  ;;  %vm2933_vm9 = vcmp.gt.f32.partialorder %v2907_v33, 0.0 }
 0x7d4   :  { %v9544_v16 = vsel %vm2931_vm7, %v2897_v20, %v5453_v14 }
 0x7d5   :  { %v2978_v53 = vmul.f32 1.442695, %v2949_v41  ;;  %v5778_v5 = vpop.f32.mrb[76].mxu1  ;;  %6358 = vmatmul.mubr.f32.gmra.mrb[90].mxu1 %v9544_v16  ;;  %v6749_v54 = vpack.c.bf16 %v9544_v16, %v9541_v9 }
 0x7d6   :  { %v5779_v40 = vpop.f32.mrb[77].mxu1 }
 0x7d7   :  { %7289 = vpow2.f32 %v2978_v53  ;;  %v5780_v10 = vadd.f32 %v5779_v40, %v5778_v5  ;;  %6750 = vmatpush3.bf16.xpose.msra.mxu0 %v6749_v54 }
 0x7d8   :  { %6751 = vmatprep.subr.bf16.mxu0 %v11193_v32 }
 0x7d9   :  { %v5781_v3 = vpop.f32.mrb[78].mxu1  ;;  %v5858_v39 = vpop.f32.mrb[78].mxu0  ;;  %v2767_v12 = vadd.f32 %v5780_v10, %v9377_v28 }
 0x7da   :  { %v5782_v34 = vpop.f32.mrb[79].mxu1  ;;  %v5859_v52 = vpop.f32.mrb[79].mxu0 }
 0x7db   :  { %v5783_v23 = vadd.f32 %v5782_v34, %v5781_v3  ;;  %v5860_v55 = vadd.f32 %v5859_v52, %v5858_v39 }
 0x7dc   :  { %v3370_v38 = vpop.trf.xlu1 }
 0x7dd   :  { %v7288_v62 = vpop.eup %7287  ;;  %v2912_v30 = vadd.f32 %v5860_v55, %v2767_v12  ;;  %v5861_v4 = vpop.f32.mrb[80].mxu0  ;;  %v2772_v48 = vadd.f32 %v5783_v23, %v9377_v28 }
 0x7de   :  { %v5862_v29 = vpop.f32.mrb[81].mxu0  ;;  %v5454_v44 = vadd.f32 -1.0, %v7288_v62 }
 0x7df   :  { %v2950_v8 = vmin.f32 %v2912_v30, 0.0  ;;  %v5863_v17 = vadd.f32 %v5862_v29, %v5861_v4  ;;  %vm2934_vm1 = vcmp.gt.f32.partialorder %v2912_v30, 0.0 }
 0x7e0   :  { %v3012_v6 = vsel %vm2932_vm13, %v2902_v61, %v5454_v44 }
 0x7e1   :  { %v7290_v20 = vpop.eup %7289  ;;  %v2980_v22 = vmul.f32 1.442695, %v2950_v8  ;;  %v2917_v60 = vadd.f32 %v5863_v17, %v2772_v48  ;;  %6360 = vmatprep.mubr.f32.mxu1 %v3012_v6 }
 0x7e2   :  { %v5455_v50 = vadd.f32 -1.0, %v7290_v20 }
 0x7e3   :  { %7291 = vpow2.f32 %v2980_v22  ;;  %v2951_v18 = vmin.f32 %v2917_v60, 0.0  ;;  %vm2935_vm3 = vcmp.gt.f32.partialorder %v2917_v60, 0.0 }
 0x7e4   :  { %v3013_v11 = vsel %vm2933_vm9, %v2907_v33, %v5455_v50 }
 0x7e5   :  { %v2982_v26 = vmul.f32 1.442695, %v2951_v18  ;;  %6361 = vmatmul.mubr.f32.gmra.mrb[92].mxu1 %v3013_v11  ;;  %v6752_v7 = vpack.c.bf16 %v3013_v11, %v3012_v6 }
 0x7e7   :  { %7293 = vpow2.f32 %v2982_v26  ;;  %6753 = vmatpush3.bf16.xpose.msra.mxu0 %v6752_v7 }
 0x7e8   :  { %6754 = vmatprep.subr.bf16.mxu0 %v11193_v32  ;;  %v9578_v32 = vld [vmem:[%s10873_s15 + $0x2] ss:$0 sm:$0xff] }
 0x7ed   :  { %v7292_v28 = vpop.eup %7291 }
 0x7ee   :  { %v5456_v19 = vadd.f32 -1.0, %v7292_v28 }
 0x7f0   :  { %v3014_v58 = vsel %vm2934_vm1, %v2912_v30, %v5456_v19 }
 0x7f1   :  { %v7294_v45 = vpop.eup %7293  ;;  %6363 = vmatprep.mubr.f32.mxu1 %v3014_v58 }
 0x7f2   :  { %v5457_v31 = vadd.f32 -1.0, %v7294_v45 }
 0x7f4   :  { %v3015_v25 = vsel %vm2935_vm3, %v2917_v60, %v5457_v31 }
 0x7f5   :  { %6364 = vmatmul.mubr.f32.gmra.mrb[94].mxu1 %v3015_v25  ;;  %v6755_v57 = vpack.c.bf16 %v3015_v25, %v3014_v58 }
 0x7f6   :  { %6398 = vmatprep.mubr.f32.mxu1 %v9404_v0  ;;  %v9568_v0 = vld [vmem:[%s10873_s15] ss:$0 sm:$0xff] }
 0x7f7   :  { %6756 = vmatpush3.bf16.xpose.msra.mxu0 %v6755_v57 }
 0x7f9   :  { %6399 = vmatmul.mubr.f32.vlgmr.msra.gmra.mrb[96].mxu1 %v9419_v59  ;;  %v9573_v59 = vld [vmem:[%s10873_s15 + $0x1] ss:$0 sm:$0xff] }
 0x7fa   :  { %6401 = vmatprep.mubr.f32.mxu1 %v9460_v47  ;;  %v9583_v47 = vld [vmem:[%s10873_s15 + $0x3] ss:$0 sm:$0xff] }
 0x7fd   :  { %6402 = vmatmul.mubr.f32.gmra.mrb[98].mxu1 %v9477_v42 }
 0x7fe   :  { %6404 = vmatprep.mubr.f32.mxu1 %v9505_v15  ;;  %6455 = vmatmul.mubr.f32.vlgmr.msra.gmra.mrb[82].mxu0 %v3370_v38 }
 0x801   :  { %6405 = vmatmul.mubr.f32.gmra.mrb[100].mxu1 %v9510_v37 }
 0x802   :  { %6407 = vmatprep.mubr.f32.mxu1 %v9518_v56 }
 0x805   :  { %6408 = vmatmul.mubr.f32.gmra.mrb[102].mxu1 %v9521_v21 }
 0x806   :  { %6410 = vmatprep.mubr.f32.mxu1 %v9530_v63 }
 0x809   :  { %6411 = vmatmul.mubr.f32.gmra.mrb[104].mxu1 %v9533_v27 }
 0x80a   :  { %6413 = vmatprep.mubr.f32.mxu1 %v9541_v9 }
 0x80d   :  { %6414 = vmatmul.mubr.f32.gmra.mrb[106].mxu1 %v9544_v16 }
 0x80e   :  { %6416 = vmatprep.mubr.f32.mxu1 %v3012_v6 }
 0x811   :  { %6417 = vmatmul.mubr.f32.gmra.mrb[108].mxu1 %v3013_v11 }
 0x812   :  { %6419 = vmatprep.mubr.f32.mxu1 %v3014_v58 }
 0x815   :  { %6420 = vmatmul.mubr.f32.gmra.mrb[110].mxu1 %v3015_v25 }
 0x858   :  { %v6344_v42 = vpop.f32.mrb[80].mxu1 }
 0x859   :  { %v3802_v15 = vmul.f32 %v6344_v42, %v9568_v0  ;;  %v4147_v37 = vmul.f32 %v6344_v42, %v9573_v59  ;;  %v4492_v56 = vmul.f32 %v6344_v42, %v9578_v32  ;;  %v4837_v21 = vmul.f32 %v6344_v42, %v9583_v47  ;;  %v3098_v63 = vpop.f32.mrb[81].mxu1 }
 0x85a   :  { %v3801_v27 = vmul.f32 %v9568_v0, %v3098_v63  ;;  %v4146_v2 = vmul.f32 %v9573_v59, %v3098_v63  ;;  %v4491_v61 = vmul.f32 %v9578_v32, %v3098_v63  ;;  %v4836_v35 = vmul.f32 %v9583_v47, %v3098_v63 }
 0x85c   :  { %v6757_v24 = vpack.c.bf16 %v4147_v37, %v4146_v2  ;;  %v6789_v51 = vpack.c.bf16 %v4837_v21, %v4836_v35  ;;  %v6759_v43 = vpack.c.bf16 %v3802_v15, %v3801_v27  ;;  %v6791_v46 = vpack.c.bf16 %v4492_v56, %v4491_v61 }
 0x85e   :  { %6758 = vmatprep.subr.bf16.mxu1 %v6757_v24  ;;  %6790 = vmatprep.subr.bf16.mxu0 %v6789_v51 }
 0x85f   :  { %6760 = vmatpush3.bf16.msra.mxu1 %v6759_v43  ;;  %6792 = vmatpush3.bf16.msra.mxu0 %v6791_v46 }
 0x868   :  { %v6347_v13 = vpop.f32.mrb[82].mxu1 }
 0x869   :  { %v3804_v9 = vmul.f32 %v6347_v13, %v9568_v0  ;;  %v4149_v36 = vmul.f32 %v6347_v13, %v9573_v59  ;;  %v4494_v1 = vmul.f32 %v6347_v13, %v9578_v32  ;;  %v4839_v33 = vmul.f32 %v6347_v13, %v9583_v47  ;;  %v3108_v14 = vpop.f32.mrb[83].mxu1 }
 0x86a   :  { %v3803_v41 = vmul.f32 %v9568_v0, %v3108_v14  ;;  %v4148_v16 = vmul.f32 %v9573_v59, %v3108_v14  ;;  %v4493_v53 = vmul.f32 %v9578_v32, %v3108_v14  ;;  %v4838_v5 = vmul.f32 %v9583_v47, %v3108_v14 }
 0x86c   :  { %v6761_v54 = vpack.c.bf16 %v4149_v36, %v4148_v16  ;;  %v6793_v40 = vpack.c.bf16 %v4839_v33, %v4838_v5  ;;  %v6763_v10 = vpack.c.bf16 %v3804_v9, %v3803_v41  ;;  %v6795_v3 = vpack.c.bf16 %v4494_v1, %v4493_v53 }
 0x86e   :  { %6762 = vmatprep.subr.bf16.mxu1 %v6761_v54  ;;  %6794 = vmatprep.subr.bf16.mxu0 %v6793_v40 }
 0x86f   :  { %6764 = vmatpush3.bf16.msra.mxu1 %v6763_v10  ;;  %6796 = vmatpush3.bf16.msra.mxu0 %v6795_v3 }
 0x878   :  { %v6350_v39 = vpop.f32.mrb[84].mxu1 }
 0x879   :  { %v3806_v34 = vmul.f32 %v6350_v39, %v9568_v0  ;;  %v4151_v52 = vmul.f32 %v6350_v39, %v9573_v59  ;;  %v4496_v12 = vmul.f32 %v6350_v39, %v9578_v32  ;;  %v4841_v23 = vmul.f32 %v6350_v39, %v9583_v47  ;;  %v3118_v55 = vpop.f32.mrb[85].mxu1 }
 0x87a   :  { %v3805_v62 = vmul.f32 %v9568_v0, %v3118_v55  ;;  %v4150_v30 = vmul.f32 %v9573_v59, %v3118_v55  ;;  %v4495_v4 = vmul.f32 %v9578_v32, %v3118_v55  ;;  %v4840_v29 = vmul.f32 %v9583_v47, %v3118_v55 }
 0x87c   :  { %v6765_v44 = vpack.c.bf16 %v4151_v52, %v4150_v30  ;;  %v6797_v48 = vpack.c.bf16 %v4841_v23, %v4840_v29  ;;  %v6767_v8 = vpack.c.bf16 %v3806_v34, %v3805_v62  ;;  %v6799_v17 = vpack.c.bf16 %v4496_v12, %v4495_v4 }
 0x87e   :  { %6766 = vmatprep.subr.bf16.mxu1 %v6765_v44  ;;  %6798 = vmatprep.subr.bf16.mxu0 %v6797_v48 }
 0x87f   :  { %6768 = vmatpush3.bf16.msra.mxu1 %v6767_v8  ;;  %6800 = vmatpush3.bf16.msra.mxu0 %v6799_v17 }
 0x888   :  { %v6353_v6 = vpop.f32.mrb[86].mxu1 }
 0x889   :  { %v3808_v20 = vmul.f32 %v6353_v6, %v9568_v0  ;;  %v4153_v22 = vmul.f32 %v6353_v6, %v9573_v59  ;;  %v4498_v60 = vmul.f32 %v6353_v6, %v9578_v32  ;;  %v4843_v50 = vmul.f32 %v6353_v6, %v9583_v47  ;;  %v3128_v18 = vpop.f32.mrb[87].mxu1 }
 0x88a   :  { %v3807_v11 = vmul.f32 %v9568_v0, %v3128_v18  ;;  %v4152_v26 = vmul.f32 %v9573_v59, %v3128_v18  ;;  %v4497_v7 = vmul.f32 %v9578_v32, %v3128_v18  ;;  %v4842_v28 = vmul.f32 %v9583_v47, %v3128_v18 }
 0x88c   :  { %v6769_v19 = vpack.c.bf16 %v4153_v22, %v4152_v26  ;;  %v6801_v58 = vpack.c.bf16 %v4843_v50, %v4842_v28  ;;  %v6771_v45 = vpack.c.bf16 %v3808_v20, %v3807_v11  ;;  %v6803_v31 = vpack.c.bf16 %v4498_v60, %v4497_v7 }
 0x88e   :  { %6770 = vmatprep.subr.bf16.mxu1 %v6769_v19  ;;  %6802 = vmatprep.subr.bf16.mxu0 %v6801_v58 }
 0x88f   :  { %6772 = vmatpush3.bf16.msra.mxu1 %v6771_v45  ;;  %6804 = vmatpush3.bf16.msra.mxu0 %v6803_v31 }
 0x898   :  { %v6356_v25 = vpop.f32.mrb[88].mxu1 }
 0x899   :  { %v3810_v57 = vmul.f32 %v6356_v25, %v9568_v0  ;;  %v4155_v38 = vmul.f32 %v6356_v25, %v9573_v59  ;;  %v4500_v42 = vmul.f32 %v6356_v25, %v9578_v32  ;;  %v4845_v15 = vmul.f32 %v6356_v25, %v9583_v47  ;;  %v3138_v37 = vpop.f32.mrb[89].mxu1 }
 0x89a   :  { %v3809_v56 = vmul.f32 %v9568_v0, %v3138_v37  ;;  %v4154_v21 = vmul.f32 %v9573_v59, %v3138_v37  ;;  %v4499_v63 = vmul.f32 %v9578_v32, %v3138_v37  ;;  %v4844_v27 = vmul.f32 %v9583_v47, %v3138_v37 }
 0x89b   :  { %v11195_v25 = vmov 3   ;;  %v11197_v37 = vmov 2  }
 0x89c   :  { %v6773_v2 = vpack.c.bf16 %v4155_v38, %v4154_v21  ;;  %v6805_v61 = vpack.c.bf16 %v4845_v15, %v4844_v27  ;;  %v6775_v35 = vpack.c.bf16 %v3810_v57, %v3809_v56  ;;  %v6807_v24 = vpack.c.bf16 %v4500_v42, %v4499_v63 }
 0x89d   :  { %v11196_v42 = vmov 1  }
 0x89e   :  { %6774 = vmatprep.subr.bf16.mxu1 %v6773_v2  ;;  %6806 = vmatprep.subr.bf16.mxu0 %v6805_v61 }
 0x89f   :  { %6776 = vmatpush3.bf16.msra.mxu1 %v6775_v35  ;;  %6808 = vmatpush3.bf16.msra.mxu0 %v6807_v24 }
 0x8a8   :  { %v6359_v51 = vpop.f32.mrb[90].mxu1 }
 0x8a9   :  { %v3812_v43 = vmul.f32 %v6359_v51, %v9568_v0  ;;  %v4157_v46 = vmul.f32 %v6359_v51, %v9573_v59  ;;  %v4502_v13 = vmul.f32 %v6359_v51, %v9578_v32  ;;  %v4847_v9 = vmul.f32 %v6359_v51, %v9583_v47  ;;  %v3148_v36 = vpop.f32.mrb[91].mxu1 }
 0x8aa   :  { %v3811_v1 = vmul.f32 %v9568_v0, %v3148_v36  ;;  %v4156_v33 = vmul.f32 %v9573_v59, %v3148_v36  ;;  %v4501_v14 = vmul.f32 %v9578_v32, %v3148_v36  ;;  %v4846_v41 = vmul.f32 %v9583_v47, %v3148_v36 }
 0x8ac   :  { %v6777_v16 = vpack.c.bf16 %v4157_v46, %v4156_v33  ;;  %v6809_v53 = vpack.c.bf16 %v4847_v9, %v4846_v41  ;;  %v6779_v5 = vpack.c.bf16 %v3812_v43, %v3811_v1  ;;  %v6811_v54 = vpack.c.bf16 %v4502_v13, %v4501_v14 }
 0x8ae   :  { %6778 = vmatprep.subr.bf16.mxu1 %v6777_v16  ;;  %6810 = vmatprep.subr.bf16.mxu0 %v6809_v53 }
 0x8af   :  { %6780 = vmatpush3.bf16.msra.mxu1 %v6779_v5  ;;  %6812 = vmatpush3.bf16.msra.mxu0 %v6811_v54  ;;  %v11198_v5 = vld [vmem:[#allocation18_spill] sm:$0xff] }
 0x8b0   :  { %v11199_v54 = vsub.s32 1, %v11198_v5 }
 0x8b8   :  { %v6362_v40 = vpop.f32.mrb[92].mxu1 }
 0x8b9   :  { %v3814_v10 = vmul.f32 %v6362_v40, %v9568_v0  ;;  %v4159_v3 = vmul.f32 %v6362_v40, %v9573_v59  ;;  %v4504_v39 = vmul.f32 %v6362_v40, %v9578_v32  ;;  %v4849_v34 = vmul.f32 %v6362_v40, %v9583_v47  ;;  %v3158_v52 = vpop.f32.mrb[93].mxu1 }
 0x8ba   :  { %v3813_v12 = vmul.f32 %v9568_v0, %v3158_v52  ;;  %v4158_v23 = vmul.f32 %v9573_v59, %v3158_v52  ;;  %v4503_v55 = vmul.f32 %v9578_v32, %v3158_v52  ;;  %v4848_v62 = vmul.f32 %v9583_v47, %v3158_v52 }
 0x8bb   :  { %v11200_v52 = vsub.s32 0, %v11198_v5 }
 0x8bc   :  { %v6781_v30 = vpack.c.bf16 %v4159_v3, %v4158_v23  ;;  %v6813_v4 = vpack.c.bf16 %v4849_v34, %v4848_v62  ;;  %v6783_v29 = vpack.c.bf16 %v3814_v10, %v3813_v12  ;;  %v6815_v44 = vpack.c.bf16 %v4504_v39, %v4503_v55 }
 0x8be   :  { %6782 = vmatprep.subr.bf16.mxu1 %v6781_v30  ;;  %6814 = vmatprep.subr.bf16.mxu0 %v6813_v4  ;;  %v11201_v30 = vsub.s32 3, %v11198_v5 }
 0x8bf   :  { %6784 = vmatpush3.bf16.msra.mxu1 %v6783_v29  ;;  %6816 = vmatpush3.bf16.msra.mxu0 %v6815_v44 }
 0x8c8   :  { %v6365_v48 = vpop.f32.mrb[94].mxu1 }
 0x8c9   :  { %v3816_v8 = vmul.f32 %v6365_v48, %v9568_v0  ;;  %v4161_v17 = vmul.f32 %v6365_v48, %v9573_v59  ;;  %v4506_v6 = vmul.f32 %v6365_v48, %v9578_v32  ;;  %v4851_v20 = vmul.f32 %v6365_v48, %v9583_v47  ;;  %v3168_v22 = vpop.f32.mrb[95].mxu1 }
 0x8ca   :  { %v3815_v60 = vmul.f32 %v9568_v0, %v3168_v22  ;;  %v4160_v50 = vmul.f32 %v9573_v59, %v3168_v22  ;;  %v4505_v18 = vmul.f32 %v9578_v32, %v3168_v22  ;;  %v4850_v11 = vmul.f32 %v9583_v47, %v3168_v22 }
 0x8cc   :  { %v6400_v26 = vpop.f32.mrb[96].mxu1  ;;  %v6785_v7 = vpack.c.bf16 %v4161_v17, %v4160_v50  ;;  %v6817_v28 = vpack.c.bf16 %v4851_v20, %v4850_v11  ;;  %v6787_v19 = vpack.c.bf16 %v3816_v8, %v3815_v60  ;;  %v6819_v58 = vpack.c.bf16 %v4506_v6, %v4505_v18  ;;  %v11202_v6 = vld [vmem:[#allocation3_spill] sm:$0xff] }
 0x8cd   :  { %3822 = vperm.xlu0 %6947, %v6400_v26   ;;  %v3259_v45 = vpop.f32.mrb[97].mxu1 }
 0x8ce   :  { %6786 = vmatprep.subr.bf16.mxu1 %v6785_v7  ;;  %6818 = vmatprep.subr.bf16.mxu0 %v6817_v28 }
 0x8cf   :  { %6788 = vmatpush3.bf16.msra.mxu1 %v6787_v19  ;;  %6820 = vmatpush3.bf16.msra.mxu0 %v6819_v58 }
 0x8d0   :  { %v6403_v31 = vpop.f32.mrb[98].mxu1 }
 0x8d1   :  { %6948 = vset.pattern.permute.xlu0 %v11195_v25  ;;  %3473 = vperm.xlu1 %6957, %v6403_v31   ;;  %v3269_v0 = vpop.f32.mrb[99].mxu1  ;;  %v9650_v59 = vpop.f32.mrb[82].mxu0 }
 0x8d2   :  { %4512 = vperm.xlu0 %6948, %v6400_v26   ;;  %v6456_v32 = vpop.f32.mrb[83].mxu0  ;;  %v9790_v40 = vrot.slane %v9650_v59, %v11199_v54  ;;  %v9803_v12 = vrot.slane %v9650_v59, %v11200_v52  ;;  %v9812_v4 = vrot.slane %v9650_v59, %v11201_v30 }
 0x8d4   :  { %v6406_v47 = vpop.f32.mrb[100].mxu1 }
 0x8d5   :  { %3468 = vperm.xlu1 %6957, %v3269_v0   ;;  %v9652_v57 = vpop.f32.mrb[101].mxu1 }
 0x8d6   :  { %6949 = vset.pattern.permute.xlu0 %v11194_v49 }
 0x8d7   :  { %3463 = vperm.xlu0 %6949, %v6400_v26  }
 0x8d8   :  { %v9655_v38 = vpop.f32.mrb[102].mxu1 }
 0x8d9   :  { %6962 = vset.pattern.permute.xlu1 %v11196_v42  ;;  %v9658_v15 = vpop.f32.mrb[103].mxu1 }
 0x8da   :  { %3838 = vperm.xlu1 %6962, %v6406_v47  }
 0x8db   :  { %6950 = vset.pattern.permute.xlu0 %v11197_v37 }
 0x8dc   :  { %4167 = vperm.xlu0 %6950, %v6400_v26   ;;  %v9661_v56 = vpop.f32.mrb[104].mxu1 }
 0x8dd   :  { %v9663_v21 = vpop.f32.mrb[105].mxu1 }
 0x8de   :  { %6964 = vset.pattern.permute.xlu1 %v11194_v49 }
 0x8df   :  { %3483 = vperm.xlu1 %6964, %v6406_v47  }
 0x8e0   :  { %6951 = vset.pattern.permute.xlu0 %v11196_v42  ;;  %v9667_v63 = vpop.f32.mrb[106].mxu1 }
 0x8e1   :  { %3818 = vperm.xlu0 %6951, %v3259_v45   ;;  %v9669_v27 = vpop.f32.mrb[107].mxu1 }
 0x8e3   :  { %6965 = vset.pattern.permute.xlu1 %v11197_v37 }
 0x8e4   :  { %4183 = vperm.xlu1 %6965, %v6406_v47   ;;  %v9672_v2 = vpop.f32.mrb[108].mxu1 }
 0x8e5   :  { %6952 = vset.pattern.permute.xlu0 %v11195_v25  ;;  %v9675_v61 = vpop.f32.mrb[109].mxu1 }
 0x8e6   :  { %4508 = vperm.xlu0 %6952, %v3259_v45  }
 0x8e8   :  { %6966 = vset.pattern.permute.xlu1 %v11196_v42  ;;  %v9678_v35 = vpop.f32.mrb[110].mxu1 }
 0x8e9   :  { %3834 = vperm.xlu1 %6966, %v9652_v57   ;;  %v9681_v24 = vpop.f32.mrb[111].mxu1 }
 0x8ea   :  { %6953 = vset.pattern.permute.xlu0 %v11194_v49 }
 0x8eb   :  { %3458 = vperm.xlu0 %6953, %v3259_v45  }
 0x8ed   :  { %6967 = vset.pattern.permute.xlu1 %v11195_v25 }
 0x8ee   :  { %4524 = vperm.xlu1 %6967, %v9652_v57  }
 0x8ef   :  { %6954 = vset.pattern.permute.xlu0 %v11197_v37 }
 0x8f0   :  { %4163 = vperm.xlu0 %6954, %v3259_v45   ;;  %v11203_v45 = vld [vmem:[#allocation2_spill] sm:$0xff] }
 0x8f2   :  { %6969 = vset.pattern.permute.xlu1 %v11197_v37 }
 0x8f3   :  { %4179 = vperm.xlu1 %6969, %v9652_v57  }
 0x8f4   :  { %6955 = vset.pattern.permute.xlu0 %v11196_v42 }
 0x8f5   :  { %3830 = vperm.xlu0 %6955, %v6403_v31  }
 0x8f7   :  { %6970 = vset.pattern.permute.xlu1 %v11196_v42 }
 0x8f8   :  { %3846 = vperm.xlu1 %6970, %v9655_v38  }
 0x8f9   :  { %6956 = vset.pattern.permute.xlu0 %v11195_v25 }
 0x8fa   :  { %4520 = vperm.xlu0 %6956, %v6403_v31  }
 0x8fc   :  { %6971 = vset.pattern.permute.xlu1 %v11195_v25 }
 0x8fd   :  { %4536 = vperm.xlu1 %6971, %v9655_v38  }
 0x8fe   :  { %6958 = vset.pattern.permute.xlu0 %v11197_v37 }
 0x8ff   :  { %4175 = vperm.xlu0 %6958, %v6403_v31  }
 0x901   :  { %6972 = vset.pattern.permute.xlu1 %v11197_v37 }
 0x902   :  { %4191 = vperm.xlu1 %6972, %v9655_v38  }
 0x903   :  { %6959 = vset.pattern.permute.xlu0 %v11196_v42 }
 0x904   :  { %3826 = vperm.xlu0 %6959, %v3269_v0  }
 0x906   :  { %6974 = vset.pattern.permute.xlu1 %v11195_v25 }
 0x907   :  { %4532 = vperm.xlu1 %6974, %v9658_v15  }
 0x908   :  { %6960 = vset.pattern.permute.xlu0 %v11195_v25 }
 0x909   :  { %4516 = vperm.xlu0 %6960, %v3269_v0  }
 0x90b   :  { %6975 = vset.pattern.permute.xlu1 %v11194_v49 }
 0x90c   :  { %3488 = vperm.xlu1 %6975, %v9658_v15  }
 0x90d   :  { %6961 = vset.pattern.permute.xlu0 %v11197_v37 }
 0x90e   :  { %4171 = vperm.xlu0 %6961, %v3269_v0  }
 0x910   :  { %6978 = vset.pattern.permute.xlu1 %v11195_v25 }
 0x911   :  { %4544 = vperm.xlu1 %6978, %v9661_v56  }
 0x912   :  { %6963 = vset.pattern.permute.xlu0 %v11195_v25 }
 0x913   :  { %4528 = vperm.xlu0 %6963, %v6406_v47  }
 0x915   :  { %6979 = vset.pattern.permute.xlu1 %v11194_v49 }
 0x916   :  { %3503 = vperm.xlu1 %6979, %v9661_v56  }
 0x917   :  { %6968 = vset.pattern.permute.xlu0 %v11194_v49 }
 0x918   :  { %3478 = vperm.xlu0 %6968, %v9652_v57  }
 0x91a   :  { %6981 = vset.pattern.permute.xlu1 %v11196_v42 }
 0x91b   :  { %3850 = vperm.xlu1 %6981, %v9663_v21  }
 0x91c   :  { %3493 = vperm.xlu0 %6968, %v9655_v38  }
 0x91f   :  { %6983 = vset.pattern.permute.xlu1 %v11194_v49 }
 0x920   :  { %6973 = vset.pattern.permute.xlu0 %v11196_v42  ;;  %3498 = vperm.xlu1 %6983, %v9663_v21  }
 0x921   :  { %3842 = vperm.xlu0 %6973, %v9658_v15  }
 0x924   :  { %6984 = vset.pattern.permute.xlu1 %v11197_v37 }
 0x925   :  { %6976 = vset.pattern.permute.xlu0 %v11197_v37  ;;  %4195 = vperm.xlu1 %6984, %v9663_v21  }
 0x926   :  { %4187 = vperm.xlu0 %6976, %v9658_v15  }
 0x929   :  { %6985 = vset.pattern.permute.xlu1 %v11196_v42 }
 0x92a   :  { %6977 = vset.pattern.permute.xlu0 %v11196_v42  ;;  %3862 = vperm.xlu1 %6985, %v9667_v63  }
 0x92b   :  { %3854 = vperm.xlu0 %6977, %v9661_v56  }
 0x92e   :  { %6986 = vset.pattern.permute.xlu1 %v11194_v49 }
 0x92f   :  { %6980 = vset.pattern.permute.xlu0 %v11197_v37  ;;  %3513 = vperm.xlu1 %6986, %v9667_v63  }
 0x930   :  { %4199 = vperm.xlu0 %6980, %v9661_v56  }
 0x933   :  { %6987 = vset.pattern.permute.xlu1 %v11197_v37 }
 0x934   :  { %6982 = vset.pattern.permute.xlu0 %v11195_v25  ;;  %4207 = vperm.xlu1 %6987, %v9667_v63  }
 0x935   :  { %4540 = vperm.xlu0 %6982, %v9663_v21   ;;  %v11204_v21 = vld [vmem:[#allocation5_spill] sm:$0xff] }
 0x938   :  { %6988 = vset.pattern.permute.xlu1 %v11196_v42 }
 0x939   :  { %4552 = vperm.xlu0 %6982, %v9667_v63   ;;  %3858 = vperm.xlu1 %6988, %v9669_v27  }
 0x93d   :  { %6990 = vset.pattern.permute.xlu0 %v11194_v49  ;;  %6989 = vset.pattern.permute.xlu1 %v11195_v25 }
 0x93e   :  { %3508 = vperm.xlu0 %6990, %v9669_v27   ;;  %4548 = vperm.xlu1 %6989, %v9669_v27  }
 0x942   :  { %6991 = vset.pattern.permute.xlu1 %v11197_v37  ;;  %3523 = vperm.xlu0 %6990, %v9672_v2  }
 0x943   :  { %4203 = vperm.xlu1 %6991, %v9669_v27  }
 0x946   :  { %6995 = vset.pattern.permute.xlu0 %v11196_v42 }
 0x947   :  { %6992 = vset.pattern.permute.xlu1 %v11196_v42  ;;  %3866 = vperm.xlu0 %6995, %v9675_v61  }
 0x948   :  { %3870 = vperm.xlu1 %6992, %v9672_v2  }
 0x94b   :  { %6998 = vset.pattern.permute.xlu0 %v11197_v37 }
 0x94c   :  { %v3823_v51 = vpop.permute.xlu0 %3822  ;;  %6993 = vset.pattern.permute.xlu1 %v11195_v25  ;;  %4211 = vperm.xlu0 %6998, %v9675_v61  }
 0x94d   :  { %4560 = vperm.xlu1 %6993, %v9672_v2   ;;  %v3886_v39 = vadd.f32 %v9790_v40, %v3823_v51 }
 0x94f   :  { %v3918_v23 = vmul.f32 0.2, %v3886_v39  ;;  %vm3902_vm7 = vcmp.gt.f32.partialorder %v3886_v39, 0.0 }
 0x950   :  { %v9753_v43 = vpop.permute.xlu1 %3473  ;;  %6999 = vset.pattern.permute.xlu0 %v11196_v42 }
 0x951   :  { %v9756_v46 = vpop.permute.xlu0 %4512  ;;  %6994 = vset.pattern.permute.xlu1 %v11197_v37  ;;  %3878 = vperm.xlu0 %6999, %v9678_v35   ;;  %v3934_v48 = vsel %vm3902_vm7, %v3886_v39, %v3918_v23  ;;  %v11206_v39 = vld [vmem:[#allocation4_spill] sm:$0xff] }
 0x952   :  { %4215 = vperm.xlu1 %6994, %v9672_v2   ;;  %v9823_v20 = vsel %vm89_vm5, %v3934_v48, -1e+30 }
 0x954   :  { %v9761_v13 = vpop.permute.xlu1 %3468 }
 0x955   :  { %7002 = vset.pattern.permute.xlu0 %v11197_v37  ;;  %v3542_v27 = vadd.f32 %v9803_v12, %v9761_v13 }
 0x956   :  { %v3464_v9 = vpop.permute.xlu0 %3463  ;;  %6996 = vset.pattern.permute.xlu1 %v11195_v25  ;;  %4223 = vperm.xlu0 %7002, %v9678_v35  }
 0x957   :  { %4556 = vperm.xlu1 %6996, %v9675_v61   ;;  %v3541_v55 = vadd.f32 %v9803_v12, %v3464_v9 }
 0x959   :  { %v9767_v36 = vpop.permute.xlu1 %3838  ;;  %vm3557_vm13 = vcmp.gt.f32.partialorder %v3541_v55, 0.0 }
 0x95a   :  { %7004 = vset.pattern.permute.xlu0 %v11195_v25  ;;  %v3890_v54 = vadd.f32 %v9790_v40, %v9767_v36 }
 0x95b   :  { %v9770_v1 = vpop.permute.xlu0 %4167  ;;  %6997 = vset.pattern.permute.xlu1 %v11194_v49  ;;  %4564 = vperm.xlu0 %7004, %v9681_v24  }
 0x95c   :  { %3518 = vperm.xlu1 %6997, %v9675_v61   ;;  %v3922_v23 = vmul.f32 0.2, %v3890_v54 }
 0x95e   :  { %v9775_v33 = vpop.permute.xlu1 %3483 }
 0x960   :  { %v9777_v14 = vpop.permute.xlu0 %3818  ;;  %7000 = vset.pattern.permute.xlu1 %v11195_v25  ;;  %v3543_v25 = vadd.f32 %v9803_v12, %v9753_v43  ;;  %v4576_v43 = vadd.f32 %v9812_v4, %v9756_v46 }
 0x961   :  { %4568 = vperm.xlu1 %7000, %v9678_v35  }
 0x962   :  { %v3575_v38 = vmul.f32 0.2, %v3543_v25  ;;  %vm3559_vm7 = vcmp.gt.f32.partialorder %v3543_v25, 0.0 }
 0x963   :  { %v9781_v41 = vpop.permute.xlu1 %4183 }
 0x964   :  { %v3591_v61 = vsel %vm3559_vm7, %v3543_v25, %v3575_v38 }
 0x965   :  { %v4509_v16 = vpop.permute.xlu0 %4508  ;;  %7001 = vset.pattern.permute.xlu1 %v11194_v49  ;;  %v9876_v13 = vsel %vm91_vm11, %v3591_v61, -1e+30 }
 0x966   :  { %3533 = vperm.xlu1 %7001, %v9678_v35   ;;  %v4575_v44 = vadd.f32 %v9812_v4, %v4509_v16  ;;  %v3574_v16 = vmul.f32 0.2, %v3542_v27 }
 0x968   :  { %v9785_v53 = vpop.permute.xlu1 %3834  ;;  %v4607_v22 = vmul.f32 0.2, %v4575_v44  ;;  %vm4591_vm9 = vcmp.gt.f32.partialorder %v4575_v44, 0.0 }
 0x96a   :  { %v3459_v10 = vpop.permute.xlu0 %3458  ;;  %7003 = vset.pattern.permute.xlu1 %v11196_v42  ;;  %v4623_v19 = vsel %vm4591_vm9, %v4575_v44, %v4607_v22  ;;  %vm3558_vm9 = vcmp.gt.f32.partialorder %v3542_v27, 0.0 }
 0x96b   :  { %3874 = vperm.xlu1 %7003, %v9681_v24   ;;  %v3540_v60 = vadd.f32 %v9803_v12, %v3459_v10  ;;  %v9841_v31 = vsel %vm88_vm8, %v4623_v19, -1e+30  ;;  %v3590_v36 = vsel %vm3558_vm9, %v3542_v27, %v3574_v16 }
 0x96c   :  { %v9900_v44 = vsel %vm90_vm14, %v3590_v36, -1e+30 }
 0x96d   :  { %v9794_v3 = vpop.permute.xlu1 %4524  ;;  %v3572_v26 = vmul.f32 0.2, %v3540_v60  ;;  %vm3556_vm1 = vcmp.gt.f32.partialorder %v3540_v60, 0.0 }
 0x96f   :  { %v9797_v34 = vpop.permute.xlu0 %4163  ;;  %7005 = vset.pattern.permute.xlu1 %v11194_v49  ;;  %v3573_v49 = vmul.f32 0.2, %v3541_v55  ;;  %v3588_v32 = vsel %vm3556_vm1, %v3540_v60, %v3572_v26  ;;  %vm4592_vm1 = vcmp.gt.f32.partialorder %v4576_v43, 0.0 }
 0x970   :  { %3528 = vperm.xlu1 %7005, %v9681_v24   ;;  %v9848_v57 = vsel %vm88_vm8, %v3588_v32, -1e+30 }
 0x971   :  { %v3589_v50 = vsel %vm3557_vm13, %v3541_v55, %v3573_v49  ;;  %v3545_v55 = vadd.f32 %v9803_v12, %v9775_v33  ;;  %v3885_v49 = vadd.f32 %v9790_v40, %v9777_v14  ;;  %v3889_v33 = vadd.f32 %v9790_v40, %v9785_v53 }
 0x972   :  { %v9807_v62 = vpop.permute.xlu1 %4179  ;;  %v9831_v11 = vsel %vm89_vm5, %v3589_v50, -1e+30 }
 0x973   :  { %v3577_v22 = vmul.f32 0.2, %v3545_v55  ;;  %v3917_v26 = vmul.f32 0.2, %v3885_v49  ;;  %vm3901_vm9 = vcmp.gt.f32.partialorder %v3885_v49, 0.0 }
 0x974   :  { %v3831_v29 = vpop.permute.xlu0 %3830  ;;  %7006 = vset.pattern.permute.xlu1 %v11197_v37 }
 0x975   :  { %4219 = vperm.xlu1 %7006, %v9681_v24   ;;  %v3888_v7 = vadd.f32 %v9790_v40, %v3831_v29  ;;  %v11205_v24 = vsub.s32 2, %v11198_v5  ;;  %v3933_v61 = vsel %vm3901_vm9, %v3885_v49, %v3917_v26 }
 0x977   :  { %v9817_v8 = vpop.permute.xlu1 %3846  ;;  %v3920_v0 = vmul.f32 0.2, %v3888_v7  ;;  %vm3904_vm3 = vcmp.gt.f32.partialorder %v3888_v7, 0.0  ;;  %v9868_v51 = vrot.slane %v9650_v59, %v11205_v24  ;;  %v4608_v59 = vmul.f32 0.2, %v4576_v43 }
 0x978   :  { %v3892_v24 = vadd.f32 %v9790_v40, %v9817_v8  ;;  %v11208_v8 = vld [vmem:[#allocation6_spill] sm:$0xff] }
 0x979   :  { %v9819_v17 = vpop.permute.xlu0 %4520  ;;  %v3936_v37 = vsel %vm3904_vm3, %v3888_v7, %v3920_v0  ;;  %v4231_v46 = vadd.f32 %v9868_v51, %v9770_v1  ;;  %vm3906_vm3 = vcmp.gt.f32.partialorder %v3890_v54, 0.0  ;;  %v4624_v48 = vsel %vm4592_vm1, %v4576_v43, %v4608_v59 }
 0x97a   :  { %3967 = vmax.xlane.f32.xlu0 %v9823_v20  ;;  %v9858_v63 = vsel %vm91_vm11, %v3936_v37, -1e+30  ;;  %v3938_v60 = vsel %vm3906_vm3, %v3890_v54, %v3922_v23  ;;  %v9907_v14 = vsel %vm89_vm5, %v4624_v48, -1e+30  ;;  %v4230_v7 = vadd.f32 %v9868_v51, %v9797_v34 }
 0x97b   :  { %v4263_v29 = vmul.f32 0.2, %v4231_v46  ;;  %vm4247_vm7 = vcmp.gt.f32.partialorder %v4231_v46, 0.0  ;;  %v9914_v25 = vsel %vm93_vm2, %v3938_v60, -1e+30  ;;  %vm3905_vm1 = vcmp.gt.f32.partialorder %v3889_v33, 0.0 }
 0x97c   :  { %v9827_v18 = vpop.permute.xlu1 %4536  ;;  %v3921_v0 = vmul.f32 0.2, %v3889_v33  ;;  %v4262_v37 = vmul.f32 0.2, %v4230_v7  ;;  %v4578_v27 = vadd.f32 %v9812_v4, %v9819_v17  ;;  %v9938_v17 = vsel %vm88_vm8, %v3933_v61, -1e+30 }
 0x97d   :  { %v4279_v53 = vsel %vm4247_vm7, %v4231_v46, %v4263_v29  ;;  %vm11209_vm7 = vcmp.gt.f32.partialorder %v11208_v8, 0.0  ;;  %v3924_v36 = vmul.f32 0.2, %v3892_v24  ;;  %vm3908_vm9 = vcmp.gt.f32.partialorder %v3892_v24, 0.0 }
 0x97e   :  { %v9834_v28 = vpop.permute.xlu0 %4175  ;;  %3622 = vmax.xlane.f32.xlu0 %v9831_v11  ;;  %v9922_v34 = vsel %vm89_vm5, %v4279_v53, -1e+30  ;;  %v3937_v16 = vsel %vm3905_vm1, %v3889_v33, %v3921_v0  ;;  %vm4246_vm5 = vcmp.gt.f32.partialorder %v4230_v7, 0.0  ;;  %v4610_v59 = vmul.f32 0.2, %v4578_v27  ;;  %vm11210_vm1 = vmmov %vm11209_vm7 }
 0x97f   :  { %v4233_v46 = vadd.f32 %v9868_v51, %v9834_v28  ;;  %v9945_v23 = vsel %vm11209_vm7, %v3937_v16, -1e+30  ;;  %v3940_v0 = vsel %vm3908_vm9, %v3892_v24, %v3924_v36 }
 0x981   :  { %v9837_v58 = vpop.permute.xlu1 %4191 }
 0x982   :  { %4655 = vmax.xlane.f32.xlu0 %v9841_v31  ;;  %v4237_v19 = vadd.f32 %v9868_v51, %v9837_v58 }
 0x983   :  { %v3827_v47 = vpop.permute.xlu0 %3826 }
 0x984   :  { %v3887_v42 = vadd.f32 %v9790_v40, %v3827_v47 }
 0x986   :  { %v9851_v15 = vpop.permute.xlu1 %4532  ;;  %3620 = vmax.xlane.f32.xlu0 %v9848_v57  ;;  %v3919_v2 = vmul.f32 0.2, %v3887_v42  ;;  %vm3903_vm13 = vcmp.gt.f32.partialorder %v3887_v42, 0.0 }
 0x988   :  { %v9854_v56 = vpop.permute.xlu0 %4516  ;;  %v3935_v10 = vsel %vm3903_vm13, %v3887_v42, %v3919_v2  ;;  %vm3561_vm13 = vcmp.gt.f32.partialorder %v3545_v55, 0.0 }
 0x989   :  { %v9887_v52 = vsel %vm90_vm14, %v3935_v10, -1e+30  ;;  %v3593_v38 = vsel %vm3561_vm13, %v3545_v55, %v3577_v22  ;;  %v4278_v55 = vsel %vm4246_vm5, %v4230_v7, %v4262_v37  ;;  %vm4594_vm13 = vcmp.gt.f32.partialorder %v4578_v27, 0.0  ;;  %v11211_v37 = vld [vmem:[#allocation9_spill] sm:$0xff] }
 0x98a   :  { %3971 = vmax.xlane.f32.xlu0 %v9858_v63  ;;  %v9929_v2 = vsel %vm93_vm2, %v3593_v38, -1e+30  ;;  %v9953_v28 = vsel %vm88_vm8, %v4278_v55, -1e+30  ;;  %v4265_v22 = vmul.f32 0.2, %v4233_v46  ;;  %v4577_v33 = vadd.f32 %v9812_v4, %v9854_v56 }
 0x98b   :  { %v9863_v35 = vpop.permute.xlu1 %3488  ;;  %v4626_v26 = vsel %vm4594_vm13, %v4578_v27, %v4610_v59  ;;  %vm4249_vm8 = vcmp.gt.f32.partialorder %v4233_v46, 0.0 }
 0x98c   :  { %v9968_v56 = vsel %vm91_vm11, %v4626_v26, -1e+30  ;;  %v4281_v61 = vsel %vm4249_vm8, %v4233_v46, %v4265_v22  ;;  %v3546_v24 = vadd.f32 %v9803_v12, %v9863_v35  ;;  %vm4593_vm7 = vcmp.gt.f32.partialorder %v4577_v33, 0.0 }
 0x98d   :  { %v9872_v9 = vpop.permute.xlu0 %4171  ;;  %v4235_v26 = vadd.f32 %v9868_v51, %v9781_v41 }
 0x98e   :  { %3626 = vmax.xlane.f32.xlu0 %v9876_v13  ;;  %v4232_v38 = vadd.f32 %v9868_v51, %v9872_v9  ;;  %v9984_v9 = vsel %vm91_vm11, %v4281_v61, -1e+30  ;;  %v3578_v36 = vmul.f32 0.2, %v3546_v24 }
 0x990   :  { %v9881_v5 = vpop.permute.xlu1 %4544  ;;  %v4264_v59 = vmul.f32 0.2, %v4232_v38  ;;  %vm4248_vm11 = vcmp.gt.f32.partialorder %v4232_v38, 0.0 }
 0x992   :  { %v9891_v30 = vpop.permute.xlu0 %4528  ;;  %3969 = vmax.xlane.f32.xlu0 %v9887_v52  ;;  %v4280_v61 = vsel %vm4248_vm11, %v4232_v38, %v4264_v59 }
 0x993   :  { %v4580_v55 = vadd.f32 %v9812_v4, %v9891_v30  ;;  %v10017_v41 = vsel %vm90_vm14, %v4280_v61, -1e+30 }
 0x995   :  { %v9896_v1 = vpop.permute.xlu1 %3503 }
 0x996   :  { %3624 = vmax.xlane.f32.xlu0 %v9900_v44 }
 0x997   :  { %v3479_v50 = vpop.permute.xlu0 %3478 }
 0x998   :  { %v3544_v32 = vadd.f32 %v9803_v12, %v3479_v50 }
 0x999   :  { %4657 = vmax.xlane.f32.xlu1 %v9907_v14 }
 0x99a   :  { %v9917_v47 = vpop.permute.xlu1 %3850  ;;  %3975 = vmax.xlane.f32.xlu0 %v9914_v25  ;;  %v3576_v43 = vmul.f32 0.2, %v3544_v32  ;;  %vm3560_vm3 = vcmp.gt.f32.partialorder %v3544_v32, 0.0 }
 0x99b   :  { %v3494_v42 = vpop.permute.xlu0 %3493  ;;  %v3893_v59 = vadd.f32 %v9790_v40, %v9917_v47 }
 0x99c   :  { %v3547_v29 = vadd.f32 %v9803_v12, %v3494_v42  ;;  %v3592_v49 = vsel %vm3560_vm3, %v3544_v32, %v3576_v43  ;;  %v4609_v32 = vmul.f32 0.2, %v4577_v33  ;;  %vm11212_vm3 = vcmp.gt.f32.partialorder %v11211_v37, 0.0 }
 0x99d   :  { %4312 = vmax.xlane.f32.xlu1 %v9922_v34  ;;  %v9962_v50 = vsel %vm11210_vm1, %v3592_v49, -1e+30  ;;  %v9977_v27 = vsel %vm11212_vm3, %v3940_v0, -1e+30  ;;  %vm11214_vm9 = vmmov %vm11212_vm3  ;;  %vm3562_vm1 = vcmp.gt.f32.partialorder %v3546_v24, 0.0 }
 0x99e   :  { %3630 = vmax.xlane.f32.xlu0 %v9929_v2  ;;  %v3579_v7 = vmul.f32 0.2, %v3547_v29  ;;  %vm3563_vm5 = vcmp.gt.f32.partialorder %v3547_v29, 0.0  ;;  %11213 = vst [vmem:[#allocation47_spill] sm:$0xff] %v9977_v27  ;;  %v4625_v46 = vsel %vm4593_vm7, %v4577_v33, %v4609_v32  ;;  %v11216_v33 = vld [vmem:[#allocation8_spill] sm:$0xff] }
 0x99f   :  { %v9934_v54 = vpop.permute.xlu1 %3498  ;;  %v9999_v30 = vsel %vm90_vm14, %v4625_v46, -1e+30  ;;  %vm11217_vm8 = vcmp.gt.f32.partialorder %v11216_v33, 0.0  ;;  %v4267_v46 = vmul.f32 0.2, %v4235_v26  ;;  %vm4251_vm14 = vcmp.gt.f32.partialorder %v4235_v26, 0.0 }
 0x9a0   :  { %v3843_v10 = vpop.permute.xlu0 %3842  ;;  %v3595_v16 = vsel %vm3563_vm5, %v3547_v29, %v3579_v7  ;;  %v4612_v7 = vmul.f32 0.2, %v4580_v55  ;;  %vm4596_vm5 = vcmp.gt.f32.partialorder %v4580_v55, 0.0  ;;  %vm11219_vm7 = vmmov %vm11217_vm8 }
 0x9a1   :  { %3965 = vmax.xlane.f32.xlu1 %v9938_v17  ;;  %v3891_v53 = vadd.f32 %v9790_v40, %v3843_v10  ;;  %v9991_v35 = vsel %vm11214_vm9, %v3595_v16, -1e+30  ;;  %v3594_v16 = vsel %vm3562_vm1, %v3546_v24, %v3578_v36  ;;  %vm3909_vm1 = vcmp.gt.f32.partialorder %v3893_v59, 0.0 }
 0x9a2   :  { %3973 = vmax.xlane.f32.xlu0 %v9945_v23  ;;  %11215 = vst [vmem:[#allocation48_spill] sm:$0xff] %v9991_v35  ;;  %v4628_v38 = vsel %vm4596_vm5, %v4580_v55, %v4612_v7  ;;  %v4234_v55 = vadd.f32 %v9868_v51, %v9807_v62  ;;  %v11221_v7 = vld [vmem:[#allocation11_spill] sm:$0xff] }
 0x9a3   :  { %v3923_v43 = vmul.f32 0.2, %v3891_v53  ;;  %vm3907_vm13 = vcmp.gt.f32.partialorder %v3891_v53, 0.0  ;;  %vm11222_vm9 = vcmp.gt.f32.partialorder %v11221_v7, 0.0 }
 0x9a4   :  { %v9949_v48 = vpop.permute.xlu1 %4195  ;;  %v4266_v62 = vmul.f32 0.2, %v4234_v55 }
 0x9a5   :  { %v9957_v60 = vpop.permute.xlu0 %4187  ;;  %4310 = vmax.xlane.f32.xlu1 %v9953_v28  ;;  %v3939_v22 = vsel %vm3907_vm13, %v3891_v53, %v3923_v43  ;;  %v3549_v53 = vadd.f32 %v9803_v12, %v9896_v1  ;;  %v10024_v1 = vsel %vm11219_vm7, %v3594_v16, -1e+30  ;;  %v3548_v16 = vadd.f32 %v9803_v12, %v9934_v54 }
 0x9a6   :  { %3628 = vmax.xlane.f32.xlu0 %v9962_v50  ;;  %v10008_v32 = vsel %vm11217_vm8, %v3939_v22, -1e+30  ;;  %v4579_v22 = vadd.f32 %v9812_v4, %v9794_v3  ;;  %11220 = vst [vmem:[#allocation19_spill] sm:$0xff] %v10024_v1  ;;  %v10033_v3 = vsel %vm93_vm2, %v4628_v38, -1e+30  ;;  %vm11224_vm8 = vmmov %vm11222_vm9 }
 0x9a7   :  { %11218 = vst [vmem:[#allocation49_spill] sm:$0xff] %v10008_v32  ;;  %v3581_v24 = vmul.f32 0.2, %v3549_v53  ;;  %vm3565_vm13 = vcmp.gt.f32.partialorder %v3549_v53, 0.0  ;;  %vm3564_vm5 = vcmp.gt.f32.partialorder %v3548_v16, 0.0 }
 0x9a8   :  { %vm4595_vm11 = vcmp.gt.f32.partialorder %v4579_v22, 0.0 }
 0x9a9   :  { %v9972_v42 = vpop.permute.xlu1 %3862  ;;  %4661 = vmax.xlane.f32.xlu1 %v9968_v56 }
 0x9aa   :  { %3979 = vmax.xlane.f32.xlu0 %v9977_v27  ;;  %v3855_v10 = vpop.permute.xlu0 %3854  ;;  %v4582_v27 = vadd.f32 %v9812_v4, %v9827_v18 }
 0x9ab   :  { %v3894_v29 = vadd.f32 %v9790_v40, %v3855_v10 }
 0x9ad   :  { %4316 = vmax.xlane.f32.xlu1 %v9984_v9  ;;  %v3926_v43 = vmul.f32 0.2, %v3894_v29  ;;  %vm3910_vm3 = vcmp.gt.f32.partialorder %v3894_v29, 0.0 }
 0x9ae   :  { %v9994_v49 = vpop.permute.xlu1 %3513  ;;  %3634 = vmax.xlane.f32.xlu0 %v9991_v35  ;;  %v4611_v35 = vmul.f32 0.2, %v4579_v22 }
 0x9af   :  { %v10003_v0 = vpop.permute.xlu0 %4199  ;;  %v3942_v36 = vsel %vm3910_vm3, %v3894_v29, %v3926_v43  ;;  %v4283_v29 = vsel %vm4251_vm14, %v4235_v26, %v4267_v46  ;;  %v3925_v43 = vmul.f32 0.2, %v3893_v59  ;;  %v3580_v46 = vmul.f32 0.2, %v3548_v16 }
 0x9b0   :  { %v10040_v47 = vsel %vm11222_vm9, %v3942_v36, -1e+30  ;;  %v10047_v38 = vsel %vm93_vm2, %v4283_v29, -1e+30  ;;  %vm4250_vm2 = vcmp.gt.f32.partialorder %v4234_v55, 0.0  ;;  %vm11226_vm3 = vcmp.gt.f32.partialorder %v11208_v8, 0.0 }
 0x9b1   :  { %4659 = vmax.xlane.f32.xlu1 %v9999_v30  ;;  %11223 = vst [vmem:[#allocation21_spill] sm:$0xff] %v10040_v47  ;;  %v3941_v29 = vsel %vm3909_vm1, %v3893_v59, %v3925_v43  ;;  %v3551_v59 = vadd.f32 %v9803_v12, %v9994_v49  ;;  %vm4598_vm14 = vcmp.gt.f32.partialorder %v4582_v27, 0.0  ;;  %vm11231_vm9 = vmmov %vm11226_vm3  ;;  %vm4253_vm1 = vcmp.gt.f32.partialorder %v4237_v19, 0.0 }
 0x9b2   :  { %3977 = vmax.xlane.f32.xlu0 %v10008_v32  ;;  %v4236_v8 = vadd.f32 %v9868_v51, %v9957_v60 }
 0x9b3   :  { %v10013_v10 = vpop.permute.xlu1 %4207 }
 0x9b4   :  { %v10029_v61 = vpop.permute.xlu0 %4540 }
 0x9b5   :  { %4314 = vmax.xlane.f32.xlu1 %v10017_v41 }
 0x9b6   :  { %3632 = vmax.xlane.f32.xlu0 %v10024_v1  ;;  %v3597_v1 = vsel %vm3565_vm13, %v3549_v53, %v3581_v24  ;;  %v4627_v53 = vsel %vm4595_vm11, %v4579_v22, %v4611_v35  ;;  %v3896_v24 = vadd.f32 %v9790_v40, %v9972_v42  ;;  %v11228_v35 = vld [vmem:[#allocation10_spill] sm:$0xff]  ;;  %v4282_v42 = vsel %vm4250_vm2, %v4234_v55, %v4266_v62 }
 0x9b7   :  { %v10058_v54 = vsel %vm11224_vm8, %v3597_v1, -1e+30  ;;  %v10065_v18 = vsel %vm11226_vm3, %v4627_v53, -1e+30  ;;  %vm11229_vm7 = vcmp.gt.f32.partialorder %v11228_v35, 0.0  ;;  %v3596_v53 = vsel %vm3564_vm5, %v3548_v16, %v3580_v46 }
 0x9b8   :  { %v3859_v32 = vpop.permute.xlu1 %3858  ;;  %v10051_v36 = vpop.permute.xlu0 %4552  ;;  %11225 = vst [vmem:[#allocation32_spill] sm:$0xff] %v10058_v54  ;;  %11227 = vst [vmem:[#allocation20_spill] sm:$0xff] %v10065_v18  ;;  %v10072_v22 = vsel %vm11229_vm7, %v3941_v29, -1e+30  ;;  %v3928_v1 = vmul.f32 0.2, %v3896_v24  ;;  %v4581_v55 = vadd.f32 %v9812_v4, %v9851_v15 }
 0x9b9   :  { %4665 = vmax.xlane.f32.xlu1 %v10033_v3  ;;  %11230 = vst [vmem:[#allocation23_spill] sm:$0xff] %v10072_v22  ;;  %vm3912_vm13 = vcmp.gt.f32.partialorder %v3896_v24, 0.0  ;;  %v10081_v58 = vsel %vm11231_vm9, %v4282_v42, -1e+30  ;;  %vm11232_vm11 = vmmov %vm11229_vm7  ;;  %v3583_v29 = vmul.f32 0.2, %v3551_v59  ;;  %v3895_v16 = vadd.f32 %v9790_v40, %v3859_v32 }
 0x9ba   :  { %3983 = vmax.xlane.f32.xlu0 %v10040_v47  ;;  %v4614_v47 = vmul.f32 0.2, %v4582_v27  ;;  %v10088_v49 = vsel %vm11232_vm11, %v3596_v53, -1e+30  ;;  %v3944_v46 = vsel %vm3912_vm13, %v3896_v24, %v3928_v1  ;;  %vm3567_vm8 = vcmp.gt.f32.partialorder %v3551_v59, 0.0 }
 0x9bb   :  { %11233 = vst [vmem:[#allocation34_spill] sm:$0xff] %v10088_v49  ;;  %vm11234_vm2 = vcmp.gt.f32.partialorder %v11211_v37, 0.0  ;;  %v4613_v15 = vmul.f32 0.2, %v4581_v55  ;;  %v10101_v32 = vsel %vm99_vm0, %v3944_v46, -1e+30  ;;  %v4239_v37 = vadd.f32 %v9868_v51, %v10003_v0 }
 0x9bc   :  { %v4630_v62 = vsel %vm4598_vm14, %v4582_v27, %v4614_v47  ;;  %v11236_v27 = vld [vmem:[#allocation13_spill] sm:$0xff]  ;;  %11237 = vst [vmem:[#allocation26_spill] sm:$0xff] %v10101_v32  ;;  %v3927_v24 = vmul.f32 0.2, %v3895_v16  ;;  %vm4597_vm5 = vcmp.gt.f32.partialorder %v4581_v55, 0.0  ;;  %vm3911_vm3 = vcmp.gt.f32.partialorder %v3895_v16, 0.0  ;;  %vm11238_vm7 = vmmov %vm11234_vm2 }
 0x9bd   :  { %v10053_v26 = vpop.permute.xlu1 %4548  ;;  %4320 = vmax.xlane.f32.xlu1 %v10047_v38  ;;  %v4268_v46 = vmul.f32 0.2, %v4236_v8  ;;  %vm4252_vm14 = vcmp.gt.f32.partialorder %v4236_v8, 0.0  ;;  %vm11241_vm9 = vcmp.gt.f32.partialorder %v11216_v33, 0.0 }
 0x9be   :  { %3638 = vmax.xlane.f32.xlu0 %v10058_v54  ;;  %v3509_v54 = vpop.permute.xlu0 %3508 }
 0x9bf   :  { %v3550_v1 = vadd.f32 %v9803_v12, %v3509_v54  ;;  %v4629_v54 = vsel %vm4597_vm5, %v4581_v55, %v4613_v15  ;;  %v11243_v55 = vld [vmem:[#allocation12_spill] sm:$0xff] }
 0x9c1   :  { %4663 = vmax.xlane.f32.xlu1 %v10065_v18  ;;  %v4269_v18 = vmul.f32 0.2, %v4237_v19  ;;  %vm3566_vm13 = vcmp.gt.f32.partialorder %v3550_v1, 0.0 }
 0x9c2   :  { %v10076_v43 = vpop.permute.xlu1 %4203  ;;  %3981 = vmax.xlane.f32.xlu0 %v10072_v22  ;;  %v10094_v22 = vsel %vm11234_vm2, %v4630_v62, -1e+30  ;;  %v3524_v53 = vpop.permute.xlu0 %3523  ;;  %vm4255_vm2 = vcmp.gt.f32.partialorder %v4239_v37, 0.0 }
 0x9c3   :  { %11235 = vst [vmem:[#allocation22_spill] sm:$0xff] %v10094_v22  ;;  %v4285_v47 = vsel %vm4253_vm1, %v4237_v19, %v4269_v18  ;;  %v3582_v18 = vmul.f32 0.2, %v3550_v1  ;;  %v3553_v15 = vadd.f32 %v9803_v12, %v3524_v53 }
 0x9c4   :  { %v10109_v60 = vsel %vm11238_vm7, %v4285_v47, -1e+30 }
 0x9c5   :  { %4318 = vmax.xlane.f32.xlu1 %v10081_v58  ;;  %11239 = vst [vmem:[#allocation24_spill] sm:$0xff] %v10109_v60  ;;  %vm3569_vm5 = vcmp.gt.f32.partialorder %v3553_v15, 0.0 }
 0x9c6   :  { %3636 = vmax.xlane.f32.xlu0 %v10088_v49  ;;  %v3599_v49 = vsel %vm3567_vm8, %v3551_v59, %v3583_v29  ;;  %v3943_v29 = vsel %vm3911_vm3, %v3895_v16, %v3927_v24  ;;  %v3867_v47 = vpop.permute.xlu0 %3866  ;;  %v4284_v16 = vsel %vm4252_vm14, %v4236_v8, %v4268_v46  ;;  %vm11245_vm8 = vmmov %vm11241_vm9  ;;  %vm11247_vm3 = vcmp.gt.f32.partialorder %v11221_v7, 0.0 }
 0x9c7   :  { %v3871_v42 = vpop.permute.xlu1 %3870  ;;  %v10116_v19 = vsel %vm99_vm0, %v3599_v49, -1e+30  ;;  %v10137_v0 = vsel %vm11245_vm8, %v4284_v16, -1e+30  ;;  %v3897_v46 = vadd.f32 %v9790_v40, %v3867_v47  ;;  %v4238_v16 = vadd.f32 %v9868_v51, %v9949_v48 }
 0x9c8   :  { %11240 = vst [vmem:[#allocation28_spill] sm:$0xff] %v10116_v19  ;;  %v3898_v59 = vadd.f32 %v9790_v40, %v3871_v42  ;;  %v10131_v42 = vsel %vm98_vm15, %v3943_v29, -1e+30 }
 0x9c9   :  { %4669 = vmax.xlane.f32.xlu1 %v10094_v22  ;;  %v4584_v22 = vadd.f32 %v9812_v4, %v9881_v5  ;;  %v10122_v5 = vsel %vm11241_vm9, %v4629_v54, -1e+30  ;;  %11244 = vst [vmem:[#allocation29_spill] sm:$0xff] %v10131_v42  ;;  %v3598_v54 = vsel %vm3566_vm13, %v3550_v1, %v3582_v18  ;;  %v3585_v1 = vmul.f32 0.2, %v3553_v15  ;;  %vm11250_vm13 = vmmov %vm11247_vm3 }
 0x9ca   :  { %3987 = vmax.xlane.f32.xlu0 %v10101_v32  ;;  %11242 = vst [vmem:[#allocation25_spill] sm:$0xff] %v10122_v5  ;;  %v3930_v24 = vmul.f32 0.2, %v3898_v59  ;;  %vm3914_vm1 = vcmp.gt.f32.partialorder %v3898_v59, 0.0  ;;  %v10146_v8 = vsel %vm98_vm15, %v3598_v54, -1e+30 }
 0x9cb   :  { %v4616_v32 = vmul.f32 0.2, %v4584_v22  ;;  %vm4600_vm11 = vcmp.gt.f32.partialorder %v4584_v22, 0.0  ;;  %11246 = vst [vmem:[#allocation27_spill] sm:$0xff] %v10146_v8  ;;  %vm3913_vm14 = vcmp.gt.f32.partialorder %v3897_v46, 0.0  ;;  %vm4254_vm9 = vcmp.gt.f32.partialorder %v4238_v16, 0.0 }
 0x9cc   :  { %v10105_v62 = vpop.permute.xlu1 %4560  ;;  %v3946_v29 = vsel %vm3914_vm1, %v3898_v59, %v3930_v24  ;;  %v3601_v59 = vsel %vm3569_vm5, %v3553_v15, %v3585_v1  ;;  %vm11252_vm1 = vcmp.gt.f32.partialorder %v11228_v35, 0.0 }
 0x9cd   :  { %4324 = vmax.xlane.f32.xlu1 %v10109_v60  ;;  %v10141_v60 = vpop.permute.xlu0 %4211  ;;  %v4632_v53 = vsel %vm4600_vm11, %v4584_v22, %v4616_v32  ;;  %v11248_v22 = vld [vmem:[#allocation15_spill] sm:$0xff]  ;;  %v10161_v32 = vsel %vm101_vm10, %v3946_v29, -1e+30  ;;  %v4270_v29 = vmul.f32 0.2, %v4238_v16  ;;  %vm11256_vm5 = vmmov %vm11252_vm1 }
 0x9ce   :  { %3642 = vmax.xlane.f32.xlu0 %v10116_v19  ;;  %v4271_v19 = vmul.f32 0.2, %v4239_v37  ;;  %11249 = vst [vmem:[#allocation33_spill] sm:$0xff] %v10161_v32 }
 0x9d0   :  { %v4287_v47 = vsel %vm4255_vm2, %v4239_v37, %v4271_v19  ;;  %v10174_v37 = vsel %vm101_vm10, %v3601_v59, -1e+30  ;;  %v4241_v59 = vadd.f32 %v9868_v51, %v10013_v10 }
 0x9d1   :  { %v10126_v49 = vpop.permute.xlu1 %4215  ;;  %4667 = vmax.xlane.f32.xlu1 %v10122_v5  ;;  %v4583_v5 = vadd.f32 %v9812_v4, %v10029_v61  ;;  %v10154_v61 = vsel %vm11247_vm3, %v4632_v53, -1e+30  ;;  %v3879_v24 = vpop.permute.xlu0 %3878  ;;  %v4586_v53 = vadd.f32 %v9812_v4, %v10051_v36  ;;  %v10169_v33 = vsel %vm11250_vm13, %v4287_v47, -1e+30  ;;  %11251 = vst [vmem:[#allocation30_spill] sm:$0xff] %v10174_v37 }
 0x9d2   :  { %3985 = vmax.xlane.f32.xlu0 %v10131_v42  ;;  %v3929_v42 = vmul.f32 0.2, %v3897_v46  ;;  %v3900_v15 = vadd.f32 %v9790_v40, %v3879_v24  ;;  %v4286_v24 = vsel %vm4254_vm9, %v4238_v16, %v4270_v29  ;;  %v4273_v7 = vmul.f32 0.2, %v4241_v59 }
 0x9d3   :  { %v4615_v54 = vmul.f32 0.2, %v4583_v5  ;;  %vm4599_vm7 = vcmp.gt.f32.partialorder %v4583_v5, 0.0  ;;  %vm4602_vm8 = vcmp.gt.f32.partialorder %v4586_v53, 0.0  ;;  %vm4257_vm3 = vcmp.gt.f32.partialorder %v4241_v59, 0.0 }
 0x9d4   :  { %v3945_v36 = vsel %vm3913_vm14, %v3897_v46, %v3929_v42  ;;  %v3932_v42 = vmul.f32 0.2, %v3900_v15  ;;  %vm3916_vm2 = vcmp.gt.f32.partialorder %v3900_v15, 0.0 }
 0x9d5   :  { %4322 = vmax.xlane.f32.xlu1 %v10137_v0  ;;  %v4631_v19 = vsel %vm4599_vm7, %v4583_v5, %v4615_v54  ;;  %v10189_v54 = vsel %vm100_vm12, %v3945_v36, -1e+30 }
 0x9d6   :  { %v10149_v18 = vpop.permute.xlu1 %4556  ;;  %3640 = vmax.xlane.f32.xlu0 %v10146_v8  ;;  %v10182_v47 = vsel %vm11252_vm1, %v4631_v19, -1e+30  ;;  %11255 = vst [vmem:[#allocation31_spill] sm:$0xff] %v10189_v54  ;;  %v4585_v19 = vadd.f32 %v9812_v4, %v10053_v26 }
 0x9d7   :  { %11253 = vst [vmem:[#allocation35_spill] sm:$0xff] %v10182_v47 }
 0x9d8   :  { %vm4601_vm14 = vcmp.gt.f32.partialorder %v4585_v19, 0.0 }
 0x9d9   :  { %4673 = vmax.xlane.f32.xlu1 %v10154_v61 }
 0x9da   :  { %3991 = vmax.xlane.f32.xlu0 %v10161_v32 }
 0x9db   :  { %v3519_v8 = vpop.permute.xlu1 %3518 }
 0x9dc   :  { %v3552_v48 = vadd.f32 %v9803_v12, %v3519_v8  ;;  %v4618_v8 = vmul.f32 0.2, %v4586_v53 }
 0x9dd   :  { %4328 = vmax.xlane.f32.xlu1 %v10169_v33 }
 0x9de   :  { %v3584_v1 = vmul.f32 0.2, %v3552_v48  ;;  %3646 = vmax.xlane.f32.xlu0 %v10174_v37  ;;  %vm3568_vm11 = vcmp.gt.f32.partialorder %v3552_v48, 0.0  ;;  %v10196_v37 = vsel %vm11256_vm5, %v4286_v24, -1e+30  ;;  %v4634_v10 = vsel %vm4602_vm8, %v4586_v53, %v4618_v8 }
 0x9df   :  { %v10207_v26 = vsel %vm99_vm0, %v4634_v10, -1e+30  ;;  %v4240_v53 = vadd.f32 %v9868_v51, %v10076_v43 }
 0x9e0   :  { %v10178_v32 = vpop.permute.xlu1 %4568  ;;  %v3600_v46 = vsel %vm3568_vm11, %v3552_v48, %v3584_v1  ;;  %v3948_v48 = vsel %vm3916_vm2, %v3900_v15, %v3932_v42  ;;  %v4617_v1 = vmul.f32 0.2, %v4585_v19 }
 0x9e1   :  { %4671 = vmax.xlane.f32.xlu1 %v10182_v47  ;;  %v10201_v16 = vsel %vm100_vm12, %v3600_v46, -1e+30  ;;  %v10214_v24 = vsel %vm103_vm6, %v3948_v48, -1e+30  ;;  %v4272_v10 = vmul.f32 0.2, %v4240_v53 }
 0x9e2   :  { %3989 = vmax.xlane.f32.xlu0 %v10189_v54  ;;  %11257 = vst [vmem:[#allocation37_spill] sm:$0xff] %v10201_v16  ;;  %v4588_v54 = vadd.f32 %v9812_v4, %v10105_v62  ;;  %vm4256_vm9 = vcmp.gt.f32.partialorder %v4240_v53, 0.0 }
 0x9e4   :  { %vm4604_vm11 = vcmp.gt.f32.partialorder %v4588_v54, 0.0 }
 0x9e5   :  { %v3534_v47 = vpop.permute.xlu1 %3533  ;;  %4326 = vmax.xlane.f32.xlu1 %v10196_v37 }
 0x9e6   :  { %v3555_v29 = vadd.f32 %v9803_v12, %v3534_v47  ;;  %3644 = vmax.xlane.f32.xlu0 %v10201_v16  ;;  %v4289_v47 = vsel %vm4257_vm3, %v4241_v59, %v4273_v7  ;;  %v4633_v16 = vsel %vm4601_vm14, %v4585_v19, %v4617_v1  ;;  %v4620_v1 = vmul.f32 0.2, %v4588_v54 }
 0x9e7   :  { %v10220_v43 = vsel %vm99_vm0, %v4289_v47, -1e+30  ;;  %v10233_v19 = vsel %vm98_vm15, %v4633_v16, -1e+30  ;;  %v4288_v47 = vsel %vm4256_vm9, %v4240_v53, %v4272_v10  ;;  %v4242_v10 = vadd.f32 %v9868_v51, %v10141_v60 }
 0x9e8   :  { %v3587_v36 = vmul.f32 0.2, %v3555_v29  ;;  %vm3571_vm7 = vcmp.gt.f32.partialorder %v3555_v29, 0.0  ;;  %v4636_v53 = vsel %vm4604_vm11, %v4588_v54, %v4620_v1  ;;  %v4590_v1 = vadd.f32 %v9812_v4, %v10178_v32 }
 0x9e9   :  { %4677 = vmax.xlane.f32.xlu1 %v10207_v26  ;;  %v4274_v54 = vmul.f32 0.2, %v4242_v10  ;;  %vm4258_vm8 = vcmp.gt.f32.partialorder %v4242_v10, 0.0 }
 0x9ea   :  { %3995 = vmax.xlane.f32.xlu0 %v10214_v24  ;;  %v3875_v15 = vpop.permute.xlu1 %3874  ;;  %v3603_v42 = vsel %vm3571_vm7, %v3555_v29, %v3587_v36  ;;  %v4243_v36 = vadd.f32 %v9868_v51, %v10126_v49 }
 0x9eb   :  { %v3899_v46 = vadd.f32 %v9790_v40, %v3875_v15  ;;  %v10227_v7 = vsel %vm103_vm6, %v3603_v42, -1e+30  ;;  %v4587_v42 = vadd.f32 %v9812_v4, %v10149_v18 }
 0x9ec   :  { %11259 = vst [vmem:[#allocation41_spill] sm:$0xff] %v10227_v7  ;;  %v4275_v16 = vmul.f32 0.2, %v4243_v36  ;;  %vm4259_vm1 = vcmp.gt.f32.partialorder %v4243_v36, 0.0 }
 0x9ed   :  { %v3931_v35 = vmul.f32 0.2, %v3899_v46  ;;  %4332 = vmax.xlane.f32.xlu1 %v10220_v43  ;;  %vm3915_vm13 = vcmp.gt.f32.partialorder %v3899_v46, 0.0 }
 0x9ee   :  { %3650 = vmax.xlane.f32.xlu0 %v10227_v7  ;;  %v4291_v18 = vsel %vm4259_vm1, %v4243_v36, %v4275_v16 }
 0x9ef   :  { %v3529_v40 = vpop.permute.xlu1 %3528  ;;  %v3947_v59 = vsel %vm3915_vm13, %v3899_v46, %v3931_v35  ;;  %v10257_v46 = vsel %vm101_vm10, %v4636_v53, -1e+30 }
 0x9f0   :  { %v3554_v29 = vadd.f32 %v9803_v12, %v3529_v40  ;;  %v10237_v48 = vsel %vm102_vm4, %v3947_v59, -1e+30  ;;  %v10245_v12 = vsel %vm98_vm15, %v4288_v47, -1e+30  ;;  %v4619_v40 = vmul.f32 0.2, %v4587_v42  ;;  %v4224_v59 = vpop.permute.xlu0 %4223 }
 0x9f1   :  { %4675 = vmax.xlane.f32.xlu1 %v10233_v19  ;;  %vm4603_vm15 = vcmp.gt.f32.partialorder %v4587_v42, 0.0  ;;  %v4245_v36 = vadd.f32 %v9868_v51, %v4224_v59 }
 0x9f2   :  { %v3586_v15 = vmul.f32 0.2, %v3554_v29  ;;  %3993 = vmax.xlane.f32.xlu0 %v10237_v48  ;;  %vm3570_vm0 = vcmp.gt.f32.partialorder %v3554_v29, 0.0  ;;  %v4635_v47 = vsel %vm4603_vm15, %v4587_v42, %v4619_v40 }
 0x9f3   :  { %v10271_v60 = vsel %vm100_vm12, %v4635_v47, -1e+30  ;;  %v4277_v32 = vmul.f32 0.2, %v4245_v36  ;;  %vm4261_vm2 = vcmp.gt.f32.partialorder %v4245_v36, 0.0 }
 0x9f4   :  { %v3602_v35 = vsel %vm3570_vm0, %v3554_v29, %v3586_v15  ;;  %v10264_v29 = vsel %vm101_vm10, %v4291_v18, -1e+30  ;;  %v4622_v15 = vmul.f32 0.2, %v4590_v1  ;;  %v4565_v16 = vpop.permute.xlu0 %4564  ;;  %vm4606_vm10 = vcmp.gt.f32.partialorder %v4590_v1, 0.0  ;;  %v4220_v18 = vpop.permute.xlu1 %4219 }
 0x9f5   :  { %4330 = vmax.xlane.f32.xlu1 %v10245_v12  ;;  %v10252_v49 = vsel %vm102_vm4, %v3602_v35, -1e+30  ;;  %v4290_v35 = vsel %vm4258_vm8, %v4242_v10, %v4274_v54  ;;  %v4589_v42 = vadd.f32 %v9812_v4, %v4565_v16  ;;  %v4244_v5 = vadd.f32 %v9868_v51, %v4220_v18 }
 0x9f6   :  { %3648 = vmax.xlane.f32.xlu0 %v10252_v49  ;;  %v10277_v53 = vsel %vm100_vm12, %v4290_v35, -1e+30  ;;  %v4638_v40 = vsel %vm4606_vm10, %v4590_v1, %v4622_v15  ;;  %v4293_v35 = vsel %vm4261_vm2, %v4245_v36, %v4277_v32 }
 0x9f7   :  { %v10284_v10 = vsel %vm103_vm6, %v4638_v40, -1e+30  ;;  %v4621_v54 = vmul.f32 0.2, %v4589_v42  ;;  %vm4605_vm12 = vcmp.gt.f32.partialorder %v4589_v42, 0.0  ;;  %vm4260_vm5 = vcmp.gt.f32.partialorder %v4244_v5, 0.0 }
 0x9f8   :  { %v10291_v15 = vsel %vm103_vm6, %v4293_v35, -1e+30  ;;  %vm5157_vm6 = vcmask 523264  }
 0x9f9   :  { %4681 = vmax.xlane.f32.xlu1 %v10257_v46  ;;  %11261 = vst [vmem:[#allocation36_spill] sm:$0xff] %v10291_v15  ;;  %v4637_v16 = vsel %vm4605_vm12, %v4589_v42, %v4621_v54 }
 0x9fa   :  { %v10296_v36 = vsel %vm102_vm4, %v4637_v16, -1e+30 }
 0x9fd   :  { %4336 = vmax.xlane.f32.xlu1 %v10264_v29 }
 0xa01   :  { %4679 = vmax.xlane.f32.xlu1 %v10271_v60 }
 0xa05   :  { %4334 = vmax.xlane.f32.xlu1 %v10277_v53 }
 0xa07   :  { %v3968_v47 = vpop.xlane.xlu0 %3967 }
 0xa08   :  { %v3998_v59 = vsub.f32 %v9823_v20, %v3968_v47  ;;  %v4276_v20 = vmul.f32 0.2, %v4244_v5 }
 0xa09   :  { %4685 = vmax.xlane.f32.xlu1 %v10284_v10 }
 0xa0a   :  { %v4015_v7 = vmul.f32 1.442695, %v3998_v59 }
 0xa0b   :  { %v3623_v4 = vpop.xlane.xlu0 %3622 }
 0xa0c   :  { %7295 = vpow2.f32 %v4015_v7  ;;  %v3653_v1 = vsub.f32 %v9831_v11, %v3623_v4  ;;  %v4292_v7 = vsel %vm4260_vm5, %v4244_v5, %v4276_v20 }
 0xa0d   :  { %4340 = vmax.xlane.f32.xlu1 %v10291_v15  ;;  %v10301_v32 = vsel %vm102_vm4, %v4292_v7, -1e+30  ;;  %vm11346_vm4 = vcmask 130048  }
 0xa0e   :  { %v3670_v40 = vmul.f32 1.442695, %v3653_v1  ;;  %11262 = vst [vmem:[#allocation44_spill] sm:$0xff] %v10301_v32  ;;  %vm11347_vm3 = vmmov %vm11346_vm4 }
 0xa0f   :  { %v4656_v51 = vpop.xlane.xlu0 %4655  ;;  %vm11348_vm7 = vmmov %vm11347_vm3 }
 0xa10   :  { %7297 = vpow2.f32 %v3670_v40  ;;  %v4687_v40 = vsub.f32 %v9841_v31, %v4656_v51  ;;  %vm11349_vm14 = vmmov %vm11347_vm3 }
 0xa11   :  { %4683 = vmax.xlane.f32.xlu1 %v10296_v36  ;;  %vm11350_vm13 = vmmov %vm11347_vm3 }
 0xa12   :  { %vm11351_vm9 = vmmov %vm11347_vm3 }
 0xa13   :  { %v3621_v11 = vpop.xlane.xlu0 %3620  ;;  %vm11352_vm0 = vmmov %vm11347_vm3 }
 0xa14   :  { %vm11353_vm11 = vmmov %vm11352_vm0 }
 0xa15   :  { %4338 = vmax.xlane.f32.xlu1 %v10301_v32  ;;  %vm11354_vm1 = vmmov %vm11352_vm0 }
 0xa16   :  { %v7296_v18 = vpop.eup %7295  ;;  %vm11355_vm15 = vmmov %vm11352_vm0 }
 0xa17   :  { %v3972_v42 = vpop.xlane.xlu0 %3971  ;;  %v10305_v47 = vmul.f32 %v7296_v18, %v11202_v6  ;;  %vm11356_vm8 = vmmov %vm11352_vm0 }
 0xa18   :  { %v4000_v31 = vsub.f32 %v9858_v63, %v3972_v42  ;;  %vm11357_vm10 = vmmov %vm11352_vm0 }
 0xa19   :  { %11263 = vst [vmem:[#allocation39_spill] sm:$0xff] %v10305_v47  ;;  %4063 = vadd.xlane.f32.xlu0 %v10305_v47  ;;  %vm11358_vm2 = vmmov %vm11352_vm0 }
 0xa1a   :  { %v7298_v59 = vpop.eup %7297  ;;  %vm11359_vm12 = vmmov %vm11352_vm0 }
 0xa1b   :  { %v3627_v54 = vpop.xlane.xlu0 %3626  ;;  %v10309_v35 = vmul.f32 %v7298_v59, %v11202_v6  ;;  %v4703_v59 = vmul.f32 1.442695, %v4687_v40  ;;  %vm11360_vm5 = vmmov %vm11352_vm0 }
 0xa1d   :  { %11264 = vst [vmem:[#allocation43_spill] sm:$0xff] %v10309_v35  ;;  %3718 = vadd.xlane.f32.xlu0 %v10309_v35  ;;  %v3652_v35 = vsub.f32 %v9848_v57, %v3621_v11  ;;  %v4019_v57 = vmul.f32 1.442695, %v4000_v31 }
 0xa1f   :  { %v3970_v5 = vpop.xlane.xlu0 %3969 }
 0xa23   :  { %v10312_v4 = vpop.xlane.xlu0 %3624 }
 0xa26   :  { %v4658_v1 = vpop.xlane.xlu1 %4657 }
 0xa27   :  { %v4688_v20 = vsub.f32 %v9907_v14, %v4658_v1  ;;  %v10315_v16 = vpop.xlane.xlu0 %3975  ;;  %v3668_v1 = vmul.f32 1.442695, %v3652_v35 }
 0xa29   :  { %v4705_v7 = vmul.f32 1.442695, %v4688_v20 }
 0xa2a   :  { %v4313_v18 = vpop.xlane.xlu1 %4312 }
 0xa2b   :  { %7299 = vpow2.f32 %v4705_v7  ;;  %v4343_v47 = vsub.f32 %v9922_v34, %v4313_v18  ;;  %v10319_v62 = vpop.xlane.xlu0 %3630 }
 0xa2d   :  { %v4360_v8 = vmul.f32 1.442695, %v4343_v47  ;;  %v3999_v47 = vsub.f32 %v9887_v52, %v3970_v5 }
 0xa2e   :  { %v3966_v32 = vpop.xlane.xlu1 %3965 }
 0xa2f   :  { %7301 = vpow2.f32 %v4360_v8  ;;  %v3997_v15 = vsub.f32 %v9938_v17, %v3966_v32  ;;  %v10323_v14 = vpop.xlane.xlu0 %3973  ;;  %v3655_v8 = vsub.f32 %v9876_v13, %v3627_v54  ;;  %v4017_v31 = vmul.f32 1.442695, %v3999_v47 }
 0xa30   :  { %7303 = vpow2.f32 %v4703_v59 }
 0xa31   :  { %v4013_v51 = vmul.f32 1.442695, %v3997_v15  ;;  %v3674_v42 = vmul.f32 1.442695, %v3655_v8 }
 0xa32   :  { %v4311_v20 = vpop.xlane.xlu1 %4310 }
 0xa33   :  { %7305 = vpow2.f32 %v4013_v51  ;;  %v4342_v34 = vsub.f32 %v9953_v28, %v4311_v20  ;;  %v10327_v7 = vpop.xlane.xlu0 %3628  ;;  %v3654_v51 = vsub.f32 %v9900_v44, %v10312_v4  ;;  %v4002_v4 = vsub.f32 %v9914_v25, %v10315_v16 }
 0xa34   :  { %7307 = vpow2.f32 %v3668_v1  ;;  %v3657_v16 = vsub.f32 %v9929_v2, %v10319_v62  ;;  %v4001_v62 = vsub.f32 %v9945_v23, %v10323_v14  ;;  %v3656_v14 = vsub.f32 %v9962_v50, %v10327_v7  ;;  %v11266_v7 = vld [vmem:[#allocation47_spill] sm:$0xff] }
 0xa35   :  { %v7300_v40 = vpop.eup %7299  ;;  %v4358_v11 = vmul.f32 1.442695, %v4342_v34  ;;  %v3672_v44 = vmul.f32 1.442695, %v3654_v51  ;;  %v4023_v25 = vmul.f32 1.442695, %v4002_v4 }
 0xa36   :  { %v4662_v17 = vpop.xlane.xlu1 %4661  ;;  %v10331_v32 = vmul.f32 %v7300_v40, %v11202_v6  ;;  %v3678_v2 = vmul.f32 1.442695, %v3657_v16  ;;  %v4021_v23 = vmul.f32 1.442695, %v4001_v62  ;;  %v3676_v50 = vmul.f32 1.442695, %v3656_v14 }
 0xa37   :  { %7309 = vpow2.f32 %v4358_v11  ;;  %v4690_v63 = vsub.f32 %v9968_v56, %v4662_v17  ;;  %v10334_v15 = vpop.xlane.xlu0 %3979 }
 0xa38   :  { %4753 = vadd.xlane.f32.xlu1 %v10331_v32  ;;  %7311 = vpow2.f32 %v4019_v57  ;;  %v4004_v16 = vsub.f32 %v11266_v7, %v10334_v15 }
 0xa39   :  { %v7302_v28 = vpop.eup %7301  ;;  %v4709_v35 = vmul.f32 1.442695, %v4690_v63 }
 0xa3a   :  { %v4317_v18 = vpop.xlane.xlu1 %4316  ;;  %v10339_v13 = vmul.f32 %v7302_v28, %v11202_v6  ;;  %v7304_v54 = vpop.eup %7303  ;;  %v4027_v15 = vmul.f32 1.442695, %v4004_v16 }
 0xa3b   :  { %7313 = vpow2.f32 %v4709_v35  ;;  %v4345_v59 = vsub.f32 %v9984_v9, %v4317_v18  ;;  %v10342_v1 = vpop.xlane.xlu0 %3634  ;;  %v10348_v20 = vmul.f32 %v7304_v54, %v11203_v45 }
 0xa3c   :  { %4408 = vadd.xlane.f32.xlu1 %v10339_v13  ;;  %7315 = vpow2.f32 %v3674_v42 }
 0xa3d   :  { %v7306_v56 = vpop.eup %7305  ;;  %v4364_v52 = vmul.f32 1.442695, %v4345_v59 }
 0xa3e   :  { %v4660_v5 = vpop.xlane.xlu1 %4659  ;;  %v10351_v6 = vmul.f32 %v7306_v56, %v11203_v45  ;;  %v7308_v34 = vpop.eup %7307 }
 0xa3f   :  { %7317 = vpow2.f32 %v4364_v52  ;;  %v4689_v9 = vsub.f32 %v9999_v30, %v4660_v5  ;;  %v10354_v40 = vpop.xlane.xlu0 %3977  ;;  %v10361_v17 = vmul.f32 %v7308_v34, %v11203_v45 }
 0xa40   :  { %4751 = vadd.xlane.f32.xlu1 %v10348_v20  ;;  %4061 = vadd.xlane.f32.xlu0 %v10351_v6  ;;  %7319 = vpow2.f32 %v4017_v31 }
 0xa41   :  { %v7310_v57 = vpop.eup %7309  ;;  %v4707_v8 = vmul.f32 1.442695, %v4689_v9 }
 0xa42   :  { %v4315_v11 = vpop.xlane.xlu1 %4314  ;;  %v10364_v63 = vmul.f32 %v7310_v57, %v11203_v45  ;;  %v7312_v30 = vpop.eup %7311 }
 0xa43   :  { %7321 = vpow2.f32 %v4707_v8  ;;  %v4344_v28 = vsub.f32 %v10017_v41, %v4315_v11  ;;  %v10367_v42 = vpop.xlane.xlu0 %3632  ;;  %v10374_v45 = vmul.f32 %v7312_v30, %v11204_v21  ;;  %v11265_v30 = vld [vmem:[#allocation20_spill] sm:$0xff] }
 0xa44   :  { %3716 = vadd.xlane.f32.xlu0 %v10361_v17  ;;  %4406 = vadd.xlane.f32.xlu1 %v10364_v63  ;;  %7323 = vpow2.f32 %v3672_v44 }
 0xa45   :  { %v7314_v47 = vpop.eup %7313  ;;  %v4362_v35 = vmul.f32 1.442695, %v4344_v28 }
 0xa46   :  { %v4666_v18 = vpop.xlane.xlu1 %4665  ;;  %v10377_v54 = vmul.f32 %v7314_v47, %v11204_v21  ;;  %v7316_v41 = vpop.eup %7315 }
 0xa47   :  { %7325 = vpow2.f32 %v4362_v35  ;;  %v4692_v59 = vsub.f32 %v10033_v3, %v4666_v18  ;;  %v10380_v56 = vpop.xlane.xlu0 %3983  ;;  %v10387_v5 = vmul.f32 %v7316_v41, %v11204_v21 }
 0xa48   :  { %4067 = vadd.xlane.f32.xlu0 %v10374_v45  ;;  %4757 = vadd.xlane.f32.xlu1 %v10377_v54  ;;  %7327 = vpow2.f32 %v4023_v25 }
 0xa49   :  { %v7318_v31 = vpop.eup %7317  ;;  %v4713_v51 = vmul.f32 1.442695, %v4692_v59 }
 0xa4a   :  { %v4321_v52 = vpop.xlane.xlu1 %4320  ;;  %v10390_v34 = vmul.f32 %v7318_v31, %v11204_v21  ;;  %v7320_v3 = vpop.eup %7319 }
 0xa4b   :  { %7329 = vpow2.f32 %v4713_v51  ;;  %v4347_v9 = vsub.f32 %v10047_v38, %v4321_v52  ;;  %v10393_v57 = vpop.xlane.xlu0 %3638  ;;  %v10400_v21 = vmul.f32 %v7320_v3, %v11206_v39  ;;  %v11267_v52 = vld [vmem:[#allocation48_spill] sm:$0xff] }
 0xa4c   :  { %3722 = vadd.xlane.f32.xlu0 %v10387_v5  ;;  %4412 = vadd.xlane.f32.xlu1 %v10390_v34  ;;  %7331 = vpow2.f32 %v3678_v2  ;;  %v3659_v3 = vsub.f32 %v11267_v52, %v10342_v1  ;;  %v11272_v52 = vld [vmem:[#allocation19_spill] sm:$0xff] }
 0xa4d   :  { %v7322_v44 = vpop.eup %7321  ;;  %v4368_v4 = vmul.f32 1.442695, %v4347_v9 }
 0xa4e   :  { %v4664_v8 = vpop.xlane.xlu1 %4663  ;;  %v10403_v11 = vmul.f32 %v7322_v44, %v11206_v39  ;;  %v7324_v38 = vpop.eup %7323  ;;  %v3682_v1 = vmul.f32 1.442695, %v3659_v3  ;;  %v3658_v3 = vsub.f32 %v11272_v52, %v10367_v42 }
 0xa4f   :  { %7333 = vpow2.f32 %v4368_v4  ;;  %v4691_v28 = vsub.f32 %v11265_v30, %v4664_v8  ;;  %v10406_v47 = vpop.xlane.xlu0 %3981  ;;  %v10413_v41 = vmul.f32 %v7324_v38, %v11206_v39  ;;  %v11269_v4 = vld [vmem:[#allocation22_spill] sm:$0xff] }
 0xa50   :  { %4065 = vadd.xlane.f32.xlu0 %v10400_v21  ;;  %4755 = vadd.xlane.f32.xlu1 %v10403_v11  ;;  %7335 = vpow2.f32 %v4021_v23  ;;  %v3680_v42 = vmul.f32 1.442695, %v3658_v3 }
 0xa51   :  { %v7326_v25 = vpop.eup %7325  ;;  %v4711_v35 = vmul.f32 1.442695, %v4691_v28  ;;  %v11270_v28 = vld [vmem:[#allocation49_spill] sm:$0xff] }
 0xa52   :  { %v4319_v18 = vpop.xlane.xlu1 %4318  ;;  %v10416_v59 = vmul.f32 %v7326_v25, %v11206_v39  ;;  %v7328_v31 = vpop.eup %7327  ;;  %v11268_v39 = vld [vmem:[#allocation7_spill] sm:$0xff]  ;;  %v4003_v25 = vsub.f32 %v11270_v28, %v10354_v40 }
 0xa53   :  { %7337 = vpow2.f32 %v4711_v35  ;;  %v4346_v2 = vsub.f32 %v10081_v58, %v4319_v18  ;;  %v10419_v62 = vpop.xlane.xlu0 %3636  ;;  %v10426_v23 = vmul.f32 %v7328_v31, %v11268_v39  ;;  %v11271_v31 = vld [vmem:[#allocation24_spill] sm:$0xff] }
 0xa54   :  { %3720 = vadd.xlane.f32.xlu0 %v10413_v41  ;;  %4410 = vadd.xlane.f32.xlu1 %v10416_v59  ;;  %7339 = vpow2.f32 %v3676_v50  ;;  %v4025_v40 = vmul.f32 1.442695, %v4003_v25  ;;  %v11275_v25 = vld [vmem:[#allocation21_spill] sm:$0xff] }
 0xa55   :  { %v7330_v51 = vpop.eup %7329  ;;  %v4366_v9 = vmul.f32 1.442695, %v4346_v2 }
 0xa56   :  { %v4670_v44 = vpop.xlane.xlu1 %4669  ;;  %v10429_v14 = vmul.f32 %v7330_v51, %v11268_v39  ;;  %v7332_v58 = vpop.eup %7331 }
 0xa57   :  { %7341 = vpow2.f32 %v4366_v9  ;;  %v4694_v8 = vsub.f32 %v11269_v4, %v4670_v44  ;;  %v10432_v38 = vpop.xlane.xlu0 %3987  ;;  %v10439_v16 = vmul.f32 %v7332_v58, %v11268_v39 }
 0xa58   :  { %4071 = vadd.xlane.f32.xlu0 %v10426_v23  ;;  %4761 = vadd.xlane.f32.xlu1 %v10429_v14  ;;  %7343 = vpow2.f32 %v4027_v15 }
 0xa59   :  { %v7334_v30 = vpop.eup %7333  ;;  %v4717_v50 = vmul.f32 1.442695, %v4694_v8 }
 0xa5a   :  { %v4325_v7 = vpop.xlane.xlu1 %4324  ;;  %v10442_v35 = vmul.f32 %v7334_v30, %v11268_v39  ;;  %v7336_v18 = vpop.eup %7335  ;;  %v11273_v39 = vld [vmem:[#allocation6_spill] sm:$0xff]  ;;  %v11274_v30 = vld [vmem:[#allocation25_spill] sm:$0xff] }
 0xa5b   :  { %7345 = vpow2.f32 %v4717_v50  ;;  %v4349_v2 = vsub.f32 %v11271_v31, %v4325_v7  ;;  %v10445_v51 = vpop.xlane.xlu0 %3642  ;;  %v10452_v58 = vmul.f32 %v7336_v18, %v11273_v39  ;;  %v4006_v7 = vsub.f32 %v11275_v25, %v10380_v56  ;;  %v11276_v56 = vld [vmem:[#allocation32_spill] sm:$0xff] }
 0xa5c   :  { %3726 = vadd.xlane.f32.xlu0 %v10439_v16  ;;  %4416 = vadd.xlane.f32.xlu1 %v10442_v35  ;;  %7347 = vpow2.f32 %v3682_v1 }
 0xa5d   :  { %v7338_v15 = vpop.eup %7337  ;;  %v4372_v9 = vmul.f32 1.442695, %v4349_v2  ;;  %v4031_v3 = vmul.f32 1.442695, %v4006_v7  ;;  %v11280_v7 = vld [vmem:[#allocation23_spill] sm:$0xff] }
 0xa5e   :  { %v4668_v44 = vpop.xlane.xlu1 %4667  ;;  %v10455_v4 = vmul.f32 %v7338_v15, %v11273_v39  ;;  %v7340_v8 = vpop.eup %7339 }
 0xa5f   :  { %7349 = vpow2.f32 %v4372_v9  ;;  %v4693_v28 = vsub.f32 %v11274_v30, %v4668_v44  ;;  %v10458_v50 = vpop.xlane.xlu0 %3985  ;;  %v10465_v2 = vmul.f32 %v7340_v8, %v11273_v39  ;;  %v3661_v44 = vsub.f32 %v11276_v56, %v10393_v57 }
 0xa60   :  { %4069 = vadd.xlane.f32.xlu0 %v10452_v58  ;;  %4759 = vadd.xlane.f32.xlu1 %v10455_v4  ;;  %7351 = vpow2.f32 %v4025_v40 }
 0xa61   :  { %v7342_v1 = vpop.eup %7341  ;;  %v4715_v18 = vmul.f32 1.442695, %v4693_v28  ;;  %v3686_v57 = vmul.f32 1.442695, %v3661_v44  ;;  %v11283_v44 = vld [vmem:[#allocation34_spill] sm:$0xff] }
 0xa62   :  { %v4323_v31 = vpop.xlane.xlu1 %4322  ;;  %v10468_v15 = vmul.f32 %v7342_v1, %v11273_v39  ;;  %v7344_v52 = vpop.eup %7343  ;;  %v11277_v39 = vld [vmem:[#allocation9_spill] sm:$0xff] }
 0xa63   :  { %7353 = vpow2.f32 %v4715_v18  ;;  %v4348_v9 = vsub.f32 %v10137_v0, %v4323_v31  ;;  %v10475_v8 = vpop.xlane.xlu0 %3640  ;;  %v10478_v1 = vmul.f32 %v7344_v52, %v11277_v39  ;;  %v4005_v31 = vsub.f32 %v11280_v7, %v10406_v47 }
 0xa64   :  { %3724 = vadd.xlane.f32.xlu0 %v10465_v2  ;;  %4414 = vadd.xlane.f32.xlu1 %v10468_v15  ;;  %7355 = vpow2.f32 %v3680_v42 }
 0xa65   :  { %v7346_v40 = vpop.eup %7345  ;;  %v4370_v30 = vmul.f32 1.442695, %v4348_v9  ;;  %11278 = vst [vmem:[#allocation45_spill] sm:$0xff] %v10478_v1  ;;  %v4029_v47 = vmul.f32 1.442695, %v4005_v31 }
 0xa66   :  { %v4674_v28 = vpop.xlane.xlu1 %4673  ;;  %v10481_v25 = vmul.f32 %v7346_v40, %v11277_v39  ;;  %v7348_v0 = vpop.eup %7347 }
 0xa67   :  { %7357 = vpow2.f32 %v4370_v30  ;;  %v4696_v18 = vsub.f32 %v10154_v61, %v4674_v28  ;;  %v10489_v56 = vmul.f32 %v7348_v0, %v11277_v39  ;;  %v10495_v28 = vpop.xlane.xlu0 %3991  ;;  %v3660_v0 = vsub.f32 %v11283_v44, %v10419_v62  ;;  %v11286_v62 = vld [vmem:[#allocation26_spill] sm:$0xff] }
 0xa68   :  { %11279 = vst [vmem:[#allocation38_spill] sm:$0xff] %v10481_v25  ;;  %4075 = vadd.xlane.f32.xlu0 %v10478_v1  ;;  %4765 = vadd.xlane.f32.xlu1 %v10481_v25  ;;  %7359 = vpow2.f32 %v4031_v3  ;;  %v11288_v25 = vld [vmem:[#allocation11_spill] sm:$0xff] }
 0xa69   :  { %v7350_v42 = vpop.eup %7349  ;;  %v4721_v9 = vmul.f32 1.442695, %v4696_v18  ;;  %11281 = vst [vmem:[#allocation40_spill] sm:$0xff] %v10489_v56  ;;  %v3684_v31 = vmul.f32 1.442695, %v3660_v0 }
 0xa6a   :  { %v4329_v52 = vpop.xlane.xlu1 %4328  ;;  %v10492_v40 = vmul.f32 %v7350_v42, %v11277_v39  ;;  %v7352_v30 = vpop.eup %7351  ;;  %v11284_v39 = vld [vmem:[#allocation8_spill] sm:$0xff] }
 0xa6b   :  { %7361 = vpow2.f32 %v4721_v9  ;;  %v4351_v61 = vsub.f32 %v10169_v33, %v4329_v52  ;;  %v10502_v42 = vmul.f32 %v7352_v30, %v11284_v39  ;;  %v11285_v52 = vld [vmem:[#allocation35_spill] sm:$0xff]  ;;  %v10512_v30 = vpop.xlane.xlu0 %3646 }
 0xa6c   :  { %11282 = vst [vmem:[#allocation46_spill] sm:$0xff] %v10492_v40  ;;  %3730 = vadd.xlane.f32.xlu0 %v10489_v56  ;;  %4420 = vadd.xlane.f32.xlu1 %v10492_v40  ;;  %7363 = vpow2.f32 %v3686_v57 }
 0xa6d   :  { %v7354_v3 = vpop.eup %7353  ;;  %v4376_v18 = vmul.f32 1.442695, %v4351_v61  ;;  %v4008_v61 = vsub.f32 %v11286_v62, %v10432_v38 }
 0xa6e   :  { %v4672_v7 = vpop.xlane.xlu1 %4671  ;;  %v10505_v9 = vmul.f32 %v7354_v3, %v11284_v39  ;;  %v7356_v33 = vpop.eup %7355 }
 0xa6f   :  { %7365 = vpow2.f32 %v4376_v18  ;;  %v4695_v56 = vsub.f32 %v11285_v52, %v4672_v7  ;;  %v10515_v3 = vmul.f32 %v7356_v33, %v11284_v39  ;;  %v4035_v38 = vmul.f32 1.442695, %v4008_v61  ;;  %v11289_v61 = vld [vmem:[#allocation29_spill] sm:$0xff] }
 0xa70   :  { %4073 = vadd.xlane.f32.xlu0 %v10502_v42  ;;  %4763 = vadd.xlane.f32.xlu1 %v10505_v9  ;;  %7367 = vpow2.f32 %v4029_v47 }
 0xa71   :  { %v7358_v57 = vpop.eup %7357  ;;  %v4719_v44 = vmul.f32 1.442695, %v4695_v56  ;;  %v11287_v56 = vld [vmem:[#allocation28_spill] sm:$0xff] }
 0xa72   :  { %v4327_v40 = vpop.xlane.xlu1 %4326  ;;  %v10518_v18 = vmul.f32 %v7358_v57, %v11284_v39  ;;  %v7360_v7 = vpop.eup %7359  ;;  %v3663_v0 = vsub.f32 %v11287_v56, %v10445_v51 }
 0xa73   :  { %7369 = vpow2.f32 %v4719_v44  ;;  %v4350_v52 = vsub.f32 %v10196_v37, %v4327_v40  ;;  %v10526_v1 = vmul.f32 %v7360_v7, %v11288_v25  ;;  %v10532_v40 = vpop.xlane.xlu0 %3989  ;;  %v4007_v44 = vsub.f32 %v11289_v61, %v10458_v50  ;;  %v11291_v50 = vld [vmem:[#allocation27_spill] sm:$0xff] }
 0xa74   :  { %3728 = vadd.xlane.f32.xlu0 %v10515_v3  ;;  %4418 = vadd.xlane.f32.xlu1 %v10518_v18  ;;  %7371 = vpow2.f32 %v3684_v31  ;;  %v3690_v51 = vmul.f32 1.442695, %v3663_v0 }
 0xa75   :  { %v7362_v47 = vpop.eup %7361  ;;  %v4374_v62 = vmul.f32 1.442695, %v4350_v52  ;;  %v4033_v0 = vmul.f32 1.442695, %v4007_v44  ;;  %v11293_v44 = vld [vmem:[#allocation33_spill] sm:$0xff] }
 0xa76   :  { %v4678_v33 = vpop.xlane.xlu1 %4677  ;;  %v10529_v39 = vmul.f32 %v7362_v47, %v11288_v25  ;;  %v7364_v57 = vpop.eup %7363 }
 0xa77   :  { %7373 = vpow2.f32 %v4374_v62  ;;  %v4698_v37 = vsub.f32 %v10207_v26, %v4678_v33  ;;  %v10539_v47 = vmul.f32 %v7364_v57, %v11288_v25  ;;  %v3662_v33 = vsub.f32 %v11291_v50, %v10475_v8  ;;  %v10549_v57 = vpop.xlane.xlu0 %3644 }
 0xa78   :  { %4079 = vadd.xlane.f32.xlu0 %v10526_v1  ;;  %4769 = vadd.xlane.f32.xlu1 %v10529_v39  ;;  %7375 = vpow2.f32 %v4035_v38 }
 0xa79   :  { %v7366_v31 = vpop.eup %7365  ;;  %v4725_v7 = vmul.f32 1.442695, %v4698_v37  ;;  %v3688_v8 = vmul.f32 1.442695, %v3662_v33  ;;  %v11294_v33 = vld [vmem:[#allocation30_spill] sm:$0xff] }
 0xa7a   :  { %v4333_v52 = vpop.xlane.xlu1 %4332  ;;  %v10542_v56 = vmul.f32 %v7366_v31, %v11288_v25  ;;  %v7368_v26 = vpop.eup %7367  ;;  %v11292_v25 = vld [vmem:[#allocation10_spill] sm:$0xff] }
 0xa7b   :  { %7377 = vpow2.f32 %v4725_v7  ;;  %v4353_v62 = vsub.f32 %v10220_v43, %v4333_v52  ;;  %v10552_v31 = vmul.f32 %v7368_v26, %v11292_v25 }
 0xa7c   :  { %11290 = vst [vmem:[#allocation42_spill] sm:$0xff] %v10542_v56  ;;  %3734 = vadd.xlane.f32.xlu0 %v10539_v47  ;;  %4424 = vadd.xlane.f32.xlu1 %v10542_v56  ;;  %7379 = vpow2.f32 %v3690_v51 }
 0xa7d   :  { %v7370_v38 = vpop.eup %7369  ;;  %v4380_v37 = vmul.f32 1.442695, %v4353_v62  ;;  %v4010_v62 = vsub.f32 %v11293_v44, %v10495_v28 }
 0xa7e   :  { %v4676_v61 = vpop.xlane.xlu1 %4675  ;;  %v10555_v7 = vmul.f32 %v7370_v38, %v11292_v25  ;;  %v7372_v43 = vpop.eup %7371 }
 0xa7f   :  { %7381 = vpow2.f32 %v4380_v37  ;;  %v4697_v52 = vsub.f32 %v10233_v19, %v4676_v61  ;;  %v10563_v56 = vmul.f32 %v7372_v43, %v11292_v25  ;;  %v3996_v61 = vpop.xlane.xlu0 %3995  ;;  %v4039_v28 = vmul.f32 1.442695, %v4010_v62 }
 0xa80   :  { %4077 = vadd.xlane.f32.xlu0 %v10552_v31  ;;  %4767 = vadd.xlane.f32.xlu1 %v10555_v7  ;;  %7383 = vpow2.f32 %v4033_v0 }
 0xa81   :  { %v7374_v51 = vpop.eup %7373  ;;  %v4723_v50 = vmul.f32 1.442695, %v4697_v52  ;;  %v3665_v52 = vsub.f32 %v11294_v33, %v10512_v30  ;;  %v11296_v30 = vld [vmem:[#allocation31_spill] sm:$0xff] }
 0xa82   :  { %v4331_v26 = vpop.xlane.xlu1 %4330  ;;  %v10566_v38 = vmul.f32 %v7374_v51, %v11292_v25  ;;  %v7376_v37 = vpop.eup %7375 }
 0xa83   :  { %7385 = vpow2.f32 %v4723_v50  ;;  %v4352_v19 = vsub.f32 %v10245_v12, %v4331_v26  ;;  %v10574_v25 = vmul.f32 %v7376_v37, %v11236_v27  ;;  %v3694_v62 = vmul.f32 1.442695, %v3665_v52  ;;  %v10584_v37 = vpop.xlane.xlu0 %3650  ;;  %v11298_v52 = vld [vmem:[#allocation37_spill] sm:$0xff] }
 0xa84   :  { %3732 = vadd.xlane.f32.xlu0 %v10563_v56  ;;  %4422 = vadd.xlane.f32.xlu1 %v10566_v38  ;;  %7387 = vpow2.f32 %v3688_v8  ;;  %v4009_v26 = vsub.f32 %v11296_v30, %v10532_v40 }
 0xa85   :  { %v7378_v0 = vpop.eup %7377  ;;  %v4378_v43 = vmul.f32 1.442695, %v4352_v19 }
 0xa86   :  { %v4682_v44 = vpop.xlane.xlu1 %4681  ;;  %v10577_v51 = vmul.f32 %v7378_v0, %v11236_v27  ;;  %v7380_v12 = vpop.eup %7379  ;;  %v4037_v40 = vmul.f32 1.442695, %v4009_v26  ;;  %v4012_v26 = vsub.f32 %v10214_v24, %v3996_v61 }
 0xa87   :  { %7389 = vpow2.f32 %v4378_v43  ;;  %v4700_v50 = vsub.f32 %v10257_v46, %v4682_v44  ;;  %v10587_v0 = vmul.f32 %v7380_v12, %v11236_v27 }
 0xa88   :  { %11295 = vst [vmem:[#allocation18_spill] sm:$0xff] %v10577_v51  ;;  %4083 = vadd.xlane.f32.xlu0 %v10574_v25  ;;  %4773 = vadd.xlane.f32.xlu1 %v10577_v51  ;;  %7391 = vpow2.f32 %v4039_v28 }
 0xa89   :  { %v7382_v8 = vpop.eup %7381  ;;  %v4729_v19 = vmul.f32 1.442695, %v4700_v50  ;;  %v3664_v50 = vsub.f32 %v11298_v52, %v10549_v57 }
 0xa8a   :  { %v4337_v33 = vpop.xlane.xlu1 %4336  ;;  %v10590_v43 = vmul.f32 %v7382_v8, %v11236_v27  ;;  %v7384_v46 = vpop.eup %7383 }
 0xa8b   :  { %7393 = vpow2.f32 %v4729_v19  ;;  %v4355_v44 = vsub.f32 %v10264_v29, %v4337_v33  ;;  %v10598_v51 = vmul.f32 %v7384_v46, %v11243_v55  ;;  %v3994_v19 = vpop.xlane.xlu0 %3993  ;;  %v3692_v57 = vmul.f32 1.442695, %v3664_v50 }
 0xa8c   :  { %11297 = vst [vmem:[#allocation3_spill] sm:$0xff] %v10590_v43  ;;  %3738 = vadd.xlane.f32.xlu0 %v10587_v0  ;;  %4428 = vadd.xlane.f32.xlu1 %v10590_v43  ;;  %7395 = vpow2.f32 %v3694_v62  ;;  %v4043_v50 = vmul.f32 1.442695, %v4012_v26  ;;  %v4011_v24 = vsub.f32 %v10237_v48, %v3994_v19 }
 0xa8d   :  { %v7386_v28 = vpop.eup %7385  ;;  %v4384_v30 = vmul.f32 1.442695, %v4355_v44 }
 0xa8e   :  { %v4680_v12 = vpop.xlane.xlu1 %4679  ;;  %v10601_v27 = vmul.f32 %v7386_v28, %v11243_v55  ;;  %v7388_v8 = vpop.eup %7387  ;;  %v4041_v48 = vmul.f32 1.442695, %v4011_v24  ;;  %v11304_v24 = vld [vmem:[#allocation14_spill] sm:$0xff] }
 0xa8f   :  { %7397 = vpow2.f32 %v4384_v30  ;;  %v4699_v29 = vsub.f32 %v10271_v60, %v4680_v12  ;;  %v10608_v44 = vmul.f32 %v7388_v8, %v11243_v55  ;;  %v3649_v30 = vpop.xlane.xlu0 %3648 }
 0xa90   :  { %4081 = vadd.xlane.f32.xlu0 %v10598_v51  ;;  %4771 = vadd.xlane.f32.xlu1 %v10601_v27  ;;  %7399 = vpow2.f32 %v4037_v40  ;;  %v3666_v19 = vsub.f32 %v10252_v49, %v3649_v30 }
 0xa91   :  { %v7390_v62 = vpop.eup %7389  ;;  %v4727_v33 = vmul.f32 1.442695, %v4699_v29 }
 0xa92   :  { %v4335_v46 = vpop.xlane.xlu1 %4334  ;;  %v10611_v28 = vmul.f32 %v7390_v62, %v11243_v55  ;;  %v7392_v52 = vpop.eup %7391  ;;  %v3696_v49 = vmul.f32 1.442695, %v3666_v19 }
 0xa93   :  { %7401 = vpow2.f32 %v4727_v33  ;;  %v4354_v60 = vsub.f32 %v10277_v53, %v4335_v46  ;;  %v10618_v8 = vmul.f32 %v7392_v52, %v11248_v22 }
 0xa94   :  { %3736 = vadd.xlane.f32.xlu0 %v10608_v44  ;;  %4426 = vadd.xlane.f32.xlu1 %v10611_v28  ;;  %7403 = vpow2.f32 %v3692_v57 }
 0xa95   :  { %v7394_v40 = vpop.eup %7393  ;;  %v4382_v61 = vmul.f32 1.442695, %v4354_v60  ;;  %11299 = vst [vmem:[#allocation2_spill] sm:$0xff] %v10618_v8  ;;  %v11303_v60 = vld [vmem:[#allocation41_spill] sm:$0xff] }
 0xa96   :  { %v4686_v12 = vpop.xlane.xlu1 %4685  ;;  %v10621_v55 = vmul.f32 %v7394_v40, %v11248_v22  ;;  %v7396_v29 = vpop.eup %7395  ;;  %v3667_v40 = vsub.f32 %v11303_v60, %v10584_v37  ;;  %v11307_v37 = vld [vmem:[#allocation36_spill] sm:$0xff] }
 0xa97   :  { %7405 = vpow2.f32 %v4382_v61  ;;  %v4702_v53 = vsub.f32 %v10284_v10, %v4686_v12  ;;  %v10628_v33 = vmul.f32 %v7396_v29, %v11248_v22 }
 0xa98   :  { %11300 = vst [vmem:[#allocation5_spill] sm:$0xff] %v10621_v55  ;;  %4087 = vadd.xlane.f32.xlu0 %v10618_v8  ;;  %4777 = vadd.xlane.f32.xlu1 %v10621_v55  ;;  %7407 = vpow2.f32 %v4043_v50  ;;  %v11321_v8 = vld [vmem:[#allocation39_spill] sm:$0xff] }
 0xa99   :  { %v7398_v62 = vpop.eup %7397  ;;  %v4733_v57 = vmul.f32 1.442695, %v4702_v53  ;;  %11301 = vst [vmem:[#allocation4_spill] sm:$0xff] %v10628_v33  ;;  %v3698_v53 = vmul.f32 1.442695, %v3667_v40 }
 0xa9a   :  { %v4341_v26 = vpop.xlane.xlu1 %4340  ;;  %v10631_v46 = vmul.f32 %v7398_v62, %v11248_v22  ;;  %v7400_v52 = vpop.eup %7399 }
 0xa9b   :  { %7409 = vpow2.f32 %v4733_v57  ;;  %v10638_v61 = vmul.f32 %v7400_v52, %v11304_v24  ;;  %v4357_v62 = vsub.f32 %v11307_v37, %v4341_v26 }
 0xa9c   :  { %11302 = vst [vmem:[#allocation13_spill] sm:$0xff] %v10631_v46  ;;  %3742 = vadd.xlane.f32.xlu0 %v10628_v33  ;;  %4432 = vadd.xlane.f32.xlu1 %v10631_v46  ;;  %7411 = vpow2.f32 %v4041_v48 }
 0xa9d   :  { %v7402_v10 = vpop.eup %7401  ;;  %11305 = vst [vmem:[#allocation12_spill] sm:$0xff] %v10638_v61  ;;  %7413 = vpow2.f32 %v3696_v49  ;;  %v4388_v49 = vmul.f32 1.442695, %v4357_v62 }
 0xa9e   :  { %v4684_v50 = vpop.xlane.xlu1 %4683  ;;  %v10641_v30 = vmul.f32 %v7402_v10, %v11304_v24  ;;  %v7404_v22 = vpop.eup %7403 }
 0xa9f   :  { %v4701_v12 = vsub.f32 %v10296_v36, %v4684_v50  ;;  %v10648_v57 = vmul.f32 %v7404_v22, %v11304_v24  ;;  %v11310_v36 = vld [vmem:[#allocation44_spill] sm:$0xff]  ;;  %v11311_v50 = vld [vmem:[#allocation17_spill] sm:$0xff] }
 0xaa0   :  { %11306 = vst [vmem:[#allocation15_spill] sm:$0xff] %v10641_v30  ;;  %4085 = vadd.xlane.f32.xlu0 %v10638_v61  ;;  %4775 = vadd.xlane.f32.xlu1 %v10641_v30 }
 0xaa1   :  { %v7406_v29 = vpop.eup %7405  ;;  %v4731_v48 = vmul.f32 1.442695, %v4701_v12  ;;  %11308 = vst [vmem:[#allocation20_spill] sm:$0xff] %v10648_v57 }
 0xaa2   :  { %v4339_v19 = vpop.xlane.xlu1 %4338  ;;  %v10651_v52 = vmul.f32 %v7406_v29, %v11304_v24  ;;  %v7408_v10 = vpop.eup %7407  ;;  %v11314_v29 = vld [vmem:[#allocation16_spill] sm:$0xff] }
 0xaa3   :  { %7415 = vpow2.f32 %v4731_v48  ;;  %v4356_v60 = vsub.f32 %v11310_v36, %v4339_v19  ;;  %v10657_v12 = vmul.f32 %v7408_v10, %v11311_v50 }
 0xaa4   :  { %11309 = vst [vmem:[#allocation47_spill] sm:$0xff] %v10651_v52  ;;  %3740 = vadd.xlane.f32.xlu0 %v10648_v57  ;;  %4430 = vadd.xlane.f32.xlu1 %v10651_v52  ;;  %7417 = vpow2.f32 %v3698_v53 }
 0xaa5   :  { %v7410_v40 = vpop.eup %7409  ;;  %v4386_v26 = vmul.f32 1.442695, %v4356_v60  ;;  %11312 = vst [vmem:[#allocation48_spill] sm:$0xff] %v10657_v12 }
 0xaa6   :  { %v10660_v22 = vmul.f32 %v7410_v40, %v11311_v50  ;;  %v7412_v24 = vpop.eup %7411 }
 0xaa7   :  { %7419 = vpow2.f32 %v4386_v26  ;;  %v10665_v37 = vmul.f32 %v7412_v24, %v11314_v29  ;;  %v7414_v48 = vpop.eup %7413  ;;  %v4064_v24 = vpop.xlane.xlu0 %4063 }
 0xaa8   :  { %11313 = vst [vmem:[#allocation7_spill] sm:$0xff] %v10660_v22  ;;  %4091 = vadd.xlane.f32.xlu0 %v10657_v12  ;;  %4781 = vadd.xlane.f32.xlu1 %v10660_v22  ;;  %7421 = vpow2.f32 %v4388_v49  ;;  %v10669_v62 = vmul.f32 %v7414_v48, %v11314_v29 }
 0xaa9   :  { %11315 = vst [vmem:[#allocation22_spill] sm:$0xff] %v10665_v37 }
 0xaaa   :  { %11316 = vst [vmem:[#allocation49_spill] sm:$0xff] %v10669_v62 }
 0xaac   :  { %4089 = vadd.xlane.f32.xlu0 %v10665_v37 }
 0xaad   :  { %v7416_v53 = vpop.eup %7415 }
 0xaae   :  { %v10672_v19 = vmul.f32 %v7416_v53, %v11314_v29  ;;  %v7418_v10 = vpop.eup %7417  ;;  %v3719_v53 = vpop.xlane.xlu0 %3718 }
 0xaaf   :  { %v10677_v60 = vmul.f32 %v7418_v10, %v11311_v50 }
 0xab0   :  { %11317 = vst [vmem:[#allocation24_spill] sm:$0xff] %v10672_v19  ;;  %3744 = vadd.xlane.f32.xlu0 %v10669_v62  ;;  %4779 = vadd.xlane.f32.xlu1 %v10672_v19  ;;  %v4094_v19 = vadd.f32 1e-09, %v4064_v24 }
 0xab1   :  { %v7420_v36 = vpop.eup %7419  ;;  %11318 = vst [vmem:[#allocation19_spill] sm:$0xff] %v10677_v60 }
 0xab2   :  { %v10680_v40 = vmul.f32 %v7420_v36, %v11314_v29  ;;  %v7422_v49 = vpop.eup %7421 }
 0xab3   :  { %v10685_v26 = vmul.f32 %v7422_v49, %v11311_v50 }
 0xab4   :  { %11319 = vst [vmem:[#allocation6_spill] sm:$0xff] %v10680_v40  ;;  %3746 = vadd.xlane.f32.xlu0 %v10677_v60  ;;  %4434 = vadd.xlane.f32.xlu1 %v10680_v40  ;;  %v3749_v40 = vadd.f32 1e-09, %v3719_v53 }
 0xab5   :  { %11320 = vst [vmem:[#allocation25_spill] sm:$0xff] %v10685_v26 }
 0xab8   :  { %4436 = vadd.xlane.f32.xlu1 %v10685_v26 }
 0xac5   :  { %v4754_v48 = vpop.xlane.xlu1 %4753 }
 0xac6   :  { %v4784_v36 = vadd.f32 1e-09, %v4754_v48 }
 0xac9   :  { %v4409_v22 = vpop.xlane.xlu1 %4408 }
 0xaca   :  { %v4439_v26 = vadd.f32 1e-09, %v4409_v22 }
 0xacd   :  { %v4062_v12 = vpop.xlane.xlu0 %4061  ;;  %v4752_v10 = vpop.xlane.xlu1 %4751 }
 0xace   :  { %v4093_v62 = vadd.f32 1e-09, %v4062_v12  ;;  %v4783_v29 = vadd.f32 1e-09, %v4752_v10  ;;  %v5142_v12 = vld [vmem:[%s10874_s16] sm:$0xff] }
 0xad0   :  { %7423 = vrcp.f32 %v4093_v62  ;;  %v5143_v62 = vld [vmem:[%s10874_s16 + $0x8] sm:$0xff] }
 0xad1   :  { %7425 = vrcp.f32 %v4783_v29  ;;  %v3717_v60 = vpop.xlane.xlu0 %3716  ;;  %v4407_v37 = vpop.xlane.xlu1 %4406 }
 0xad2   :  { %7427 = vrcp.f32 %v4094_v19  ;;  %v3748_v50 = vadd.f32 1e-09, %v3717_v60  ;;  %v4438_v49 = vadd.f32 1e-09, %v4407_v37  ;;  %v6821_v19 = vpack.c.bf16 %v5143_v62, %v5142_v12 }
 0xad3   :  { %7429 = vrcp.f32 %v4784_v36  ;;  %v5144_v36 = vld [vmem:[%s10874_s16 + $0x10] sm:$0xff] }
 0xad4   :  { %7431 = vrcp.f32 %v3748_v50  ;;  %6822 = vmatprep.subr.bf16.mxu1 %v6821_v19  ;;  %v5145_v50 = vld [vmem:[%s10874_s16 + $0x18] sm:$0xff] }
 0xad5   :  { %7433 = vrcp.f32 %v4438_v49  ;;  %v4068_v46 = vpop.xlane.xlu0 %4067  ;;  %v4758_v33 = vpop.xlane.xlu1 %4757  ;;  %v6825_v57 = vpack.c.bf16 %v5145_v50, %v5144_v36 }
 0xad6   :  { %7435 = vrcp.f32 %v3749_v40  ;;  %v4096_v12 = vadd.f32 1e-09, %v4068_v46  ;;  %v4786_v55 = vadd.f32 1e-09, %v4758_v33 }
 0xad7   :  { %7437 = vrcp.f32 %v4439_v26 }
 0xad9   :  { %v3723_v24 = vpop.xlane.xlu0 %3722  ;;  %v4413_v60 = vpop.xlane.xlu1 %4412 }
 0xada   :  { %v7424_v37 = vpop.eup %7423 }
 0xadb   :  { %v7426_v22 = vpop.eup %7425  ;;  %v4125_v48 = vmul.f32 %v7424_v37, %v10351_v6 }
 0xadc   :  { %v7428_v53 = vpop.eup %7427  ;;  %v4815_v40 = vmul.f32 %v7426_v22, %v10348_v20 }
 0xadd   :  { %v7430_v26 = vpop.eup %7429  ;;  %4916 = vmatprep.mubr.f32.mxu1 %v4125_v48  ;;  %v4066_v10 = vpop.xlane.xlu0 %4065  ;;  %v4126_v52 = vmul.f32 %v7428_v53, %v11321_v8 }
 0xade   :  { %v4756_v29 = vpop.xlane.xlu1 %4755  ;;  %v7432_v49 = vpop.eup %7431  ;;  %v4095_v62 = vadd.f32 1e-09, %v4066_v10  ;;  %5061 = vmatprep.mubr.f32.mxu0 %v4815_v40  ;;  %v4816_v46 = vmul.f32 %v7430_v26, %v10331_v32  ;;  %v3751_v40 = vadd.f32 1e-09, %v3723_v24 }
 0xadf   :  { %v4785_v6 = vadd.f32 1e-09, %v4756_v29  ;;  %v7434_v37 = vpop.eup %7433  ;;  %v3780_v20 = vmul.f32 %v7432_v49, %v10361_v17  ;;  %v4441_v17 = vadd.f32 1e-09, %v4413_v60 }
 0xae0   :  { %v7436_v22 = vpop.eup %7435  ;;  %7439 = vrcp.f32 %v4095_v62  ;;  %v4470_v48 = vmul.f32 %v7434_v37, %v10364_v63  ;;  %v11322_v63 = vld [vmem:[#allocation43_spill] sm:$0xff] }
 0xae1   :  { %v7438_v30 = vpop.eup %7437  ;;  %7441 = vrcp.f32 %v4785_v6  ;;  %4917 = vmatmul.mubr.f32.vlgmr.msra.gmra.mrb[112].mxu1 %v3780_v20  ;;  %v3721_v61 = vpop.xlane.xlu0 %3720  ;;  %v3781_v29 = vmul.f32 %v7436_v22, %v11322_v63 }
 0xae2   :  { %v4411_v43 = vpop.xlane.xlu1 %4410  ;;  %7443 = vrcp.f32 %v4096_v12  ;;  %v3750_v10 = vadd.f32 1e-09, %v3721_v61  ;;  %5062 = vmatmul.mubr.f32.vlgmr.msra.gmra.mrb[84].mxu0 %v4470_v48  ;;  %4921 = vmatprep.mubr.f32.mxu1 %v4126_v52  ;;  %v4471_v8 = vmul.f32 %v7438_v30, %v10339_v13 }
 0xae3   :  { %v4440_v33 = vadd.f32 1e-09, %v4411_v43  ;;  %7445 = vrcp.f32 %v4786_v55  ;;  %5066 = vmatprep.mubr.f32.mxu0 %v4816_v46  ;;  %6824 = vmatpush3.bf16.msra.mxu1 %v6821_v19 }
 0xae4   :  { %7447 = vrcp.f32 %v3750_v10  ;;  %6826 = vmatprep.subr.bf16.mxu1 %v6825_v57 }
 0xae5   :  { %7449 = vrcp.f32 %v4440_v33  ;;  %4922 = vmatmul.mubr.f32.gmra.mrb[114].mxu1 %v3781_v29  ;;  %v4072_v53 = vpop.xlane.xlu0 %4071 }
 0xae6   :  { %v4762_v32 = vpop.xlane.xlu1 %4761  ;;  %7451 = vrcp.f32 %v3751_v40  ;;  %5067 = vmatmul.mubr.f32.gmra.mrb[86].mxu0 %v4471_v8  ;;  %v4098_v50 = vadd.f32 1e-09, %v4072_v53 }
 0xae7   :  { %7453 = vrcp.f32 %v4441_v17  ;;  %6828 = vmatpush3.bf16.msra.mxu1 %v6825_v57  ;;  %v4788_v57 = vadd.f32 1e-09, %v4762_v32 }
 0xae9   :  { %v3727_v43 = vpop.xlane.xlu0 %3726 }
 0xaea   :  { %v4417_v61 = vpop.xlane.xlu1 %4416  ;;  %v7440_v55 = vpop.eup %7439  ;;  %v3753_v40 = vadd.f32 1e-09, %v3727_v43 }
 0xaeb   :  { %v7442_v52 = vpop.eup %7441  ;;  %v4127_v24 = vmul.f32 %v7440_v55, %v10400_v21 }
 0xaec   :  { %v7444_v60 = vpop.eup %7443  ;;  %v4817_v19 = vmul.f32 %v7442_v52, %v10403_v11 }
 0xaed   :  { %v7446_v26 = vpop.eup %7445  ;;  %4926 = vmatprep.mubr.f32.mxu1 %v4127_v24  ;;  %v4070_v13 = vpop.xlane.xlu0 %4069  ;;  %v4128_v20 = vmul.f32 %v7444_v60, %v10374_v45 }
 0xaee   :  { %v4760_v30 = vpop.xlane.xlu1 %4759  ;;  %v7448_v36 = vpop.eup %7447  ;;  %v4097_v49 = vadd.f32 1e-09, %v4070_v13  ;;  %5071 = vmatprep.mubr.f32.mxu0 %v4817_v19  ;;  %v4818_v46 = vmul.f32 %v7446_v26, %v10377_v54 }
 0xaef   :  { %v4787_v12 = vadd.f32 1e-09, %v4760_v30  ;;  %v7450_v62 = vpop.eup %7449  ;;  %v3782_v6 = vmul.f32 %v7448_v36, %v10413_v41  ;;  %v4443_v41 = vadd.f32 1e-09, %v4417_v61 }
 0xaf0   :  { %v7452_v37 = vpop.eup %7451  ;;  %7455 = vrcp.f32 %v4097_v49  ;;  %v4472_v21 = vmul.f32 %v7450_v62, %v10416_v59 }
 0xaf1   :  { %v7454_v11 = vpop.eup %7453  ;;  %7457 = vrcp.f32 %v4787_v12  ;;  %4927 = vmatmul.mubr.f32.gmra.mrb[116].mxu1 %v3782_v6  ;;  %v3725_v22 = vpop.xlane.xlu0 %3724  ;;  %v3783_v59 = vmul.f32 %v7452_v37, %v10387_v5 }
 0xaf2   :  { %v4415_v48 = vpop.xlane.xlu1 %4414  ;;  %7459 = vrcp.f32 %v4098_v50  ;;  %v3752_v10 = vadd.f32 1e-09, %v3725_v22  ;;  %5072 = vmatmul.mubr.f32.gmra.mrb[88].mxu0 %v4472_v21  ;;  %4931 = vmatprep.mubr.f32.mxu1 %v4128_v20  ;;  %v4473_v45 = vmul.f32 %v7454_v11, %v10390_v34 }
 0xaf3   :  { %v4442_v33 = vadd.f32 1e-09, %v4415_v48  ;;  %7461 = vrcp.f32 %v4788_v57  ;;  %5076 = vmatprep.mubr.f32.mxu0 %v4818_v46 }
 0xaf4   :  { %7463 = vrcp.f32 %v3752_v10 }
 0xaf5   :  { %7465 = vrcp.f32 %v4442_v33  ;;  %4932 = vmatmul.mubr.f32.gmra.mrb[118].mxu1 %v3783_v59  ;;  %v4076_v17 = vpop.xlane.xlu0 %4075 }
 0xaf6   :  { %v4766_v63 = vpop.xlane.xlu1 %4765  ;;  %7467 = vrcp.f32 %v3753_v40  ;;  %5077 = vmatmul.mubr.f32.gmra.mrb[90].mxu0 %v4473_v45  ;;  %v4100_v24 = vadd.f32 1e-09, %v4076_v17 }
 0xaf7   :  { %7469 = vrcp.f32 %v4443_v41  ;;  %v4790_v13 = vadd.f32 1e-09, %v4766_v63 }
 0xaf9   :  { %v3731_v54 = vpop.xlane.xlu0 %3730 }
 0xafa   :  { %v4421_v29 = vpop.xlane.xlu1 %4420  ;;  %v7456_v8 = vpop.eup %7455  ;;  %v3755_v57 = vadd.f32 1e-09, %v3731_v54 }
 0xafb   :  { %v7458_v53 = vpop.eup %7457  ;;  %v4129_v32 = vmul.f32 %v7456_v8, %v10452_v58 }
 0xafc   :  { %v7460_v43 = vpop.eup %7459  ;;  %v4819_v61 = vmul.f32 %v7458_v53, %v10455_v4  ;;  %v11323_v53 = vld [vmem:[#allocation45_spill] sm:$0xff] }
 0xafd   :  { %v7462_v5 = vpop.eup %7461  ;;  %4936 = vmatprep.mubr.f32.mxu1 %v4129_v32  ;;  %v4074_v55 = vpop.xlane.xlu0 %4073  ;;  %v4130_v50 = vmul.f32 %v7460_v43, %v10426_v23 }
 0xafe   :  { %v4764_v34 = vpop.xlane.xlu1 %4763  ;;  %v7464_v52 = vpop.eup %7463  ;;  %v4099_v60 = vadd.f32 1e-09, %v4074_v55  ;;  %5081 = vmatprep.mubr.f32.mxu0 %v4819_v61  ;;  %v4820_v62 = vmul.f32 %v7462_v5, %v10429_v14  ;;  %v11324_v5 = vld [vmem:[#allocation38_spill] sm:$0xff] }
 0xaff   :  { %v4789_v19 = vadd.f32 1e-09, %v4764_v34  ;;  %v7466_v26 = vpop.eup %7465  ;;  %v3784_v30 = vmul.f32 %v7464_v52, %v10465_v2  ;;  %v4445_v2 = vadd.f32 1e-09, %v4421_v29 }
 0xb00   :  { %v7468_v36 = vpop.eup %7467  ;;  %7471 = vrcp.f32 %v4099_v60  ;;  %v4474_v58 = vmul.f32 %v7466_v26, %v10468_v15  ;;  %v11325_v60 = vld [vmem:[#allocation40_spill] sm:$0xff] }
 0xb01   :  { %v7470_v4 = vpop.eup %7469  ;;  %7473 = vrcp.f32 %v4789_v19  ;;  %4937 = vmatmul.mubr.f32.gmra.mrb[120].mxu1 %v3784_v30  ;;  %v3729_v49 = vpop.xlane.xlu0 %3728  ;;  %v3785_v15 = vmul.f32 %v7468_v36, %v10439_v16  ;;  %v11326_v19 = vld [vmem:[#allocation46_spill] sm:$0xff] }
 0xb02   :  { %v4419_v12 = vpop.xlane.xlu1 %4418  ;;  %7475 = vrcp.f32 %v4100_v24  ;;  %v3754_v6 = vadd.f32 1e-09, %v3729_v49  ;;  %5082 = vmatmul.mubr.f32.gmra.mrb[92].mxu0 %v4474_v58  ;;  %4941 = vmatprep.mubr.f32.mxu1 %v4130_v50  ;;  %v4475_v23 = vmul.f32 %v7470_v4, %v10442_v35 }
 0xb03   :  { %v4444_v37 = vadd.f32 1e-09, %v4419_v12  ;;  %7477 = vrcp.f32 %v4790_v13  ;;  %5086 = vmatprep.mubr.f32.mxu0 %v4820_v62 }
 0xb04   :  { %7479 = vrcp.f32 %v3754_v6 }
 0xb05   :  { %7481 = vrcp.f32 %v4444_v37  ;;  %4942 = vmatmul.mubr.f32.gmra.mrb[122].mxu1 %v3785_v15  ;;  %v4080_v21 = vpop.xlane.xlu0 %4079 }
 0xb06   :  { %v4770_v20 = vpop.xlane.xlu1 %4769  ;;  %7483 = vrcp.f32 %v3755_v57  ;;  %5087 = vmatmul.mubr.f32.gmra.mrb[94].mxu0 %v4475_v23  ;;  %v4102_v59 = vadd.f32 1e-09, %v4080_v21 }
 0xb07   :  { %7485 = vrcp.f32 %v4445_v2  ;;  %v4792_v54 = vadd.f32 1e-09, %v4770_v20 }
 0xb09   :  { %v3735_v14 = vpop.xlane.xlu0 %3734 }
 0xb0a   :  { %v4425_v11 = vpop.xlane.xlu1 %4424  ;;  %v7472_v22 = vpop.eup %7471  ;;  %v3757_v34 = vadd.f32 1e-09, %v3735_v14 }
 0xb0b   :  { %v7474_v48 = vpop.eup %7473  ;;  %v4131_v46 = vmul.f32 %v7472_v22, %v10502_v42 }
 0xb0c   :  { %v7476_v40 = vpop.eup %7475  ;;  %v4821_v10 = vmul.f32 %v7474_v48, %v10505_v9 }
 0xb0d   :  { %v7478_v16 = vpop.eup %7477  ;;  %4946 = vmatprep.mubr.f32.mxu1 %v4131_v46  ;;  %v4078_v33 = vpop.xlane.xlu0 %4077  ;;  %v4132_v32 = vmul.f32 %v7476_v40, %v11323_v53 }
 0xb0e   :  { %v4768_v35 = vpop.xlane.xlu1 %4767  ;;  %v7480_v41 = vpop.eup %7479  ;;  %v4101_v45 = vadd.f32 1e-09, %v4078_v33  ;;  %5091 = vmatprep.mubr.f32.mxu0 %v4821_v10  ;;  %v4822_v55 = vmul.f32 %v7478_v16, %v11324_v5 }
 0xb0f   :  { %v4791_v17 = vadd.f32 1e-09, %v4768_v35  ;;  %v7482_v63 = vpop.eup %7481  ;;  %v3786_v29 = vmul.f32 %v7480_v41, %v10515_v3  ;;  %v4447_v3 = vadd.f32 1e-09, %v4425_v11 }
 0xb10   :  { %v7484_v8 = vpop.eup %7483  ;;  %7487 = vrcp.f32 %v4101_v45  ;;  %v4476_v42 = vmul.f32 %v7482_v63, %v10518_v18 }
 0xb11   :  { %v7486_v9 = vpop.eup %7485  ;;  %7489 = vrcp.f32 %v4791_v17  ;;  %4947 = vmatmul.mubr.f32.gmra.mrb[124].mxu1 %v3786_v29  ;;  %v3733_v43 = vpop.xlane.xlu0 %3732  ;;  %v3787_v18 = vmul.f32 %v7484_v8, %v11325_v60 }
 0xb12   :  { %v4423_v61 = vpop.xlane.xlu1 %4422  ;;  %7491 = vrcp.f32 %v4102_v59  ;;  %v3756_v52 = vadd.f32 1e-09, %v3733_v43  ;;  %5092 = vmatmul.mubr.f32.gmra.mrb[96].mxu0 %v4476_v42  ;;  %4951 = vmatprep.mubr.f32.mxu1 %v4132_v32  ;;  %v4477_v26 = vmul.f32 %v7486_v9, %v11326_v19  ;;  %v11328_v19 = vld [vmem:[#allocation18_spill] sm:$0xff] }
 0xb13   :  { %v4446_v24 = vadd.f32 1e-09, %v4423_v61  ;;  %7493 = vrcp.f32 %v4792_v54  ;;  %5096 = vmatprep.mubr.f32.mxu0 %v4822_v55 }
 0xb14   :  { %7495 = vrcp.f32 %v3756_v52 }
 0xb15   :  { %7497 = vrcp.f32 %v4446_v24  ;;  %4952 = vmatmul.mubr.f32.gmra.mrb[126].mxu1 %v3787_v18  ;;  %v4084_v13 = vpop.xlane.xlu0 %4083 }
 0xb16   :  { %v4774_v30 = vpop.xlane.xlu1 %4773  ;;  %7499 = vrcp.f32 %v3757_v34  ;;  %5097 = vmatmul.mubr.f32.gmra.mrb[98].mxu0 %v4477_v26  ;;  %v4104_v15 = vadd.f32 1e-09, %v4084_v13 }
 0xb17   :  { %7501 = vrcp.f32 %v4447_v3  ;;  %v4794_v14 = vadd.f32 1e-09, %v4774_v30 }
 0xb19   :  { %v3739_v36 = vpop.xlane.xlu0 %3738 }
 0xb1a   :  { %v4429_v58 = vpop.xlane.xlu1 %4428  ;;  %v7488_v50 = vpop.eup %7487  ;;  %v3759_v16 = vadd.f32 1e-09, %v3739_v36 }
 0xb1b   :  { %v7490_v4 = vpop.eup %7489  ;;  %v4133_v49 = vmul.f32 %v7488_v50, %v10552_v31  ;;  %v5146_v50 = vld [vmem:[%s10874_s16 + $0x20] sm:$0xff] }
 0xb1c   :  { %v7492_v12 = vpop.eup %7491  ;;  %v4823_v62 = vmul.f32 %v7490_v4, %v10555_v7  ;;  %v5147_v4 = vld [vmem:[%s10874_s16 + $0x28] sm:$0xff] }
 0xb1d   :  { %v7494_v57 = vpop.eup %7493  ;;  %4956 = vmatprep.mubr.f32.mxu1 %v4133_v49  ;;  %v4082_v6 = vpop.xlane.xlu0 %4081  ;;  %v4134_v48 = vmul.f32 %v7492_v12, %v10526_v1  ;;  %v11327_v1 = vld [vmem:[#allocation42_spill] sm:$0xff]  ;;  %v6829_v12 = vpack.c.bf16 %v5147_v4, %v5146_v50  ;;  %v11344_v4 = vld [vmem:[#allocation7_spill] sm:$0xff] }
 0xb1e   :  { %v4772_v37 = vpop.xlane.xlu1 %4771  ;;  %v7496_v2 = vpop.eup %7495  ;;  %v4103_v23 = vadd.f32 1e-09, %v4082_v6  ;;  %5101 = vmatprep.mubr.f32.mxu0 %v4823_v62  ;;  %v4824_v10 = vmul.f32 %v7494_v57, %v10529_v39  ;;  %v5149_v62 = vld [vmem:[%s10874_s16 + $0x38] sm:$0xff] }
 0xb1f   :  { %v4793_v21 = vadd.f32 1e-09, %v4772_v37  ;;  %v7498_v20 = vpop.eup %7497  ;;  %v3788_v11 = vmul.f32 %v7496_v2, %v10563_v56  ;;  %v4449_v56 = vadd.f32 1e-09, %v4429_v58  ;;  %6830 = vmatprep.subr.bf16.mxu1 %v6829_v12 }
 0xb20   :  { %v7500_v22 = vpop.eup %7499  ;;  %7503 = vrcp.f32 %v4103_v23  ;;  %v4478_v31 = vmul.f32 %v7498_v20, %v10566_v38  ;;  %6832 = vmatpush3.bf16.msra.mxu1 %v6829_v12  ;;  %v11330_v20 = vld [vmem:[#allocation12_spill] sm:$0xff] }
 0xb21   :  { %v7502_v7 = vpop.eup %7501  ;;  %7505 = vrcp.f32 %v4793_v21  ;;  %4957 = vmatmul.mubr.f32.gmra.mrb[128].mxu1 %v3788_v11  ;;  %v3737_v46 = vpop.xlane.xlu0 %3736  ;;  %v3789_v38 = vmul.f32 %v7500_v22, %v10539_v47  ;;  %v11331_v22 = vld [vmem:[#allocation15_spill] sm:$0xff] }
 0xb22   :  { %v4427_v40 = vpop.xlane.xlu1 %4426  ;;  %7507 = vrcp.f32 %v4104_v15  ;;  %v3758_v33 = vadd.f32 1e-09, %v3737_v46  ;;  %5102 = vmatmul.mubr.f32.gmra.mrb[100].mxu0 %v4478_v31  ;;  %4961 = vmatprep.mubr.f32.mxu1 %v4134_v48  ;;  %v4479_v41 = vmul.f32 %v7502_v7, %v11327_v1 }
 0xb23   :  { %v4448_v35 = vadd.f32 1e-09, %v4427_v40  ;;  %7509 = vrcp.f32 %v4794_v14  ;;  %5106 = vmatprep.mubr.f32.mxu0 %v4824_v10 }
 0xb24   :  { %7511 = vrcp.f32 %v3758_v33 }
 0xb25   :  { %7513 = vrcp.f32 %v4448_v35  ;;  %4962 = vmatmul.mubr.f32.gmra.mrb[130].mxu1 %v3789_v38  ;;  %v4088_v59 = vpop.xlane.xlu0 %4087 }
 0xb26   :  { %v4778_v45 = vpop.xlane.xlu1 %4777  ;;  %7515 = vrcp.f32 %v3759_v16  ;;  %5107 = vmatmul.mubr.f32.gmra.mrb[102].mxu0 %v4479_v41  ;;  %v4106_v43 = vadd.f32 1e-09, %v4088_v59  ;;  %v11333_v41 = vld [vmem:[#allocation47_spill] sm:$0xff] }
 0xb27   :  { %7517 = vrcp.f32 %v4449_v56  ;;  %v4796_v34 = vadd.f32 1e-09, %v4778_v45  ;;  %v11332_v56 = vld [vmem:[#allocation20_spill] sm:$0xff]  ;;  %v11334_v45 = vld [vmem:[#allocation2_spill] sm:$0xff] }
 0xb29   :  { %v3743_v39 = vpop.xlane.xlu0 %3742 }
 0xb2a   :  { %v4433_v17 = vpop.xlane.xlu1 %4432  ;;  %v7504_v63 = vpop.eup %7503  ;;  %v3761_v13 = vadd.f32 1e-09, %v3743_v39 }
 0xb2b   :  { %v7506_v54 = vpop.eup %7505  ;;  %v4135_v29 = vmul.f32 %v7504_v63, %v10598_v51 }
 0xb2c   :  { %v7508_v8 = vpop.eup %7507  ;;  %v4825_v42 = vmul.f32 %v7506_v54, %v10601_v27 }
 0xb2d   :  { %v7510_v47 = vpop.eup %7509  ;;  %4966 = vmatprep.mubr.f32.mxu1 %v4135_v29  ;;  %v4086_v53 = vpop.xlane.xlu0 %4085  ;;  %v4136_v3 = vmul.f32 %v7508_v8, %v10574_v25  ;;  %v11329_v25 = vld [vmem:[#allocation3_spill] sm:$0xff]  ;;  %v11335_v29 = vld [vmem:[#allocation5_spill] sm:$0xff] }
 0xb2e   :  { %v4776_v32 = vpop.xlane.xlu1 %4775  ;;  %v7512_v9 = vpop.eup %7511  ;;  %v4105_v61 = vadd.f32 1e-09, %v4086_v53  ;;  %5111 = vmatprep.mubr.f32.mxu0 %v4825_v42  ;;  %v4826_v26 = vmul.f32 %v7510_v47, %v11328_v19  ;;  %v11336_v53 = vld [vmem:[#allocation4_spill] sm:$0xff] }
 0xb2f   :  { %v4795_v5 = vadd.f32 1e-09, %v4776_v32  ;;  %v7514_v55 = vpop.eup %7513  ;;  %v3790_v52 = vmul.f32 %v7512_v9, %v10608_v44  ;;  %v4451_v44 = vadd.f32 1e-09, %v4433_v17  ;;  %v11337_v9 = vld [vmem:[#allocation13_spill] sm:$0xff] }
 0xb30   :  { %v7516_v24 = vpop.eup %7515  ;;  %7519 = vrcp.f32 %v4105_v61  ;;  %v4480_v51 = vmul.f32 %v7514_v55, %v10611_v28 }
 0xb31   :  { %v7518_v27 = vpop.eup %7517  ;;  %7521 = vrcp.f32 %v4795_v5  ;;  %4967 = vmatmul.mubr.f32.gmra.mrb[132].mxu1 %v3790_v52  ;;  %v3741_v60 = vpop.xlane.xlu0 %3740  ;;  %v3791_v28 = vmul.f32 %v7516_v24, %v10587_v0  ;;  %v5148_v0 = vld [vmem:[%s10874_s16 + $0x30] sm:$0xff] }
 0xb32   :  { %v4431_v18 = vpop.xlane.xlu1 %4430  ;;  %7523 = vrcp.f32 %v4106_v43  ;;  %v3760_v30 = vadd.f32 1e-09, %v3741_v60  ;;  %5112 = vmatmul.mubr.f32.gmra.mrb[104].mxu0 %v4480_v51  ;;  %4971 = vmatprep.mubr.f32.mxu1 %v4136_v3  ;;  %v4481_v58 = vmul.f32 %v7518_v27, %v11329_v25  ;;  %v6833_v37 = vpack.c.bf16 %v5149_v62, %v5148_v0  ;;  %v11339_v27 = vld [vmem:[#allocation49_spill] sm:$0xff] }
 0xb33   :  { %v4450_v36 = vadd.f32 1e-09, %v4431_v18  ;;  %7525 = vrcp.f32 %v4796_v34  ;;  %5116 = vmatprep.mubr.f32.mxu0 %v4826_v26  ;;  %v11338_v34 = vld [vmem:[#allocation22_spill] sm:$0xff]  ;;  %v11340_v18 = vld [vmem:[#allocation24_spill] sm:$0xff]  ;;  %v11345_v0 = vld [vmem:[#allocation25_spill] sm:$0xff] }
 0xb34   :  { %7527 = vrcp.f32 %v3760_v30  ;;  %6834 = vmatprep.subr.bf16.mxu1 %v6833_v37  ;;  %v11341_v26 = vld [vmem:[#allocation48_spill] sm:$0xff] }
 0xb35   :  { %7529 = vrcp.f32 %v4450_v36  ;;  %4972 = vmatmul.mubr.f32.gmra.mrb[134].mxu1 %v3791_v28  ;;  %v4092_v49 = vpop.xlane.xlu0 %4091  ;;  %v11342_v28 = vld [vmem:[#allocation19_spill] sm:$0xff] }
 0xb36   :  { %7531 = vrcp.f32 %v3761_v13  ;;  %5117 = vmatmul.mubr.f32.gmra.mrb[106].mxu0 %v4481_v58  ;;  %v4782_v57 = vpop.xlane.xlu1 %4781  ;;  %v4108_v21 = vadd.f32 1e-09, %v4092_v49  ;;  %6836 = vmatpush3.bf16.msra.mxu1 %v6833_v37  ;;  %v11343_v58 = vld [vmem:[#allocation6_spill] sm:$0xff] }
 0xb37   :  { %7533 = vrcp.f32 %v4451_v44  ;;  %v4798_v35 = vadd.f32 1e-09, %v4782_v57 }
 0xb39   :  { %v4090_v6 = vpop.xlane.xlu0 %4089 }
 0xb3a   :  { %v7520_v2 = vpop.eup %7519  ;;  %v4107_v15 = vadd.f32 1e-09, %v4090_v6 }
 0xb3b   :  { %v7522_v23 = vpop.eup %7521  ;;  %v4137_v14 = vmul.f32 %v7520_v2, %v11330_v20 }
 0xb3c   :  { %v7524_v11 = vpop.eup %7523  ;;  %7535 = vrcp.f32 %v4107_v15  ;;  %v4827_v31 = vmul.f32 %v7522_v23, %v11331_v22 }
 0xb3d   :  { %v7526_v48 = vpop.eup %7525  ;;  %4976 = vmatprep.mubr.f32.mxu1 %v4137_v14  ;;  %v3745_v7 = vpop.xlane.xlu0 %3744  ;;  %7537 = vrcp.f32 %v4108_v21  ;;  %v4138_v39 = vmul.f32 %v7524_v11, %v11334_v45 }
 0xb3e   :  { %v4780_v46 = vpop.xlane.xlu1 %4779  ;;  %v7528_v40 = vpop.eup %7527  ;;  %v3762_v10 = vadd.f32 1e-09, %v3745_v7  ;;  %5121 = vmatprep.mubr.f32.mxu0 %v4827_v31  ;;  %v4828_v8 = vmul.f32 %v7526_v48, %v11335_v29 }
 0xb3f   :  { %v4797_v16 = vadd.f32 1e-09, %v4780_v46  ;;  %v7530_v33 = vpop.eup %7529  ;;  %v3792_v38 = vmul.f32 %v7528_v40, %v11332_v56 }
 0xb40   :  { %v7532_v1 = vpop.eup %7531  ;;  %7539 = vrcp.f32 %v3762_v10  ;;  %v4482_v59 = vmul.f32 %v7530_v33, %v11333_v41 }
 0xb41   :  { %v7534_v17 = vpop.eup %7533  ;;  %7541 = vrcp.f32 %v4797_v16  ;;  %4977 = vmatmul.mubr.f32.gmra.mrb[136].mxu1 %v3792_v38  ;;  %v3747_v63 = vpop.xlane.xlu0 %3746  ;;  %v3793_v32 = vmul.f32 %v7532_v1, %v11336_v53 }
 0xb42   :  { %v4435_v54 = vpop.xlane.xlu1 %4434  ;;  %v3763_v42 = vadd.f32 1e-09, %v3747_v63  ;;  %5122 = vmatmul.mubr.f32.gmra.mrb[108].mxu0 %v4482_v59  ;;  %4981 = vmatprep.mubr.f32.mxu1 %v4138_v39  ;;  %7543 = vrcp.f32 %v4798_v35  ;;  %v4483_v43 = vmul.f32 %v7534_v17, %v11337_v9 }
 0xb43   :  { %v4452_v47 = vadd.f32 1e-09, %v4435_v54  ;;  %5126 = vmatprep.mubr.f32.mxu0 %v4828_v8 }
 0xb44   :  { %7545 = vrcp.f32 %v3763_v42 }
 0xb45   :  { %7547 = vrcp.f32 %v4452_v47  ;;  %4982 = vmatmul.mubr.f32.gmra.mrb[138].mxu1 %v3793_v32 }
 0xb46   :  { %v4437_v61 = vpop.xlane.xlu1 %4436  ;;  %v7536_v5 = vpop.eup %7535  ;;  %5127 = vmatmul.mubr.f32.gmra.mrb[110].mxu0 %v4483_v43 }
 0xb47   :  { %v4453_v55 = vadd.f32 1e-09, %v4437_v61  ;;  %v4139_v52 = vmul.f32 %v7536_v5, %v11338_v34  ;;  %v7538_v24 = vpop.eup %7537 }
 0xb48   :  { %v4140_v13 = vmul.f32 %v7538_v24, %v11341_v26 }
 0xb49   :  { %7549 = vrcp.f32 %v4453_v55  ;;  %4986 = vmatprep.mubr.f32.mxu1 %v4139_v52 }
 0xb4a   :  { %v7540_v51 = vpop.eup %7539 }
 0xb4b   :  { %v7542_v3 = vpop.eup %7541  ;;  %v3794_v60 = vmul.f32 %v7540_v51, %v11339_v27 }
 0xb4c   :  { %v4829_v19 = vmul.f32 %v7542_v3, %v11340_v18  ;;  %v7544_v30 = vpop.eup %7543 }
 0xb4d   :  { %4987 = vmatmul.mubr.f32.gmra.mrb[140].mxu1 %v3794_v60  ;;  %v4830_v49 = vmul.f32 %v7544_v30, %v11344_v4 }
 0xb4e   :  { %v7546_v36 = vpop.eup %7545  ;;  %5131 = vmatprep.mubr.f32.mxu0 %v4829_v19  ;;  %4991 = vmatprep.mubr.f32.mxu1 %v4140_v13 }
 0xb4f   :  { %v7548_v44 = vpop.eup %7547  ;;  %v3795_v25 = vmul.f32 %v7546_v36, %v11342_v28 }
 0xb50   :  { %v4484_v50 = vmul.f32 %v7548_v44, %v11343_v58 }
 0xb51   :  { %4992 = vmatmul.mubr.f32.gmra.mrb[142].mxu1 %v3795_v25 }
 0xb52   :  { %5132 = vmatmul.mubr.f32.gmra.mrb[112].mxu0 %v4484_v50 }
 0xb53   :  { %v7550_v12 = vpop.eup %7549  ;;  %5136 = vmatprep.mubr.f32.mxu0 %v4830_v49 }
 0xb54   :  { %v4485_v62 = vmul.f32 %v7550_v12, %v11345_v0 }
 0xb56   :  { %5137 = vmatmul.mubr.f32.gmra.mrb[114].mxu0 %v4485_v62 }
 0xbb4   :  { %v5977_v57 = vpop.f32.mrb[112].mxu1 }
 0xbb5   :  { %v6057_v6 = vpop.f32.mrb[84].mxu0  ;;  %v5978_v37 = vpop.f32.mrb[113].mxu1 }
 0xbb6   :  { %v5979_v2 = vadd.f32 %v5978_v37, %v5977_v57  ;;  %v6058_v15 = vpop.f32.mrb[85].mxu0 }
 0xbb7   :  { %v6059_v23 = vadd.f32 %v6058_v15, %v6057_v6 }
 0xbb8   :  { %v5980_v21 = vpop.f32.mrb[114].mxu1 }
 0xbb9   :  { %v5064_v20 = vadd.f32 %v6059_v23, %v5979_v2  ;;  %v6060_v14 = vpop.f32.mrb[86].mxu0  ;;  %v5981_v11 = vpop.f32.mrb[115].mxu1 }
 0xbba   :  { %v5982_v22 = vadd.f32 %v5981_v11, %v5980_v21  ;;  %v6061_v31 = vpop.f32.mrb[87].mxu0 }
 0xbbb   :  { %v6062_v48 = vadd.f32 %v6061_v31, %v6060_v14  ;;  %6473 = vmatprep.mubr.msk.f32.mxu1 %vm5157_vm6, %v5064_v20 }
 0xbbd   :  { %v5069_v7 = vadd.f32 %v6062_v48, %v5982_v22 }
 0xbbf   :  { %6474 = vmatmul.mubr.msk.f32.vlgmr.msra.gmra.mrb[144].mxu1 %vm5157_vm6, %v5069_v7 }
 0xbc4   :  { %v5983_v46 = vpop.f32.mrb[116].mxu1 }
 0xbc5   :  { %v6063_v40 = vpop.f32.mrb[88].mxu0  ;;  %v5984_v10 = vpop.f32.mrb[117].mxu1 }
 0xbc6   :  { %v5985_v16 = vadd.f32 %v5984_v10, %v5983_v46  ;;  %v6064_v33 = vpop.f32.mrb[89].mxu0 }
 0xbc7   :  { %v6065_v35 = vadd.f32 %v6064_v33, %v6063_v40 }
 0xbc8   :  { %v5986_v56 = vpop.f32.mrb[118].mxu1 }
 0xbc9   :  { %v5074_v38 = vadd.f32 %v6065_v35, %v5985_v16  ;;  %v6066_v1 = vpop.f32.mrb[90].mxu0  ;;  %v5987_v41 = vpop.f32.mrb[119].mxu1 }
 0xbca   :  { %v5988_v59 = vadd.f32 %v5987_v41, %v5986_v56  ;;  %v6067_v45 = vpop.f32.mrb[91].mxu0 }
 0xbcb   :  { %v6068_v39 = vadd.f32 %v6067_v45, %v6066_v1  ;;  %6476 = vmatprep.mubr.msk.f32.mxu1 %vm5157_vm6, %v5074_v38 }
 0xbcd   :  { %v5079_v17 = vadd.f32 %v6068_v39, %v5988_v59 }
 0xbcf   :  { %6477 = vmatmul.mubr.msk.f32.gmra.mrb[146].mxu1 %vm5157_vm6, %v5079_v17 }
 0xbd4   :  { %v5989_v63 = vpop.f32.mrb[120].mxu1 }
 0xbd5   :  { %v6069_v54 = vpop.f32.mrb[92].mxu0  ;;  %v5990_v29 = vpop.f32.mrb[121].mxu1 }
 0xbd6   :  { %v5991_v8 = vadd.f32 %v5990_v29, %v5989_v63  ;;  %v6070_v42 = vpop.f32.mrb[93].mxu0 }
 0xbd7   :  { %v6071_v47 = vadd.f32 %v6070_v42, %v6069_v54 }
 0xbd8   :  { %v5992_v53 = vpop.f32.mrb[122].mxu1 }
 0xbd9   :  { %v5084_v32 = vadd.f32 %v6071_v47, %v5991_v8  ;;  %v6072_v9 = vpop.f32.mrb[94].mxu0  ;;  %v5993_v43 = vpop.f32.mrb[123].mxu1 }
 0xbda   :  { %v5994_v61 = vadd.f32 %v5993_v43, %v5992_v53  ;;  %v6073_v5 = vpop.f32.mrb[95].mxu0 }
 0xbdb   :  { %v6074_v55 = vadd.f32 %v6073_v5, %v6072_v9  ;;  %6479 = vmatprep.mubr.msk.f32.mxu1 %vm5157_vm6, %v5084_v32 }
 0xbdd   :  { %v5089_v34 = vadd.f32 %v6074_v55, %v5994_v61 }
 0xbdf   :  { %6480 = vmatmul.mubr.msk.f32.gmra.mrb[148].mxu1 %vm5157_vm6, %v5089_v34 }
 0xbe4   :  { %v5995_v52 = vpop.f32.mrb[124].mxu1 }
 0xbe5   :  { %v6075_v24 = vpop.f32.mrb[96].mxu0  ;;  %v5996_v51 = vpop.f32.mrb[125].mxu1 }
 0xbe6   :  { %v5997_v3 = vadd.f32 %v5996_v51, %v5995_v52  ;;  %v6076_v27 = vpop.f32.mrb[97].mxu0 }
 0xbe7   :  { %v6077_v60 = vadd.f32 %v6076_v27, %v6075_v24 }
 0xbe8   :  { %v5998_v18 = vpop.f32.mrb[126].mxu1 }
 0xbe9   :  { %v5094_v19 = vadd.f32 %v6077_v60, %v5997_v3  ;;  %v6078_v26 = vpop.f32.mrb[98].mxu0  ;;  %v5999_v13 = vpop.f32.mrb[127].mxu1 }
 0xbea   :  { %v6000_v30 = vadd.f32 %v5999_v13, %v5998_v18  ;;  %v6079_v36 = vpop.f32.mrb[99].mxu0  ;;  %v5462_v18 = vld [vmem:[%s10875_s14] ss:$0 sm:$0xff] }
 0xbeb   :  { %v6080_v44 = vadd.f32 %v6079_v36, %v6078_v26  ;;  %6482 = vmatprep.mubr.msk.f32.mxu1 %vm5157_vm6, %v5094_v19 }
 0xbed   :  { %v5099_v28 = vadd.f32 %v6080_v44, %v6000_v30 }
 0xbef   :  { %6483 = vmatmul.mubr.msk.f32.gmra.mrb[150].mxu1 %vm5157_vm6, %v5099_v28 }
 0xbf4   :  { %v6001_v25 = vpop.f32.mrb[128].mxu1 }
 0xbf5   :  { %v6081_v58 = vpop.f32.mrb[100].mxu0  ;;  %v6002_v50 = vpop.f32.mrb[129].mxu1 }
 0xbf6   :  { %v6003_v4 = vadd.f32 %v6002_v50, %v6001_v25  ;;  %v6082_v49 = vpop.f32.mrb[101].mxu0 }
 0xbf7   :  { %v6083_v12 = vadd.f32 %v6082_v49, %v6081_v58 }
 0xbf8   :  { %v6004_v0 = vpop.f32.mrb[130].mxu1 }
 0xbf9   :  { %v5104_v62 = vadd.f32 %v6083_v12, %v6003_v4  ;;  %v6084_v57 = vpop.f32.mrb[102].mxu0  ;;  %v6005_v6 = vpop.f32.mrb[131].mxu1 }
 0xbfa   :  { %v6006_v37 = vadd.f32 %v6005_v6, %v6004_v0  ;;  %v6085_v2 = vpop.f32.mrb[103].mxu0 }
 0xbfb   :  { %v6086_v15 = vadd.f32 %v6085_v2, %v6084_v57  ;;  %6485 = vmatprep.mubr.msk.f32.mxu1 %vm5157_vm6, %v5104_v62 }
 0xbfd   :  { %v5109_v23 = vadd.f32 %v6086_v15, %v6006_v37 }
 0xbff   :  { %6486 = vmatmul.mubr.msk.f32.gmra.mrb[152].mxu1 %vm5157_vm6, %v5109_v23 }
 0xc04   :  { %v6007_v21 = vpop.f32.mrb[132].mxu1 }
 0xc05   :  { %v6087_v20 = vpop.f32.mrb[104].mxu0  ;;  %v6008_v14 = vpop.f32.mrb[133].mxu1 }
 0xc06   :  { %v6009_v11 = vadd.f32 %v6008_v14, %v6007_v21  ;;  %v6088_v22 = vpop.f32.mrb[105].mxu0 }
 0xc07   :  { %v6089_v31 = vadd.f32 %v6088_v22, %v6087_v20 }
 0xc08   :  { %v6010_v48 = vpop.f32.mrb[134].mxu1 }
 0xc09   :  { %v5114_v7 = vadd.f32 %v6089_v31, %v6009_v11  ;;  %v6090_v46 = vpop.f32.mrb[106].mxu0  ;;  %v6011_v40 = vpop.f32.mrb[135].mxu1 }
 0xc0a   :  { %v6012_v10 = vadd.f32 %v6011_v40, %v6010_v48  ;;  %v6091_v16 = vpop.f32.mrb[107].mxu0 }
 0xc0b   :  { %v6092_v33 = vadd.f32 %v6091_v16, %v6090_v46  ;;  %6488 = vmatprep.mubr.msk.f32.mxu1 %vm5157_vm6, %v5114_v7 }
 0xc0d   :  { %v5119_v35 = vadd.f32 %v6092_v33, %v6012_v10 }
 0xc0f   :  { %6489 = vmatmul.mubr.msk.f32.gmra.mrb[154].mxu1 %vm5157_vm6, %v5119_v35 }
 0xc14   :  { %v6013_v56 = vpop.f32.mrb[136].mxu1 }
 0xc15   :  { %v6093_v38 = vpop.f32.mrb[108].mxu0  ;;  %v6014_v1 = vpop.f32.mrb[137].mxu1 }
 0xc16   :  { %v6015_v41 = vadd.f32 %v6014_v1, %v6013_v56  ;;  %v6094_v59 = vpop.f32.mrb[109].mxu0 }
 0xc17   :  { %v6095_v45 = vadd.f32 %v6094_v59, %v6093_v38 }
 0xc18   :  { %v6016_v39 = vpop.f32.mrb[138].mxu1 }
 0xc19   :  { %v5124_v17 = vadd.f32 %v6095_v45, %v6015_v41  ;;  %v6096_v63 = vpop.f32.mrb[110].mxu0  ;;  %v6017_v54 = vpop.f32.mrb[139].mxu1 }
 0xc1a   :  { %v6018_v29 = vadd.f32 %v6017_v54, %v6016_v39  ;;  %v6097_v8 = vpop.f32.mrb[111].mxu0 }
 0xc1b   :  { %v6098_v42 = vadd.f32 %v6097_v8, %v6096_v63  ;;  %6491 = vmatprep.mubr.msk.f32.mxu1 %vm5157_vm6, %v5124_v17 }
 0xc1d   :  { %v5129_v47 = vadd.f32 %v6098_v42, %v6018_v29 }
 0xc1f   :  { %6492 = vmatmul.mubr.msk.f32.gmra.mrb[156].mxu1 %vm5157_vm6, %v5129_v47 }
 0xc20   :  { %v6019_v53 = vpop.f32.mrb[140].mxu1 }
 0xc21   :  { %v6020_v32 = vpop.f32.mrb[141].mxu1 }
 0xc22   :  { %v6021_v9 = vadd.f32 %v6020_v32, %v6019_v53 }
 0xc24   :  { %v6022_v43 = vpop.f32.mrb[142].mxu1 }
 0xc25   :  { %v6099_v61 = vpop.f32.mrb[112].mxu0  ;;  %v6023_v5 = vpop.f32.mrb[143].mxu1 }
 0xc26   :  { %v6024_v55 = vadd.f32 %v6023_v5, %v6022_v43  ;;  %v6100_v34 = vpop.f32.mrb[113].mxu0 }
 0xc27   :  { %v6101_v52 = vadd.f32 %v6100_v34, %v6099_v61 }
 0xc29   :  { %v5134_v24 = vadd.f32 %v6101_v52, %v6021_v9  ;;  %v6102_v51 = vpop.f32.mrb[114].mxu0 }
 0xc2a   :  { %v6103_v3 = vpop.f32.mrb[115].mxu0 }
 0xc2b   :  { %v6104_v27 = vadd.f32 %v6103_v3, %v6102_v51  ;;  %6494 = vmatprep.mubr.msk.f32.mxu1 %vm5157_vm6, %v5134_v24 }
 0xc2d   :  { %v5139_v60 = vadd.f32 %v6104_v27, %v6024_v55 }
 0xc2f   :  { %6495 = vmatmul.mubr.msk.f32.gmra.mrb[158].mxu1 %vm5157_vm6, %v5139_v60  ;;  %vm11361_vm6 = vmmov %vm11352_vm0 }
 0xc92   :  { %v6475_v19 = vpop.f32.mrb[144].mxu1 }
 0xc93   :  { %v5278_v26 = vadd.f32 %v6475_v19, %v5462_v18  ;;  %v5272_v13 = vpop.f32.mrb[145].mxu1 }
 0xc94   :  { %v5273_v30 = vadd.f32 %v5462_v18, %v5272_v13 }
 0xc95   :  { %5352 = vst.msk [vmem:[%s10876_s17 + $0x8] sm:$0xff] %vm11346_vm4, %v5278_v26 }
 0xc96   :  { %5351 = vst.msk [vmem:[%s10876_s17] sm:$0xff] %vm11347_vm3, %v5273_v30 }
 0xca2   :  { %v6478_v36 = vpop.f32.mrb[146].mxu1 }
 0xca3   :  { %v5288_v44 = vadd.f32 %v6478_v36, %v5462_v18  ;;  %v5282_v28 = vpop.f32.mrb[147].mxu1 }
 0xca4   :  { %v5283_v25 = vadd.f32 %v5462_v18, %v5282_v28 }
 0xca5   :  { %5354 = vst.msk [vmem:[%s10876_s17 + $0x18] sm:$0xff] %vm11348_vm7, %v5288_v44 }
 0xca6   :  { %5353 = vst.msk [vmem:[%s10876_s17 + $0x10] sm:$0xff] %vm11349_vm14, %v5283_v25 }
 0xcb2   :  { %v6481_v58 = vpop.f32.mrb[148].mxu1 }
 0xcb3   :  { %v5298_v50 = vadd.f32 %v6481_v58, %v5462_v18  ;;  %v5292_v4 = vpop.f32.mrb[149].mxu1 }
 0xcb4   :  { %v5293_v49 = vadd.f32 %v5462_v18, %v5292_v4 }
 0xcb5   :  { %5356 = vst.msk [vmem:[%s10876_s17 + $0x28] sm:$0xff] %vm11350_vm13, %v5298_v50 }
 0xcb6   :  { %5355 = vst.msk [vmem:[%s10876_s17 + $0x20] sm:$0xff] %vm11351_vm9, %v5293_v49 }
 0xcc2   :  { %v6484_v12 = vpop.f32.mrb[150].mxu1 }
 0xcc3   :  { %v5308_v0 = vadd.f32 %v6484_v12, %v5462_v18  ;;  %v5302_v62 = vpop.f32.mrb[151].mxu1 }
 0xcc4   :  { %v5303_v57 = vadd.f32 %v5462_v18, %v5302_v62 }
 0xcc5   :  { %5358 = vst.msk [vmem:[%s10876_s17 + $0x38] sm:$0xff] %vm11352_vm0, %v5308_v0 }
 0xcc6   :  { %5357 = vst.msk [vmem:[%s10876_s17 + $0x30] sm:$0xff] %vm11353_vm11, %v5303_v57 }
 0xcd2   :  { %v6487_v6 = vpop.f32.mrb[152].mxu1 }
 0xcd3   :  { %v5318_v37 = vadd.f32 %v6487_v6, %v5462_v18  ;;  %v5312_v2 = vpop.f32.mrb[153].mxu1 }
 0xcd4   :  { %v5313_v15 = vadd.f32 %v5462_v18, %v5312_v2 }
 0xcd5   :  { %5360 = vst.msk [vmem:[%s10876_s17 + $0x48] sm:$0xff] %vm11354_vm1, %v5318_v37 }
 0xcd6   :  { %5359 = vst.msk [vmem:[%s10876_s17 + $0x40] sm:$0xff] %vm11355_vm15, %v5313_v15 }
 0xce2   :  { %v6490_v23 = vpop.f32.mrb[154].mxu1 }
 0xce3   :  { %v5328_v21 = vadd.f32 %v6490_v23, %v5462_v18  ;;  %v5322_v20 = vpop.f32.mrb[155].mxu1 }
 0xce4   :  { %v5323_v14 = vadd.f32 %v5462_v18, %v5322_v20 }
 0xce5   :  { %5362 = vst.msk [vmem:[%s10876_s17 + $0x58] sm:$0xff] %vm11356_vm8, %v5328_v21 }
 0xce6   :  { %5361 = vst.msk [vmem:[%s10876_s17 + $0x50] sm:$0xff] %vm11357_vm10, %v5323_v14 }
 0xcf2   :  { %v6493_v11 = vpop.f32.mrb[156].mxu1 }
 0xcf3   :  { %v5338_v22 = vadd.f32 %v6493_v11, %v5462_v18  ;;  %v5332_v31 = vpop.f32.mrb[157].mxu1 }
 0xcf4   :  { %v5333_v48 = vadd.f32 %v5462_v18, %v5332_v31 }
 0xcf5   :  { %5364 = vst.msk [vmem:[%s10876_s17 + $0x68] sm:$0xff] %vm11358_vm2, %v5338_v22 }
 0xcf6   :  { %5363 = vst.msk [vmem:[%s10876_s17 + $0x60] sm:$0xff] %vm11359_vm12, %v5333_v48 }
 0xd02   :  { %v6496_v7 = vpop.f32.mrb[158].mxu1 }
 0xd03   :  { %v5348_v46 = vadd.f32 %v6496_v7, %v5462_v18  ;;  %v5342_v40 = vpop.f32.mrb[159].mxu1 }
 0xd04   :  { %v5343_v10 = vadd.f32 %v5462_v18, %v5342_v40 }
 0xd05   :  { %5366 = vst.msk [vmem:[%s10876_s17 + $0x78] sm:$0xff] %vm11360_vm5, %v5348_v46 }
 0xd06   :  { %5365 = vst.msk [vmem:[%s10876_s17 + $0x70] sm:$0xff] %vm11361_vm6, %v5343_v10 }

</bundles_post_ra>
